<compile_context>
chip_gen: v6e
topology: v6e:2x2x1
jax: 0.10.0
libtpu: 0.0.40
codegen_flags: <defaults>
</compile_context>

<pallas_src>
import jax
import jax.numpy as jnp
from jax.experimental import pallas as pl
from jax.experimental.pallas import tpu as pltpu

BN_EPS = 1e-5

_VMEM_LIMIT_CACHE = None


def _vmem_limit():
    """~3/4 of physical per-core VMEM: ~48 MiB on v7x, ~96 MiB on v5e/v6e."""
    global _VMEM_LIMIT_CACHE
    if _VMEM_LIMIT_CACHE is None:
        try:
            cap = pltpu.get_tpu_info().vmem_capacity_bytes
            _VMEM_LIMIT_CACHE = int(cap * 3 // 4)
        except Exception:
            _VMEM_LIMIT_CACHE = 48 * 1024 * 1024
    return _VMEM_LIMIT_CACHE


def _cparams(ndims=1):
    return pltpu.CompilerParams(
        dimension_semantics=("parallel",) * ndims,
        vmem_limit_bytes=_vmem_limit(),
    )


def _const_spec(shape):
    """Grid-invariant operand (weights / folded BN): index_map -> all zeros.
    TODO(synk): add pipeline_mode=pl.Buffered(1) (single-buffer) for these on
    v7x once that kwarg is available in the deployed JAX version."""
    zeros = (0,) * len(shape)
    return pl.BlockSpec(shape, lambda *_: zeros)


def _tile_m(m, target=1024):
    """M tile for the 1x1 path: large (HBM roofline knee is ~512-1024 rows),
    multiple of 8, exact divisor if one exists, else ragged last block."""
    if m <= target:
        return m
    t = min(target, m)
    t -= t % 8
    for tm in range(t, 7, -8):
        if m % tm == 0:
            return tm
    return t  # ragged last block: Pallas masks the out-of-range writes


# ----------------------------- Pallas kernels -----------------------------

def _scale0_shortcut_kernel(x_ref, s0_ref, b0_ref, ssc_ref, bsc_ref,
                            w0_ref, wsc_ref, o_ref):
    # Fused scale0 (BN->ReLU->1x1) and shortcut (BN->ReLU->1x1) from the same
    # x tile; results stored as one lane-dense [x_ | shortcut] block.
    xv = x_ref[...]
    a0 = jnp.maximum(xv * s0_ref[...] + b0_ref[...], 0.0).astype(jnp.bfloat16)
    asc = jnp.maximum(xv * ssc_ref[...] + bsc_ref[...], 0.0).astype(jnp.bfloat16)
    x_out = jnp.dot(a0, w0_ref[...], preferred_element_type=jnp.float32)
    sc_out = jnp.dot(asc, wsc_ref[...], preferred_element_type=jnp.float32)
    o_ref[...] = jnp.concatenate([x_out, sc_out], axis=-1)


def _make_tail_kernel(H, W, bp, cout):
    c4 = 4 * bp
    HW = H * W

    def kernel(b1_ref, b2_ref, b3_ref, y4_ref, xs_ref,
               sps_ref, spb_ref, w_ref,
               csx_ref, cbx_ref, css_ref, cbs_ref, cwx_ref, cws_ref,
               o_ref, pad_ref, acc_ref):
        xsv = xs_ref[0]                                  # (H, W, bp+cout)
        xg = xsv[..., :bp]                               # (H, W, bp)
        shortcut = xsv[..., bp:]                         # (H, W, cout)

        # (branch_g + x_) -> scale_process BN + ReLU, per group (no x tile,
        # no HBM concat of the branches, 1x1 branch broadcast here).
        y4v = y4_ref[...].reshape(1, 1, bp)
        brs = (b1_ref[0], b2_ref[0], b3_ref[0], y4v)
        groups = [jnp.maximum((brs[g] + xg) * sps_ref[g] + spb_ref[g], 0.0)
                  for g in range(4)]
        act = jnp.concatenate(groups, axis=-1)           # (H, W, 4bp)

        # Zero only the 1-px halo border each step (interior fully overwritten
        # below).  Not gated on program_id==0: with "parallel" semantics each
        # megacore TC has its own scratch and would miss a one-shot init.
        pad_ref[0:1, :, :] = jnp.zeros((1, W + 2, c4), jnp.float32)
        pad_ref[H + 1:H + 2, :, :] = jnp.zeros((1, W + 2, c4), jnp.float32)
        pad_ref[:, 0:1, :] = jnp.zeros((H + 2, 1, c4), jnp.float32)
        pad_ref[:, W + 1:W + 2, :] = jnp.zeros((H + 2, 1, c4), jnp.float32)
        pad_ref[1:H + 1, 1:W + 1, :] = act

        # 3 dx-shifted column views, cast to bf16 once, reused for 3 dy row
        # slices each (leading-dim selects are cheap) -> 3 strided gathers
        # instead of 9.
        cols = [pad_ref[:, dx:dx + W, :].astype(jnp.bfloat16) for dx in range(3)]

        # Grouped 3x3 conv as 9 block-diagonal (c4,c4) matmuls, accumulated in
        # an f32 VMEM scratch (keeps live vregs small at real PIDNet sizes).
        # TODO(synk): on v5e (128x128 MXU) per-group (bp,bp) dots would halve
        # MXU passes; block-diagonal kept for v6e/v7x weight residency.
        for tap in range(9):
            dy, dx = tap // 3, tap % 3
            win = cols[dx][dy:dy + H].reshape(HW, c4)
            p = jnp.dot(win, w_ref[tap], preferred_element_type=jnp.float32)
            if tap == 0:
                acc_ref[...] = p
            else:
                acc_ref[...] += p

        # Fused compression(cat([x_, scale_out])) + shortcut: the concat is
        # replaced by split-weight dots; scale_out never leaves VMEM.
        a_x = jnp.maximum(xg.reshape(HW, bp) * csx_ref[...] + cbx_ref[...],
                          0.0).astype(jnp.bfloat16)
        a_s = jnp.maximum(acc_ref[...] * css_ref[...] + cbs_ref[...],
                          0.0).astype(jnp.bfloat16)
        o_ref[...] = (jnp.dot(a_x, cwx_ref[...], preferred_element_type=jnp.float32)
                      + jnp.dot(a_s, cws_ref[...], preferred_element_type=jnp.float32)
                      + shortcut.reshape(HW, cout))

    return kernel


# --------------------------- pallas_call wrappers ---------------------------

def scale0_shortcut(x2d, s0, b0, ssc, bsc, w0, wsc):
    m, cin = x2d.shape
    bp = w0.shape[1]
    cout = wsc.shape[1]
    tm = _tile_m(m)
    row = lambda i: (i, 0)
    return pl.pallas_call(
        _scale0_shortcut_kernel,
        grid=(pl.cdiv(m, tm),),
        in_specs=[pl.BlockSpec((tm, cin), row),
                  _const_spec((1, cin)),
                  _const_spec((1, cin)),
                  _const_spec((1, cin)),
                  _const_spec((1, cin)),
                  _const_spec((cin, bp)),
                  _const_spec((cin, cout))],
        out_specs=pl.BlockSpec((tm, bp + cout), row),
        out_shape=jax.ShapeDtypeStruct((m, bp + cout), jnp.float32),
        compiler_params=_cparams(1),
    )(x2d, s0, b0, ssc, bsc, w0, wsc)


def fused_tail(b1, b2, b3, y4, xs4, sps, spb, w_bd,
               csx, cbx, css, cbs, cwx, cws):
    # TODO(synk): for v7x add a row-block spatial grid axis (with halo rows per
    # block) so n=1 workloads still use both TensorCores and overlap DMA.
    n, H, W, bp = b1.shape
    c4 = 4 * bp
    cout = cws.shape[1]
    HW = H * W
    kernel = _make_tail_kernel(H, W, bp, cout)
    img = lambda b: (b, 0, 0, 0)
    rowb = lambda b: (b, 0)
    return pl.pallas_call(
        kernel,
        grid=(n,),
        in_specs=[pl.BlockSpec((1, H, W, bp), img),
                  pl.BlockSpec((1, H, W, bp), img),
                  pl.BlockSpec((1, H, W, bp), img),
                  pl.BlockSpec((1, 1, 1, bp), img),
                  pl.BlockSpec((1, H, W, bp + cout), img),
                  _const_spec((4, bp)),
                  _const_spec((4, bp)),
                  _const_spec((9, c4, c4)),
                  _const_spec((1, bp)),
                  _const_spec((1, bp)),
                  _const_spec((1, c4)),
                  _const_spec((1, c4)),
                  _const_spec((bp, cout)),
                  _const_spec((c4, cout))],
        out_specs=pl.BlockSpec((HW, cout), rowb),
        out_shape=jax.ShapeDtypeStruct((n * HW, cout), jnp.float32),
        scratch_shapes=[pltpu.VMEM((H + 2, W + 2, c4), jnp.float32),
                        pltpu.VMEM((HW, c4), jnp.float32)],
        compiler_params=_cparams(1),
    )(b1, b2, b3, y4, xs4, sps, spb, w_bd, csx, cbx, css, cbs, cwx, cws)


# ------------------------------ JAX glue ------------------------------
# TODO(synk): pooled branches (tiny spatial sizes) and bilinear resize are left
# to XLA on purpose - per-pallas_call overhead dominates at those sizes.

def avg_pool(x_nhwc, k, s, p):
    # PyTorch AvgPool2d(k, s, p), count_include_pad=True
    summed = jax.lax.reduce_window(
        x_nhwc, 0.0, jax.lax.add,
        window_dimensions=(1, k, k, 1),
        window_strides=(1, s, s, 1),
        padding=((0, 0), (p, p), (p, p), (0, 0)))
    return summed / float(k * k)


def bilinear_resize(x, H, W):
    # F.interpolate(mode='bilinear', align_corners=False), NHWC input
    n, h, w, c = x.shape
    if h == H and w == W:
        return x
    ys = jnp.maximum((jnp.arange(H, dtype=jnp.float32) + 0.5) * (h / H) - 0.5, 0.0)
    xs = jnp.maximum((jnp.arange(W, dtype=jnp.float32) + 0.5) * (w / W) - 0.5, 0.0)
    y0 = jnp.floor(ys).astype(jnp.int32)
    x0 = jnp.floor(xs).astype(jnp.int32)
    y1 = jnp.minimum(y0 + 1, h - 1)
    x1 = jnp.minimum(x0 + 1, w - 1)
    wy = (ys - y0.astype(jnp.float32))[None, :, None, None]
    wx = (xs - x0.astype(jnp.float32))[None, None, :, None]
    g00 = x[:, y0][:, :, x0]
    g01 = x[:, y0][:, :, x1]
    g10 = x[:, y1][:, :, x0]
    g11 = x[:, y1][:, :, x1]
    top = g00 * (1.0 - wx) + g01 * wx
    bot = g10 * (1.0 - wx) + g11 * wx
    return top * (1.0 - wy) + bot * wy


def _bn_relu_conv1x1_jnp(x_nhwc, scale, bias, w):
    a = jnp.maximum(x_nhwc * scale.reshape(1, 1, 1, -1)
                    + bias.reshape(1, 1, 1, -1), 0.0)
    return jnp.einsum('nhwc,cd->nhwd', a, w)


# ------------------------------ parameters ------------------------------

def _bn_fold(key, c):
    k1, k2, k3, k4 = jax.random.split(key, 4)
    gamma = jax.random.uniform(k1, (c,), minval=0.5, maxval=1.5)
    beta = 0.1 * jax.random.normal(k2, (c,))
    mean = 0.1 * jax.random.normal(k3, (c,))
    var = jax.random.uniform(k4, (c,), minval=0.5, maxval=1.5)
    scale = gamma / jnp.sqrt(var + BN_EPS)
    bias = beta - mean * scale
    return (scale.reshape(1, c).astype(jnp.float32),
            bias.reshape(1, c).astype(jnp.float32))


def init_params(key, inplanes, bp, outplanes):
    keys = jax.random.split(key, 16)

    def conv1x1(k, cin, cout):
        return 0.05 * jax.random.normal(k, (cin, cout), dtype=jnp.float32)

    params = {}
    # pooled branches (consumed by plain JAX, weights stay f32)
    for i, name in enumerate(["scale1", "scale2", "scale3", "scale4"]):
        s, b = _bn_fold(keys[2 * i], inplanes)
        params[name] = (s, b, conv1x1(keys[2 * i + 1], inplanes, bp))

    # scale0 / shortcut (Pallas kernel 1): weights pre-cast to bf16 at init
    s, b = _bn_fold(keys[8], inplanes)
    params["scale0"] = (s, b, conv1x1(keys[9], inplanes, bp).astype(jnp.bfloat16))
    s, b = _bn_fold(keys[10], inplanes)
    params["shortcut"] = (s, b,
                          conv1x1(keys[11], inplanes, outplanes).astype(jnp.bfloat16))

    # scale_process BN (4*bp channels) as per-group rows (4, bp)
    s, b = _bn_fold(keys[12], 4 * bp)
    params["sp_scale"] = s.reshape(4, bp)
    params["sp_bias"] = b.reshape(4, bp)

    # grouped 3x3 conv: per-tap block-diagonal weights, pre-cast to bf16.
    # (NOTE: not the PyTorch Conv2d (groups=4) weight layout; loading real
    #  weights requires a documented permutation into this layout.)
    wg = 0.05 * jax.random.normal(keys[13], (9, 4, bp, bp), dtype=jnp.float32)
    w_bd = jnp.zeros((9, 4 * bp, 4 * bp), jnp.float32)
    for g in range(4):
        w_bd = w_bd.at[:, g * bp:(g + 1) * bp, g * bp:(g + 1) * bp].set(wg[:, g])
    params["sp_w_bd"] = w_bd.astype(jnp.bfloat16)

    # compression BN (5*bp) + weight (5*bp, outplanes), pre-split into the
    # x_ part (first bp channels) and the scale_out part (last 4*bp channels)
    s, b = _bn_fold(keys[14], 5 * bp)
    cw = conv1x1(keys[15], 5 * bp, outplanes)
    params["comp"] = (s[:, :bp], b[:, :bp], s[:, bp:], b[:, bp:],
                      cw[:bp].astype(jnp.bfloat16), cw[bp:].astype(jnp.bfloat16))
    return params


# ------------------------------ forward ------------------------------

def pappm_forward(x_nchw, params):
    n, cin, H, W = x_nchw.shape
    bp = params["sp_scale"].shape[1]
    cout = params["shortcut"][2].shape[1]
    m = n * H * W

    x = jnp.transpose(x_nchw, (0, 2, 3, 1)).astype(jnp.float32)   # NHWC
    x2d = x.reshape(m, cin)

    # scale0 + shortcut fused (one read of x, one lane-dense [x_|shortcut] store)
    s0, b0, w0 = params["scale0"]
    ssc, bsc, wsc = params["shortcut"]
    xs = scale0_shortcut(x2d, s0, b0, ssc, bsc, w0, wsc)           # (m, bp+cout)

    # pooled branches (tiny spatial sizes) in plain JAX
    y1 = _bn_relu_conv1x1_jnp(avg_pool(x, 5, 2, 2), *params["scale1"])
    y2 = _bn_relu_conv1x1_jnp(avg_pool(x, 9, 4, 4), *params["scale2"])
    y3 = _bn_relu_conv1x1_jnp(avg_pool(x, 17, 8, 8), *params["scale3"])
    y4 = _bn_relu_conv1x1_jnp(jnp.mean(x, axis=(1, 2), keepdims=True),
                              *params["scale4"])                   # (n,1,1,bp)

    b1 = bilinear_resize(y1, H, W)
    b2 = bilinear_resize(y2, H, W)
    b3 = bilinear_resize(y3, H, W)
    # y4's "resize" (1x1 -> HxW) is a broadcast done inside the tail kernel.

    xs4 = xs.reshape(n, H, W, bp + cout)
    csx, cbx, css, cbs, cwx, cws = params["comp"]
    out2d = fused_tail(b1, b2, b3, y4, xs4,
                       params["sp_scale"], params["sp_bias"], params["sp_w_bd"],
                       csx, cbx, css, cbs, cwx, cws)               # (m, cout)

    out = out2d.reshape(n, H, W, cout)
    return jnp.transpose(out, (0, 3, 1, 2))                        # NCHW


if __name__ == "__main__":
    N, inplanes, H, W = 2, 16, 16, 16
    branch_planes, outplanes = 8, 32

    key = jax.random.PRNGKey(0)
    kx, kp = jax.random.split(key)
    x = jax.random.normal(kx, (N, inplanes, H, W), dtype=jnp.float32)
    params = init_params(kp, inplanes, branch_planes, outplanes)

    fwd = jax.jit(pappm_forward)
    out = jax.block_until_ready(fwd(x, params))
    assert out.shape == (N, outplanes, H, W)
    assert bool(jnp.all(jnp.isfinite(out)))
    print("KERNEL_OK")
</pallas_src>

<mosaic_0001>
module attributes {stable_mosaic.version = 11 : i64} {
  func.func @_scale0_shortcut_kernel(%arg0: i32, %arg1: memref<512x16xf32, #tpu.memory_space<vmem>>, %arg2: memref<1x16xf32, #tpu.memory_space<vmem>>, %arg3: memref<1x16xf32, #tpu.memory_space<vmem>>, %arg4: memref<1x16xf32, #tpu.memory_space<vmem>>, %arg5: memref<1x16xf32, #tpu.memory_space<vmem>>, %arg6: memref<16x8xbf16, #tpu.memory_space<vmem>>, %arg7: memref<16x32xbf16, #tpu.memory_space<vmem>>, %arg8: memref<512x40xf32, #tpu.memory_space<vmem>>) attributes {dimension_semantics = [#tpu.dimension_semantics<parallel>], iteration_bounds = array<i64: 1>, scalar_prefetch = 0 : i64, scratch_operands = 0 : i64, tpu.core_type = #tpu.core_type<tc>, window_params = [{transform_indices = @transform_0, window_bounds = array<i64: 512, 16>}, {pipeline_mode = #tpu.pipeline_mode<synchronous>, transform_indices = @transform_1, window_bounds = array<i64: 1, 16>}, {pipeline_mode = #tpu.pipeline_mode<synchronous>, transform_indices = @transform_2, window_bounds = array<i64: 1, 16>}, {pipeline_mode = #tpu.pipeline_mode<synchronous>, transform_indices = @transform_3, window_bounds = array<i64: 1, 16>}, {pipeline_mode = #tpu.pipeline_mode<synchronous>, transform_indices = @transform_4, window_bounds = array<i64: 1, 16>}, {pipeline_mode = #tpu.pipeline_mode<synchronous>, transform_indices = @transform_5, window_bounds = array<i64: 16, 8>}, {pipeline_mode = #tpu.pipeline_mode<synchronous>, transform_indices = @transform_6, window_bounds = array<i64: 16, 32>}, {transform_indices = @transform_7, window_bounds = array<i64: 512, 40>}]} {
    %c0 = arith.constant 0 : index
    %c0_0 = arith.constant 0 : index
    %0 = vector.load %arg1[%c0, %c0_0] : memref<512x16xf32, #tpu.memory_space<vmem>>, vector<512x16xf32>
    %c0_1 = arith.constant 0 : index
    %c0_2 = arith.constant 0 : index
    %1 = vector.load %arg2[%c0_1, %c0_2] : memref<1x16xf32, #tpu.memory_space<vmem>>, vector<1x16xf32>
    %2 = vector.broadcast %1 : vector<1x16xf32> to vector<512x16xf32>
    %3 = arith.mulf %0, %2 : vector<512x16xf32>
    %c0_3 = arith.constant 0 : index
    %c0_4 = arith.constant 0 : index
    %4 = vector.load %arg3[%c0_3, %c0_4] : memref<1x16xf32, #tpu.memory_space<vmem>>, vector<1x16xf32>
    %5 = vector.broadcast %4 : vector<1x16xf32> to vector<512x16xf32>
    %6 = arith.addf %3, %5 : vector<512x16xf32>
    %cst = arith.constant 0.000000e+00 : f32
    %7 = vector.broadcast %cst : f32 to vector<512x16xf32>
    %8 = arith.maximumf %6, %7 : vector<512x16xf32>
    %9 = arith.truncf %8 : vector<512x16xf32> to vector<512x16xbf16>
    %c0_5 = arith.constant 0 : index
    %c0_6 = arith.constant 0 : index
    %10 = vector.load %arg4[%c0_5, %c0_6] : memref<1x16xf32, #tpu.memory_space<vmem>>, vector<1x16xf32>
    %11 = vector.broadcast %10 : vector<1x16xf32> to vector<512x16xf32>
    %12 = arith.mulf %0, %11 : vector<512x16xf32>
    %c0_7 = arith.constant 0 : index
    %c0_8 = arith.constant 0 : index
    %13 = vector.load %arg5[%c0_7, %c0_8] : memref<1x16xf32, #tpu.memory_space<vmem>>, vector<1x16xf32>
    %14 = vector.broadcast %13 : vector<1x16xf32> to vector<512x16xf32>
    %15 = arith.addf %12, %14 : vector<512x16xf32>
    %cst_9 = arith.constant 0.000000e+00 : f32
    %16 = vector.broadcast %cst_9 : f32 to vector<512x16xf32>
    %17 = arith.maximumf %15, %16 : vector<512x16xf32>
    %18 = arith.truncf %17 : vector<512x16xf32> to vector<512x16xbf16>
    %c0_10 = arith.constant 0 : index
    %c0_11 = arith.constant 0 : index
    %19 = vector.load %arg6[%c0_10, %c0_11] : memref<16x8xbf16, #tpu.memory_space<vmem>>, vector<16x8xbf16>
    %cst_12 = arith.constant dense<0.000000e+00> : vector<512x8xf32>
    %20 = tpu.matmul %9, %19, %cst_12 {dimension_numbers = #tpu.dot_dimension_numbers<[1], [0], [0], [1], [0, 0, 1, 1], [], []>} : vector<512x16xbf16>, vector<16x8xbf16>, vector<512x8xf32> -> vector<512x8xf32>
    %c0_13 = arith.constant 0 : index
    %c0_14 = arith.constant 0 : index
    %21 = vector.load %arg7[%c0_13, %c0_14] : memref<16x32xbf16, #tpu.memory_space<vmem>>, vector<16x32xbf16>
    %cst_15 = arith.constant dense<0.000000e+00> : vector<512x32xf32>
    %22 = tpu.matmul %18, %21, %cst_15 {dimension_numbers = #tpu.dot_dimension_numbers<[1], [0], [0], [1], [0, 0, 1, 1], [], []>} : vector<512x16xbf16>, vector<16x32xbf16>, vector<512x32xf32> -> vector<512x32xf32>
    %23 = tpu.concatenate %20, %22 in 1 : vector<512x8xf32>, vector<512x32xf32> -> vector<512x40xf32>
    %c0_16 = arith.constant 0 : index
    %c0_17 = arith.constant 0 : index
    %24 = vector.load %arg8[%c0_16, %c0_17] : memref<512x40xf32, #tpu.memory_space<vmem>>, vector<512x40xf32>
    tpu.vector_store %arg8[%c0_16, %c0_17], %23 {strides = array<i32>} : memref<512x40xf32, #tpu.memory_space<vmem>>, vector<512x40xf32>,
    return
  }
  func.func @transform_0(%arg0: i32) -> (i32, i32) {
    %c0_i32 = arith.constant 0 : i32
    %c0_i32_0 = arith.constant 0 : i32
    return %arg0, %c0_i32 : i32, i32
  }
  func.func @transform_1(%arg0: i32) -> (i32, i32) {
    %c0_i32 = arith.constant 0 : i32
    %c0_i32_0 = arith.constant 0 : i32
    %c0_i32_1 = arith.constant 0 : i32
    return %c0_i32, %c0_i32_0 : i32, i32
  }
  func.func @transform_2(%arg0: i32) -> (i32, i32) {
    %c0_i32 = arith.constant 0 : i32
    %c0_i32_0 = arith.constant 0 : i32
    %c0_i32_1 = arith.constant 0 : i32
    return %c0_i32, %c0_i32_0 : i32, i32
  }
  func.func @transform_3(%arg0: i32) -> (i32, i32) {
    %c0_i32 = arith.constant 0 : i32
    %c0_i32_0 = arith.constant 0 : i32
    %c0_i32_1 = arith.constant 0 : i32
    return %c0_i32, %c0_i32_0 : i32, i32
  }
  func.func @transform_4(%arg0: i32) -> (i32, i32) {
    %c0_i32 = arith.constant 0 : i32
    %c0_i32_0 = arith.constant 0 : i32
    %c0_i32_1 = arith.constant 0 : i32
    return %c0_i32, %c0_i32_0 : i32, i32
  }
  func.func @transform_5(%arg0: i32) -> (i32, i32) {
    %c0_i32 = arith.constant 0 : i32
    %c0_i32_0 = arith.constant 0 : i32
    %c0_i32_1 = arith.constant 0 : i32
    return %c0_i32, %c0_i32_0 : i32, i32
  }
  func.func @transform_6(%arg0: i32) -> (i32, i32) {
    %c0_i32 = arith.constant 0 : i32
    %c0_i32_0 = arith.constant 0 : i32
    %c0_i32_1 = arith.constant 0 : i32
    return %c0_i32, %c0_i32_0 : i32, i32
  }
  func.func @transform_7(%arg0: i32) -> (i32, i32) {
    %c0_i32 = arith.constant 0 : i32
    %c0_i32_0 = arith.constant 0 : i32
    return %arg0, %c0_i32 : i32, i32
  }
}

module attributes {stable_mosaic.version = 11 : i64} {
  func.func @kernel(%arg0: i32, %arg1: memref<1x16x16x8xf32, #tpu.memory_space<vmem>>, %arg2: memref<1x16x16x8xf32, #tpu.memory_space<vmem>>, %arg3: memref<1x16x16x8xf32, #tpu.memory_space<vmem>>, %arg4: memref<1x1x1x8xf32, #tpu.memory_space<vmem>>, %arg5: memref<1x16x16x40xf32, #tpu.memory_space<vmem>>, %arg6: memref<4x8xf32, #tpu.memory_space<vmem>>, %arg7: memref<4x8xf32, #tpu.memory_space<vmem>>, %arg8: memref<9x32x32xbf16, #tpu.memory_space<vmem>>, %arg9: memref<1x8xf32, #tpu.memory_space<vmem>>, %arg10: memref<1x8xf32, #tpu.memory_space<vmem>>, %arg11: memref<1x32xf32, #tpu.memory_space<vmem>>, %arg12: memref<1x32xf32, #tpu.memory_space<vmem>>, %arg13: memref<8x32xbf16, #tpu.memory_space<vmem>>, %arg14: memref<32x32xbf16, #tpu.memory_space<vmem>>, %arg15: memref<256x32xf32, #tpu.memory_space<vmem>>, %arg16: memref<18x18x32xf32, #tpu.memory_space<vmem>>, %arg17: memref<256x32xf32, #tpu.memory_space<vmem>>) attributes {dimension_semantics = [#tpu.dimension_semantics<parallel>], iteration_bounds = array<i64: 2>, scalar_prefetch = 0 : i64, scratch_operands = 2 : i64, tpu.core_type = #tpu.core_type<tc>, window_params = [{transform_indices = @transform_0, window_bounds = array<i64: 1, 16, 16, 8>}, {transform_indices = @transform_1, window_bounds = array<i64: 1, 16, 16, 8>}, {transform_indices = @transform_2, window_bounds = array<i64: 1, 16, 16, 8>}, {transform_indices = @transform_3, window_bounds = array<i64: 1, 1, 1, 8>}, {transform_indices = @transform_4, window_bounds = array<i64: 1, 16, 16, 40>}, {pipeline_mode = #tpu.pipeline_mode<synchronous>, transform_indices = @transform_5, window_bounds = array<i64: 4, 8>}, {pipeline_mode = #tpu.pipeline_mode<synchronous>, transform_indices = @transform_6, window_bounds = array<i64: 4, 8>}, {pipeline_mode = #tpu.pipeline_mode<synchronous>, transform_indices = @transform_7, window_bounds = array<i64: 9, 32, 32>}, {pipeline_mode = #tpu.pipeline_mode<synchronous>, transform_indices = @transform_8, window_bounds = array<i64: 1, 8>}, {pipeline_mode = #tpu.pipeline_mode<synchronous>, transform_indices = @transform_9, window_bounds = array<i64: 1, 8>}, {pipeline_mode = #tpu.pipeline_mode<synchronous>, transform_indices = @transform_10, window_bounds = array<i64: 1, 32>}, {pipeline_mode = #tpu.pipeline_mode<synchronous>, transform_indices = @transform_11, window_bounds = array<i64: 1, 32>}, {pipeline_mode = #tpu.pipeline_mode<synchronous>, transform_indices = @transform_12, window_bounds = array<i64: 8, 32>}, {pipeline_mode = #tpu.pipeline_mode<synchronous>, transform_indices = @transform_13, window_bounds = array<i64: 32, 32>}, {transform_indices = @transform_14, window_bounds = array<i64: 256, 32>}]} {
    %c0 = arith.constant 0 : index
    %c0_0 = arith.constant 0 : index
    %c0_1 = arith.constant 0 : index
    %c0_2 = arith.constant 0 : index
    %0 = vector.load %arg5[%c0, %c0_0, %c0_1, %c0_2] : memref<1x16x16x40xf32, #tpu.memory_space<vmem>>, vector<1x16x16x40xf32>
    %1 = vector.shape_cast %0 : vector<1x16x16x40xf32> to vector<16x16x40xf32>
    %2 = vector.extract_strided_slice %1 {offsets = [0, 0, 0], sizes = [16, 16, 8], strides = [1, 1, 1]} : vector<16x16x40xf32> to vector<16x16x8xf32>
    %3 = vector.extract_strided_slice %1 {offsets = [0, 0, 8], sizes = [16, 16, 32], strides = [1, 1, 1]} : vector<16x16x40xf32> to vector<16x16x32xf32>
    %c0_3 = arith.constant 0 : index
    %c0_4 = arith.constant 0 : index
    %c0_5 = arith.constant 0 : index
    %c0_6 = arith.constant 0 : index
    %4 = vector.load %arg4[%c0_3, %c0_4, %c0_5, %c0_6] : memref<1x1x1x8xf32, #tpu.memory_space<vmem>>, vector<1x1x1x8xf32>
    %5 = vector.shape_cast %4 : vector<1x1x1x8xf32> to vector<1x1x8xf32>
    %c0_7 = arith.constant 0 : index
    %c0_8 = arith.constant 0 : index
    %c0_9 = arith.constant 0 : index
    %c0_10 = arith.constant 0 : index
    %6 = vector.load %arg1[%c0_7, %c0_8, %c0_9, %c0_10] : memref<1x16x16x8xf32, #tpu.memory_space<vmem>>, vector<1x16x16x8xf32>
    %7 = vector.shape_cast %6 : vector<1x16x16x8xf32> to vector<16x16x8xf32>
    %c0_11 = arith.constant 0 : index
    %c0_12 = arith.constant 0 : index
    %c0_13 = arith.constant 0 : index
    %c0_14 = arith.constant 0 : index
    %8 = vector.load %arg2[%c0_11, %c0_12, %c0_13, %c0_14] : memref<1x16x16x8xf32, #tpu.memory_space<vmem>>, vector<1x16x16x8xf32>
    %9 = vector.shape_cast %8 : vector<1x16x16x8xf32> to vector<16x16x8xf32>
    %c0_15 = arith.constant 0 : index
    %c0_16 = arith.constant 0 : index
    %c0_17 = arith.constant 0 : index
    %c0_18 = arith.constant 0 : index
    %10 = vector.load %arg3[%c0_15, %c0_16, %c0_17, %c0_18] : memref<1x16x16x8xf32, #tpu.memory_space<vmem>>, vector<1x16x16x8xf32>
    %11 = vector.shape_cast %10 : vector<1x16x16x8xf32> to vector<16x16x8xf32>
    %12 = arith.addf %7, %2 : vector<16x16x8xf32>
    %c0_19 = arith.constant 0 : index
    %c0_20 = arith.constant 0 : index
    %13 = vector.load %arg6[%c0_19, %c0_20] : memref<4x8xf32, #tpu.memory_space<vmem>>, vector<1x8xf32>
    %14 = vector.shape_cast %13 : vector<1x8xf32> to vector<8xf32>
    %15 = vector.shape_cast %14 : vector<8xf32> to vector<1x1x8xf32>
    %16 = vector.broadcast %15 : vector<1x1x8xf32> to vector<16x16x8xf32>
    %17 = arith.mulf %12, %16 : vector<16x16x8xf32>
    %c0_21 = arith.constant 0 : index
    %c0_22 = arith.constant 0 : index
    %18 = vector.load %arg7[%c0_21, %c0_22] : memref<4x8xf32, #tpu.memory_space<vmem>>, vector<1x8xf32>
    %19 = vector.shape_cast %18 : vector<1x8xf32> to vector<8xf32>
    %20 = vector.shape_cast %19 : vector<8xf32> to vector<1x1x8xf32>
    %21 = vector.broadcast %20 : vector<1x1x8xf32> to vector<16x16x8xf32>
    %22 = arith.addf %17, %21 : vector<16x16x8xf32>
    %cst = arith.constant 0.000000e+00 : f32
    %23 = vector.broadcast %cst : f32 to vector<16x16x8xf32>
    %24 = arith.maximumf %22, %23 : vector<16x16x8xf32>
    %25 = arith.addf %9, %2 : vector<16x16x8xf32>
    %c1 = arith.constant 1 : index
    %c0_23 = arith.constant 0 : index
    %26 = vector.load %arg6[%c1, %c0_23] : memref<4x8xf32, #tpu.memory_space<vmem>>, vector<1x8xf32>
    %27 = vector.shape_cast %26 : vector<1x8xf32> to vector<8xf32>
    %28 = vector.shape_cast %27 : vector<8xf32> to vector<1x1x8xf32>
    %29 = vector.broadcast %28 : vector<1x1x8xf32> to vector<16x16x8xf32>
    %30 = arith.mulf %25, %29 : vector<16x16x8xf32>
    %c1_24 = arith.constant 1 : index
    %c0_25 = arith.constant 0 : index
    %31 = vector.load %arg7[%c1_24, %c0_25] : memref<4x8xf32, #tpu.memory_space<vmem>>, vector<1x8xf32>
    %32 = vector.shape_cast %31 : vector<1x8xf32> to vector<8xf32>
    %33 = vector.shape_cast %32 : vector<8xf32> to vector<1x1x8xf32>
    %34 = vector.broadcast %33 : vector<1x1x8xf32> to vector<16x16x8xf32>
    %35 = arith.addf %30, %34 : vector<16x16x8xf32>
    %cst_26 = arith.constant 0.000000e+00 : f32
    %36 = vector.broadcast %cst_26 : f32 to vector<16x16x8xf32>
    %37 = arith.maximumf %35, %36 : vector<16x16x8xf32>
    %38 = arith.addf %11, %2 : vector<16x16x8xf32>
    %c2 = arith.constant 2 : index
    %c0_27 = arith.constant 0 : index
    %39 = vector.load %arg6[%c2, %c0_27] : memref<4x8xf32, #tpu.memory_space<vmem>>, vector<1x8xf32>
    %40 = vector.shape_cast %39 : vector<1x8xf32> to vector<8xf32>
    %41 = vector.shape_cast %40 : vector<8xf32> to vector<1x1x8xf32>
    %42 = vector.broadcast %41 : vector<1x1x8xf32> to vector<16x16x8xf32>
    %43 = arith.mulf %38, %42 : vector<16x16x8xf32>
    %c2_28 = arith.constant 2 : index
    %c0_29 = arith.constant 0 : index
    %44 = vector.load %arg7[%c2_28, %c0_29] : memref<4x8xf32, #tpu.memory_space<vmem>>, vector<1x8xf32>
    %45 = vector.shape_cast %44 : vector<1x8xf32> to vector<8xf32>
    %46 = vector.shape_cast %45 : vector<8xf32> to vector<1x1x8xf32>
    %47 = vector.broadcast %46 : vector<1x1x8xf32> to vector<16x16x8xf32>
    %48 = arith.addf %43, %47 : vector<16x16x8xf32>
    %cst_30 = arith.constant 0.000000e+00 : f32
    %49 = vector.broadcast %cst_30 : f32 to vector<16x16x8xf32>
    %50 = arith.maximumf %48, %49 : vector<16x16x8xf32>
    %51 = vector.broadcast %5 : vector<1x1x8xf32> to vector<16x16x8xf32>
    %52 = arith.addf %51, %2 : vector<16x16x8xf32>
    %c3 = arith.constant 3 : index
    %c0_31 = arith.constant 0 : index
    %53 = vector.load %arg6[%c3, %c0_31] : memref<4x8xf32, #tpu.memory_space<vmem>>, vector<1x8xf32>
    %54 = vector.shape_cast %53 : vector<1x8xf32> to vector<8xf32>
    %55 = vector.shape_cast %54 : vector<8xf32> to vector<1x1x8xf32>
    %56 = vector.broadcast %55 : vector<1x1x8xf32> to vector<16x16x8xf32>
    %57 = arith.mulf %52, %56 : vector<16x16x8xf32>
    %c3_32 = arith.constant 3 : index
    %c0_33 = arith.constant 0 : index
    %58 = vector.load %arg7[%c3_32, %c0_33] : memref<4x8xf32, #tpu.memory_space<vmem>>, vector<1x8xf32>
    %59 = vector.shape_cast %58 : vector<1x8xf32> to vector<8xf32>
    %60 = vector.shape_cast %59 : vector<8xf32> to vector<1x1x8xf32>
    %61 = vector.broadcast %60 : vector<1x1x8xf32> to vector<16x16x8xf32>
    %62 = arith.addf %57, %61 : vector<16x16x8xf32>
    %cst_34 = arith.constant 0.000000e+00 : f32
    %63 = vector.broadcast %cst_34 : f32 to vector<16x16x8xf32>
    %64 = arith.maximumf %62, %63 : vector<16x16x8xf32>
    %65 = tpu.concatenate %24, %37, %50, %64 in 2 : vector<16x16x8xf32>, vector<16x16x8xf32>, vector<16x16x8xf32>, vector<16x16x8xf32> -> vector<16x16x32xf32>
    %cst_35 = arith.constant 0.000000e+00 : f32
    %66 = vector.broadcast %cst_35 : f32 to vector<1x18x32xf32>
    %c0_36 = arith.constant 0 : index
    %c0_37 = arith.constant 0 : index
    %c0_38 = arith.constant 0 : index
    %67 = vector.load %arg16[%c0_36, %c0_37, %c0_38] : memref<18x18x32xf32, #tpu.memory_space<vmem>>, vector<1x18x32xf32>
    tpu.vector_store %arg16[%c0_36, %c0_37, %c0_38], %66 {strides = array<i32>} : memref<18x18x32xf32, #tpu.memory_space<vmem>>, vector<1x18x32xf32>,
    %cst_39 = arith.constant 0.000000e+00 : f32
    %68 = vector.broadcast %cst_39 : f32 to vector<1x18x32xf32>
    %c17 = arith.constant 17 : index
    %c0_40 = arith.constant 0 : index
    %c0_41 = arith.constant 0 : index
    %69 = vector.load %arg16[%c17, %c0_40, %c0_41] : memref<18x18x32xf32, #tpu.memory_space<vmem>>, vector<1x18x32xf32>
    tpu.vector_store %arg16[%c17, %c0_40, %c0_41], %68 {strides = array<i32>} : memref<18x18x32xf32, #tpu.memory_space<vmem>>, vector<1x18x32xf32>,
    %cst_42 = arith.constant 0.000000e+00 : f32
    %70 = vector.broadcast %cst_42 : f32 to vector<18x1x32xf32>
    %c0_43 = arith.constant 0 : index
    %c0_44 = arith.constant 0 : index
    %c0_45 = arith.constant 0 : index
    %71 = vector.load %arg16[%c0_43, %c0_44, %c0_45] : memref<18x18x32xf32, #tpu.memory_space<vmem>>, vector<18x1x32xf32>
    tpu.vector_store %arg16[%c0_43, %c0_44, %c0_45], %70 {strides = array<i32>} : memref<18x18x32xf32, #tpu.memory_space<vmem>>, vector<18x1x32xf32>,
    %cst_46 = arith.constant 0.000000e+00 : f32
    %72 = vector.broadcast %cst_46 : f32 to vector<18x1x32xf32>
    %c0_47 = arith.constant 0 : index
    %c17_48 = arith.constant 17 : index
    %c0_49 = arith.constant 0 : index
    %73 = vector.load %arg16[%c0_47, %c17_48, %c0_49] : memref<18x18x32xf32, #tpu.memory_space<vmem>>, vector<18x1x32xf32>
    tpu.vector_store %arg16[%c0_47, %c17_48, %c0_49], %72 {strides = array<i32>} : memref<18x18x32xf32, #tpu.memory_space<vmem>>, vector<18x1x32xf32>,
    %c1_50 = arith.constant 1 : index
    %c1_51 = arith.constant 1 : index
    %c0_52 = arith.constant 0 : index
    %74 = vector.load %arg16[%c1_50, %c1_51, %c0_52] : memref<18x18x32xf32, #tpu.memory_space<vmem>>, vector<16x16x32xf32>
    tpu.vector_store %arg16[%c1_50, %c1_51, %c0_52], %65 {strides = array<i32>} : memref<18x18x32xf32, #tpu.memory_space<vmem>>, vector<16x16x32xf32>,
    %c0_53 = arith.constant 0 : index
    %c0_54 = arith.constant 0 : index
    %c0_55 = arith.constant 0 : index
    %75 = vector.load %arg16[%c0_53, %c0_54, %c0_55] : memref<18x18x32xf32, #tpu.memory_space<vmem>>, vector<18x16x32xf32>
    %76 = arith.truncf %75 : vector<18x16x32xf32> to vector<18x16x32xbf16>
    %c0_56 = arith.constant 0 : index
    %c1_57 = arith.constant 1 : index
    %c0_58 = arith.constant 0 : index
    %77 = vector.load %arg16[%c0_56, %c1_57, %c0_58] : memref<18x18x32xf32, #tpu.memory_space<vmem>>, vector<18x16x32xf32>
    %78 = arith.truncf %77 : vector<18x16x32xf32> to vector<18x16x32xbf16>
    %c0_59 = arith.constant 0 : index
    %c2_60 = arith.constant 2 : index
    %c0_61 = arith.constant 0 : index
    %79 = vector.load %arg16[%c0_59, %c2_60, %c0_61] : memref<18x18x32xf32, #tpu.memory_space<vmem>>, vector<18x16x32xf32>
    %80 = arith.truncf %79 : vector<18x16x32xf32> to vector<18x16x32xbf16>
    %81 = vector.extract_strided_slice %76 {offsets = [0, 0, 0], sizes = [16, 16, 32], strides = [1, 1, 1]} : vector<18x16x32xbf16> to vector<16x16x32xbf16>
    %82 = vector.shape_cast %81 : vector<16x16x32xbf16> to vector<256x32xbf16>
    %c0_62 = arith.constant 0 : index
    %c0_63 = arith.constant 0 : index
    %c0_64 = arith.constant 0 : index
    %83 = vector.load %arg8[%c0_62, %c0_63, %c0_64] : memref<9x32x32xbf16, #tpu.memory_space<vmem>>, vector<1x32x32xbf16>
    %84 = vector.shape_cast %83 : vector<1x32x32xbf16> to vector<32x32xbf16>
    %cst_65 = arith.constant dense<0.000000e+00> : vector<256x32xf32>
    %85 = tpu.matmul %82, %84, %cst_65 {dimension_numbers = #tpu.dot_dimension_numbers<[1], [0], [0], [1], [0, 0, 1, 1], [], []>} : vector<256x32xbf16>, vector<32x32xbf16>, vector<256x32xf32> -> vector<256x32xf32>
    %c0_66 = arith.constant 0 : index
    %c0_67 = arith.constant 0 : index
    %86 = vector.load %arg17[%c0_66, %c0_67] : memref<256x32xf32, #tpu.memory_space<vmem>>, vector<256x32xf32>
    tpu.vector_store %arg17[%c0_66, %c0_67], %85 {strides = array<i32>} : memref<256x32xf32, #tpu.memory_space<vmem>>, vector<256x32xf32>,
    %87 = vector.extract_strided_slice %78 {offsets = [0, 0, 0], sizes = [16, 16, 32], strides = [1, 1, 1]} : vector<18x16x32xbf16> to vector<16x16x32xbf16>
    %88 = vector.shape_cast %87 : vector<16x16x32xbf16> to vector<256x32xbf16>
    %c1_68 = arith.constant 1 : index
    %c0_69 = arith.constant 0 : index
    %c0_70 = arith.constant 0 : index
    %89 = vector.load %arg8[%c1_68, %c0_69, %c0_70] : memref<9x32x32xbf16, #tpu.memory_space<vmem>>, vector<1x32x32xbf16>
    %90 = vector.shape_cast %89 : vector<1x32x32xbf16> to vector<32x32xbf16>
    %cst_71 = arith.constant dense<0.000000e+00> : vector<256x32xf32>
    %91 = tpu.matmul %88, %90, %cst_71 {dimension_numbers = #tpu.dot_dimension_numbers<[1], [0], [0], [1], [0, 0, 1, 1], [], []>} : vector<256x32xbf16>, vector<32x32xbf16>, vector<256x32xf32> -> vector<256x32xf32>
    %c0_72 = arith.constant 0 : index
    %c0_73 = arith.constant 0 : index
    %92 = vector.load %arg17[%c0_72, %c0_73] : memref<256x32xf32, #tpu.memory_space<vmem>>, vector<256x32xf32>
    %93 = arith.addf %92, %91 : vector<256x32xf32>
    %c0_74 = arith.constant 0 : index
    %c0_75 = arith.constant 0 : index
    %94 = vector.load %arg17[%c0_74, %c0_75] : memref<256x32xf32, #tpu.memory_space<vmem>>, vector<256x32xf32>
    tpu.vector_store %arg17[%c0_74, %c0_75], %93 {strides = array<i32>} : memref<256x32xf32, #tpu.memory_space<vmem>>, vector<256x32xf32>,
    %95 = vector.extract_strided_slice %80 {offsets = [0, 0, 0], sizes = [16, 16, 32], strides = [1, 1, 1]} : vector<18x16x32xbf16> to vector<16x16x32xbf16>
    %96 = vector.shape_cast %95 : vector<16x16x32xbf16> to vector<256x32xbf16>
    %c2_76 = arith.constant 2 : index
    %c0_77 = arith.constant 0 : index
    %c0_78 = arith.constant 0 : index
    %97 = vector.load %arg8[%c2_76, %c0_77, %c0_78] : memref<9x32x32xbf16, #tpu.memory_space<vmem>>, vector<1x32x32xbf16>
    %98 = vector.shape_cast %97 : vector<1x32x32xbf16> to vector<32x32xbf16>
    %cst_79 = arith.constant dense<0.000000e+00> : vector<256x32xf32>
    %99 = tpu.matmul %96, %98, %cst_79 {dimension_numbers = #tpu.dot_dimension_numbers<[1], [0], [0], [1], [0, 0, 1, 1], [], []>} : vector<256x32xbf16>, vector<32x32xbf16>, vector<256x32xf32> -> vector<256x32xf32>
    %c0_80 = arith.constant 0 : index
    %c0_81 = arith.constant 0 : index
    %100 = vector.load %arg17[%c0_80, %c0_81] : memref<256x32xf32, #tpu.memory_space<vmem>>, vector<256x32xf32>
    %101 = arith.addf %100, %99 : vector<256x32xf32>
    %c0_82 = arith.constant 0 : index
    %c0_83 = arith.constant 0 : index
    %102 = vector.load %arg17[%c0_82, %c0_83] : memref<256x32xf32, #tpu.memory_space<vmem>>, vector<256x32xf32>
    tpu.vector_store %arg17[%c0_82, %c0_83], %101 {strides = array<i32>} : memref<256x32xf32, #tpu.memory_space<vmem>>, vector<256x32xf32>,
    %103 = vector.extract_strided_slice %76 {offsets = [1, 0, 0], sizes = [16, 16, 32], strides = [1, 1, 1]} : vector<18x16x32xbf16> to vector<16x16x32xbf16>
    %104 = vector.shape_cast %103 : vector<16x16x32xbf16> to vector<256x32xbf16>
    %c3_84 = arith.constant 3 : index
    %c0_85 = arith.constant 0 : index
    %c0_86 = arith.constant 0 : index
    %105 = vector.load %arg8[%c3_84, %c0_85, %c0_86] : memref<9x32x32xbf16, #tpu.memory_space<vmem>>, vector<1x32x32xbf16>
    %106 = vector.shape_cast %105 : vector<1x32x32xbf16> to vector<32x32xbf16>
    %cst_87 = arith.constant dense<0.000000e+00> : vector<256x32xf32>
    %107 = tpu.matmul %104, %106, %cst_87 {dimension_numbers = #tpu.dot_dimension_numbers<[1], [0], [0], [1], [0, 0, 1, 1], [], []>} : vector<256x32xbf16>, vector<32x32xbf16>, vector<256x32xf32> -> vector<256x32xf32>
    %c0_88 = arith.constant 0 : index
    %c0_89 = arith.constant 0 : index
    %108 = vector.load %arg17[%c0_88, %c0_89] : memref<256x32xf32, #tpu.memory_space<vmem>>, vector<256x32xf32>
    %109 = arith.addf %108, %107 : vector<256x32xf32>
    %c0_90 = arith.constant 0 : index
    %c0_91 = arith.constant 0 : index
    %110 = vector.load %arg17[%c0_90, %c0_91] : memref<256x32xf32, #tpu.memory_space<vmem>>, vector<256x32xf32>
    tpu.vector_store %arg17[%c0_90, %c0_91], %109 {strides = array<i32>} : memref<256x32xf32, #tpu.memory_space<vmem>>, vector<256x32xf32>,
    %111 = vector.extract_strided_slice %78 {offsets = [1, 0, 0], sizes = [16, 16, 32], strides = [1, 1, 1]} : vector<18x16x32xbf16> to vector<16x16x32xbf16>
    %112 = vector.shape_cast %111 : vector<16x16x32xbf16> to vector<256x32xbf16>
    %c4 = arith.constant 4 : index
    %c0_92 = arith.constant 0 : index
    %c0_93 = arith.constant 0 : index
    %113 = vector.load %arg8[%c4, %c0_92, %c0_93] : memref<9x32x32xbf16, #tpu.memory_space<vmem>>, vector<1x32x32xbf16>
    %114 = vector.shape_cast %113 : vector<1x32x32xbf16> to vector<32x32xbf16>
    %cst_94 = arith.constant dense<0.000000e+00> : vector<256x32xf32>
    %115 = tpu.matmul %112, %114, %cst_94 {dimension_numbers = #tpu.dot_dimension_numbers<[1], [0], [0], [1], [0, 0, 1, 1], [], []>} : vector<256x32xbf16>, vector<32x32xbf16>, vector<256x32xf32> -> vector<256x32xf32>
    %c0_95 = arith.constant 0 : index
    %c0_96 = arith.constant 0 : index
    %116 = vector.load %arg17[%c0_95, %c0_96] : memref<256x32xf32, #tpu.memory_space<vmem>>, vector<256x32xf32>
    %117 = arith.addf %116, %115 : vector<256x32xf32>
    %c0_97 = arith.constant 0 : index
    %c0_98 = arith.constant 0 : index
    %118 = vector.load %arg17[%c0_97, %c0_98] : memref<256x32xf32, #tpu.memory_space<vmem>>, vector<256x32xf32>
    tpu.vector_store %arg17[%c0_97, %c0_98], %117 {strides = array<i32>} : memref<256x32xf32, #tpu.memory_space<vmem>>, vector<256x32xf32>,
    %119 = vector.extract_strided_slice %80 {offsets = [1, 0, 0], sizes = [16, 16, 32], strides = [1, 1, 1]} : vector<18x16x32xbf16> to vector<16x16x32xbf16>
    %120 = vector.shape_cast %119 : vector<16x16x32xbf16> to vector<256x32xbf16>
    %c5 = arith.constant 5 : index
    %c0_99 = arith.constant 0 : index
    %c0_100 = arith.constant 0 : index
    %121 = vector.load %arg8[%c5, %c0_99, %c0_100] : memref<9x32x32xbf16, #tpu.memory_space<vmem>>, vector<1x32x32xbf16>
    %122 = vector.shape_cast %121 : vector<1x32x32xbf16> to vector<32x32xbf16>
    %cst_101 = arith.constant dense<0.000000e+00> : vector<256x32xf32>
    %123 = tpu.matmul %120, %122, %cst_101 {dimension_numbers = #tpu.dot_dimension_numbers<[1], [0], [0], [1], [0, 0, 1, 1], [], []>} : vector<256x32xbf16>, vector<32x32xbf16>, vector<256x32xf32> -> vector<256x32xf32>
    %c0_102 = arith.constant 0 : index
    %c0_103 = arith.constant 0 : index
    %124 = vector.load %arg17[%c0_102, %c0_103] : memref<256x32xf32, #tpu.memory_space<vmem>>, vector<256x32xf32>
    %125 = arith.addf %124, %123 : vector<256x32xf32>
    %c0_104 = arith.constant 0 : index
    %c0_105 = arith.constant 0 : index
    %126 = vector.load %arg17[%c0_104, %c0_105] : memref<256x32xf32, #tpu.memory_space<vmem>>, vector<256x32xf32>
    tpu.vector_store %arg17[%c0_104, %c0_105], %125 {strides = array<i32>} : memref<256x32xf32, #tpu.memory_space<vmem>>, vector<256x32xf32>,
    %127 = vector.extract_strided_slice %76 {offsets = [2, 0, 0], sizes = [16, 16, 32], strides = [1, 1, 1]} : vector<18x16x32xbf16> to vector<16x16x32xbf16>
    %128 = vector.shape_cast %127 : vector<16x16x32xbf16> to vector<256x32xbf16>
    %c6 = arith.constant 6 : index
    %c0_106 = arith.constant 0 : index
    %c0_107 = arith.constant 0 : index
    %129 = vector.load %arg8[%c6, %c0_106, %c0_107] : memref<9x32x32xbf16, #tpu.memory_space<vmem>>, vector<1x32x32xbf16>
    %130 = vector.shape_cast %129 : vector<1x32x32xbf16> to vector<32x32xbf16>
    %cst_108 = arith.constant dense<0.000000e+00> : vector<256x32xf32>
    %131 = tpu.matmul %128, %130, %cst_108 {dimension_numbers = #tpu.dot_dimension_numbers<[1], [0], [0], [1], [0, 0, 1, 1], [], []>} : vector<256x32xbf16>, vector<32x32xbf16>, vector<256x32xf32> -> vector<256x32xf32>
    %c0_109 = arith.constant 0 : index
    %c0_110 = arith.constant 0 : index
    %132 = vector.load %arg17[%c0_109, %c0_110] : memref<256x32xf32, #tpu.memory_space<vmem>>, vector<256x32xf32>
    %133 = arith.addf %132, %131 : vector<256x32xf32>
    %c0_111 = arith.constant 0 : index
    %c0_112 = arith.constant 0 : index
    %134 = vector.load %arg17[%c0_111, %c0_112] : memref<256x32xf32, #tpu.memory_space<vmem>>, vector<256x32xf32>
    tpu.vector_store %arg17[%c0_111, %c0_112], %133 {strides = array<i32>} : memref<256x32xf32, #tpu.memory_space<vmem>>, vector<256x32xf32>,
    %135 = vector.extract_strided_slice %78 {offsets = [2, 0, 0], sizes = [16, 16, 32], strides = [1, 1, 1]} : vector<18x16x32xbf16> to vector<16x16x32xbf16>
    %136 = vector.shape_cast %135 : vector<16x16x32xbf16> to vector<256x32xbf16>
    %c7 = arith.constant 7 : index
    %c0_113 = arith.constant 0 : index
    %c0_114 = arith.constant 0 : index
    %137 = vector.load %arg8[%c7, %c0_113, %c0_114] : memref<9x32x32xbf16, #tpu.memory_space<vmem>>, vector<1x32x32xbf16>
    %138 = vector.shape_cast %137 : vector<1x32x32xbf16> to vector<32x32xbf16>
    %cst_115 = arith.constant dense<0.000000e+00> : vector<256x32xf32>
    %139 = tpu.matmul %136, %138, %cst_115 {dimension_numbers = #tpu.dot_dimension_numbers<[1], [0], [0], [1], [0, 0, 1, 1], [], []>} : vector<256x32xbf16>, vector<32x32xbf16>, vector<256x32xf32> -> vector<256x32xf32>
    %c0_116 = arith.constant 0 : index
    %c0_117 = arith.constant 0 : index
    %140 = vector.load %arg17[%c0_116, %c0_117] : memref<256x32xf32, #tpu.memory_space<vmem>>, vector<256x32xf32>
    %141 = arith.addf %140, %139 : vector<256x32xf32>
    %c0_118 = arith.constant 0 : index
    %c0_119 = arith.constant 0 : index
    %142 = vector.load %arg17[%c0_118, %c0_119] : memref<256x32xf32, #tpu.memory_space<vmem>>, vector<256x32xf32>
    tpu.vector_store %arg17[%c0_118, %c0_119], %141 {strides = array<i32>} : memref<256x32xf32, #tpu.memory_space<vmem>>, vector<256x32xf32>,
    %143 = vector.extract_strided_slice %80 {offsets = [2, 0, 0], sizes = [16, 16, 32], strides = [1, 1, 1]} : vector<18x16x32xbf16> to vector<16x16x32xbf16>
    %144 = vector.shape_cast %143 : vector<16x16x32xbf16> to vector<256x32xbf16>
    %c8 = arith.constant 8 : index
    %c0_120 = arith.constant 0 : index
    %c0_121 = arith.constant 0 : index
    %145 = vector.load %arg8[%c8, %c0_120, %c0_121] : memref<9x32x32xbf16, #tpu.memory_space<vmem>>, vector<1x32x32xbf16>
    %146 = vector.shape_cast %145 : vector<1x32x32xbf16> to vector<32x32xbf16>
    %cst_122 = arith.constant dense<0.000000e+00> : vector<256x32xf32>
    %147 = tpu.matmul %144, %146, %cst_122 {dimension_numbers = #tpu.dot_dimension_numbers<[1], [0], [0], [1], [0, 0, 1, 1], [], []>} : vector<256x32xbf16>, vector<32x32xbf16>, vector<256x32xf32> -> vector<256x32xf32>
    %c0_123 = arith.constant 0 : index
    %c0_124 = arith.constant 0 : index
    %148 = vector.load %arg17[%c0_123, %c0_124] : memref<256x32xf32, #tpu.memory_space<vmem>>, vector<256x32xf32>
    %149 = arith.addf %148, %147 : vector<256x32xf32>
    %c0_125 = arith.constant 0 : index
    %c0_126 = arith.constant 0 : index
    %150 = vector.load %arg17[%c0_125, %c0_126] : memref<256x32xf32, #tpu.memory_space<vmem>>, vector<256x32xf32>
    tpu.vector_store %arg17[%c0_125, %c0_126], %149 {strides = array<i32>} : memref<256x32xf32, #tpu.memory_space<vmem>>, vector<256x32xf32>,
    %151 = vector.shape_cast %2 : vector<16x16x8xf32> to vector<256x8xf32>
    %c0_127 = arith.constant 0 : index
    %c0_128 = arith.constant 0 : index
    %152 = vector.load %arg9[%c0_127, %c0_128] : memref<1x8xf32, #tpu.memory_space<vmem>>, vector<1x8xf32>
    %153 = vector.broadcast %152 : vector<1x8xf32> to vector<256x8xf32>
    %154 = arith.mulf %151, %153 : vector<256x8xf32>
    %c0_129 = arith.constant 0 : index
    %c0_130 = arith.constant 0 : index
    %155 = vector.load %arg10[%c0_129, %c0_130] : memref<1x8xf32, #tpu.memory_space<vmem>>, vector<1x8xf32>
    %156 = vector.broadcast %155 : vector<1x8xf32> to vector<256x8xf32>
    %157 = arith.addf %154, %156 : vector<256x8xf32>
    %cst_131 = arith.constant 0.000000e+00 : f32
    %158 = vector.broadcast %cst_131 : f32 to vector<256x8xf32>
    %159 = arith.maximumf %157, %158 : vector<256x8xf32>
    %160 = arith.truncf %159 : vector<256x8xf32> to vector<256x8xbf16>
    %c0_132 = arith.constant 0 : index
    %c0_133 = arith.constant 0 : index
    %161 = vector.load %arg17[%c0_132, %c0_133] : memref<256x32xf32, #tpu.memory_space<vmem>>, vector<256x32xf32>
    %c0_134 = arith.constant 0 : index
    %c0_135 = arith.constant 0 : index
    %162 = vector.load %arg11[%c0_134, %c0_135] : memref<1x32xf32, #tpu.memory_space<vmem>>, vector<1x32xf32>
    %163 = vector.broadcast %162 : vector<1x32xf32> to vector<256x32xf32>
    %164 = arith.mulf %161, %163 : vector<256x32xf32>
    %c0_136 = arith.constant 0 : index
    %c0_137 = arith.constant 0 : index
    %165 = vector.load %arg12[%c0_136, %c0_137] : memref<1x32xf32, #tpu.memory_space<vmem>>, vector<1x32xf32>
    %166 = vector.broadcast %165 : vector<1x32xf32> to vector<256x32xf32>
    %167 = arith.addf %164, %166 : vector<256x32xf32>
    %cst_138 = arith.constant 0.000000e+00 : f32
    %168 = vector.broadcast %cst_138 : f32 to vector<256x32xf32>
    %169 = arith.maximumf %167, %168 : vector<256x32xf32>
    %170 = arith.truncf %169 : vector<256x32xf32> to vector<256x32xbf16>
    %c0_139 = arith.constant 0 : index
    %c0_140 = arith.constant 0 : index
    %171 = vector.load %arg13[%c0_139, %c0_140] : memref<8x32xbf16, #tpu.memory_space<vmem>>, vector<8x32xbf16>
    %cst_141 = arith.constant dense<0.000000e+00> : vector<256x32xf32>
    %172 = tpu.matmul %160, %171, %cst_141 {dimension_numbers = #tpu.dot_dimension_numbers<[1], [0], [0], [1], [0, 0, 1, 1], [], []>} : vector<256x8xbf16>, vector<8x32xbf16>, vector<256x32xf32> -> vector<256x32xf32>
    %c0_142 = arith.constant 0 : index
    %c0_143 = arith.constant 0 : index
    %173 = vector.load %arg14[%c0_142, %c0_143] : memref<32x32xbf16, #tpu.memory_space<vmem>>, vector<32x32xbf16>
    %cst_144 = arith.constant dense<0.000000e+00> : vector<256x32xf32>
    %174 = tpu.matmul %170, %173, %cst_144 {dimension_numbers = #tpu.dot_dimension_numbers<[1], [0], [0], [1], [0, 0, 1, 1], [], []>} : vector<256x32xbf16>, vector<32x32xbf16>, vector<256x32xf32> -> vector<256x32xf32>
    %175 = arith.addf %172, %174 : vector<256x32xf32>
    %176 = vector.shape_cast %3 : vector<16x16x32xf32> to vector<256x32xf32>
    %177 = arith.addf %175, %176 : vector<256x32xf32>
    %c0_145 = arith.constant 0 : index
    %c0_146 = arith.constant 0 : index
    %178 = vector.load %arg15[%c0_145, %c0_146] : memref<256x32xf32, #tpu.memory_space<vmem>>, vector<256x32xf32>
    tpu.vector_store %arg15[%c0_145, %c0_146], %177 {strides = array<i32>} : memref<256x32xf32, #tpu.memory_space<vmem>>, vector<256x32xf32>,
    return
  }
  func.func @transform_0(%arg0: i32) -> (i32, i32, i32, i32) {
    %c0_i32 = arith.constant 0 : i32
    %c0_i32_0 = arith.constant 0 : i32
    %c0_i32_1 = arith.constant 0 : i32
    %c0_i32_2 = arith.constant 0 : i32
    return %arg0, %c0_i32, %c0_i32_0, %c0_i32_1 : i32, i32, i32, i32
  }
  func.func @transform_1(%arg0: i32) -> (i32, i32, i32, i32) {
    %c0_i32 = arith.constant 0 : i32
    %c0_i32_0 = arith.constant 0 : i32
    %c0_i32_1 = arith.constant 0 : i32
    %c0_i32_2 = arith.constant 0 : i32
    return %arg0, %c0_i32, %c0_i32_0, %c0_i32_1 : i32, i32, i32, i32
  }
  func.func @transform_2(%arg0: i32) -> (i32, i32, i32, i32) {
    %c0_i32 = arith.constant 0 : i32
    %c0_i32_0 = arith.constant 0 : i32
    %c0_i32_1 = arith.constant 0 : i32
    %c0_i32_2 = arith.constant 0 : i32
    return %arg0, %c0_i32, %c0_i32_0, %c0_i32_1 : i32, i32, i32, i32
  }
  func.func @transform_3(%arg0: i32) -> (i32, i32, i32, i32) {
    %c0_i32 = arith.constant 0 : i32
    %c0_i32_0 = arith.constant 0 : i32
    %c0_i32_1 = arith.constant 0 : i32
    %c0_i32_2 = arith.constant 0 : i32
    return %arg0, %c0_i32, %c0_i32_0, %c0_i32_1 : i32, i32, i32, i32
  }
  func.func @transform_4(%arg0: i32) -> (i32, i32, i32, i32) {
    %c0_i32 = arith.constant 0 : i32
    %c0_i32_0 = arith.constant 0 : i32
    %c0_i32_1 = arith.constant 0 : i32
    %c0_i32_2 = arith.constant 0 : i32
    return %arg0, %c0_i32, %c0_i32_0, %c0_i32_1 : i32, i32, i32, i32
  }
  func.func @transform_5(%arg0: i32) -> (i32, i32) {
    %c0_i32 = arith.constant 0 : i32
    %c0_i32_0 = arith.constant 0 : i32
    %c0_i32_1 = arith.constant 0 : i32
    return %c0_i32, %c0_i32_0 : i32, i32
  }
  func.func @transform_6(%arg0: i32) -> (i32, i32) {
    %c0_i32 = arith.constant 0 : i32
    %c0_i32_0 = arith.constant 0 : i32
    %c0_i32_1 = arith.constant 0 : i32
    return %c0_i32, %c0_i32_0 : i32, i32
  }
  func.func @transform_7(%arg0: i32) -> (i32, i32, i32) {
    %c0_i32 = arith.constant 0 : i32
    %c0_i32_0 = arith.constant 0 : i32
    %c0_i32_1 = arith.constant 0 : i32
    %c0_i32_2 = arith.constant 0 : i32
    return %c0_i32, %c0_i32_0, %c0_i32_1 : i32, i32, i32
  }
  func.func @transform_8(%arg0: i32) -> (i32, i32) {
    %c0_i32 = arith.constant 0 : i32
    %c0_i32_0 = arith.constant 0 : i32
    %c0_i32_1 = arith.constant 0 : i32
    return %c0_i32, %c0_i32_0 : i32, i32
  }
  func.func @transform_9(%arg0: i32) -> (i32, i32) {
    %c0_i32 = arith.constant 0 : i32
    %c0_i32_0 = arith.constant 0 : i32
    %c0_i32_1 = arith.constant 0 : i32
    return %c0_i32, %c0_i32_0 : i32, i32
  }
  func.func @transform_10(%arg0: i32) -> (i32, i32) {
    %c0_i32 = arith.constant 0 : i32
    %c0_i32_0 = arith.constant 0 : i32
    %c0_i32_1 = arith.constant 0 : i32
    return %c0_i32, %c0_i32_0 : i32, i32
  }
  func.func @transform_11(%arg0: i32) -> (i32, i32) {
    %c0_i32 = arith.constant 0 : i32
    %c0_i32_0 = arith.constant 0 : i32
    %c0_i32_1 = arith.constant 0 : i32
    return %c0_i32, %c0_i32_0 : i32, i32
  }
  func.func @transform_12(%arg0: i32) -> (i32, i32) {
    %c0_i32 = arith.constant 0 : i32
    %c0_i32_0 = arith.constant 0 : i32
    %c0_i32_1 = arith.constant 0 : i32
    return %c0_i32, %c0_i32_0 : i32, i32
  }
  func.func @transform_13(%arg0: i32) -> (i32, i32) {
    %c0_i32 = arith.constant 0 : i32
    %c0_i32_0 = arith.constant 0 : i32
    %c0_i32_1 = arith.constant 0 : i32
    return %c0_i32, %c0_i32_0 : i32, i32
  }
  func.func @transform_14(%arg0: i32) -> (i32, i32) {
    %c0_i32 = arith.constant 0 : i32
    %c0_i32_0 = arith.constant 0 : i32
    return %arg0, %c0_i32 : i32, i32
  }
}

</mosaic_0001>

<bundles_post_ra>
// kernel: pappm_forward.2
= control target key start
LH: loop header
LB: loop body
LE: loop exit
PB: predicated region body
PF: predicated region fallthrough
CT: control target
= control target key end

     0   :  { %vm575_vm0 = vcmask 130048   ;;  %vm1610_vm1 = vcmask 64512   ;;  %vm1675_vm2 = vcmask 326656   ;;  %s3504_s6 = inlined_call_operand.vmem [shape: bf16[16,32], index: 6, kind: input, shape index: {}]   ;;  %s3505_s0 = inlined_call_operand.vmem [shape: f32[512,16], index: 0, kind: input, shape index: {}]   ;;  %s3506_s3 = inlined_call_operand.vmem [shape: f32[1,16], index: 3, kind: input, shape index: {}]   ;;  %s3507_s4 = inlined_call_operand.vmem [shape: f32[1,16], index: 4, kind: input, shape index: {}]   ;;  %s3508_s5 = inlined_call_operand.vmem [shape: bf16[16,8], index: 5, kind: input, shape index: {}]   ;;  %s3509_s1 = inlined_call_operand.vmem [shape: f32[1,16], index: 1, kind: input, shape index: {}]   ;;  %s3510_s2 = inlined_call_operand.vmem [shape: f32[1,16], index: 2, kind: input, shape index: {}]   ;;  %s3511_s7 = inlined_call_operand.vmem [shape: f32[512,40], index: 7, kind: output, shape index: {}]  }
   0x1   :  { %v2013_v0 = vld [vmem:[%s3504_s6] sm:$0xff]   ;;  %v2067_v2 = vld [vmem:[%s3505_s0 + $0x8] sm:$0xff]  ;;  %v2086_v7 = vld [vmem:[%s3505_s0 + $0x10] sm:$0xff] }
   0x2   :  { %v2062_v1 = vld [vmem:[%s3505_s0] sm:$0xff]  ;;  %1946 = vmatprep.subr.bf16.mxu1 %v2013_v0  ;;  %v2091_v8 = vld [vmem:[%s3505_s0 + $0x18] sm:$0xff]  ;;  %v2105_v12 = vld [vmem:[%s3505_s0 + $0x28] sm:$0xff] }
   0x3   :  { %v2072_v3 = vld [vmem:[%s3506_s3] ss:$0 sm:$0xff]  ;;  %1947 = vmatpush3.bf16.msra.mxu1 %v2013_v0  ;;  %v2110_v13 = vld [vmem:[%s3505_s0 + $0x30] sm:$0xff]  ;;  %v2121_v18 = vld [vmem:[%s3505_s0 + $0x38] sm:$0xff] }
   0x4   :  { %v336_v4 = vmul.f32 %v2072_v3, %v2062_v1  ;;  %v337_v5 = vmul.f32 %v2072_v3, %v2067_v2  ;;  %v2081_v6 = vld [vmem:[%s3507_s4] ss:$0 sm:$0xff]  ;;  %v338_v9 = vmul.f32 %v2072_v3, %v2086_v7  ;;  %v339_v10 = vmul.f32 %v2072_v3, %v2091_v8  ;;  %v2139_v28 = vld [vmem:[%s3505_s0 + $0x48] sm:$0xff]  ;;  %v2146_v33 = vld [vmem:[%s3505_s0 + $0x50] sm:$0xff] }
   0x5   :  { %v2100_v11 = vld [vmem:[%s3505_s0 + $0x20] sm:$0xff]  ;;  %v341_v17 = vmul.f32 %v2072_v3, %v2105_v12  ;;  %v342_v21 = vmul.f32 %v2072_v3, %v2110_v13  ;;  %v343_v22 = vmul.f32 %v2072_v3, %v2121_v18  ;;  %v2151_v34 = vld [vmem:[%s3505_s0 + $0x58] sm:$0xff]  ;;  %v2163_v40 = vld [vmem:[%s3505_s0 + $0x68] sm:$0xff]  ;;  %v345_v44 = vmul.f32 %v2072_v3, %v2139_v28 }
   0x6   :  { %v407_v14 = vadd.f32 %v2081_v6, %v336_v4  ;;  %v408_v15 = vadd.f32 %v2081_v6, %v337_v5  ;;  %v340_v16 = vmul.f32 %v2072_v3, %v2100_v11  ;;  %v409_v19 = vadd.f32 %v2081_v6, %v338_v9  ;;  %v2132_v23 = vld [vmem:[%s3505_s0 + $0x40] sm:$0xff]  ;;  %v2170_v45 = vld [vmem:[%s3505_s0 + $0x70] sm:$0xff]  ;;  %v2181_v50 = vld [vmem:[%s3505_s0 + $0x78] sm:$0xff] }
   0x7   :  { %v410_v20 = vadd.f32 %v2081_v6, %v339_v10  ;;  %v412_v27 = vadd.f32 %v2081_v6, %v341_v17  ;;  %v413_v31 = vadd.f32 %v2081_v6, %v342_v21  ;;  %v414_v32 = vadd.f32 %v2081_v6, %v343_v22  ;;  %v2158_v39 = vld [vmem:[%s3505_s0 + $0x60] sm:$0xff]  ;;  %v2206_v0 = vld [vmem:[%s3505_s0 + $0x88] sm:$0xff] }
   0x8   :  { %v471_v24 = vmax.f32 %v407_v14, 0.0  ;;  %v472_v25 = vmax.f32 %v408_v15, 0.0  ;;  %v411_v26 = vadd.f32 %v2081_v6, %v340_v16  ;;  %v473_v29 = vmax.f32 %v409_v19, 0.0  ;;  %v2192_v55 = vld [vmem:[%s3505_s0 + $0x80] sm:$0xff]  ;;  %v2214_v14 = vld [vmem:[%s3505_s0 + $0x90] sm:$0xff]  ;;  %v2219_v15 = vld [vmem:[%s3505_s0 + $0x98] sm:$0xff] }
   0x9   :  { %v474_v30 = vmax.f32 %v410_v20, 0.0  ;;  %v476_v37 = vmax.f32 %v412_v27, 0.0  ;;  %v344_v38 = vmul.f32 %v2072_v3, %v2132_v23  ;;  %v477_v42 = vmax.f32 %v413_v31, 0.0  ;;  %v2225_v21 = vld [vmem:[%s3505_s0 + $0xa0] sm:$0xff]  ;;  %v2230_v22 = vld [vmem:[%s3505_s0 + $0xa8] sm:$0xff] }
   0xa   :  { %v535_v35 = vpack.c.bf16 %v472_v25, %v471_v24  ;;  %v475_v36 = vmax.f32 %v411_v26, 0.0  ;;  %v478_v43 = vmax.f32 %v414_v32, 0.0  ;;  %v346_v48 = vmul.f32 %v2072_v3, %v2146_v33 }
   0xb   :  { %v536_v41 = vpack.c.bf16 %v474_v30, %v473_v29  ;;  %v415_v47 = vadd.f32 %v2081_v6, %v344_v38  ;;  %v347_v49 = vmul.f32 %v2072_v3, %v2151_v34  ;;  %v416_v52 = vadd.f32 %v2081_v6, %v345_v44  ;;  %v2238_v29 = vld [vmem:[%s3505_s0 + $0xb0] sm:$0xff] }
   0xc   :  { %1948 = vmatprep.mubr.msk.bf16.mxu1 %vm575_vm0, %v535_v35  ;;  %v537_v46 = vpack.c.bf16 %v476_v37, %v475_v36  ;;  %v538_v51 = vpack.c.bf16 %v478_v43, %v477_v42  ;;  %v348_v53 = vmul.f32 %v2072_v3, %v2158_v39  ;;  %v349_v54 = vmul.f32 %v2072_v3, %v2163_v40  ;;  %v2247_v36 = vld [vmem:[%s3505_s0 + $0xb8] sm:$0xff]  ;;  %v2257_v43 = vld [vmem:[%s3505_s0 + $0xc0] sm:$0xff] }
   0xd   :  { %1949 = vmatmul.mubr.msk.bf16.vlgmr.msra.gmra.mxu1 %vm575_vm0, %v536_v41  ;;  %v479_v56 = vmax.f32 %v415_v47, 0.0  ;;  %v417_v57 = vadd.f32 %v2081_v6, %v346_v48  ;;  %v418_v58 = vadd.f32 %v2081_v6, %v347_v49  ;;  %v350_v59 = vmul.f32 %v2072_v3, %v2170_v45 }
   0xe   :  { %1952 = vmatprep.mubr.msk.bf16.mxu1 %vm575_vm0, %v537_v46  ;;  %v480_v60 = vmax.f32 %v416_v52, 0.0  ;;  %v419_v61 = vadd.f32 %v2081_v6, %v348_v53  ;;  %v420_v62 = vadd.f32 %v2081_v6, %v349_v54  ;;  %v351_v63 = vmul.f32 %v2072_v3, %v2181_v50 }
   0xf   :  { %v481_v4 = vmax.f32 %v417_v57, 0.0  ;;  %v482_v5 = vmax.f32 %v418_v58, 0.0  ;;  %v421_v9 = vadd.f32 %v2081_v6, %v350_v59  ;;  %v352_v10 = vmul.f32 %v2072_v3, %v2192_v55 }
  0x10   :  { %v539_v16 = vpack.c.bf16 %v480_v60, %v479_v56  ;;  %v483_v17 = vmax.f32 %v419_v61, 0.0  ;;  %v484_v19 = vmax.f32 %v420_v62, 0.0  ;;  %v422_v20 = vadd.f32 %v2081_v6, %v351_v63  ;;  %v2282_v60 = vld [vmem:[%s3505_s0 + $0xd0] sm:$0xff]  ;;  %v2287_v61 = vld [vmem:[%s3505_s0 + $0xd8] sm:$0xff]  ;;  %v2014_v62 = vld [vmem:[%s3508_s5] sm:$0xff]  }
  0x11   :  { %v540_v24 = vpack.c.bf16 %v482_v5, %v481_v4  ;;  %v485_v25 = vmax.f32 %v421_v9, 0.0  ;;  %v353_v26 = vmul.f32 %v2072_v3, %v2206_v0  ;;  %v423_v27 = vadd.f32 %v2081_v6, %v352_v10  ;;  %v2298_v10 = vld [vmem:[%s3505_s0 + $0xe0] sm:$0xff]  ;;  %1880 = vmatprep.subr.bf16.mxu0 %v2014_v62 }
  0x12   :  { %v541_v30 = vpack.c.bf16 %v484_v19, %v483_v17  ;;  %v486_v31 = vmax.f32 %v422_v20, 0.0  ;;  %v354_v32 = vmul.f32 %v2072_v3, %v2214_v14  ;;  %v355_v35 = vmul.f32 %v2072_v3, %v2219_v15  ;;  %1881 = vmatpush3.bf16.msra.mxu0 %v2014_v62 }
  0x13   :  { %v424_v37 = vadd.f32 %v2081_v6, %v353_v26  ;;  %v487_v38 = vmax.f32 %v423_v27, 0.0  ;;  %v356_v41 = vmul.f32 %v2072_v3, %v2225_v21  ;;  %v357_v42 = vmul.f32 %v2072_v3, %v2230_v22  ;;  %v2313_v26 = vld [vmem:[%s3505_s0 + $0xf0] sm:$0xff] }
  0x14   :  { %v2260_v44 = vpack.c.bf16 %v486_v31, %v485_v25  ;;  %v425_v46 = vadd.f32 %v2081_v6, %v354_v32  ;;  %v426_v47 = vadd.f32 %v2081_v6, %v355_v35  ;;  %v358_v48 = vmul.f32 %v2072_v3, %v2238_v29 }
  0x15   :  { %1953 = vmatmul.mubr.msk.bf16.gmra.mxu1 %vm575_vm0, %v538_v51  ;;  %v488_v49 = vmax.f32 %v424_v37, 0.0  ;;  %v427_v52 = vadd.f32 %v2081_v6, %v356_v41  ;;  %v428_v53 = vadd.f32 %v2081_v6, %v357_v42  ;;  %v359_v54 = vmul.f32 %v2072_v3, %v2247_v36  ;;  %v2274_v51 = vld [vmem:[%s3505_s0 + $0xc8] sm:$0xff]  ;;  %v2324_v37 = vld [vmem:[%s3505_s0 + $0xf8] sm:$0xff] }
  0x16   :  { %1956 = vmatprep.mubr.msk.bf16.mxu1 %vm575_vm0, %v539_v16  ;;  %v489_v56 = vmax.f32 %v425_v46, 0.0  ;;  %v490_v57 = vmax.f32 %v426_v47, 0.0  ;;  %v429_v58 = vadd.f32 %v2081_v6, %v358_v48  ;;  %v360_v59 = vmul.f32 %v2072_v3, %v2257_v43  ;;  %v2303_v16 = vld [vmem:[%s3505_s0 + $0xe8] sm:$0xff]  ;;  %v2334_v47 = vld [vmem:[%s3505_s0 + $0x100] sm:$0xff] }
  0x17   :  { %v2292_v63 = vpack.c.bf16 %v488_v49, %v487_v38  ;;  %v491_v4 = vmax.f32 %v427_v52, 0.0  ;;  %v492_v5 = vmax.f32 %v428_v53, 0.0  ;;  %v430_v9 = vadd.f32 %v2081_v6, %v359_v54  ;;  %3539 = vst [vmem:[#allocation2_spill] sm:$0xff] %v2334_v47 }
  0x18   :  { %v2305_v17 = vpack.c.bf16 %v490_v57, %v489_v56  ;;  %v493_v19 = vmax.f32 %v429_v58, 0.0  ;;  %v361_v20 = vmul.f32 %v2072_v3, %v2274_v51  ;;  %v431_v25 = vadd.f32 %v2081_v6, %v360_v59  ;;  %v2350_v59 = vld [vmem:[%s3505_s0 + $0x108] sm:$0xff] }
  0x19   :  { %v2315_v27 = vpack.c.bf16 %v492_v5, %v491_v4  ;;  %v494_v31 = vmax.f32 %v430_v9, 0.0  ;;  %v362_v32 = vmul.f32 %v2072_v3, %v2282_v60  ;;  %v363_v35 = vmul.f32 %v2072_v3, %v2287_v61  ;;  %3540 = vst [vmem:[#allocation3_spill] sm:$0xff] %v2350_v59  ;;  %v2359_v9 = vld [vmem:[%s3505_s0 + $0x110] sm:$0xff] }
  0x1a   :  { %v432_v38 = vadd.f32 %v2081_v6, %v361_v20  ;;  %v495_v41 = vmax.f32 %v431_v25, 0.0  ;;  %v364_v42 = vmul.f32 %v2072_v3, %v2298_v10  ;;  %v365_v46 = vmul.f32 %v2072_v3, %v2303_v16  ;;  %3541 = vst [vmem:[#allocation4_spill] sm:$0xff] %v2359_v9 }
  0x1b   :  { %v2336_v48 = vpack.c.bf16 %v494_v31, %v493_v19  ;;  %v433_v49 = vadd.f32 %v2081_v6, %v362_v32  ;;  %v434_v52 = vadd.f32 %v2081_v6, %v363_v35  ;;  %v366_v53 = vmul.f32 %v2072_v3, %v2313_v26  ;;  %v2364_v19 = vld [vmem:[%s3505_s0 + $0x118] sm:$0xff]  ;;  %v2372_v32 = vld [vmem:[%s3505_s0 + $0x120] sm:$0xff]  ;;  %v2377_v35 = vld [vmem:[%s3505_s0 + $0x128] sm:$0xff] }
  0x1c   :  { %v496_v54 = vmax.f32 %v432_v38, 0.0  ;;  %v435_v56 = vadd.f32 %v2081_v6, %v364_v42  ;;  %v436_v57 = vadd.f32 %v2081_v6, %v365_v46  ;;  %v367_v58 = vmul.f32 %v2072_v3, %v2324_v37  ;;  %3542 = vst [vmem:[#allocation5_spill] sm:$0xff] %v2364_v19  ;;  %3543 = vst [vmem:[#allocation6_spill] sm:$0xff] %v2372_v32 }
  0x1d   :  { %1957 = vmatmul.mubr.msk.bf16.gmra.mxu1 %vm575_vm0, %v540_v24  ;;  %v497_v62 = vmax.f32 %v433_v49, 0.0  ;;  %v498_v4 = vmax.f32 %v434_v52, 0.0  ;;  %v437_v5 = vadd.f32 %v2081_v6, %v366_v53  ;;  %v368_v24 = vmul.f32 %v2072_v3, %v2334_v47  ;;  %3544 = vst [vmem:[#allocation7_spill] sm:$0xff] %v2377_v35  ;;  %v2387_v49 = vld [vmem:[%s3505_s0 + $0x130] sm:$0xff] }
  0x1e   :  { %1960 = vmatprep.mubr.msk.bf16.mxu1 %vm575_vm0, %v541_v30  ;;  %v2366_v20 = vpack.c.bf16 %v496_v54, %v495_v41  ;;  %v499_v30 = vmax.f32 %v435_v56, 0.0  ;;  %v500_v25 = vmax.f32 %v436_v57, 0.0  ;;  %v438_v31 = vadd.f32 %v2081_v6, %v367_v58  ;;  %3545 = vst [vmem:[#allocation8_spill] sm:$0xff] %v2387_v49  ;;  %v2398_v57 = vld [vmem:[%s3505_s0 + $0x138] sm:$0xff] }
  0x1f   :  { %v2379_v38 = vpack.c.bf16 %v498_v4, %v497_v62  ;;  %v501_v42 = vmax.f32 %v437_v5, 0.0  ;;  %v369_v41 = vmul.f32 %v2072_v3, %v2350_v59  ;;  %v439_v46 = vadd.f32 %v2081_v6, %v368_v24  ;;  %3546 = vst [vmem:[#allocation9_spill] sm:$0xff] %v2398_v57  ;;  %v2408_v24 = vld [vmem:[%s3505_s0 + $0x140] sm:$0xff] }
  0x20   :  { %v2389_v52 = vpack.c.bf16 %v500_v25, %v499_v30  ;;  %v502_v53 = vmax.f32 %v438_v31, 0.0  ;;  %v370_v54 = vmul.f32 %v2072_v3, %v2359_v9  ;;  %v371_v56 = vmul.f32 %v2072_v3, %v2364_v19  ;;  %3547 = vst [vmem:[#allocation10_spill] sm:$0xff] %v2408_v24 }
  0x21   :  { %v440_v58 = vadd.f32 %v2081_v6, %v369_v41  ;;  %v503_v62 = vmax.f32 %v439_v46, 0.0  ;;  %v372_v4 = vmul.f32 %v2072_v3, %v2372_v32  ;;  %v373_v5 = vmul.f32 %v2072_v3, %v2377_v35 }
  0x22   :  { %v2410_v30 = vpack.c.bf16 %v502_v53, %v501_v42  ;;  %v441_v25 = vadd.f32 %v2081_v6, %v370_v54  ;;  %v442_v31 = vadd.f32 %v2081_v6, %v371_v56  ;;  %v374_v41 = vmul.f32 %v2072_v3, %v2387_v49  ;;  %v2423_v42 = vld [vmem:[%s3505_s0 + $0x148] sm:$0xff] }
  0x23   :  { %v504_v46 = vmax.f32 %v440_v58, 0.0  ;;  %v443_v32 = vadd.f32 %v2081_v6, %v372_v4  ;;  %v444_v19 = vadd.f32 %v2081_v6, %v373_v5  ;;  %v375_v35 = vmul.f32 %v2072_v3, %v2398_v57  ;;  %3548 = vst [vmem:[#allocation11_spill] sm:$0xff] %v2423_v42  ;;  %v2433_v4 = vld [vmem:[%s3505_s0 + $0x150] sm:$0xff]  ;;  %v2438_v5 = vld [vmem:[%s3505_s0 + $0x158] sm:$0xff]  ;;  %v2453_v57 = vld [vmem:[%s3505_s0 + $0x168] sm:$0xff] }
  0x24   :  { %v505_v53 = vmax.f32 %v441_v25, 0.0  ;;  %v506_v54 = vmax.f32 %v442_v31, 0.0  ;;  %v445_v56 = vadd.f32 %v2081_v6, %v374_v41  ;;  %v376_v58 = vmul.f32 %v2072_v3, %v2408_v24  ;;  %3549 = vst [vmem:[#allocation12_spill] sm:$0xff] %v2433_v4  ;;  %3550 = vst [vmem:[#allocation13_spill] sm:$0xff] %v2438_v5  ;;  %v2448_v24 = vld [vmem:[%s3505_s0 + $0x160] sm:$0xff] }
  0x25   :  { %1961 = vmatmul.mubr.msk.bf16.gmra.mxu1 %vm575_vm0, %v2260_v44  ;;  %v2442_v44 = vpack.c.bf16 %v504_v46, %v503_v62  ;;  %v507_v25 = vmax.f32 %v443_v32, 0.0  ;;  %v508_v31 = vmax.f32 %v444_v19, 0.0  ;;  %v446_v41 = vadd.f32 %v2081_v6, %v375_v35  ;;  %3551 = vst [vmem:[#allocation14_spill] sm:$0xff] %v2448_v24  ;;  %3552 = vst [vmem:[#allocation15_spill] sm:$0xff] %v2453_v57  ;;  %v2463_v32 = vld [vmem:[%s3505_s0 + $0x170] sm:$0xff] }
  0x26   :  { %1964 = vmatprep.mubr.msk.bf16.mxu1 %vm575_vm0, %v2292_v63  ;;  %v2455_v49 = vpack.c.bf16 %v506_v54, %v505_v53  ;;  %v509_v9 = vmax.f32 %v445_v56, 0.0  ;;  %v377_v63 = vmul.f32 %v2072_v3, %v2423_v42  ;;  %v447_v19 = vadd.f32 %v2081_v6, %v376_v58  ;;  %3553 = vst [vmem:[#allocation16_spill] sm:$0xff] %v2463_v32  ;;  %v2474_v54 = vld [vmem:[%s3505_s0 + $0x178] sm:$0xff] }
  0x27   :  { %v2465_v35 = vpack.c.bf16 %v508_v31, %v507_v25  ;;  %v510_v62 = vmax.f32 %v446_v41, 0.0  ;;  %v378_v46 = vmul.f32 %v2072_v3, %v2433_v4  ;;  %v379_v53 = vmul.f32 %v2072_v3, %v2438_v5  ;;  %3554 = vst [vmem:[#allocation17_spill] sm:$0xff] %v2474_v54  ;;  %v2484_v31 = vld [vmem:[%s3505_s0 + $0x180] sm:$0xff] }
  0x28   :  { %v448_v56 = vadd.f32 %v2081_v6, %v377_v63  ;;  %v511_v58 = vmax.f32 %v447_v19, 0.0  ;;  %v380_v42 = vmul.f32 %v2072_v3, %v2448_v24  ;;  %v381_v25 = vmul.f32 %v2072_v3, %v2453_v57  ;;  %3555 = vst [vmem:[#allocation18_spill] sm:$0xff] %v2484_v31 }
  0x29   :  { %v2486_v41 = vpack.c.bf16 %v510_v62, %v509_v9  ;;  %v449_v5 = vadd.f32 %v2081_v6, %v378_v46  ;;  %v450_v4 = vadd.f32 %v2081_v6, %v379_v53  ;;  %v382_v63 = vmul.f32 %v2072_v3, %v2463_v32  ;;  %v2499_v9 = vld [vmem:[%s3505_s0 + $0x188] sm:$0xff] }
  0x2a   :  { %v512_v19 = vmax.f32 %v448_v56, 0.0  ;;  %v451_v24 = vadd.f32 %v2081_v6, %v380_v42  ;;  %v452_v59 = vadd.f32 %v2081_v6, %v381_v25  ;;  %v383_v57 = vmul.f32 %v2072_v3, %v2474_v54  ;;  %3556 = vst [vmem:[#allocation19_spill] sm:$0xff] %v2499_v9  ;;  %v2507_v42 = vld [vmem:[%s3505_s0 + $0x190] sm:$0xff]  ;;  %v2512_v56 = vld [vmem:[%s3505_s0 + $0x198] sm:$0xff]  ;;  %v2527_v54 = vld [vmem:[%s3505_s0 + $0x1a8] sm:$0xff] }
  0x2b   :  { %v513_v62 = vmax.f32 %v449_v5, 0.0  ;;  %v514_v46 = vmax.f32 %v450_v4, 0.0  ;;  %v453_v53 = vadd.f32 %v2081_v6, %v382_v63  ;;  %v384_v32 = vmul.f32 %v2072_v3, %v2484_v31  ;;  %3557 = vst [vmem:[#allocation20_spill] sm:$0xff] %v2507_v42  ;;  %3558 = vst [vmem:[#allocation21_spill] sm:$0xff] %v2512_v56  ;;  %v2522_v31 = vld [vmem:[%s3505_s0 + $0x1a0] sm:$0xff] }
  0x2c   :  { %v2516_v5 = vpack.c.bf16 %v512_v19, %v511_v58  ;;  %v515_v4 = vmax.f32 %v451_v24, 0.0  ;;  %v516_v25 = vmax.f32 %v452_v59, 0.0  ;;  %v454_v63 = vadd.f32 %v2081_v6, %v383_v57  ;;  %3560 = vst [vmem:[#allocation23_spill] sm:$0xff] %v2522_v31  ;;  %3561 = vst [vmem:[#allocation24_spill] sm:$0xff] %v2527_v54  ;;  %v2539_v24 = vld [vmem:[%s3505_s0 + $0x1b0] sm:$0xff] }
  0x2d   :  { %1965 = vmatmul.mubr.msk.bf16.gmra.mxu1 %vm575_vm0, %v2305_v17  ;;  %v2531_v17 = vpack.c.bf16 %v514_v46, %v513_v62  ;;  %v517_v58 = vmax.f32 %v453_v53, 0.0  ;;  %v385_v59 = vmul.f32 %v2072_v3, %v2499_v9  ;;  %v455_v57 = vadd.f32 %v2081_v6, %v384_v32  ;;  %3562 = vst [vmem:[#allocation25_spill] sm:$0xff] %v2539_v24  ;;  %v2550_v62 = vld [vmem:[%s3505_s0 + $0x1b8] sm:$0xff] }
  0x2e   :  { %3559 = vst [vmem:[#allocation22_spill] sm:$0xff] %v2516_v5  ;;  %1968 = vmatprep.mubr.msk.bf16.mxu1 %vm575_vm0, %v2315_v27  ;;  %v2541_v19 = vpack.c.bf16 %v516_v25, %v515_v4  ;;  %v518_v47 = vmax.f32 %v454_v63, 0.0  ;;  %v386_v5 = vmul.f32 %v2072_v3, %v2507_v42  ;;  %v387_v27 = vmul.f32 %v2072_v3, %v2512_v56  ;;  %v2560_v25 = vld [vmem:[%s3505_s0 + $0x1c0] sm:$0xff] }
  0x2f   :  { %3563 = vst [vmem:[#allocation26_spill] sm:$0xff] %v2550_v62  ;;  %v456_v32 = vadd.f32 %v2081_v6, %v385_v59  ;;  %v519_v46 = vmax.f32 %v455_v57, 0.0  ;;  %v388_v53 = vmul.f32 %v2072_v3, %v2522_v31  ;;  %v389_v4 = vmul.f32 %v2072_v3, %v2527_v54  ;;  %3564 = vst [vmem:[#allocation27_spill] sm:$0xff] %v2560_v25 }
  0x30   :  { %v2562_v63 = vpack.c.bf16 %v518_v47, %v517_v58  ;;  %v457_v56 = vadd.f32 %v2081_v6, %v386_v5  ;;  %v458_v42 = vadd.f32 %v2081_v6, %v387_v27  ;;  %v390_v59 = vmul.f32 %v2072_v3, %v2539_v24  ;;  %v2575_v47 = vld [vmem:[%s3505_s0 + $0x1c8] sm:$0xff] }
  0x31   :  { %v520_v57 = vmax.f32 %v456_v32, 0.0  ;;  %v459_v31 = vadd.f32 %v2081_v6, %v388_v53  ;;  %v460_v9 = vadd.f32 %v2081_v6, %v389_v4  ;;  %v391_v54 = vmul.f32 %v2072_v3, %v2550_v62  ;;  %3566 = vst [vmem:[#allocation29_spill] sm:$0xff] %v2575_v47  ;;  %v2583_v32 = vld [vmem:[%s3509_s1] ss:$0 sm:$0xff] }
  0x32   :  { %3565 = vst [vmem:[#allocation28_spill] sm:$0xff] %v2562_v63  ;;  %v521_v58 = vmax.f32 %v457_v56, 0.0  ;;  %v522_v5 = vmax.f32 %v458_v42, 0.0  ;;  %v461_v27 = vadd.f32 %v2081_v6, %v390_v59  ;;  %v392_v24 = vmul.f32 %v2072_v3, %v2560_v25  ;;  %v2591_v42 = vld [vmem:[%s3505_s0 + $0x1d0] sm:$0xff]  ;;  %v2596_v56 = vld [vmem:[%s3505_s0 + $0x1d8] sm:$0xff] }
  0x33   :  { %v2585_v53 = vpack.c.bf16 %v520_v57, %v519_v46  ;;  %v523_v4 = vmax.f32 %v459_v31, 0.0  ;;  %v524_v62 = vmax.f32 %v460_v9, 0.0  ;;  %v462_v63 = vadd.f32 %v2081_v6, %v391_v54  ;;  %3567 = vst [vmem:[#allocation30_spill] sm:$0xff] %v2596_v56  ;;  %v2608_v9 = vld [vmem:[%s3510_s2] ss:$0 sm:$0xff] }
  0x34   :  { %v2600_v59 = vpack.c.bf16 %v522_v5, %v521_v58  ;;  %v525_v46 = vmax.f32 %v461_v27, 0.0  ;;  %v393_v31 = vmul.f32 %v2072_v3, %v2575_v47  ;;  %v463_v54 = vadd.f32 %v2081_v6, %v392_v24 }
  0x35   :  { %1969 = vmatmul.mubr.msk.bf16.gmra.mxu1 %vm575_vm0, %v2336_v48  ;;  %v2612_v57 = vpack.c.bf16 %v524_v62, %v523_v4  ;;  %v526_v25 = vmax.f32 %v462_v63, 0.0  ;;  %v98_v48 = vmul.f32 %v2583_v32, %v2062_v1  ;;  %v99_v58 = vmul.f32 %v2583_v32, %v2067_v2 }
  0x36   :  { %1972 = vmatprep.mubr.msk.bf16.mxu1 %vm575_vm0, %v2366_v20  ;;  %v464_v5 = vadd.f32 %v2081_v6, %v393_v31  ;;  %v527_v24 = vmax.f32 %v463_v54, 0.0  ;;  %v394_v27 = vmul.f32 %v2072_v3, %v2591_v42  ;;  %v395_v47 = vmul.f32 %v2072_v3, %v2596_v56  ;;  %v2626_v20 = vld [vmem:[%s3505_s0 + $0x1e0] sm:$0xff] }
  0x37   :  { %v2628_v62 = vpack.c.bf16 %v526_v25, %v525_v46  ;;  %v169_v1 = vadd.f32 %v2608_v9, %v98_v48  ;;  %v170_v2 = vadd.f32 %v2608_v9, %v99_v58  ;;  %v100_v63 = vmul.f32 %v2583_v32, %v2086_v7  ;;  %v2641_v25 = vld [vmem:[%s3505_s0 + $0x1e8] sm:$0xff] }
  0x38   :  { %v528_v4 = vmax.f32 %v464_v5, 0.0  ;;  %v465_v31 = vadd.f32 %v2081_v6, %v394_v27  ;;  %v466_v54 = vadd.f32 %v2081_v6, %v395_v47  ;;  %v101_v56 = vmul.f32 %v2583_v32, %v2091_v8  ;;  %v2652_v8 = vld [vmem:[%s3505_s0 + $0x1f0] sm:$0xff] }
  0x39   :  { %3568 = vst [vmem:[#allocation31_spill] sm:$0xff] %v2628_v62  ;;  %v233_v46 = vmax.f32 %v169_v1, 0.0  ;;  %v234_v48 = vmax.f32 %v170_v2, 0.0  ;;  %v171_v58 = vadd.f32 %v2608_v9, %v100_v63  ;;  %v396_v7 = vmul.f32 %v2072_v3, %v2626_v20  ;;  %v2657_v1 = vld [vmem:[%s3505_s0 + $0x1f8] sm:$0xff]  ;;  %s2015_s0 = smov 8  }
  0x3a   :  { %v2646_v5 = vpack.c.bf16 %v528_v4, %v527_v24  ;;  %v529_v27 = vmax.f32 %v465_v31, 0.0  ;;  %v530_v62 = vmax.f32 %v466_v54, 0.0  ;;  %v172_v47 = vadd.f32 %v2608_v9, %v101_v56 }
  0x3b   :  { %v297_v2 = vpack.c.bf16 %v234_v48, %v233_v46  ;;  %v235_v63 = vmax.f32 %v171_v58, 0.0  ;;  %v397_v24 = vmul.f32 %v2072_v3, %v2641_v25  ;;  %v467_v4 = vadd.f32 %v2081_v6, %v396_v7 }
  0x3c   :  { %3569 = vst [vmem:[#allocation32_spill] sm:$0xff] %v2646_v5  ;;  %v2664_v56 = vpack.c.bf16 %v530_v62, %v529_v27  ;;  %v236_v31 = vmax.f32 %v172_v47, 0.0  ;;  %v102_v54 = vmul.f32 %v2583_v32, %v2100_v11  ;;  %v103_v5 = vmul.f32 %v2583_v32, %v2105_v12 }
  0x3d   :  { %1973 = vmatmul.mubr.msk.bf16.gmra.mxu1 %vm575_vm0, %v2379_v38  ;;  %1882 = vmatprep.mubr.msk.bf16.mxu0 %vm575_vm0, %v297_v2  ;;  %v468_v46 = vadd.f32 %v2081_v6, %v397_v24  ;;  %v531_v48 = vmax.f32 %v467_v4, 0.0  ;;  %v398_v38 = vmul.f32 %v2072_v3, %v2652_v8  ;;  %v399_v62 = vmul.f32 %v2072_v3, %v2657_v1 }
  0x3e   :  { %1976 = vmatprep.mubr.msk.bf16.mxu1 %vm575_vm0, %v2389_v52  ;;  %v298_v58 = vpack.c.bf16 %v236_v31, %v235_v63  ;;  %v173_v11 = vadd.f32 %v2608_v9, %v102_v54  ;;  %v174_v7 = vadd.f32 %v2608_v9, %v103_v5  ;;  %v104_v12 = vmul.f32 %v2583_v32, %v2110_v13 }
  0x3f   :  { %v532_v52 = vmax.f32 %v468_v46, 0.0  ;;  %v469_v27 = vadd.f32 %v2081_v6, %v398_v38  ;;  %v470_v47 = vadd.f32 %v2081_v6, %v399_v62  ;;  %v105_v2 = vmul.f32 %v2583_v32, %v2121_v18 }
  0x40   :  { %1883 = vmatmul.mubr.msk.bf16.vlgmr.msra.gmra.mxu0 %vm575_vm0, %v298_v58  ;;  %v237_v24 = vmax.f32 %v173_v11, 0.0  ;;  %v238_v3 = vmax.f32 %v174_v7, 0.0  ;;  %v175_v63 = vadd.f32 %v2608_v9, %v104_v12  ;;  %v106_v5 = vmul.f32 %v2583_v32, %v2132_v23 }
  0x41   :  { %v2690_v4 = vpack.c.bf16 %v532_v52, %v531_v48  ;;  %v533_v13 = vmax.f32 %v469_v27, 0.0  ;;  %v534_v31 = vmax.f32 %v470_v47, 0.0  ;;  %v176_v54 = vadd.f32 %v2608_v9, %v105_v2 }
  0x42   :  { %v299_v46 = vpack.c.bf16 %v238_v3, %v237_v24  ;;  %v239_v6 = vmax.f32 %v175_v63, 0.0  ;;  %v107_v18 = vmul.f32 %v2583_v32, %v2139_v28  ;;  %v177_v38 = vadd.f32 %v2608_v9, %v106_v5 }
  0x43   :  { %v2696_v62 = vpack.c.bf16 %v534_v31, %v533_v13  ;;  %v240_v58 = vmax.f32 %v176_v54, 0.0  ;;  %v108_v11 = vmul.f32 %v2583_v32, %v2146_v33  ;;  %v109_v23 = vmul.f32 %v2583_v32, %v2151_v34 }
  0x44   :  { %1886 = vmatprep.mubr.msk.bf16.mxu0 %vm575_vm0, %v299_v46  ;;  %v178_v48 = vadd.f32 %v2608_v9, %v107_v18  ;;  %v241_v7 = vmax.f32 %v177_v38, 0.0  ;;  %v110_v28 = vmul.f32 %v2583_v32, %v2158_v39  ;;  %v111_v12 = vmul.f32 %v2583_v32, %v2163_v40 }
  0x45   :  { %1977 = vmatmul.mubr.msk.bf16.gmra.mxu1 %vm575_vm0, %v2410_v30  ;;  %v300_v33 = vpack.c.bf16 %v240_v58, %v239_v6  ;;  %v179_v34 = vadd.f32 %v2608_v9, %v108_v11  ;;  %v180_v52 = vadd.f32 %v2608_v9, %v109_v23  ;;  %v112_v30 = vmul.f32 %v2583_v32, %v2170_v45 }
  0x46   :  { %1980 = vmatprep.mubr.msk.bf16.mxu1 %vm575_vm0, %v2442_v44  ;;  %v242_v27 = vmax.f32 %v178_v48, 0.0  ;;  %v181_v47 = vadd.f32 %v2608_v9, %v110_v28  ;;  %v182_v2 = vadd.f32 %v2608_v9, %v111_v12  ;;  %v113_v39 = vmul.f32 %v2583_v32, %v2181_v50 }
  0x47   :  { %v243_v40 = vmax.f32 %v179_v34, 0.0  ;;  %v244_v24 = vmax.f32 %v180_v52, 0.0  ;;  %v183_v44 = vadd.f32 %v2608_v9, %v112_v30  ;;  %v114_v3 = vmul.f32 %v2583_v32, %v2192_v55 }
  0x48   :  { %1887 = vmatmul.mubr.msk.bf16.gmra.mxu0 %vm575_vm0, %v300_v33  ;;  %v301_v63 = vpack.c.bf16 %v242_v27, %v241_v7  ;;  %v245_v5 = vmax.f32 %v181_v47, 0.0  ;;  %v246_v45 = vmax.f32 %v182_v2, 0.0  ;;  %v184_v13 = vadd.f32 %v2608_v9, %v113_v39 }
  0x49   :  { %v302_v31 = vpack.c.bf16 %v244_v24, %v243_v40  ;;  %v115_v54 = vmul.f32 %v2583_v32, %v2206_v0  ;;  %v185_v50 = vadd.f32 %v2608_v9, %v114_v3  ;;  %v247_v6 = vmax.f32 %v183_v44, 0.0 }
  0x4a   :  { %1890 = vmatprep.mubr.msk.bf16.mxu0 %vm575_vm0, %v301_v63  ;;  %v303_v46 = vpack.c.bf16 %v246_v45, %v245_v5  ;;  %v116_v55 = vmul.f32 %v2583_v32, %v2214_v14  ;;  %v117_v18 = vmul.f32 %v2583_v32, %v2219_v15  ;;  %v248_v38 = vmax.f32 %v184_v13, 0.0 }
  0x4b   :  { %v186_v58 = vadd.f32 %v2608_v9, %v115_v54  ;;  %v118_v11 = vmul.f32 %v2583_v32, %v2225_v21  ;;  %v119_v0 = vmul.f32 %v2583_v32, %v2230_v22  ;;  %v249_v23 = vmax.f32 %v185_v50, 0.0 }
  0x4c   :  { %v187_v48 = vadd.f32 %v2608_v9, %v116_v55  ;;  %v188_v14 = vadd.f32 %v2608_v9, %v117_v18  ;;  %v120_v15 = vmul.f32 %v2583_v32, %v2238_v29  ;;  %v121_v22 = vmul.f32 %v2583_v32, %v2247_v36 }
  0x4d   :  { %1981 = vmatmul.mubr.msk.bf16.gmra.mxu1 %vm575_vm0, %v2455_v49  ;;  %v250_v7 = vmax.f32 %v186_v58, 0.0  ;;  %v189_v21 = vadd.f32 %v2608_v9, %v118_v11  ;;  %v190_v28 = vadd.f32 %v2608_v9, %v119_v0  ;;  %v122_v12 = vmul.f32 %v2583_v32, %v2257_v43  ;;  %v3572_v11 = vld [vmem:[#allocation3_spill] sm:$0xff] }
  0x4e   :  { %1984 = vmatprep.mubr.msk.bf16.mxu1 %vm575_vm0, %v2465_v35  ;;  %v191_v49 = vadd.f32 %v2608_v9, %v120_v15  ;;  %v304_v33 = vpack.c.bf16 %v248_v38, %v247_v6  ;;  %v251_v34 = vmax.f32 %v187_v48, 0.0  ;;  %v252_v52 = vmax.f32 %v188_v14, 0.0  ;;  %v3573_v14 = vld [vmem:[#allocation4_spill] sm:$0xff] }
  0x4f   :  { %v192_v29 = vadd.f32 %v2608_v9, %v121_v22  ;;  %v305_v35 = vpack.c.bf16 %v250_v7, %v249_v23  ;;  %v253_v30 = vmax.f32 %v189_v21, 0.0  ;;  %v123_v27 = vmul.f32 %v2583_v32, %v2274_v51  ;;  %v3574_v7 = vld [vmem:[#allocation5_spill] sm:$0xff] }
  0x50   :  { %1891 = vmatmul.mubr.msk.bf16.gmra.mxu0 %vm575_vm0, %v302_v31  ;;  %v193_v47 = vadd.f32 %v2608_v9, %v122_v12  ;;  %v254_v36 = vmax.f32 %v190_v28, 0.0  ;;  %v255_v2 = vmax.f32 %v191_v49, 0.0  ;;  %v124_v43 = vmul.f32 %v2583_v32, %v2282_v60  ;;  %v3575_v49 = vld [vmem:[#allocation6_spill] sm:$0xff] }
  0x51   :  { %1894 = vmatprep.mubr.msk.bf16.mxu0 %vm575_vm0, %v303_v46  ;;  %v125_v39 = vmul.f32 %v2583_v32, %v2287_v61  ;;  %v256_v40 = vmax.f32 %v192_v29, 0.0  ;;  %v194_v24 = vadd.f32 %v2608_v9, %v123_v27  ;;  %v126_v44 = vmul.f32 %v2583_v32, %v2298_v10  ;;  %v3577_v27 = vld [vmem:[#allocation8_spill] sm:$0xff] }
  0x52   :  { %v127_v51 = vmul.f32 %v2583_v32, %v2303_v16  ;;  %v257_v3 = vmax.f32 %v193_v47, 0.0  ;;  %v195_v63 = vadd.f32 %v2608_v9, %v124_v43  ;;  %v128_v60 = vmul.f32 %v2583_v32, %v2313_v26  ;;  %v3570_v16 = vld [vmem:[#allocation22_spill] sm:$0xff]  ;;  %v3578_v43 = vld [vmem:[#allocation9_spill] sm:$0xff] }
  0x53   :  { %v196_v5 = vadd.f32 %v2608_v9, %v125_v39  ;;  %v258_v61 = vmax.f32 %v194_v24, 0.0  ;;  %v197_v45 = vadd.f32 %v2608_v9, %v126_v44  ;;  %v129_v10 = vmul.f32 %v2583_v32, %v2324_v37  ;;  %v3571_v26 = vld [vmem:[#allocation2_spill] sm:$0xff] }
  0x54   :  { %v198_v13 = vadd.f32 %v2608_v9, %v127_v51  ;;  %v259_v31 = vmax.f32 %v195_v63, 0.0  ;;  %v2781_v50 = vadd.f32 %v2608_v9, %v128_v60  ;;  %v130_v46 = vmul.f32 %v2583_v32, %v3571_v26  ;;  %v3579_v51 = vld [vmem:[#allocation10_spill] sm:$0xff]  ;;  %v3581_v26 = vld [vmem:[#allocation12_spill] sm:$0xff] }
  0x55   :  { %1985 = vmatmul.mubr.msk.bf16.gmra.mxu1 %vm575_vm0, %v2486_v41  ;;  %v260_v54 = vmax.f32 %v196_v5, 0.0  ;;  %v306_v41 = vpack.c.bf16 %v252_v52, %v251_v34  ;;  %v261_v6 = vmax.f32 %v197_v45, 0.0  ;;  %v2786_v18 = vadd.f32 %v2608_v9, %v129_v10 }
  0x56   :  { %1988 = vmatprep.mubr.msk.bf16.mxu1 %vm575_vm0, %v3570_v16  ;;  %v262_v55 = vmax.f32 %v198_v13, 0.0  ;;  %v307_v38 = vpack.c.bf16 %v254_v36, %v253_v30  ;;  %v2788_v58 = vpack.c.bf16 %v256_v40, %v255_v2  ;;  %v2790_v37 = vpack.c.bf16 %v258_v61, %v257_v3 }
  0x57   :  { %v131_v0 = vmul.f32 %v2583_v32, %v3572_v11  ;;  %v2795_v23 = vpack.c.bf16 %v260_v54, %v259_v31  ;;  %v263_v48 = vmax.f32 %v2781_v50, 0.0  ;;  %v132_v15 = vmul.f32 %v2583_v32, %v3573_v14 }
  0x58   :  { %1895 = vmatmul.mubr.msk.bf16.gmra.mxu0 %vm575_vm0, %v304_v33  ;;  %v133_v21 = vmul.f32 %v2583_v32, %v3574_v7  ;;  %v2803_v28 = vpack.c.bf16 %v262_v55, %v261_v6  ;;  %v2806_v22 = vadd.f32 %v2608_v9, %v130_v46  ;;  %v134_v12 = vmul.f32 %v2583_v32, %v3575_v49  ;;  %v3576_v33 = vld [vmem:[#allocation7_spill] sm:$0xff]  ;;  %v3582_v46 = vld [vmem:[#allocation13_spill] sm:$0xff] }
  0x59   :  { %1898 = vmatprep.mubr.msk.bf16.mxu0 %vm575_vm0, %v305_v35  ;;  %v135_v34 = vmul.f32 %v2583_v32, %v3576_v33  ;;  %v264_v52 = vmax.f32 %v2786_v18, 0.0  ;;  %v203_v29 = vadd.f32 %v2608_v9, %v132_v15  ;;  %v136_v35 = vmul.f32 %v2583_v32, %v3577_v27  ;;  %v3584_v15 = vld [vmem:[#allocation15_spill] sm:$0xff]  ;;  %v3585_v33 = vld [vmem:[#allocation16_spill] sm:$0xff]  ;;  %v3586_v27 = vld [vmem:[#allocation17_spill] sm:$0xff] }
  0x5a   :  { %v204_v30 = vadd.f32 %v2608_v9, %v133_v21  ;;  %v2818_v47 = vadd.f32 %v2608_v9, %v131_v0  ;;  %v205_v36 = vadd.f32 %v2608_v9, %v134_v12  ;;  %v137_v39 = vmul.f32 %v2583_v32, %v3578_v43  ;;  %v3583_v0 = vld [vmem:[#allocation14_spill] sm:$0xff] }
  0x5b   :  { %v206_v2 = vadd.f32 %v2608_v9, %v135_v34  ;;  %v267_v40 = vmax.f32 %v203_v29, 0.0  ;;  %v207_v44 = vadd.f32 %v2608_v9, %v136_v35  ;;  %v138_v3 = vmul.f32 %v2583_v32, %v3579_v51  ;;  %v3587_v43 = vld [vmem:[#allocation18_spill] sm:$0xff] }
  0x5c   :  { %v268_v24 = vmax.f32 %v204_v30, 0.0  ;;  %v265_v63 = vmax.f32 %v2806_v22, 0.0  ;;  %v269_v5 = vmax.f32 %v205_v36, 0.0  ;;  %v208_v61 = vadd.f32 %v2608_v9, %v137_v39 }
  0x5d   :  { %1989 = vmatmul.mubr.msk.bf16.gmra.mxu1 %vm575_vm0, %v2531_v17  ;;  %v270_v60 = vmax.f32 %v206_v2, 0.0  ;;  %v271_v13 = vmax.f32 %v207_v44, 0.0  ;;  %v3580_v17 = vld [vmem:[#allocation11_spill] sm:$0xff]  ;;  %v209_v16 = vadd.f32 %v2608_v9, %v138_v3  ;;  %v141_v6 = vmul.f32 %v2583_v32, %v3582_v46 }
  0x5e   :  { %1992 = vmatprep.mubr.msk.bf16.mxu1 %vm575_vm0, %v2541_v19  ;;  %v2833_v45 = vpack.c.bf16 %v268_v24, %v267_v40  ;;  %v139_v10 = vmul.f32 %v2583_v32, %v3580_v17  ;;  %v272_v54 = vmax.f32 %v208_v61, 0.0  ;;  %v140_v19 = vmul.f32 %v2583_v32, %v3581_v26  ;;  %v3588_v40 = vld [vmem:[#allocation28_spill] sm:$0xff]  ;;  %v3589_v61 = vld [vmem:[#allocation19_spill] sm:$0xff] }
  0x5f   :  { %v2838_v31 = vpack.c.bf16 %v270_v60, %v269_v5  ;;  %v273_v11 = vmax.f32 %v209_v16, 0.0  ;;  %v142_v14 = vmul.f32 %v2583_v32, %v3583_v0  ;;  %v143_v7 = vmul.f32 %v2583_v32, %v3584_v15  ;;  %v3593_v0 = vld [vmem:[#allocation24_spill] sm:$0xff] }
  0x60   :  { %1899 = vmatmul.mubr.msk.bf16.gmra.mxu0 %vm575_vm0, %v306_v41  ;;  %v210_v55 = vadd.f32 %v2608_v9, %v139_v10  ;;  %v2851_v21 = vpack.c.bf16 %v272_v54, %v271_v13  ;;  %v211_v49 = vadd.f32 %v2608_v9, %v140_v19  ;;  %v212_v12 = vadd.f32 %v2608_v9, %v141_v6  ;;  %v3590_v54 = vld [vmem:[#allocation20_spill] sm:$0xff]  ;;  %v3591_v19 = vld [vmem:[#allocation21_spill] sm:$0xff] }
  0x61   :  { %1902 = vmatprep.mubr.msk.bf16.mxu0 %vm575_vm0, %v307_v38  ;;  %v144_v41 = vmul.f32 %v2583_v32, %v3585_v33  ;;  %v213_v29 = vadd.f32 %v2608_v9, %v142_v14  ;;  %v214_v30 = vadd.f32 %v2608_v9, %v143_v7  ;;  %v145_v35 = vmul.f32 %v2583_v32, %v3586_v27 }
  0x62   :  { %v274_v34 = vmax.f32 %v210_v55, 0.0  ;;  %v275_v36 = vmax.f32 %v211_v49, 0.0  ;;  %v276_v2 = vmax.f32 %v212_v12, 0.0  ;;  %v146_v39 = vmul.f32 %v2583_v32, %v3587_v43  ;;  %v3592_v55 = vld [vmem:[#allocation23_spill] sm:$0xff]  ;;  %v3594_v12 = vld [vmem:[#allocation25_spill] sm:$0xff] }
  0x63   :  { %v215_v38 = vadd.f32 %v2608_v9, %v144_v41  ;;  %v277_v44 = vmax.f32 %v213_v29, 0.0  ;;  %v278_v51 = vmax.f32 %v214_v30, 0.0  ;;  %v216_v3 = vadd.f32 %v2608_v9, %v145_v35  ;;  %v3595_v30 = vld [vmem:[#allocation26_spill] sm:$0xff] }
  0x64   :  { %v2866_v24 = vpack.c.bf16 %v274_v34, %v273_v11  ;;  %v2871_v5 = vpack.c.bf16 %v276_v2, %v275_v36  ;;  %v147_v13 = vmul.f32 %v2583_v32, %v3589_v61  ;;  %v217_v17 = vadd.f32 %v2608_v9, %v146_v39  ;;  %v3596_v2 = vld [vmem:[#allocation27_spill] sm:$0xff] }
  0x65   :  { %1993 = vmatmul.mubr.msk.bf16.gmra.mxu1 %vm575_vm0, %v3588_v40  ;;  %v279_v60 = vmax.f32 %v215_v38, 0.0  ;;  %v2876_v10 = vpack.c.bf16 %v278_v51, %v277_v44  ;;  %v280_v16 = vmax.f32 %v216_v3, 0.0  ;;  %v148_v26 = vmul.f32 %v2583_v32, %v3590_v54  ;;  %v3597_v3 = vld [vmem:[#allocation29_spill] sm:$0xff]  ;;  %v3598_v54 = vld [vmem:[#allocation30_spill] sm:$0xff] }
  0x66   :  { %1996 = vmatprep.mubr.msk.bf16.mxu1 %vm575_vm0, %v2585_v53  ;;  %v149_v46 = vmul.f32 %v2583_v32, %v3591_v19  ;;  %v218_v6 = vadd.f32 %v2608_v9, %v147_v13  ;;  %v281_v53 = vmax.f32 %v217_v17, 0.0  ;;  %v150_v11 = vmul.f32 %v2583_v32, %v3592_v55 }
  0x67   :  { %v151_v14 = vmul.f32 %v2583_v32, %v3593_v0  ;;  %v2889_v15 = vpack.c.bf16 %v280_v16, %v279_v60  ;;  %v219_v7 = vadd.f32 %v2608_v9, %v148_v26  ;;  %v152_v33 = vmul.f32 %v2583_v32, %v3594_v12 }
  0x68   :  { %1903 = vmatmul.mubr.msk.bf16.gmra.mxu0 %vm575_vm0, %v2788_v58  ;;  %v220_v49 = vadd.f32 %v2608_v9, %v149_v46  ;;  %v282_v41 = vmax.f32 %v218_v6, 0.0  ;;  %v221_v34 = vadd.f32 %v2608_v9, %v150_v11  ;;  %v153_v58 = vmul.f32 %v2583_v32, %v3595_v30  ;;  %v3599_v30 = vld [vmem:[#allocation31_spill] sm:$0xff] }
  0x69   :  { %1906 = vmatprep.mubr.msk.bf16.mxu0 %vm575_vm0, %v2790_v37  ;;  %v222_v29 = vadd.f32 %v2608_v9, %v151_v14  ;;  %v283_v27 = vmax.f32 %v219_v7, 0.0  ;;  %v223_v36 = vadd.f32 %v2608_v9, %v152_v33  ;;  %v154_v38 = vmul.f32 %v2583_v32, %v3596_v2 }
  0x6a   :  { %v284_v35 = vmax.f32 %v220_v49, 0.0  ;;  %v321_v43 = vpack.c.bf16 %v282_v41, %v281_v53  ;;  %v285_v39 = vmax.f32 %v221_v34, 0.0  ;;  %v224_v37 = vadd.f32 %v2608_v9, %v153_v58 }
  0x6b   :  { %v286_v40 = vmax.f32 %v222_v29, 0.0  ;;  %v287_v51 = vmax.f32 %v223_v36, 0.0  ;;  %v155_v60 = vmul.f32 %v2583_v32, %v3597_v3  ;;  %v225_v61 = vadd.f32 %v2608_v9, %v154_v38 }
  0x6c   :  { %v322_v44 = vpack.c.bf16 %v284_v35, %v283_v27  ;;  %v288_v17 = vmax.f32 %v224_v37, 0.0  ;;  %v156_v16 = vmul.f32 %v2583_v32, %v2591_v42  ;;  %v157_v26 = vmul.f32 %v2583_v32, %v3598_v54 }
  0x6d   :  { %1997 = vmatmul.mubr.msk.bf16.gmra.mxu1 %vm575_vm0, %v2600_v59  ;;  %v323_v13 = vpack.c.bf16 %v286_v40, %v285_v39  ;;  %v226_v59 = vadd.f32 %v2608_v9, %v155_v60  ;;  %v289_v19 = vmax.f32 %v225_v61, 0.0  ;;  %v158_v46 = vmul.f32 %v2583_v32, %v2626_v20 }
  0x6e   :  { %2000 = vmatprep.mubr.msk.bf16.mxu1 %vm575_vm0, %v2612_v57  ;;  %v159_v6 = vmul.f32 %v2583_v32, %v2641_v25  ;;  %v324_v53 = vpack.c.bf16 %v288_v17, %v287_v51  ;;  %v227_v57 = vadd.f32 %v2608_v9, %v156_v16  ;;  %v228_v55 = vadd.f32 %v2608_v9, %v157_v26 }
  0x6f   :  { %v160_v42 = vmul.f32 %v2583_v32, %v2652_v8  ;;  %v290_v11 = vmax.f32 %v226_v59, 0.0  ;;  %v229_v0 = vadd.f32 %v2608_v9, %v158_v46  ;;  %v161_v20 = vmul.f32 %v2583_v32, %v2657_v1 }
  0x70   :  { %1907 = vmatmul.mubr.msk.bf16.gmra.mxu0 %vm575_vm0, %v2795_v23  ;;  %v230_v14 = vadd.f32 %v2608_v9, %v159_v6  ;;  %v266_v25 = vmax.f32 %v2818_v47, 0.0  ;;  %v291_v7 = vmax.f32 %v227_v57, 0.0  ;;  %v292_v49 = vmax.f32 %v228_v55, 0.0  ;;  %v3600_v47 = vld [vmem:[#allocation32_spill] sm:$0xff] }
  0x71   :  { %1910 = vmatprep.mubr.msk.bf16.mxu0 %vm575_vm0, %v2803_v28  ;;  %v231_v8 = vadd.f32 %v2608_v9, %v160_v42  ;;  %v325_v12 = vpack.c.bf16 %v290_v11, %v289_v19  ;;  %v293_v33 = vmax.f32 %v229_v0, 0.0  ;;  %v232_v41 = vadd.f32 %v2608_v9, %v161_v20 }
  0x72   :  { %v294_v23 = vmax.f32 %v230_v14, 0.0  ;;  %v326_v34 = vpack.c.bf16 %v292_v49, %v291_v7  ;;  %v312_v32 = vpack.c.bf16 %v264_v52, %v263_v48  ;;  %v313_v58 = vpack.c.bf16 %v266_v25, %v265_v63 }
  0x73   :  { %v295_v29 = vmax.f32 %v231_v8, 0.0  ;;  %v296_v28 = vmax.f32 %v232_v41, 0.0 }
  0x74   :  { %v327_v1 = vpack.c.bf16 %v294_v23, %v293_v33 }
  0x75   :  { %2001 = vmatmul.mubr.msk.bf16.gmra.mxu1 %vm575_vm0, %v3599_v30  ;;  %v328_v27 = vpack.c.bf16 %v296_v28, %v295_v29 }
  0x76   :  { %2004 = vmatprep.mubr.msk.bf16.mxu1 %vm575_vm0, %v3600_v47 }
  0x78   :  { %1911 = vmatmul.mubr.msk.bf16.gmra.mxu0 %vm575_vm0, %v312_v32 }
  0x79   :  { %1914 = vmatprep.mubr.msk.bf16.mxu0 %vm575_vm0, %v313_v58 }
  0x7d   :  { %2005 = vmatmul.mubr.msk.bf16.gmra.mxu1 %vm575_vm0, %v2664_v56 }
  0x7e   :  { %2008 = vmatprep.mubr.msk.bf16.mxu1 %vm575_vm0, %v2690_v4 }
  0x80   :  { %1915 = vmatmul.mubr.msk.bf16.gmra.mxu0 %vm575_vm0, %v2833_v45 }
  0x81   :  { %1918 = vmatprep.mubr.msk.bf16.mxu0 %vm575_vm0, %v2838_v31 }
  0x85   :  { %2009 = vmatmul.mubr.msk.bf16.gmra.mxu1 %vm575_vm0, %v2696_v62 }
  0x88   :  { %1919 = vmatmul.mubr.msk.bf16.gmra.mxu0 %vm575_vm0, %v2851_v21 }
  0x89   :  { %1922 = vmatprep.mubr.msk.bf16.mxu0 %vm575_vm0, %v2866_v24 }
  0x90   :  { %1923 = vmatmul.mubr.msk.bf16.gmra.mxu0 %vm575_vm0, %v2871_v5 }
  0x91   :  { %1926 = vmatprep.mubr.msk.bf16.mxu0 %vm575_vm0, %v2876_v10 }
  0x98   :  { %1927 = vmatmul.mubr.msk.bf16.gmra.mxu0 %vm575_vm0, %v2889_v15 }
  0x99   :  { %1930 = vmatprep.mubr.msk.bf16.mxu0 %vm575_vm0, %v321_v43 }
  0xa0   :  { %1931 = vmatmul.mubr.msk.bf16.gmra.mxu0 %vm575_vm0, %v322_v44 }
  0xa1   :  { %1934 = vmatprep.mubr.msk.bf16.mxu0 %vm575_vm0, %v323_v13 }
  0xa8   :  { %1935 = vmatmul.mubr.msk.bf16.gmra.mxu0 %vm575_vm0, %v324_v53 }
  0xa9   :  { %1938 = vmatprep.mubr.msk.bf16.mxu0 %vm575_vm0, %v325_v12 }
  0xb0   :  { %1939 = vmatmul.mubr.msk.bf16.gmra.mxu0 %vm575_vm0, %v326_v34 }
  0xb1   :  { %1942 = vmatprep.mubr.msk.bf16.mxu0 %vm575_vm0, %v327_v1 }
  0xb8   :  { %1943 = vmatmul.mubr.msk.bf16.gmra.mxu0 %vm575_vm0, %v328_v27 }
  0xcd   :  { %v1950_v9 = vpop.f32.mrf.mxu1 }
  0xce   :  { %1422 = vrot.lane.b32.xlu1 %v1950_v9, %s2015_s0 }
  0xcf   :  { %v1099_v56 = vpop.f32.mrf.mxu1 }
  0xd0   :  { %1418 = vrot.lane.b32.xlu0 %v1099_v56, %s2015_s0 }
  0xd1   :  { %v1951_v4 = vpop.f32.mrf.mxu1 }
  0xd2   :  { %1424 = vrot.lane.b32.xlu1 %v1951_v4, %s2015_s0 }
  0xd3   :  { %v1102_v62 = vpop.f32.mrf.mxu1 }
  0xd4   :  { %1420 = vrot.lane.b32.xlu0 %v1102_v62, %s2015_s0 }
  0xd5   :  { %v1954_v50 = vpop.f32.mrf.mxu1 }
  0xd7   :  { %v1115_v18 = vpop.f32.mrf.mxu1 }
  0xd8   :  { %1430 = vrot.lane.b32.xlu0 %v1954_v50, %s2015_s0 }
  0xd9   :  { %v1955_v48 = vpop.f32.mrf.mxu1 }
  0xda   :  { %1432 = vrot.lane.b32.xlu1 %v1955_v48, %s2015_s0 }
  0xdb   :  { %v1118_v22 = vpop.f32.mrf.mxu1 }
  0xdc   :  { %1426 = vrot.lane.b32.xlu0 %v1115_v18, %s2015_s0 }
  0xdd   :  { %v1958_v52 = vpop.f32.mrf.mxu1 }
  0xde   :  { %1428 = vrot.lane.b32.xlu1 %v1118_v22, %s2015_s0 }
  0xdf   :  { %v1131_v63 = vpop.f32.mrf.mxu1 }
  0xe0   :  { %1438 = vrot.lane.b32.xlu0 %v1958_v52, %s2015_s0 }
  0xe1   :  { %v1959_v45 = vpop.f32.mrf.mxu1 }
  0xe2   :  { %1440 = vrot.lane.b32.xlu1 %v1959_v45, %s2015_s0 }
  0xe3   :  { %v1134_v31 = vpop.f32.mrf.mxu1 }
  0xe4   :  { %1434 = vrot.lane.b32.xlu0 %v1131_v63, %s2015_s0 }
  0xe5   :  { %v1962_v21 = vpop.f32.mrf.mxu1 }
  0xe6   :  { %1436 = vrot.lane.b32.xlu1 %v1134_v31, %s2015_s0 }
  0xe7   :  { %v1147_v24 = vpop.f32.mrf.mxu1 }
  0xe8   :  { %1446 = vrot.lane.b32.xlu0 %v1962_v21, %s2015_s0 }
  0xe9   :  { %v1963_v5 = vpop.f32.mrf.mxu1 }
  0xea   :  { %1448 = vrot.lane.b32.xlu1 %v1963_v5, %s2015_s0 }
  0xeb   :  { %v1150_v10 = vpop.f32.mrf.mxu1 }
  0xec   :  { %1442 = vrot.lane.b32.xlu0 %v1147_v24, %s2015_s0 }
  0xed   :  { %v1966_v15 = vpop.f32.mrf.mxu1 }
  0xee   :  { %1444 = vrot.lane.b32.xlu1 %v1150_v10, %s2015_s0 }
  0xef   :  { %v1163_v35 = vpop.f32.mrf.mxu1 }
  0xf0   :  { %1454 = vrot.lane.b32.xlu0 %v1966_v15, %s2015_s0 }
  0xf1   :  { %v1967_v36 = vpop.f32.mrf.mxu1 }
  0xf2   :  { %1456 = vrot.lane.b32.xlu1 %v1967_v36, %s2015_s0 }
  0xf3   :  { %v1166_v2 = vpop.f32.mrf.mxu1 }
  0xf4   :  { %1450 = vrot.lane.b32.xlu0 %v1163_v35, %s2015_s0 }
  0xf5   :  { %v1970_v38 = vpop.f32.mrf.mxu1 }
  0xf6   :  { %1452 = vrot.lane.b32.xlu1 %v1166_v2, %s2015_s0 }
  0xf7   :  { %v1179_v43 = vpop.f32.mrf.mxu1 }
  0xf8   :  { %1462 = vrot.lane.b32.xlu0 %v1970_v38, %s2015_s0 }
  0xf9   :  { %v1971_v39 = vpop.f32.mrf.mxu1 }
  0xfa   :  { %1464 = vrot.lane.b32.xlu1 %v1971_v39, %s2015_s0 }
  0xfb   :  { %v1182_v40 = vpop.f32.mrf.mxu1 }
  0xfc   :  { %1458 = vrot.lane.b32.xlu0 %v1179_v43, %s2015_s0 }
  0xfd   :  { %v1974_v37 = vpop.f32.mrf.mxu1 }
  0xfe   :  { %1460 = vrot.lane.b32.xlu1 %v1182_v40, %s2015_s0 }
  0xff   :  { %v1195_v44 = vpop.f32.mrf.mxu1 }
 0x100   :  { %1470 = vrot.lane.b32.xlu0 %v1974_v37, %s2015_s0  ;;  %v3001_v3 = vpop.f32.mrf.mxu0 }
 0x101   :  { %v1975_v51 = vpop.f32.mrf.mxu1 }
 0x102   :  { %1472 = vrot.lane.b32.xlu1 %v1975_v51, %s2015_s0  ;;  %v3004_v61 = vpop.f32.mrf.mxu0 }
 0x103   :  { %v1198_v60 = vpop.f32.mrf.mxu1 }
 0x104   :  { %1466 = vrot.lane.b32.xlu0 %v1195_v44, %s2015_s0  ;;  %v3007_v17 = vpop.f32.mrf.mxu0 }
 0x105   :  { %v1978_v13 = vpop.f32.mrf.mxu1 }
 0x106   :  { %1468 = vrot.lane.b32.xlu1 %v1198_v60, %s2015_s0  ;;  %v3010_v54 = vpop.f32.mrf.mxu0 }
 0x107   :  { %v1211_v16 = vpop.f32.mrf.mxu1 }
 0x108   :  { %1478 = vrot.lane.b32.xlu0 %v1978_v13, %s2015_s0  ;;  %v3013_v59 = vpop.f32.mrf.mxu0 }
 0x109   :  { %v1979_v26 = vpop.f32.mrf.mxu1 }
 0x10a   :  { %1480 = vrot.lane.b32.xlu1 %v1979_v26, %s2015_s0  ;;  %v3016_v46 = vpop.f32.mrf.mxu0 }
 0x10b   :  { %v1214_v19 = vpop.f32.mrf.mxu1 }
 0x10c   :  { %1474 = vrot.lane.b32.xlu0 %v1211_v16, %s2015_s0  ;;  %v3019_v53 = vpop.f32.mrf.mxu0 }
 0x10d   :  { %v1982_v6 = vpop.f32.mrf.mxu1 }
 0x10e   :  { %1476 = vrot.lane.b32.xlu1 %v1214_v19, %s2015_s0  ;;  %v3022_v55 = vpop.f32.mrf.mxu0 }
 0x10f   :  { %v1227_v57 = vpop.f32.mrf.mxu1 }
 0x110   :  { %1486 = vrot.lane.b32.xlu0 %v1982_v6, %s2015_s0  ;;  %v3025_v11 = vpop.f32.mrf.mxu0 }
 0x111   :  { %v1983_v42 = vpop.f32.mrf.mxu1 }
 0x112   :  { %1488 = vrot.lane.b32.xlu1 %v1983_v42, %s2015_s0  ;;  %v3028_v14 = vpop.f32.mrf.mxu0 }
 0x113   :  { %v1230_v0 = vpop.f32.mrf.mxu1 }
 0x114   :  { %1482 = vrot.lane.b32.xlu0 %v1227_v57, %s2015_s0  ;;  %v3031_v25 = vpop.f32.mrf.mxu0 }
 0x115   :  { %v1986_v20 = vpop.f32.mrf.mxu1 }
 0x116   :  { %1484 = vrot.lane.b32.xlu1 %v1230_v0, %s2015_s0  ;;  %v3034_v49 = vpop.f32.mrf.mxu0 }
 0x117   :  { %v1243_v7 = vpop.f32.mrf.mxu1 }
 0x118   :  { %1494 = vrot.lane.b32.xlu0 %v1986_v20, %s2015_s0  ;;  %v3037_v12 = vpop.f32.mrf.mxu0 }
 0x119   :  { %v1987_v8 = vpop.f32.mrf.mxu1 }
 0x11a   :  { %1496 = vrot.lane.b32.xlu1 %v1987_v8, %s2015_s0  ;;  %v3040_v23 = vpop.f32.mrf.mxu0 }
 0x11b   :  { %v1246_v33 = vpop.f32.mrf.mxu1 }
 0x11c   :  { %1490 = vrot.lane.b32.xlu0 %v1243_v7, %s2015_s0  ;;  %v3043_v34 = vpop.f32.mrf.mxu0 }
 0x11d   :  { %v1990_v41 = vpop.f32.mrf.mxu1 }
 0x11e   :  { %1492 = vrot.lane.b32.xlu1 %v1246_v33, %s2015_s0  ;;  %v3046_v30 = vpop.f32.mrf.mxu0 }
 0x11f   :  { %v1259_v29 = vpop.f32.mrf.mxu1 }
 0x120   :  { %1502 = vrot.lane.b32.xlu0 %v1990_v41, %s2015_s0  ;;  %v3049_v1 = vpop.f32.mrf.mxu0 }
 0x121   :  { %v1991_v32 = vpop.f32.mrf.mxu1 }
 0x122   :  { %1504 = vrot.lane.b32.xlu1 %v1991_v32, %s2015_s0  ;;  %v3052_v47 = vpop.f32.mrf.mxu0 }
 0x123   :  { %v1262_v28 = vpop.f32.mrf.mxu1 }
 0x124   :  { %1498 = vrot.lane.b32.xlu0 %v1259_v29, %s2015_s0  ;;  %v3055_v27 = vpop.f32.mrf.mxu0 }
 0x125   :  { %v1994_v58 = vpop.f32.mrf.mxu1 }
 0x126   :  { %1500 = vrot.lane.b32.xlu1 %v1262_v28, %s2015_s0  ;;  %v3058_v56 = vpop.f32.mrf.mxu0 }
 0x127   :  { %v1275_v9 = vpop.f32.mrf.mxu1 }
 0x128   :  { %1510 = vrot.lane.b32.xlu0 %v1994_v58, %s2015_s0  ;;  %v3061_v62 = vpop.f32.mrf.mxu0 }
 0x129   :  { %v1995_v4 = vpop.f32.mrf.mxu1 }
 0x12a   :  { %1512 = vrot.lane.b32.xlu1 %v1995_v4, %s2015_s0  ;;  %v3064_v18 = vpop.f32.mrf.mxu0 }
 0x12b   :  { %v1278_v50 = vpop.f32.mrf.mxu1 }
 0x12c   :  { %1506 = vrot.lane.b32.xlu0 %v1275_v9, %s2015_s0  ;;  %v3067_v22 = vpop.f32.mrf.mxu0 }
 0x12d   :  { %v1998_v48 = vpop.f32.mrf.mxu1 }
 0x12e   :  { %1508 = vrot.lane.b32.xlu1 %v1278_v50, %s2015_s0  ;;  %v3070_v63 = vpop.f32.mrf.mxu0 }
 0x12f   :  { %v1291_v52 = vpop.f32.mrf.mxu1 }
 0x130   :  { %1518 = vrot.lane.b32.xlu0 %v1998_v48, %s2015_s0  ;;  %v3073_v31 = vpop.f32.mrf.mxu0 }
 0x131   :  { %v1999_v45 = vpop.f32.mrf.mxu1 }
 0x132   :  { %1520 = vrot.lane.b32.xlu1 %v1999_v45, %s2015_s0  ;;  %v3076_v24 = vpop.f32.mrf.mxu0 }
 0x133   :  { %v1294_v21 = vpop.f32.mrf.mxu1 }
 0x134   :  { %1514 = vrot.lane.b32.xlu0 %v1291_v52, %s2015_s0  ;;  %v3079_v10 = vpop.f32.mrf.mxu0 }
 0x135   :  { %v2002_v5 = vpop.f32.mrf.mxu1 }
 0x136   :  { %1516 = vrot.lane.b32.xlu1 %v1294_v21, %s2015_s0  ;;  %v3082_v35 = vpop.f32.mrf.mxu0 }
 0x137   :  { %v1307_v15 = vpop.f32.mrf.mxu1 }
 0x138   :  { %1526 = vrot.lane.b32.xlu0 %v2002_v5, %s2015_s0  ;;  %v3085_v2 = vpop.f32.mrf.mxu0 }
 0x139   :  { %v2003_v36 = vpop.f32.mrf.mxu1 }
 0x13a   :  { %1528 = vrot.lane.b32.xlu1 %v2003_v36, %s2015_s0  ;;  %v3088_v43 = vpop.f32.mrf.mxu0 }
 0x13b   :  { %v1310_v38 = vpop.f32.mrf.mxu1 }
 0x13c   :  { %1522 = vrot.lane.b32.xlu0 %v1307_v15, %s2015_s0  ;;  %v3091_v40 = vpop.f32.mrf.mxu0 }
 0x13d   :  { %v2006_v39 = vpop.f32.mrf.mxu1 }
 0x13e   :  { %1524 = vrot.lane.b32.xlu1 %v1310_v38, %s2015_s0  ;;  %v3094_v44 = vpop.f32.mrf.mxu0 }
 0x13f   :  { %v1323_v37 = vpop.f32.mrf.mxu1 }
 0x140   :  { %v1423_v51 = vpop.permute.xlu1 %1422  ;;  %1534 = vrot.lane.b32.xlu0 %v2006_v39, %s2015_s0  ;;  %v3099_v16 = vpop.f32.mrf.mxu0 }
 0x141   :  { %v1613_v60 = vsel %vm1610_vm1, %v3001_v3, %v1423_v51  ;;  %v2007_v13 = vpop.f32.mrf.mxu1 }
 0x142   :  { %1678 = vst.msk [vmem:[%s3511_s7 + $0x10] sm:$0xff] %vm1675_vm2, %v1613_v60  ;;  %v1419_v26 = vpop.permute.xlu0 %1418  ;;  %1536 = vrot.lane.b32.xlu1 %v2007_v13, %s2015_s0  ;;  %v3115_v0 = vpop.f32.mrf.mxu0 }
 0x143   :  { %v1611_v19 = vsel %vm1610_vm1, %v3004_v61, %v1419_v26  ;;  %v1326_v6 = vpop.f32.mrf.mxu1 }
 0x144   :  { %1676 = vst.msk [vmem:[%s3511_s7] sm:$0xff] %vm1675_vm2, %v1611_v19  ;;  %v1425_v3 = vpop.permute.xlu1 %1424  ;;  %1530 = vrot.lane.b32.xlu0 %v1323_v37, %s2015_s0  ;;  %v3129_v8 = vpop.f32.mrf.mxu0 }
 0x145   :  { %v1614_v57 = vsel %vm1610_vm1, %v3007_v17, %v1425_v3  ;;  %v2010_v42 = vpop.f32.mrf.mxu1 }
 0x146   :  { %1679 = vst.msk [vmem:[%s3511_s7 + $0x18] sm:$0xff] %vm1675_vm2, %v1614_v57  ;;  %v1421_v61 = vpop.permute.xlu0 %1420  ;;  %1532 = vrot.lane.b32.xlu1 %v1326_v6, %s2015_s0  ;;  %v3141_v28 = vpop.f32.mrf.mxu0 }
 0x147   :  { %v1612_v20 = vsel %vm1610_vm1, %v3010_v54, %v1421_v61  ;;  %v1339_v7 = vpop.f32.mrf.mxu1 }
 0x148   :  { %1677 = vst.msk [vmem:[%s3511_s7 + $0x8] sm:$0xff] %vm1675_vm2, %v1612_v20  ;;  %1538 = vrot.lane.b32.xlu0 %v1339_v7, %s2015_s0  ;;  %v3156_v4 = vpop.f32.mrf.mxu0 }
 0x149   :  { %v2011_v17 = vpop.f32.mrf.mxu1 }
 0x14a   :  { %v1431_v33 = vpop.permute.xlu0 %1430  ;;  %v3170_v52 = vpop.f32.mrf.mxu0 }
 0x14b   :  { %v1617_v41 = vsel %vm1610_vm1, %v3013_v59, %v1431_v33  ;;  %v1342_v29 = vpop.f32.mrf.mxu1 }
 0x14c   :  { %1682 = vst.msk [vmem:[%s3511_s7 + $0x30] sm:$0xff] %vm1675_vm2, %v1617_v41  ;;  %v1433_v54 = vpop.permute.xlu1 %1432  ;;  %1542 = vrot.lane.b32.xlu0 %v2010_v42, %s2015_s0  ;;  %1540 = vrot.lane.b32.xlu1 %v1342_v29, %s2015_s0  ;;  %v3184_v5 = vpop.f32.mrf.mxu0 }
 0x14d   :  { %v1618_v32 = vsel %vm1610_vm1, %v3019_v53, %v1433_v54 }
 0x14e   :  { %1683 = vst.msk [vmem:[%s3511_s7 + $0x38] sm:$0xff] %vm1675_vm2, %v1618_v32  ;;  %v1427_v59 = vpop.permute.xlu0 %1426  ;;  %v3198_v38 = vpop.f32.mrf.mxu0 }
 0x14f   :  { %v1615_v58 = vsel %vm1610_vm1, %v3016_v46, %v1427_v59 }
 0x150   :  { %1680 = vst.msk [vmem:[%s3511_s7 + $0x20] sm:$0xff] %vm1675_vm2, %v1615_v58  ;;  %v1429_v9 = vpop.permute.xlu1 %1428  ;;  %1544 = vrot.lane.b32.xlu1 %v2011_v17, %s2015_s0  ;;  %v3212_v51 = vpop.f32.mrf.mxu0 }
 0x151   :  { %v1616_v53 = vsel %vm1610_vm1, %v3022_v55, %v1429_v9 }
 0x152   :  { %1681 = vst.msk [vmem:[%s3511_s7 + $0x28] sm:$0xff] %vm1675_vm2, %v1616_v53  ;;  %v1439_v50 = vpop.permute.xlu0 %1438  ;;  %v3226_v26 = vpop.f32.mrf.mxu0 }
 0x153   :  { %v1621_v46 = vsel %vm1610_vm1, %v3025_v11, %v1439_v50 }
 0x154   :  { %1686 = vst.msk [vmem:[%s3511_s7 + $0x50] sm:$0xff] %vm1675_vm2, %v1621_v46  ;;  %v1441_v48 = vpop.permute.xlu1 %1440  ;;  %v3240_v3 = vpop.f32.mrf.mxu0 }
 0x155   :  { %v1622_v55 = vsel %vm1610_vm1, %v3031_v25, %v1441_v48 }
 0x156   :  { %1687 = vst.msk [vmem:[%s3511_s7 + $0x58] sm:$0xff] %vm1675_vm2, %v1622_v55  ;;  %v1435_v45 = vpop.permute.xlu0 %1434  ;;  %v3254_v61 = vpop.f32.mrf.mxu0 }
 0x157   :  { %v1619_v11 = vsel %vm1610_vm1, %v3028_v14, %v1435_v45 }
 0x158   :  { %1684 = vst.msk [vmem:[%s3511_s7 + $0x40] sm:$0xff] %vm1675_vm2, %v1619_v11  ;;  %v1437_v21 = vpop.permute.xlu1 %1436  ;;  %v3268_v17 = vpop.f32.mrf.mxu0 }
 0x159   :  { %v1620_v25 = vsel %vm1610_vm1, %v3034_v49, %v1437_v21 }
 0x15a   :  { %1685 = vst.msk [vmem:[%s3511_s7 + $0x48] sm:$0xff] %vm1675_vm2, %v1620_v25  ;;  %v1447_v15 = vpop.permute.xlu0 %1446  ;;  %v3282_v29 = vpop.f32.mrf.mxu0 }
 0x15b   :  { %v1625_v14 = vsel %vm1610_vm1, %v3037_v12, %v1447_v15 }
 0x15c   :  { %1690 = vst.msk [vmem:[%s3511_s7 + $0x70] sm:$0xff] %vm1675_vm2, %v1625_v14  ;;  %v1449_v36 = vpop.permute.xlu1 %1448  ;;  %v3296_v59 = vpop.f32.mrf.mxu0 }
 0x15d   :  { %v1626_v49 = vsel %vm1610_vm1, %v3043_v34, %v1449_v36 }
 0x15e   :  { %1691 = vst.msk [vmem:[%s3511_s7 + $0x78] sm:$0xff] %vm1675_vm2, %v1626_v49  ;;  %v1443_v39 = vpop.permute.xlu0 %1442  ;;  %v3310_v53 = vpop.f32.mrf.mxu0 }
 0x15f   :  { %v1623_v12 = vsel %vm1610_vm1, %v3040_v23, %v1443_v39 }
 0x160   :  { %1688 = vst.msk [vmem:[%s3511_s7 + $0x60] sm:$0xff] %vm1675_vm2, %v1623_v12  ;;  %v1445_v37 = vpop.permute.xlu1 %1444  ;;  %v1932_v48 = vpop.f32.mrf.mxu0 }
 0x161   :  { %v1624_v34 = vsel %vm1610_vm1, %v3046_v30, %v1445_v37 }
 0x162   :  { %1689 = vst.msk [vmem:[%s3511_s7 + $0x68] sm:$0xff] %vm1675_vm2, %v1624_v34  ;;  %v1455_v60 = vpop.permute.xlu0 %1454 }
 0x163   :  { %v1629_v23 = vsel %vm1610_vm1, %v3049_v1, %v1455_v60 }
 0x164   :  { %1694 = vst.msk [vmem:[%s3511_s7 + $0x90] sm:$0xff] %vm1675_vm2, %v1629_v23  ;;  %v1457_v13 = vpop.permute.xlu1 %1456 }
 0x165   :  { %v1630_v30 = vsel %vm1610_vm1, %v3055_v27, %v1457_v13 }
 0x166   :  { %1695 = vst.msk [vmem:[%s3511_s7 + $0x98] sm:$0xff] %vm1675_vm2, %v1630_v30  ;;  %v1451_v19 = vpop.permute.xlu0 %1450 }
 0x167   :  { %v1627_v1 = vsel %vm1610_vm1, %v3052_v47, %v1451_v19 }
 0x168   :  { %1692 = vst.msk [vmem:[%s3511_s7 + $0x80] sm:$0xff] %vm1675_vm2, %v1627_v1  ;;  %v1453_v6 = vpop.permute.xlu1 %1452 }
 0x169   :  { %v1628_v27 = vsel %vm1610_vm1, %v3058_v56, %v1453_v6 }
 0x16a   :  { %1693 = vst.msk [vmem:[%s3511_s7 + $0x88] sm:$0xff] %vm1675_vm2, %v1628_v27  ;;  %v1463_v57 = vpop.permute.xlu0 %1462 }
 0x16b   :  { %v1633_v47 = vsel %vm1610_vm1, %v3061_v62, %v1463_v57 }
 0x16c   :  { %1698 = vst.msk [vmem:[%s3511_s7 + $0xb0] sm:$0xff] %vm1675_vm2, %v1633_v47  ;;  %v1465_v42 = vpop.permute.xlu1 %1464 }
 0x16d   :  { %v1634_v56 = vsel %vm1610_vm1, %v3067_v22, %v1465_v42 }
 0x16e   :  { %1699 = vst.msk [vmem:[%s3511_s7 + $0xb8] sm:$0xff] %vm1675_vm2, %v1634_v56  ;;  %v1459_v20 = vpop.permute.xlu0 %1458 }
 0x16f   :  { %v1631_v62 = vsel %vm1610_vm1, %v3064_v18, %v1459_v20 }
 0x170   :  { %1696 = vst.msk [vmem:[%s3511_s7 + $0xa0] sm:$0xff] %vm1675_vm2, %v1631_v62  ;;  %v1461_v7 = vpop.permute.xlu1 %1460 }
 0x171   :  { %v1632_v22 = vsel %vm1610_vm1, %v3070_v63, %v1461_v7 }
 0x172   :  { %1697 = vst.msk [vmem:[%s3511_s7 + $0xa8] sm:$0xff] %vm1675_vm2, %v1632_v22  ;;  %v1471_v33 = vpop.permute.xlu0 %1470 }
 0x173   :  { %v1637_v18 = vsel %vm1610_vm1, %v3073_v31, %v1471_v33 }
 0x174   :  { %1702 = vst.msk [vmem:[%s3511_s7 + $0xd0] sm:$0xff] %vm1675_vm2, %v1637_v18  ;;  %v1473_v41 = vpop.permute.xlu1 %1472 }
 0x175   :  { %v1638_v63 = vsel %vm1610_vm1, %v3079_v10, %v1473_v41 }
 0x176   :  { %1703 = vst.msk [vmem:[%s3511_s7 + $0xd8] sm:$0xff] %vm1675_vm2, %v1638_v63  ;;  %v1467_v54 = vpop.permute.xlu0 %1466 }
 0x177   :  { %v1635_v31 = vsel %vm1610_vm1, %v3076_v24, %v1467_v54 }
 0x178   :  { %1700 = vst.msk [vmem:[%s3511_s7 + $0xc0] sm:$0xff] %vm1675_vm2, %v1635_v31  ;;  %v1469_v32 = vpop.permute.xlu1 %1468 }
 0x179   :  { %v1636_v10 = vsel %vm1610_vm1, %v3082_v35, %v1469_v32 }
 0x17a   :  { %1701 = vst.msk [vmem:[%s3511_s7 + $0xc8] sm:$0xff] %vm1675_vm2, %v1636_v10  ;;  %v1479_v58 = vpop.permute.xlu0 %1478 }
 0x17b   :  { %v1641_v24 = vsel %vm1610_vm1, %v3085_v2, %v1479_v58 }
 0x17c   :  { %1706 = vst.msk [vmem:[%s3511_s7 + $0xf0] sm:$0xff] %vm1675_vm2, %v1641_v24  ;;  %v1481_v9 = vpop.permute.xlu1 %1480 }
 0x17d   :  { %v1642_v35 = vsel %vm1610_vm1, %v3091_v40, %v1481_v9 }
 0x17e   :  { %1707 = vst.msk [vmem:[%s3511_s7 + $0xf8] sm:$0xff] %vm1675_vm2, %v1642_v35  ;;  %v1475_v50 = vpop.permute.xlu0 %1474 }
 0x17f   :  { %v1639_v2 = vsel %vm1610_vm1, %v3088_v43, %v1475_v50 }
 0x180   :  { %1704 = vst.msk [vmem:[%s3511_s7 + $0xe0] sm:$0xff] %vm1675_vm2, %v1639_v2  ;;  %v1477_v46 = vpop.permute.xlu1 %1476 }
 0x181   :  { %v1640_v40 = vsel %vm1610_vm1, %v3094_v44, %v1477_v46  ;;  %v898_v44 = vpop.f32.mrf.mxu0 }
 0x182   :  { %1705 = vst.msk [vmem:[%s3511_s7 + $0xe8] sm:$0xff] %vm1675_vm2, %v1640_v40  ;;  %v1487_v55 = vpop.permute.xlu0 %1486 }
 0x183   :  { %v1645_v45 = vsel %vm1610_vm1, %v3099_v16, %v1487_v55 }
 0x184   :  { %1710 = vst.msk [vmem:[%s3511_s7 + $0x110] sm:$0xff] %vm1675_vm2, %v1645_v45  ;;  %v1489_v43 = vpop.permute.xlu1 %1488 }
 0x185   :  { %v1646_v11 = vsel %vm1610_vm1, %v3129_v8, %v1489_v43  ;;  %v1933_v8 = vpop.f32.mrf.mxu0 }
 0x186   :  { %1711 = vst.msk [vmem:[%s3511_s7 + $0x118] sm:$0xff] %vm1675_vm2, %v1646_v11  ;;  %v1483_v21 = vpop.permute.xlu0 %1482 }
 0x187   :  { %v1643_v25 = vsel %vm1610_vm1, %v3115_v0, %v1483_v21 }
 0x188   :  { %1708 = vst.msk [vmem:[%s3511_s7 + $0x100] sm:$0xff] %vm1675_vm2, %v1643_v25  ;;  %v1485_v16 = vpop.permute.xlu1 %1484 }
 0x189   :  { %v1644_v15 = vsel %vm1610_vm1, %v3141_v28, %v1485_v16  ;;  %v901_v28 = vpop.f32.mrf.mxu0 }
 0x18a   :  { %1709 = vst.msk [vmem:[%s3511_s7 + $0x108] sm:$0xff] %vm1675_vm2, %v1644_v15  ;;  %v1495_v14 = vpop.permute.xlu0 %1494 }
 0x18b   :  { %v1649_v36 = vsel %vm1610_vm1, %v3156_v4, %v1495_v14 }
 0x18c   :  { %1714 = vst.msk [vmem:[%s3511_s7 + $0x130] sm:$0xff] %vm1675_vm2, %v1649_v36  ;;  %v1497_v0 = vpop.permute.xlu1 %1496 }
 0x18d   :  { %v1650_v49 = vsel %vm1610_vm1, %v3184_v5, %v1497_v0  ;;  %v1936_v5 = vpop.f32.mrf.mxu0 }
 0x18e   :  { %1715 = vst.msk [vmem:[%s3511_s7 + $0x138] sm:$0xff] %vm1675_vm2, %v1650_v49  ;;  %v1491_v39 = vpop.permute.xlu0 %1490 }
 0x18f   :  { %v1647_v12 = vsel %vm1610_vm1, %v3170_v52, %v1491_v39 }
 0x190   :  { %1712 = vst.msk [vmem:[%s3511_s7 + $0x120] sm:$0xff] %vm1675_vm2, %v1647_v12  ;;  %v1493_v4 = vpop.permute.xlu1 %1492 }
 0x191   :  { %v1648_v37 = vsel %vm1610_vm1, %v3198_v38, %v1493_v4  ;;  %v914_v38 = vpop.f32.mrf.mxu0 }
 0x192   :  { %1713 = vst.msk [vmem:[%s3511_s7 + $0x128] sm:$0xff] %vm1675_vm2, %v1648_v37  ;;  %v1503_v34 = vpop.permute.xlu0 %1502 }
 0x193   :  { %v1653_v60 = vsel %vm1610_vm1, %v3212_v51, %v1503_v34  ;;  %v1937_v1 = vpop.f32.mrf.mxu0 }
 0x194   :  { %1718 = vst.msk [vmem:[%s3511_s7 + $0x150] sm:$0xff] %vm1675_vm2, %v1653_v60  ;;  %v1505_v52 = vpop.permute.xlu1 %1504 }
 0x195   :  { %v1654_v23 = vsel %vm1610_vm1, %v3240_v3, %v1505_v52  ;;  %v917_v57 = vpop.f32.mrf.mxu0 }
 0x196   :  { %1719 = vst.msk [vmem:[%s3511_s7 + $0x158] sm:$0xff] %vm1675_vm2, %v1654_v23  ;;  %v1499_v13 = vpop.permute.xlu0 %1498 }
 0x197   :  { %v1651_v30 = vsel %vm1610_vm1, %v3226_v26, %v1499_v13  ;;  %v1940_v20 = vpop.f32.mrf.mxu0 }
 0x198   :  { %1716 = vst.msk [vmem:[%s3511_s7 + $0x140] sm:$0xff] %vm1675_vm2, %v1651_v30  ;;  %v1501_v51 = vpop.permute.xlu1 %1500 }
 0x199   :  { %v1652_v19 = vsel %vm1610_vm1, %v3254_v61, %v1501_v51  ;;  %v930_v33 = vpop.f32.mrf.mxu0 }
 0x19a   :  { %1717 = vst.msk [vmem:[%s3511_s7 + $0x148] sm:$0xff] %vm1675_vm2, %v1652_v19  ;;  %v1511_v6 = vpop.permute.xlu0 %1510 }
 0x19b   :  { %v1657_v27 = vsel %vm1610_vm1, %v3268_v17, %v1511_v6  ;;  %v1941_v54 = vpop.f32.mrf.mxu0 }
 0x19c   :  { %1722 = vst.msk [vmem:[%s3511_s7 + $0x170] sm:$0xff] %vm1675_vm2, %v1657_v27  ;;  %v1513_v26 = vpop.permute.xlu1 %1512 }
 0x19d   :  { %v1658_v3 = vsel %vm1610_vm1, %v3296_v59, %v1513_v26  ;;  %v933_v58 = vpop.f32.mrf.mxu0 }
 0x19e   :  { %1723 = vst.msk [vmem:[%s3511_s7 + $0x178] sm:$0xff] %vm1675_vm2, %v1658_v3  ;;  %v1507_v47 = vpop.permute.xlu0 %1506 }
 0x19f   :  { %v1655_v42 = vsel %vm1610_vm1, %v3282_v29, %v1507_v47  ;;  %v1944_v50 = vpop.f32.mrf.mxu0 }
 0x1a0   :  { %1720 = vst.msk [vmem:[%s3511_s7 + $0x160] sm:$0xff] %vm1675_vm2, %v1655_v42  ;;  %v1509_v56 = vpop.permute.xlu1 %1508 }
 0x1a1   :  { %v1656_v61 = vsel %vm1610_vm1, %v3310_v53, %v1509_v56  ;;  %v946_v55 = vpop.f32.mrf.mxu0 }
 0x1a2   :  { %1721 = vst.msk [vmem:[%s3511_s7 + $0x168] sm:$0xff] %vm1675_vm2, %v1656_v61  ;;  %v1519_v62 = vpop.permute.xlu0 %1518 }
 0x1a3   :  { %v1661_v7 = vsel %vm1610_vm1, %v1932_v48, %v1519_v62  ;;  %v1945_v21 = vpop.f32.mrf.mxu0 }
 0x1a4   :  { %1726 = vst.msk [vmem:[%s3511_s7 + $0x190] sm:$0xff] %vm1675_vm2, %v1661_v7  ;;  %v1521_v22 = vpop.permute.xlu1 %1520 }
 0x1a5   :  { %v1662_v17 = vsel %vm1610_vm1, %v1933_v8, %v1521_v22  ;;  %v949_v15 = vpop.f32.mrf.mxu0 }
 0x1a6   :  { %1727 = vst.msk [vmem:[%s3511_s7 + $0x198] sm:$0xff] %vm1675_vm2, %v1662_v17  ;;  %v1515_v18 = vpop.permute.xlu0 %1514 }
 0x1a7   :  { %v1659_v41 = vsel %vm1610_vm1, %v898_v44, %v1515_v18 }
 0x1a8   :  { %1724 = vst.msk [vmem:[%s3511_s7 + $0x180] sm:$0xff] %vm1675_vm2, %v1659_v41  ;;  %v1517_v63 = vpop.permute.xlu1 %1516 }
 0x1a9   :  { %v1660_v29 = vsel %vm1610_vm1, %v901_v28, %v1517_v63 }
 0x1aa   :  { %1725 = vst.msk [vmem:[%s3511_s7 + $0x188] sm:$0xff] %vm1675_vm2, %v1660_v29  ;;  %v1527_v31 = vpop.permute.xlu0 %1526 }
 0x1ab   :  { %v1665_v32 = vsel %vm1610_vm1, %v1936_v5, %v1527_v31 }
 0x1ac   :  { %1730 = vst.msk [vmem:[%s3511_s7 + $0x1b0] sm:$0xff] %vm1675_vm2, %v1665_v32  ;;  %v1529_v10 = vpop.permute.xlu1 %1528 }
 0x1ad   :  { %v1666_v59 = vsel %vm1610_vm1, %v1937_v1, %v1529_v10 }
 0x1ae   :  { %1731 = vst.msk [vmem:[%s3511_s7 + $0x1b8] sm:$0xff] %vm1675_vm2, %v1666_v59  ;;  %v1523_v24 = vpop.permute.xlu0 %1522 }
 0x1af   :  { %v1663_v9 = vsel %vm1610_vm1, %v914_v38, %v1523_v24 }
 0x1b0   :  { %1728 = vst.msk [vmem:[%s3511_s7 + $0x1a0] sm:$0xff] %vm1675_vm2, %v1663_v9  ;;  %v1525_v35 = vpop.permute.xlu1 %1524 }
 0x1b1   :  { %v1664_v53 = vsel %vm1610_vm1, %v917_v57, %v1525_v35 }
 0x1b2   :  { %1729 = vst.msk [vmem:[%s3511_s7 + $0x1a8] sm:$0xff] %vm1675_vm2, %v1664_v53  ;;  %v1535_v2 = vpop.permute.xlu0 %1534 }
 0x1b3   :  { %v1669_v46 = vsel %vm1610_vm1, %v1940_v20, %v1535_v2 }
 0x1b4   :  { %1734 = vst.msk [vmem:[%s3511_s7 + $0x1d0] sm:$0xff] %vm1675_vm2, %v1669_v46  ;;  %v1537_v40 = vpop.permute.xlu1 %1536 }
 0x1b5   :  { %v1670_v48 = vsel %vm1610_vm1, %v1941_v54, %v1537_v40 }
 0x1b6   :  { %1735 = vst.msk [vmem:[%s3511_s7 + $0x1d8] sm:$0xff] %vm1675_vm2, %v1670_v48  ;;  %v1531_v45 = vpop.permute.xlu0 %1530 }
 0x1b7   :  { %v1667_v43 = vsel %vm1610_vm1, %v930_v33, %v1531_v45 }
 0x1b8   :  { %1732 = vst.msk [vmem:[%s3511_s7 + $0x1c0] sm:$0xff] %vm1675_vm2, %v1667_v43  ;;  %v1533_v11 = vpop.permute.xlu1 %1532 }
 0x1b9   :  { %v1668_v44 = vsel %vm1610_vm1, %v933_v58, %v1533_v11 }
 0x1ba   :  { %1733 = vst.msk [vmem:[%s3511_s7 + $0x1c8] sm:$0xff] %vm1675_vm2, %v1668_v44  ;;  %v1539_v25 = vpop.permute.xlu0 %1538 }
 0x1bb   :  { %v1671_v16 = vsel %vm1610_vm1, %v946_v55, %v1539_v25 }
 0x1bc   :  { %1736 = vst.msk [vmem:[%s3511_s7 + $0x1e0] sm:$0xff] %vm1675_vm2, %v1671_v16 }
 0x1be   :  { %v1543_v8 = vpop.permute.xlu0 %1542  ;;  %v1541_v14 = vpop.permute.xlu1 %1540 }
 0x1bf   :  { %v1673_v36 = vsel %vm1610_vm1, %v1944_v50, %v1543_v8  ;;  %v1672_v0 = vsel %vm1610_vm1, %v949_v15, %v1541_v14 }
 0x1c0   :  { %1738 = vst.msk [vmem:[%s3511_s7 + $0x1f0] sm:$0xff] %vm1675_vm2, %v1673_v36  ;;  %1737 = vst.msk [vmem:[%s3511_s7 + $0x1e8] sm:$0xff] %vm1675_vm2, %v1672_v0 }
 0x1c2   :  { %v1545_v49 = vpop.permute.xlu1 %1544 }
 0x1c3   :  { %v1674_v28 = vsel %vm1610_vm1, %v1945_v21, %v1545_v49 }
 0x1c4   :  { %1739 = vst.msk [vmem:[%s3511_s7 + $0x1f8] sm:$0xff] %vm1675_vm2, %v1674_v28 }

// kernel: pappm_forward.3
= control target key start
LH: loop header
LB: loop body
LE: loop exit
PB: predicated region body
PF: predicated region fallthrough
CT: control target
= control target key end

     0   :  { %s9111_s0 = inlined_call_operand.vmem [shape: f32[2,16,16,8], index: 0, kind: input, shape index: {}]   ;;  %s9112_s1 = inlined_call_operand.vmem [shape: f32[2,16,16,8], index: 1, kind: input, shape index: {}]   ;;  %s9113_s2 = inlined_call_operand.vmem [shape: f32[2,16,16,8], index: 2, kind: input, shape index: {}]   ;;  %s9114_s3 = inlined_call_operand.vmem [shape: f32[2,1,1,8], index: 3, kind: input, shape index: {}]   ;;  %s9115_s4 = inlined_call_operand.vmem [shape: f32[2,16,16,40], index: 4, kind: input, shape index: {}]   ;;  %s9116_s5 = inlined_call_operand.vmem [shape: f32[4,8], index: 5, kind: input, shape index: {}]   ;;  %s9117_s6 = inlined_call_operand.vmem [shape: f32[4,8], index: 6, kind: input, shape index: {}]   ;;  %s9118_s7 = inlined_call_operand.vmem [shape: bf16[9,32,32], index: 7, kind: input, shape index: {}]   ;;  %s9119_s8 = inlined_call_operand.vmem [shape: f32[1,8], index: 8, kind: input, shape index: {}]   ;;  %s9120_s9 = inlined_call_operand.vmem [shape: f32[1,8], index: 9, kind: input, shape index: {}]   ;;  %s9121_s10 = inlined_call_operand.vmem [shape: f32[1,32], index: 10, kind: input, shape index: {}]   ;;  %s9122_s11 = inlined_call_operand.vmem [shape: f32[1,32], index: 11, kind: input, shape index: {}]   ;;  %s9123_s12 = inlined_call_operand.vmem [shape: bf16[8,32], index: 12, kind: input, shape index: {}]   ;;  %s9124_s13 = inlined_call_operand.vmem [shape: bf16[32,32], index: 13, kind: input, shape index: {}]   ;;  %s9125_s14 = inlined_call_operand.hbm [shape: f32[512,32], index: 14, kind: output, shape index: {}]  }
   0x1   :  { %9134 = sst [smem:[#allocation10_spill]] %s9112_s1 }
   0x2   :  { %19 = vsyncpa [#allocation5], 0 }
   0x3   :  { %21 = vsyncpa [#allocation5 + $0x1], 0  ;;  %s6684_s29 = smov 0   ;;  %s6686_s30 = smov 0  }
   0x4   :  { %s6688_s15 = smov 0   ;;  %s6690_s16 = smov 0  }
   0x5 LB: > { %9135 = sst [smem:[#allocation7_spill]] %s6596_s15  ;;  %s6705_s17 = sadd.s32 4294967295, %s6600_s16   ;;  %s6600_s16 = sphi %s6690_s16, %s9144_s16   ;;  %s6596_s15 = sphi %s6688_s15, %s9146_s15   ;;  %s6592_s30 = sphi %s6686_s30, %s9148_s30   ;;  %s6588_s29 = sphi %s6684_s29, %s9147_s29  }
   0x6   : > { %s5552_s18 = sadd.s32 4294967294, %s6600_s16   ;;  %s6709_s19 = sadd.s32 1, %s6600_s16  }
   0x7   : > { %9136 = sst [smem:[#allocation8_spill]] %s6709_s19  ;;  %s353_s20 = sadd.s32 1, %s6596_s15 }
   0x8   : > { %s350_s21 = ssub.s32 %s6600_s16, %s6709_s19  ;;  %p363_p0 = scmp.ne.s32.totalorder %s6596_s15, %s6592_s30 }
   0x9   : > { %p351_p1 = scmp.eq.s32.totalorder %s350_s21, 0  ;;  %p364_p2 = scmp.eq.s32.totalorder %s6705_s17, 1 }
   0xa   : > { %p369_p3 = scmp.ne.s32.totalorder %s6592_s30, %s6588_s29  ;;  %p370_p4 = scmp.eq.s32.totalorder %s5552_s18, 1 }
   0xb   : > { %s6720_s22 = scalar_select %p351_p1, %s6596_s15, %s353_s20  }
   0xc   : > { %p6722_p5 = por %p364_p2, %p363_p0  ;;  %p6726_p6 = por %p370_p4, %p369_p3 }
   0xd   : > { %9137 = sst [smem:[#allocation9_spill]] %s6720_s22  ;;  %p5555_p7 = scmp.ge.s32.totalorder %s6600_s16, 1 }
   0xe   : > { %p453_p8 = scmp.lt.s32.totalorder %s6600_s16, 3 }
  0x10   : > { %p454_p9 = pnand %p5555_p7, %p453_p8 }
  0x11   : > { %p517_p10 = scmp.lt.s32.totalorder (!%p454_p9), %s6705_s17, 1  ;;  %s9140_s1 = sld [smem:[#allocation10_spill]] (!%p454_p9) }
  0x12   : > { %457 = sbr.rel (%p454_p9) target bundleno = 1031 (0x407), region = 76  ;;  %s9133_s21 = smov (!%p454_p9), 8  }
  0x13   : > { %s9129_s20 = smov (!%p454_p9), 16   ;;  %s9131_s19 = smov (!%p454_p9), 24  }
  0x17   : > { %s518_s25 = scalar_select %p517_p10, %s6705_s17, 1  ;;  %v6751_v0 = vld [vmem:[%s9116_s5 + $0x1] ss:$0 sm:$0xff]  ;;  %v6774_v5 = vld [vmem:[%s9116_s5 + $0x2] ss:$0 sm:$0xff]  ;;  %vm1712_vm0 = vcmask 261120  }
  0x18   : > { %v6760_v3 = vld [vmem:[%s9117_s6 + $0x1] ss:$0 sm:$0xff]  ;;  %v6812_v30 = vld [vmem:[%s9117_s6 + $0x2] ss:$0 sm:$0xff]  ;;  %v6831_v44 = vld [vmem:[%s9116_s5 + $0x3] ss:$0 sm:$0xff] }
  0x19   : > { %s6734_s26 = sshll.u32 %s518_s25, 8  ;;  %s6798_s28 = scalar_lea.vmem %s9114_s3, %s518_s25  ;;  %v6845_v52 = vld [vmem:[%s9117_s6 + $0x3] ss:$0 sm:$0xff]  ;;  %vm1721_vm1 = vcmask 253952   ;;  %vm1613_vm2 = vcmask 64512   ;;  %vm1646_vm3 = vcmask 130048  }
  0x1a   : > { %s6740_s18 = scalar_lea.vmem %s9140_s1, %s6734_s26  ;;  %s6746_s22 = scalar_lea.vmem %s9115_s4, %s6734_s26  ;;  %v6817_v33 = vld [vmem:[%s6798_s28] ss:$0 sm:$0xff]  ;;  %vm1679_vm4 = vcmask 195584   ;;  %vm1715_vm5 = vcmask 254976   ;;  %vm5074_vm6 = vcmask 1043456  }
  0x1b   : > { %v6754_v1 = vld [vmem:[%s6746_s22 + $0x80] sm:$0xff]  ;;  %v6763_v4 = vld [vmem:[%s6746_s22 + $0x70] sm:$0xff]  ;;  %s6769_s15 = scalar_lea.vmem %s9113_s2, %s6734_s26  ;;  %v6779_v8 = vld [vmem:[%s6746_s22 + $0x88] sm:$0xff]  ;;  %s7242_s25 = scalar_lea.vmem %s9111_s0, %s6734_s26 }
  0x1c   : > { %v623_v2 = vld [vmem:[%s6740_s18 + $0x80] sm:$0xff]  ;;  %v621_v7 = vld [vmem:[%s6740_s18 + $0x70] sm:$0xff]  ;;  %v624_v9 = vld [vmem:[%s6740_s18 + $0x88] sm:$0xff]  ;;  %v1105_v45 = vadd.f32 %v6817_v33, %v6763_v4  ;;  %v1108_v49 = vadd.f32 %v6817_v33, %v6779_v8  ;;  %v1107_v54 = vadd.f32 %v6817_v33, %v6754_v1  ;;  %s9142_s26 = smov 24   ;;  %s5815_s1 = sshll.u32 %s6705_s17, 12 }
  0x1d   : > { %v825_v6 = vadd.f32 %v623_v2, %v6754_v1  ;;  %v823_v10 = vadd.f32 %v621_v7, %v6763_v4  ;;  %v826_v11 = vadd.f32 %v624_v9, %v6779_v8  ;;  %v6785_v12 = vld [vmem:[%s6746_s22 + $0x78] sm:$0xff]  ;;  %v653_v18 = vld [vmem:[%s6769_s15 + $0x70] sm:$0xff]  ;;  %v656_v19 = vld [vmem:[%s6769_s15 + $0x88] sm:$0xff] }
  0x1e   : > { %v622_v13 = vld [vmem:[%s6740_s18 + $0x78] sm:$0xff]  ;;  %v655_v20 = vld [vmem:[%s6769_s15 + $0x80] sm:$0xff]  ;;  %v961_v23 = vadd.f32 %v653_v18, %v6763_v4  ;;  %v964_v27 = vadd.f32 %v656_v19, %v6779_v8  ;;  %v1106_v40 = vadd.f32 %v6817_v33, %v6785_v12  ;;  %v1142_v53 = vmul.f32 %v6831_v44, %v1105_v45  ;;  %v6855_v57 = vld [vmem:[%s6746_s22 + $0x90] sm:$0xff] }
  0x1f   : > { %v654_v14 = vld [vmem:[%s6769_s15 + $0x78] sm:$0xff]  ;;  %v862_v15 = vmul.f32 %v6751_v0, %v825_v6  ;;  %v824_v16 = vadd.f32 %v622_v13, %v6785_v12  ;;  %v860_v21 = vmul.f32 %v6751_v0, %v823_v10  ;;  %v863_v22 = vmul.f32 %v6751_v0, %v826_v11  ;;  %v625_v58 = vld [vmem:[%s6740_s18 + $0x90] sm:$0xff]  ;;  %v6867_v9 = vld [vmem:[%s6746_s22 + $0xa8] sm:$0xff] }
  0x20   : > { %v962_v17 = vadd.f32 %v654_v14, %v6785_v12  ;;  %v998_v31 = vmul.f32 %v6774_v5, %v961_v23  ;;  %v963_v32 = vadd.f32 %v655_v20, %v6754_v1  ;;  %v1001_v39 = vmul.f32 %v6774_v5, %v964_v27  ;;  %v6851_v55 = vld [vmem:[%s6746_s22 + $0x98] sm:$0xff]  ;;  %v628_v10 = vld [vmem:[%s6740_s18 + $0xa8] sm:$0xff]  ;;  %v6871_v11 = vld [vmem:[%s6746_s22 + $0xa0] sm:$0xff] }
  0x21   : > { %v899_v24 = vadd.f32 %v6760_v3, %v862_v15  ;;  %v861_v25 = vmul.f32 %v6751_v0, %v824_v16  ;;  %v897_v28 = vadd.f32 %v6760_v3, %v860_v21  ;;  %v900_v29 = vadd.f32 %v6760_v3, %v863_v22  ;;  %v626_v56 = vld [vmem:[%s6740_s18 + $0x98] sm:$0xff]  ;;  %v627_v13 = vld [vmem:[%s6740_s18 + $0xa0] sm:$0xff]  ;;  %v657_v23 = vld [vmem:[%s6769_s15 + $0x90] sm:$0xff] }
  0x22   : > { %v999_v26 = vmul.f32 %v6774_v5, %v962_v17  ;;  %v1035_v42 = vadd.f32 %v6812_v30, %v998_v31  ;;  %v1000_v43 = vmul.f32 %v6774_v5, %v963_v32  ;;  %v1038_v47 = vadd.f32 %v6812_v30, %v1001_v39  ;;  %v658_v22 = vld [vmem:[%s6769_s15 + $0x98] sm:$0xff] }
  0x23   : > { %v931_v34 = vmax.f32 %v899_v24, 0.0  ;;  %v898_v35 = vadd.f32 %v6760_v3, %v861_v25  ;;  %v929_v36 = vmax.f32 %v897_v28, 0.0  ;;  %v932_v37 = vmax.f32 %v900_v29, 0.0 }
  0x24   : > { %v1036_v38 = vadd.f32 %v6812_v30, %v999_v26  ;;  %v1143_v48 = vmul.f32 %v6831_v44, %v1106_v40  ;;  %v1067_v50 = vmax.f32 %v1035_v42, 0.0  ;;  %v1037_v51 = vadd.f32 %v6812_v30, %v1000_v43 }
  0x25   : > { %1293 = vrot.lane.b32.xlu1 %v931_v34, %s9133_s21  ;;  %1289 = vrot.lane.b32.xlu0 %v929_v36, %s9133_s21  ;;  %v930_v41 = vmax.f32 %v898_v35, 0.0  ;;  %v1070_v59 = vmax.f32 %v1038_v47, 0.0  ;;  %v1145_v61 = vmul.f32 %v6831_v44, %v1108_v49  ;;  %v828_v62 = vadd.f32 %v626_v56, %v6851_v55  ;;  %v660_v34 = vld [vmem:[%s6769_s15 + $0xa8] sm:$0xff]  ;;  %v659_v36 = vld [vmem:[%s6769_s15 + $0xa0] sm:$0xff] }
  0x26   : > { %v1068_v46 = vmax.f32 %v1036_v38, 0.0  ;;  %v1180_v60 = vadd.f32 %v6845_v52, %v1143_v48  ;;  %v1069_v63 = vmax.f32 %v1037_v51, 0.0  ;;  %v1179_v2 = vadd.f32 %v6845_v52, %v1142_v53  ;;  %v6457_v35 = vld [vmem:[%s9118_s7 + $0x8] sm:$0xff]  }
  0x27   : > { %v1144_v6 = vmul.f32 %v6831_v44, %v1107_v54  ;;  %v827_v7 = vadd.f32 %v625_v58, %v6855_v57  ;;  %v1182_v15 = vadd.f32 %v6845_v52, %v1145_v61  ;;  %v865_v16 = vmul.f32 %v6751_v0, %v828_v62  ;;  %6407 = vmatprep.subr.bf16.mxu1 %v6457_v35  ;;  %v543_v51 = vld [vmem:[%s6746_s22 + $0x8] sm:$0xff]  ;;  %v607_v61 = vld [vmem:[%s6740_s18] sm:$0xff] }
  0x28   : > { %v1212_v14 = vmax.f32 %v1180_v60, 0.0  ;;  %v830_v17 = vadd.f32 %v628_v10, %v6867_v9  ;;  %v1211_v18 = vmax.f32 %v1179_v2, 0.0  ;;  %v829_v21 = vadd.f32 %v627_v13, %v6871_v11  ;;  %6409 = vmatpush3.bf16.msra.mxu1 %v6457_v35  ;;  %6013 = vmatprep.subr.bf16.mxu0 %v6457_v35  ;;  %v542_v60 = vld [vmem:[%s6746_s22] sm:$0xff] }
  0x29   : > { %1295 = vrot.lane.b32.xlu1 %v932_v37, %s9133_s21  ;;  %1291 = vrot.lane.b32.xlu0 %v930_v41, %s9133_s21  ;;  %v1181_v19 = vadd.f32 %v6845_v52, %v1144_v6  ;;  %v864_v20 = vmul.f32 %v6751_v0, %v827_v7  ;;  %v1214_v24 = vmax.f32 %v1182_v15, 0.0  ;;  %v902_v25 = vadd.f32 %v6760_v3, %v865_v16  ;;  %v6458_v37 = vld [vmem:[%s9118_s7] sm:$0xff]  }
  0x2a   : > { %v867_v26 = vmul.f32 %v6751_v0, %v830_v17  ;;  %v966_v27 = vadd.f32 %v658_v22, %v6851_v55  ;;  %v866_v31 = vmul.f32 %v6751_v0, %v829_v21  ;;  %v965_v32 = vadd.f32 %v657_v23, %v6855_v57  ;;  %6408 = vmatprep.subr.bf16.mxu1 %v6458_v37  ;;  %v640_v17 = vld [vmem:[%s6769_s15 + $0x8] sm:$0xff]  ;;  %v639_v22 = vld [vmem:[%s6769_s15] sm:$0xff] }
  0x2b   : > { %v1213_v28 = vmax.f32 %v1181_v19, 0.0  ;;  %v901_v29 = vadd.f32 %v6760_v3, %v864_v20  ;;  %v934_v38 = vmax.f32 %v902_v25, 0.0  ;;  %v968_v41 = vadd.f32 %v660_v34, %v6867_v9  ;;  %6014 = vmatpush3.bf16.msra.mxu0 %v6457_v35 }
  0x2c   : > { %v904_v39 = vadd.f32 %v6760_v3, %v867_v26  ;;  %v1003_v40 = vmul.f32 %v6774_v5, %v966_v27  ;;  %v903_v43 = vadd.f32 %v6760_v3, %v866_v31  ;;  %v1002_v45 = vmul.f32 %v6774_v5, %v965_v32  ;;  %6410 = vmatpush3.bf16.msra.mxu1 %v6458_v37 }
  0x2d   : > { %1419 = vrot.lane.b32.xlu1 %v1068_v46, %s9129_s20  ;;  %1417 = vrot.lane.b32.xlu0 %v1067_v50, %s9129_s20  ;;  %v933_v42 = vmax.f32 %v901_v29, 0.0  ;;  %v967_v46 = vadd.f32 %v659_v36, %v6871_v11  ;;  %v1005_v49 = vmul.f32 %v6774_v5, %v968_v41  ;;  %v1110_v50 = vadd.f32 %v6817_v33, %v6851_v55  ;;  %v6959_v41 = vld [vmem:[%s6746_s22 + $0xb0] sm:$0xff] }
  0x2e   : > { %v936_v47 = vmax.f32 %v904_v39, 0.0  ;;  %v1040_v48 = vadd.f32 %v6812_v30, %v1003_v40  ;;  %v935_v53 = vmax.f32 %v903_v43, 0.0  ;;  %v1039_v54 = vadd.f32 %v6812_v30, %v1002_v45  ;;  %6015 = vmatprep.subr.bf16.mxu0 %v6458_v37  ;;  %v6955_v39 = vld [vmem:[%s6746_s22 + $0xb8] sm:$0xff] }
  0x2f   : > { %v1004_v56 = vmul.f32 %v6774_v5, %v967_v46  ;;  %v1109_v58 = vadd.f32 %v6817_v33, %v6855_v57  ;;  %6016 = vmatpush3.bf16.msra.mxu0 %v6458_v37  ;;  %v1042_v62 = vadd.f32 %v6812_v30, %v1005_v49  ;;  %v809_v10 = vadd.f32 %v607_v61, %v542_v60  ;;  %v630_v40 = vld [vmem:[%s6740_s18 + $0xb8] sm:$0xff] }
  0x30   : > { %v1072_v55 = vmax.f32 %v1040_v48, 0.0  ;;  %v1071_v6 = vmax.f32 %v1039_v54, 0.0  ;;  %v1112_v16 = vadd.f32 %v6817_v33, %v6867_v9  ;;  %v1111_v21 = vadd.f32 %v6817_v33, %v6871_v11  ;;  %v632_v54 = vld [vmem:[%s6740_s18 + $0xc8] sm:$0xff] }
  0x31   : > { %1423 = vrot.lane.b32.xlu1 %v1070_v59, %s9129_s20  ;;  %1421 = vrot.lane.b32.xlu0 %v1069_v63, %s9129_s20  ;;  %v608_v59 = vld [vmem:[%s6740_s18 + $0x8] sm:$0xff]  ;;  %v1147_v63 = vmul.f32 %v6831_v44, %v1110_v50  ;;  %v1041_v57 = vadd.f32 %v6812_v30, %v1004_v56  ;;  %v1146_v7 = vmul.f32 %v6831_v44, %v1109_v58  ;;  %s9141_s20 = smov 16   ;;  %v1074_v13 = vmax.f32 %v1042_v62, 0.0  ;;  %v6975_v56 = vld [vmem:[%s6746_s22 + $0xc0] sm:$0xff] }
  0x32   : > { %v810_v2 = vadd.f32 %v608_v59, %v543_v51  ;;  %v846_v20 = vmul.f32 %v6751_v0, %v809_v10  ;;  %v1149_v25 = vmul.f32 %v6831_v44, %v1112_v16  ;;  %v948_v9 = vadd.f32 %v640_v17, %v543_v51  ;;  %v631_v58 = vld [vmem:[%s6740_s18 + $0xc0] sm:$0xff] }
  0x33   : > { %v1183_v19 = vadd.f32 %v6845_v52, %v1146_v7  ;;  %v1148_v11 = vmul.f32 %v6831_v44, %v1111_v21  ;;  %v1092_v34 = vadd.f32 %v6817_v33, %v543_v51  ;;  %v661_v7 = vld [vmem:[%s6769_s15 + $0xb0] sm:$0xff]  ;;  %v610_v21 = vld [vmem:[%s6740_s18 + $0x18] sm:$0xff] }
  0x34   : > { %v847_v15 = vmul.f32 %v6751_v0, %v810_v2  ;;  %v883_v27 = vadd.f32 %v6760_v3, %v846_v20  ;;  %v1186_v31 = vadd.f32 %v6845_v52, %v1149_v25  ;;  %v985_v32 = vmul.f32 %v6774_v5, %v948_v9  ;;  %v6997_v20 = vld [vmem:[%s6746_s22 + $0x18] sm:$0xff] }
  0x35   : > { %1547 = vrot.lane.b32.xlu1 %v1212_v14, %s9131_s19  ;;  %1545 = vrot.lane.b32.xlu0 %v1211_v18, %s9131_s19  ;;  %v1184_v14 = vadd.f32 %v6845_v52, %v1147_v63  ;;  %v1073_v18 = vmax.f32 %v1041_v57, 0.0  ;;  %v1215_v26 = vmax.f32 %v1183_v19, 0.0  ;;  %v1185_v36 = vadd.f32 %v6845_v52, %v1148_v11  ;;  %v662_v57 = vld [vmem:[%s6769_s15 + $0xb8] sm:$0xff] }
  0x36   : > { %v915_v35 = vmax.f32 %v883_v27, 0.0  ;;  %v1218_v43 = vmax.f32 %v1186_v31, 0.0  ;;  %v1022_v45 = vadd.f32 %v6812_v30, %v985_v32  ;;  %v1129_v46 = vmul.f32 %v6831_v44, %v1092_v34  ;;  %v664_v31 = vld [vmem:[%s6769_s15 + $0xc8] sm:$0xff]  ;;  %v663_v32 = vld [vmem:[%s6769_s15 + $0xc0] sm:$0xff] }
  0x37   : > { %v1216_v23 = vmax.f32 %v1184_v14, 0.0  ;;  %v1217_v48 = vmax.f32 %v1185_v36, 0.0  ;;  %v969_v19 = vadd.f32 %v661_v7, %v6959_v41  ;;  %v642_v7 = vld [vmem:[%s6769_s15 + $0x18] sm:$0xff] }
  0x38   : > { %v1054_v59 = vmax.f32 %v1022_v45, 0.0 }
  0x39   : > { %1551 = vrot.lane.b32.xlu1 %v1214_v24, %s9131_s19  ;;  %1549 = vrot.lane.b32.xlu0 %v1213_v28, %s9131_s19  ;;  %v884_v24 = vadd.f32 %v6760_v3, %v847_v15  ;;  %v947_v28 = vadd.f32 %v639_v22, %v542_v60  ;;  %v970_v15 = vadd.f32 %v662_v57, %v6955_v39  ;;  %v7001_v22 = vld [vmem:[%s6746_s22 + $0x10] sm:$0xff] }
  0x3b   : > { %v916_v29 = vmax.f32 %v884_v24, 0.0  ;;  %v984_v37 = vmul.f32 %v6774_v5, %v947_v28  ;;  %v1007_v9 = vmul.f32 %v6774_v5, %v970_v15  ;;  %v1006_v28 = vmul.f32 %v6774_v5, %v969_v19 }
  0x3d   : > { %1299 = vrot.lane.b32.xlu1 %v934_v38, %s9133_s21  ;;  %1297 = vrot.lane.b32.xlu0 %v933_v42, %s9133_s21  ;;  %v1091_v38 = vadd.f32 %v6817_v33, %v542_v60  ;;  %v629_v42 = vld [vmem:[%s6740_s18 + $0xb0] sm:$0xff]  ;;  %v1021_v49 = vadd.f32 %v6812_v30, %v984_v37  ;;  %v1166_v60 = vadd.f32 %v6845_v52, %v1129_v46 }
  0x3e   : > { %v831_v51 = vadd.f32 %v629_v42, %v6959_v41 }
  0x3f   : > { %v1128_v50 = vmul.f32 %v6831_v44, %v1091_v38  ;;  %v1053_v62 = vmax.f32 %v1021_v49, 0.0  ;;  %v1198_v10 = vmax.f32 %v1166_v60, 0.0  ;;  %v7039_v60 = vld [vmem:[%s6746_s22 + $0x20] sm:$0xff] }
  0x40   : > { %v868_v2 = vmul.f32 %v6751_v0, %v831_v51 }
  0x41   : > { %1303 = vrot.lane.b32.xlu1 %v936_v47, %s9133_s21  ;;  %1301 = vrot.lane.b32.xlu0 %v935_v53, %s9133_s21  ;;  %v832_v47 = vadd.f32 %v630_v40, %v6955_v39  ;;  %v6971_v53 = vld [vmem:[%s6746_s22 + $0xc8] sm:$0xff]  ;;  %v1165_v63 = vadd.f32 %v6845_v52, %v1128_v50  ;;  %v1043_v40 = vadd.f32 %v6812_v30, %v1006_v28 }
  0x42   : > { %v905_v17 = vadd.f32 %v6760_v3, %v868_v2  ;;  %v972_v37 = vadd.f32 %v664_v31, %v6971_v53  ;;  %v644_v31 = vld [vmem:[%s6769_s15 + $0x28] sm:$0xff] }
  0x43   : > { %v869_v61 = vmul.f32 %v6751_v0, %v832_v47  ;;  %v1197_v16 = vmax.f32 %v1165_v63, 0.0  ;;  %v1075_v49 = vmax.f32 %v1043_v40, 0.0 }
  0x44   : > { %v937_v27 = vmax.f32 %v905_v17, 0.0  ;;  %v1009_v47 = vmul.f32 %v6774_v5, %v972_v37  ;;  %v6605_v17 = vmov 0.0  }
  0x45   : > { %1427 = vrot.lane.b32.xlu1 %v1072_v55, %s9141_s20  ;;  %1425 = vrot.lane.b32.xlu0 %v1071_v6, %s9141_s20  ;;  %v834_v55 = vadd.f32 %v632_v54, %v6971_v53  ;;  %v833_v6 = vadd.f32 %v631_v58, %v6975_v56  ;;  %v1113_v54 = vadd.f32 %v6817_v33, %v6959_v41  ;;  %v7035_v58 = vld [vmem:[%s6746_s22 + $0x28] sm:$0xff] }
  0x46   : > { %1730 = vst.msk [vmem:[#allocation2 + $0xc0] sm:$0x1] %vm1721_vm1, %v6605_v17  ;;  %1723 = vst.msk [vmem:[#allocation2 + $0x18] sm:$0x1] %vm1721_vm1, %v6605_v17 }
  0x47   : > { %v871_v14 = vmul.f32 %v6751_v0, %v834_v55  ;;  %v1046_v55 = vadd.f32 %v6812_v30, %v1009_v47  ;;  %1713 = vst.msk [vmem:[#allocation2] sm:$0xff] %vm1712_vm0, %v6605_v17  ;;  %1714 = vst.msk [vmem:[#allocation2 + $0x8] sm:$0xff] %vm1712_vm0, %v6605_v17 }
  0x48   : > { %1718 = vst.msk [vmem:[#allocation2 + $0x198] sm:$0xff] %vm1712_vm0, %v6605_v17  ;;  %1719 = vst.msk [vmem:[#allocation2 + $0x1a0] sm:$0xff] %vm1712_vm0, %v6605_v17 }
  0x49   : > { %1431 = vrot.lane.b32.xlu1 %v1074_v13, %s9141_s20  ;;  %1429 = vrot.lane.b32.xlu0 %v1073_v18, %s9141_s20  ;;  %v906_v13 = vadd.f32 %v6760_v3, %v869_v61  ;;  %v870_v18 = vmul.f32 %v6751_v0, %v833_v6  ;;  %v908_v25 = vadd.f32 %v6760_v3, %v871_v14  ;;  %v611_v61 = vld [vmem:[%s6740_s18 + $0x20] sm:$0xff] }
  0x4a   : > { %v1150_v6 = vmul.f32 %v6831_v44, %v1113_v54  ;;  %v813_v57 = vadd.f32 %v611_v61, %v7039_v60  ;;  %1724 = vst.msk [vmem:[#allocation2 + $0x30] sm:$0x1] %vm1721_vm1, %v6605_v17  ;;  %1725 = vst.msk [vmem:[#allocation2 + $0x48] sm:$0x1] %vm1721_vm1, %v6605_v17 }
  0x4b   : > { %v938_v24 = vmax.f32 %v906_v13, 0.0  ;;  %v907_v11 = vadd.f32 %v6760_v3, %v870_v18  ;;  %v940_v34 = vmax.f32 %v908_v25, 0.0  ;;  %v1078_v13 = vmax.f32 %v1046_v55, 0.0  ;;  %1726 = vst.msk [vmem:[#allocation2 + $0x60] sm:$0x1] %vm1721_vm1, %v6605_v17 }
  0x4c   : > { %1727 = vst.msk [vmem:[#allocation2 + $0x78] sm:$0x1] %vm1721_vm1, %v6605_v17  ;;  %1728 = vst.msk [vmem:[#allocation2 + $0x90] sm:$0x1] %vm1721_vm1, %v6605_v17  ;;  %v1187_v19 = vadd.f32 %v6845_v52, %v1150_v6 }
  0x4d   : > { %1555 = vrot.lane.b32.xlu1 %v1216_v23, %s9131_s19  ;;  %1553 = vrot.lane.b32.xlu0 %v1215_v26, %s9131_s19  ;;  %v609_v23 = vld [vmem:[%s6740_s18 + $0x10] sm:$0xff]  ;;  %v812_v26 = vadd.f32 %v610_v21, %v6997_v20  ;;  %v939_v38 = vmax.f32 %v907_v11, 0.0  ;;  %1729 = vst.msk [vmem:[#allocation2 + $0xa8] sm:$0x1] %vm1721_vm1, %v6605_v17  ;;  %1731 = vst.msk [vmem:[#allocation2 + $0xd8] sm:$0x1] %vm1721_vm1, %v6605_v17  ;;  %v850_v21 = vmul.f32 %v6751_v0, %v813_v57 }
  0x4e   : > { %1732 = vst.msk [vmem:[#allocation2 + $0xf0] sm:$0x1] %vm1721_vm1, %v6605_v17  ;;  %1733 = vst.msk [vmem:[#allocation2 + $0x108] sm:$0x1] %vm1721_vm1, %v6605_v17 }
  0x4f   : > { %v849_v36 = vmul.f32 %v6751_v0, %v812_v26  ;;  %1734 = vst.msk [vmem:[#allocation2 + $0x120] sm:$0x1] %vm1721_vm1, %v6605_v17  ;;  %1735 = vst.msk [vmem:[#allocation2 + $0x138] sm:$0x1] %vm1721_vm1, %v6605_v17  ;;  %v1116_v26 = vadd.f32 %v6817_v33, %v6971_v53  ;;  %v887_v11 = vadd.f32 %v6760_v3, %v850_v21  ;;  %v7198_v21 = vld [vmem:[%s6746_s22 + $0xe0] sm:$0xff] }
  0x50   : > { %1736 = vst.msk [vmem:[#allocation2 + $0x150] sm:$0x1] %vm1721_vm1, %v6605_v17  ;;  %1737 = vst.msk [vmem:[#allocation2 + $0x168] sm:$0x1] %vm1721_vm1, %v6605_v17  ;;  %v952_v53 = vadd.f32 %v644_v31, %v7035_v58 }
  0x51   : > { %1263 = vrot.lane.b32.xlu1 %v916_v29, %s9133_s21  ;;  %1261 = vrot.lane.b32.xlu0 %v915_v35, %s9133_s21  ;;  %v811_v29 = vadd.f32 %v609_v23, %v7001_v22  ;;  %v1044_v35 = vadd.f32 %v6812_v30, %v1007_v9  ;;  %v886_v46 = vadd.f32 %v6760_v3, %v849_v36  ;;  %v919_v37 = vmax.f32 %v887_v11, 0.0 }
  0x52   : > { %1738 = vst.msk [vmem:[#allocation2 + $0x180] sm:$0x1] %vm1721_vm1, %v6605_v17  ;;  %1741 = vst.msk [vmem:[#allocation2 + $0x29] sm:$0x1] %vm1721_vm1, %v6605_v17  ;;  %v1153_v36 = vmul.f32 %v6831_v44, %v1116_v26 }
  0x53   : > { %v848_v42 = vmul.f32 %v6751_v0, %v811_v29  ;;  %v1076_v45 = vmax.f32 %v1044_v35, 0.0  ;;  %1742 = vst.msk [vmem:[#allocation2 + $0x41] sm:$0x1] %vm1721_vm1, %v6605_v17  ;;  %1743 = vst.msk [vmem:[#allocation2 + $0x59] sm:$0x1] %vm1721_vm1, %v6605_v17  ;;  %v1115_v29 = vadd.f32 %v6817_v33, %v6975_v56 }
  0x54   : > { %1744 = vst.msk [vmem:[#allocation2 + $0x71] sm:$0x1] %vm1721_vm1, %v6605_v17  ;;  %1745 = vst.msk [vmem:[#allocation2 + $0x89] sm:$0x1] %vm1721_vm1, %v6605_v17 }
  0x55   : > { %1559 = vrot.lane.b32.xlu1 %v1218_v43, %s9131_s19  ;;  %1557 = vrot.lane.b32.xlu0 %v1217_v48, %s9131_s19  ;;  %v971_v43 = vadd.f32 %v663_v32, %v6975_v56  ;;  %v1114_v48 = vadd.f32 %v6817_v33, %v6955_v39  ;;  %v7029_v50 = vadd.f32 %v6760_v3, %v848_v42  ;;  %v918_v39 = vmax.f32 %v886_v46, 0.0  ;;  %v643_v32 = vld [vmem:[%s6769_s15 + $0x20] sm:$0xff] }
  0x56   : > { %1746 = vst.msk [vmem:[#allocation2 + $0xa1] sm:$0x1] %vm1721_vm1, %v6605_v17  ;;  %1747 = vst.msk [vmem:[#allocation2 + $0xb9] sm:$0x1] %vm1721_vm1, %v6605_v17  ;;  %v1152_v40 = vmul.f32 %v6831_v44, %v1115_v29  ;;  %v951_v56 = vadd.f32 %v643_v32, %v7039_v60  ;;  %v1094_v42 = vadd.f32 %v6817_v33, %v6997_v20  ;;  %v666_v32 = vld [vmem:[%s6769_s15 + $0xd8] sm:$0xff] }
  0x57   : > { %v1008_v51 = vmul.f32 %v6774_v5, %v971_v43  ;;  %v917_v41 = vmax.f32 %v7029_v50, 0.0  ;;  %1748 = vst.msk [vmem:[#allocation2 + $0xd1] sm:$0x1] %vm1721_vm1, %v6605_v17  ;;  %1749 = vst.msk [vmem:[#allocation2 + $0xe9] sm:$0x1] %vm1721_vm1, %v6605_v17  ;;  %v989_v46 = vmul.f32 %v6774_v5, %v952_v53 }
  0x58   : > { %1750 = vst.msk [vmem:[#allocation2 + $0x101] sm:$0x1] %vm1721_vm1, %v6605_v17  ;;  %1751 = vst.msk [vmem:[#allocation2 + $0x119] sm:$0x1] %vm1721_vm1, %v6605_v17  ;;  %v1131_v50 = vmul.f32 %v6831_v44, %v1094_v42 }
  0x59   : > { %1391 = vrot.lane.b32.xlu1 %v1054_v59, %s9141_s20  ;;  %1389 = vrot.lane.b32.xlu0 %v1053_v62, %s9141_s20  ;;  %v612_v59 = vld [vmem:[%s6740_s18 + $0x28] sm:$0xff]  ;;  %v1151_v62 = vmul.f32 %v6831_v44, %v1114_v48  ;;  %v1045_v2 = vadd.f32 %v6812_v30, %v1008_v51  ;;  %1752 = vst.msk [vmem:[#allocation2 + $0x131] sm:$0x1] %vm1721_vm1, %v6605_v17  ;;  %1753 = vst.msk [vmem:[#allocation2 + $0x149] sm:$0x1] %vm1721_vm1, %v6605_v17 }
  0x5a   : > { %v814_v63 = vadd.f32 %v612_v59, %v7035_v58  ;;  %1754 = vst.msk [vmem:[#allocation2 + $0x161] sm:$0x1] %vm1721_vm1, %v6605_v17  ;;  %1755 = vst.msk [vmem:[#allocation2 + $0x179] sm:$0x1] %vm1721_vm1, %v6605_v17  ;;  %v1189_v48 = vadd.f32 %v6845_v52, %v1152_v40  ;;  %v1026_v54 = vadd.f32 %v6812_v30, %v989_v46  ;;  %v7225_v46 = vld [vmem:[%s6746_s22 + $0x30] sm:$0xff] }
  0x5b   : > { %v1188_v14 = vadd.f32 %v6845_v52, %v1151_v62  ;;  %1756 = vst.msk [vmem:[#allocation2 + $0x191] sm:$0x1] %vm1721_vm1, %v6605_v17  ;;  %v1077_v18 = vmax.f32 %v1045_v2, 0.0  ;;  %1722 = vst.msk [vmem:[#allocation2] sm:$0x1] %vm1721_vm1, %v6605_v17  ;;  %v1096_v59 = vadd.f32 %v6817_v33, %v7035_v58  ;;  %v7178_v62 = vld [vmem:[%s6746_s22 + $0xd8] sm:$0xff]  ;;  %v1168_v58 = vadd.f32 %v6845_v52, %v1131_v50 }
  0x5c   : > { %v851_v15 = vmul.f32 %v6751_v0, %v814_v63  ;;  %1739 = vst.msk [vmem:[#allocation2 + $0x198] sm:$0x1] %vm1721_vm1, %v6605_v17  ;;  %v1221_v61 = vmax.f32 %v1189_v48, 0.0  ;;  %v634_v63 = vld [vmem:[%s6740_s18 + $0xd8] sm:$0xff]  ;;  %v633_v2 = vld [vmem:[%s6740_s18 + $0xd0] sm:$0xff]  ;;  %v1058_v6 = vmax.f32 %v1026_v54, 0.0 }
  0x5d   : > { %1519 = vrot.lane.b32.xlu1 %v1198_v10, %s9131_s19  ;;  %1517 = vrot.lane.b32.xlu0 %v1197_v16, %s9131_s19  ;;  %v641_v10 = vld [vmem:[%s6769_s15 + $0x10] sm:$0xff]  ;;  %v950_v16 = vadd.f32 %v642_v7, %v6997_v20  ;;  %v1093_v20 = vadd.f32 %v6817_v33, %v7001_v22  ;;  %v1133_v57 = vmul.f32 %v6831_v44, %v1096_v59 }
  0x5e   : > { %v949_v23 = vadd.f32 %v641_v10, %v7001_v22  ;;  %v888_v25 = vadd.f32 %v6760_v3, %v851_v15  ;;  %v1095_v22 = vadd.f32 %v6817_v33, %v7039_v60  ;;  %v836_v7 = vadd.f32 %v634_v63, %v7178_v62  ;;  %v7190_v10 = vld [vmem:[%s6746_s22 + $0xe8] sm:$0xff]  ;;  %1716 = vst.msk [vmem:[#allocation2 + $0x10] sm:$0x3] %vm1715_vm5, %v6605_v17 }
  0x5f   : > { %v987_v9 = vmul.f32 %v6774_v5, %v950_v16  ;;  %v1130_v55 = vmul.f32 %v6831_v44, %v1093_v20  ;;  %v636_v16 = vld [vmem:[%s6740_s18 + $0xe8] sm:$0xff]  ;;  %1720 = vst.msk [vmem:[#allocation2 + $0x1a8] sm:$0x3] %vm1715_vm5, %v6605_v17 }
  0x60   : > { %v986_v28 = vmul.f32 %v6774_v5, %v949_v23  ;;  %v635_v23 = vld [vmem:[%s6740_s18 + $0xe0] sm:$0xff]  ;;  %v838_v26 = vadd.f32 %v636_v16, %v7190_v10  ;;  %1757 = vst.msk [vmem:[#allocation2 + $0x1a9] sm:$0x1] %vm1721_vm1, %v6605_v17  ;;  %1740 = vst.msk [vmem:[#allocation2 + $0x11] sm:$0x1] %vm1721_vm1, %v6605_v17  ;;  %v6486_v17 = vld [vmem:[%s6746_s22 + $0xa8] sm:$0xff] }
  0x61   : > { %1307 = vrot.lane.b32.xlu1 %v938_v24, %s9133_s21  ;;  %1305 = vrot.lane.b32.xlu0 %v937_v27, %s9133_s21  ;;  %v1220_v24 = vmax.f32 %v1188_v14, 0.0  ;;  %v1219_v27 = vmax.f32 %v1187_v19, 0.0  ;;  %v1024_v35 = vadd.f32 %v6812_v30, %v987_v9  ;;  %v1132_v14 = vmul.f32 %v6831_v44, %v1095_v22  ;;  %v1792_v19 = vld [vmem:[#allocation2 + $0x8] sm:$0xff] }
  0x62   : > { %v873_v9 = vmul.f32 %v6751_v0, %v836_v7  ;;  %v837_v31 = vadd.f32 %v635_v23, %v7198_v21  ;;  %v875_v53 = vmul.f32 %v6751_v0, %v838_v26  ;;  %v7267_v26 = vld [vmem:[%s6746_s22 + $0x48] sm:$0xff] }
  0x63   : > { %v1056_v43 = vmax.f32 %v1024_v35, 0.0 }
  0x65   : > { %1311 = vrot.lane.b32.xlu1 %v940_v34, %s9133_s21  ;;  %1309 = vrot.lane.b32.xlu0 %v939_v38, %s9133_s21  ;;  %v920_v34 = vmax.f32 %v888_v25, 0.0  ;;  %v1023_v38 = vadd.f32 %v6812_v30, %v986_v28  ;;  %v1170_v25 = vadd.f32 %v6845_v52, %v1133_v57  ;;  %v1169_v28 = vadd.f32 %v6845_v52, %v1132_v14  ;;  %v589_v14 = vld [vmem:[%s7242_s25 + $0x70] sm:$0xff] }
  0x67   : > { %v1055_v47 = vmax.f32 %v1023_v38, 0.0  ;;  %v1202_v35 = vmax.f32 %v1170_v25, 0.0  ;;  %v1201_v38 = vmax.f32 %v1169_v28, 0.0  ;;  %v685_v28 = vadd.f32 %v589_v14, %v6763_v4  ;;  %v7336_v14 = vld [vmem:[%s9117_s6 + $0x1] ss:$0 sm:$0xff] }
  0x69   : > { %1435 = vrot.lane.b32.xlu1 %v1076_v45, %s9141_s20  ;;  %1433 = vrot.lane.b32.xlu0 %v1075_v49, %s9141_s20  ;;  %v1190_v45 = vadd.f32 %v6845_v52, %v1153_v36  ;;  %v988_v49 = vmul.f32 %v6774_v5, %v951_v56  ;;  %v910_v36 = vadd.f32 %v6760_v3, %v873_v9 }
  0x6a   : > { %v874_v56 = vmul.f32 %v6751_v0, %v837_v31 }
  0x6b   : > { %v1222_v51 = vmax.f32 %v1190_v45, 0.0  ;;  %v614_v45 = vld [vmem:[%s6740_s18 + $0x38] sm:$0xff]  ;;  %v942_v48 = vmax.f32 %v910_v36, 0.0 }
  0x6c   : > { %v911_v54 = vadd.f32 %v6760_v3, %v874_v56  ;;  %v645_v56 = vld [vmem:[%s6769_s15 + $0x30] sm:$0xff] }
  0x6d   : > { %1267 = vrot.lane.b32.xlu1 %v918_v39, %s9133_s21  ;;  %1265 = vrot.lane.b32.xlu0 %v917_v41, %s9133_s21  ;;  %v1025_v39 = vadd.f32 %v6812_v30, %v988_v49  ;;  %v7182_v41 = vld [vmem:[%s6746_s22 + $0xd0] sm:$0xff]  ;;  %v912_v49 = vadd.f32 %v6760_v3, %v875_v53  ;;  %v646_v53 = vld [vmem:[%s6769_s15 + $0x38] sm:$0xff] }
  0x6e   : > { %v835_v15 = vadd.f32 %v633_v2, %v7182_v41  ;;  %v590_v2 = vld [vmem:[%s7242_s25 + $0x78] sm:$0xff]  ;;  %v943_v57 = vmax.f32 %v911_v54, 0.0  ;;  %v1117_v9 = vadd.f32 %v6817_v33, %v7182_v41 }
  0x6f   : > { %v1057_v60 = vmax.f32 %v1025_v39, 0.0  ;;  %v668_v39 = vld [vmem:[%s6769_s15 + $0xe8] sm:$0xff]  ;;  %v944_v22 = vmax.f32 %v912_v49, 0.0 }
  0x70   : > { %v872_v29 = vmul.f32 %v6751_v0, %v835_v15  ;;  %v686_v15 = vadd.f32 %v590_v2, %v6785_v12 }
  0x71   : > { %1439 = vrot.lane.b32.xlu1 %v1078_v13, %s9141_s20  ;;  %1437 = vrot.lane.b32.xlu0 %v1077_v18, %s9141_s20  ;;  %v1167_v13 = vadd.f32 %v6845_v52, %v1130_v55  ;;  %v1791_v18 = vld [vmem:[#allocation2] sm:$0xff] }
  0x72   : > { %v909_v40 = vadd.f32 %v6760_v3, %v872_v29  ;;  %v667_v55 = vld [vmem:[%s6769_s15 + $0xe0] sm:$0xff] }
  0x73   : > { %v1199_v11 = vmax.f32 %v1167_v13, 0.0  ;;  %v975_v13 = vadd.f32 %v667_v55, %v7198_v21  ;;  %v7279_v29 = vld [vmem:[%s6746_s22 + $0x40] sm:$0xff] }
  0x75   : > { %1563 = vrot.lane.b32.xlu1 %v1220_v24, %s9131_s19  ;;  %1561 = vrot.lane.b32.xlu0 %v1219_v27, %s9131_s19  ;;  %v1200_v24 = vmax.f32 %v1168_v58, 0.0  ;;  %v1827_v27 = vpack.c.bf16 %v1792_v19, %v1791_v18  ;;  %v592_v18 = vld [vmem:[%s7242_s25 + $0x88] sm:$0xff]  ;;  %v1012_v12 = vmul.f32 %v6774_v5, %v975_v13 }
  0x77   : > { %6017 = vmatprep.mubr.msk.bf16.mxu0 %vm1712_vm0, %v1827_v27  ;;  %v616_v27 = vld [vmem:[%s6740_s18 + $0x48] sm:$0xff] }
  0x78   : > { %v818_v4 = vadd.f32 %v616_v27, %v7267_v26 }
  0x79   : > { %1271 = vrot.lane.b32.xlu1 %v920_v34, %s9133_s21  ;;  %1269 = vrot.lane.b32.xlu0 %v919_v37, %s9133_s21  ;;  %v665_v34 = vld [vmem:[%s6769_s15 + $0xd0] sm:$0xff]  ;;  %v974_v37 = vadd.f32 %v666_v32, %v7178_v62 }
  0x7a   : > { %v973_v42 = vadd.f32 %v665_v34, %v7182_v41  ;;  %v688_v41 = vadd.f32 %v592_v18, %v6779_v8 }
  0x7b   : > { %v1011_v20 = vmul.f32 %v6774_v5, %v974_v37 }
  0x7c   : > { %v1010_v59 = vmul.f32 %v6774_v5, %v973_v42 }
  0x7d   : > { %1395 = vrot.lane.b32.xlu1 %v1056_v43, %s9141_s20  ;;  %1393 = vrot.lane.b32.xlu0 %v1055_v47, %s9141_s20  ;;  %v7221_v43 = vld [vmem:[%s6746_s22 + $0x38] sm:$0xff]  ;;  %v613_v47 = vld [vmem:[%s6740_s18 + $0x30] sm:$0xff]  ;;  %v1048_v63 = vadd.f32 %v6812_v30, %v1011_v20 }
  0x7e   : > { %v816_v50 = vadd.f32 %v614_v45, %v7221_v43  ;;  %v1047_v7 = vadd.f32 %v6812_v30, %v1010_v59  ;;  %v953_v59 = vadd.f32 %v645_v56, %v7225_v46 }
  0x7f   : > { %v1080_v16 = vmax.f32 %v1048_v63, 0.0 }
  0x80   : > { %v853_v58 = vmul.f32 %v6751_v0, %v816_v50 }
  0x81   : > { %1567 = vrot.lane.b32.xlu1 %v1222_v51, %s9131_s19  ;;  %1565 = vrot.lane.b32.xlu0 %v1221_v61, %s9131_s19  ;;  %v941_v51 = vmax.f32 %v909_v40, 0.0  ;;  %v815_v61 = vadd.f32 %v613_v47, %v7225_v46  ;;  %v1154_v40 = vmul.f32 %v6831_v44, %v1117_v9  ;;  %v647_v9 = vld [vmem:[%s6769_s15 + $0x40] sm:$0xff] }
  0x82   : > { %v890_v19 = vadd.f32 %v6760_v3, %v853_v58 }
  0x83   : > { %v1191_v55 = vadd.f32 %v6845_v52, %v1154_v40 }
  0x84   : > { %v922_v34 = vmax.f32 %v890_v19, 0.0 }
  0x85   : > { %1399 = vrot.lane.b32.xlu1 %v1058_v6, %s9141_s20  ;;  %1397 = vrot.lane.b32.xlu0 %v1057_v60, %s9141_s20  ;;  %v976_v6 = vadd.f32 %v668_v39, %v7190_v10  ;;  %v852_v60 = vmul.f32 %v6751_v0, %v815_v61  ;;  %v1118_v0 = vadd.f32 %v6817_v33, %v7178_v62  ;;  %v1223_v19 = vmax.f32 %v1191_v55, 0.0 }
  0x87   : > { %v1013_v23 = vmul.f32 %v6774_v5, %v976_v6  ;;  %v889_v25 = vadd.f32 %v6760_v3, %v852_v60  ;;  %v615_v3 = vld [vmem:[%s6740_s18 + $0x40] sm:$0xff]  ;;  %v1155_v36 = vmul.f32 %v6831_v44, %v1118_v0  ;;  %v648_v0 = vld [vmem:[%s6769_s15 + $0x48] sm:$0xff] }
  0x88   : > { %v591_v5 = vld [vmem:[%s7242_s25 + $0x80] sm:$0xff]  ;;  %v817_v8 = vadd.f32 %v615_v3, %v7279_v29 }
  0x89   : > { %1523 = vrot.lane.b32.xlu1 %v1200_v24, %s9131_s19  ;;  %1521 = vrot.lane.b32.xlu0 %v1199_v11, %s9131_s19  ;;  %v1079_v24 = vmax.f32 %v1047_v7, 0.0  ;;  %v7273_v11 = vld [vmem:[%s9116_s5] ss:$0 sm:$0xff]  ;;  %v921_v37 = vmax.f32 %v889_v25, 0.0  ;;  %v687_v42 = vadd.f32 %v591_v5, %v6754_v1  ;;  %v7313_v1 = vld [vmem:[%s9116_s5 + $0x1] ss:$0 sm:$0xff] }
  0x8a   : > { %v723_v32 = vmul.f32 %v7273_v11, %v686_v15  ;;  %v722_v45 = vmul.f32 %v7273_v11, %v685_v28  ;;  %v725_v49 = vmul.f32 %v7273_v11, %v688_v41  ;;  %v855_v54 = vmul.f32 %v7313_v1, %v818_v4  ;;  %v7327_v7 = vld [vmem:[%s9116_s5 + $0x2] ss:$0 sm:$0xff] }
  0x8b   : > { %v724_v63 = vmul.f32 %v7273_v11, %v687_v42  ;;  %v7350_v3 = vld [vmem:[%s9117_s6 + $0x2] ss:$0 sm:$0xff]  ;;  %v955_v4 = vadd.f32 %v647_v9, %v7279_v29 }
  0x8c   : > { %v892_v15 = vadd.f32 %v7336_v14, %v855_v54 }
  0x8d   : > { %1527 = vrot.lane.b32.xlu1 %v1202_v35, %s9131_s19  ;;  %1525 = vrot.lane.b32.xlu0 %v1201_v38, %s9131_s19  ;;  %v1050_v35 = vadd.f32 %v6812_v30, %v1013_v23  ;;  %v1049_v38 = vadd.f32 %v6812_v30, %v1012_v12  ;;  %v954_v30 = vadd.f32 %v646_v53, %v7221_v43 }
  0x8f   : > { %v1082_v50 = vmax.f32 %v1050_v35, 0.0  ;;  %v1081_v39 = vmax.f32 %v1049_v38, 0.0  ;;  %v991_v60 = vmul.f32 %v7327_v7, %v954_v30 }
  0x91   : > { %1315 = vrot.lane.b32.xlu1 %v942_v48, %s9133_s21  ;;  %1313 = vrot.lane.b32.xlu0 %v941_v51, %s9133_s21  ;;  %v7304_v48 = vld [vmem:[%s9117_s6] ss:$0 sm:$0xff]  ;;  %v1192_v51 = vadd.f32 %v6845_v52, %v1155_v36  ;;  %v1120_v52 = vadd.f32 %v6817_v33, %v7190_v10  ;;  %v1119_v10 = vadd.f32 %v6817_v33, %v7198_v21  ;;  %v924_v33 = vmax.f32 %v892_v15, 0.0  ;;  %v7362_v36 = vld [vmem:[%s9116_s5 + $0x3] ss:$0 sm:$0xff] }
  0x92   : > { %v760_v61 = vadd.f32 %v7304_v48, %v723_v32  ;;  %v759_v2 = vadd.f32 %v7304_v48, %v722_v45  ;;  %v762_v6 = vadd.f32 %v7304_v48, %v725_v49  ;;  %v1028_v5 = vadd.f32 %v7350_v3, %v991_v60  ;;  %v594_v49 = vld [vmem:[%s7242_s25 + $0x98] sm:$0xff]  ;;  %v593_v60 = vld [vmem:[%s7242_s25 + $0x90] sm:$0xff] }
  0x93   : > { %v1224_v13 = vmax.f32 %v1192_v51, 0.0  ;;  %v1157_v41 = vmul.f32 %v6831_v44, %v1120_v52  ;;  %v956_v32 = vadd.f32 %v648_v0, %v7267_v26  ;;  %v1156_v44 = vmul.f32 %v7362_v36, %v1119_v10  ;;  %v7383_v51 = vld [vmem:[%s6798_s28] ss:$0 sm:$0xff]  ;;  %v7416_v10 = vld [vmem:[%s6746_s22 + $0x58] sm:$0xff] }
  0x94   : > { %v792_v18 = vmax.f32 %v760_v61, 0.0  ;;  %v791_v25 = vmax.f32 %v759_v2, 0.0  ;;  %v794_v27 = vmax.f32 %v762_v6, 0.0  ;;  %v1060_v45 = vmax.f32 %v1028_v5, 0.0  ;;  %v618_v0 = vld [vmem:[%s6740_s18 + $0x58] sm:$0xff] }
  0x95   : > { %1319 = vrot.lane.b32.xlu1 %v944_v22, %s9133_s21  ;;  %1317 = vrot.lane.b32.xlu0 %v943_v57, %s9133_s21  ;;  %v854_v22 = vmul.f32 %v7313_v1, %v817_v8  ;;  %v1098_v54 = vadd.f32 %v7383_v51, %v7221_v43 }
  0x97   : > { %v7275_v62 = vpop.permute.xlu1 %1293  ;;  %v7283_v31 = vpop.permute.xlu0 %1289  ;;  %v891_v23 = vadd.f32 %v7336_v14, %v854_v22  ;;  %v992_v22 = vmul.f32 %v7327_v7, %v955_v4 }
  0x99   : > { %1443 = vrot.lane.b32.xlu1 %v1080_v16, %s9141_s20  ;;  %1441 = vrot.lane.b32.xlu0 %v1079_v24, %s9141_s20  ;;  %v990_v16 = vmul.f32 %v7327_v7, %v953_v59  ;;  %v761_v24 = vadd.f32 %v7304_v48, %v724_v63  ;;  %v923_v35 = vmax.f32 %v891_v23, 0.0  ;;  %v1097_v59 = vadd.f32 %v7383_v51, %v7225_v46 }
  0x9a   : > { %v1099_v23 = vadd.f32 %v7383_v51, %v7279_v29 }
  0x9b   : > { %v7299_v47 = vpop.permute.xlu1 %1295  ;;  %v1292_v20 = vpop.permute.xlu0 %1291  ;;  %v1027_v21 = vadd.f32 %v7350_v3, %v990_v16  ;;  %v793_v53 = vmax.f32 %v761_v24, 0.0  ;;  %v1135_v16 = vmul.f32 %v7362_v36, %v1098_v54  ;;  %v7422_v24 = vld [vmem:[%s9118_s7 + $0x18] sm:$0xff]  }
  0x9c   : > { %v1631_v61 = vsel %vm1613_vm2, %v794_v27, %v7299_v47  ;;  %v7428_v27 = vld [vmem:[%s6746_s22 + $0x50] sm:$0xff]  ;;  %6049 = vmatprep.subr.bf16.mxu1 %v7422_v24 }
  0x9d   : > { %1275 = vrot.lane.b32.xlu1 %v922_v34, %s9133_s21  ;;  %1273 = vrot.lane.b32.xlu0 %v921_v37, %s9133_s21  ;;  %v1629_v34 = vsel %vm1613_vm2, %v792_v18, %v1292_v20  ;;  %v1628_v37 = vsel %vm1613_vm2, %v791_v25, %v7283_v31  ;;  %v7375_v20 = vld [vmem:[%s9117_s6 + $0x3] ss:$0 sm:$0xff]  ;;  %v1630_v63 = vsel %vm1613_vm2, %v793_v53, %v7275_v62 }
  0x9e   : > { %v1194_v30 = vadd.f32 %v7375_v20, %v1157_v41  ;;  %v1193_v55 = vadd.f32 %v7375_v20, %v1156_v44  ;;  %v1134_v18 = vmul.f32 %v7362_v36, %v1097_v59  ;;  %v596_v41 = vld [vmem:[%s7242_s25 + $0xa8] sm:$0xff]  ;;  %v1172_v4 = vadd.f32 %v7375_v20, %v1135_v16 }
  0x9f   : > { %v1420_v58 = vpop.permute.xlu1 %1419  ;;  %v1418_v57 = vpop.permute.xlu0 %1417  ;;  %v692_v54 = vadd.f32 %v6486_v17, %v596_v41  ;;  %v7503_v41 = vld [vmem:[%s9118_s7 + $0x28] sm:$0xff]  }
  0xa0   : > { %v1662_v38 = vsel %vm1646_vm3, %v1629_v34, %v1420_v58  ;;  %v1661_v8 = vsel %vm1646_vm3, %v1628_v37, %v1418_v57  ;;  %v6484_v58 = vld [vmem:[%s6746_s22 + $0x98] sm:$0xff]  ;;  %v1226_v52 = vmax.f32 %v1194_v30, 0.0  ;;  %v1171_v53 = vadd.f32 %v7375_v20, %v1134_v18  ;;  %v7461_v30 = vld [vmem:[%s6746_s22 + $0x60] sm:$0xff]  ;;  %6085 = vmatprep.subr.bf16.mxu0 %v7503_v41 }
  0xa1   : > { %1447 = vrot.lane.b32.xlu1 %v1082_v50, %s9141_s20  ;;  %1445 = vrot.lane.b32.xlu0 %v1081_v39, %s9141_s20  ;;  %v993_v50 = vmul.f32 %v7327_v7, %v956_v32  ;;  %v1059_v39 = vmax.f32 %v1027_v21, 0.0  ;;  %v690_v46 = vadd.f32 %v6484_v58, %v594_v49  ;;  %v7438_v32 = vld [vmem:[%s6746_s22 + $0x68] sm:$0xff]  ;;  %v820_v37 = vadd.f32 %v618_v0, %v7416_v10 }
  0xa2   : > { %v729_v18 = vmul.f32 %v7273_v11, %v692_v54 }
  0xa3   : > { %v1424_v12 = vpop.permute.xlu1 %1423  ;;  %v1422_v28 = vpop.permute.xlu0 %1421  ;;  %v1030_v15 = vadd.f32 %v7350_v3, %v993_v50  ;;  %v727_v5 = vmul.f32 %v7273_v11, %v690_v46  ;;  %v857_v46 = vmul.f32 %v7313_v1, %v820_v37 }
  0xa4   : > { %v1664_v43 = vsel %vm1646_vm3, %v1631_v61, %v1424_v12  ;;  %v1663_v6 = vsel %vm1646_vm3, %v1630_v63, %v1422_v28  ;;  %v6485_v12 = vld [vmem:[%s6746_s22 + $0x90] sm:$0xff]  ;;  %v6487_v61 = vld [vmem:[%s6746_s22 + $0xa0] sm:$0xff] }
  0xa5   : > { %1571 = vrot.lane.b32.xlu1 %v1224_v13, %s9142_s26  ;;  %1569 = vrot.lane.b32.xlu0 %v1223_v19, %s9142_s26  ;;  %v1100_v13 = vadd.f32 %v7383_v51, %v7267_v26  ;;  %v1225_v26 = vmax.f32 %v1193_v55, 0.0  ;;  %v1029_v19 = vadd.f32 %v7350_v3, %v992_v22  ;;  %v689_v9 = vadd.f32 %v6485_v12, %v593_v60  ;;  %v617_v28 = vld [vmem:[%s6740_s18 + $0x50] sm:$0xff] }
  0xa6   : > { %v1062_v44 = vmax.f32 %v1030_v15, 0.0  ;;  %v7465_v50 = vadd.f32 %v7304_v48, %v727_v5 }
  0xa7   : > { %v1548_v40 = vpop.permute.xlu1 %1547  ;;  %v1546_v42 = vpop.permute.xlu0 %1545  ;;  %v1137_v21 = vmul.f32 %v7362_v36, %v1100_v13  ;;  %v649_v13 = vld [vmem:[%s6769_s15 + $0x50] sm:$0xff] }
  0xa8   : > { %v1695_v56 = vsel %vm1679_vm4, %v1662_v38, %v1548_v40  ;;  %v1694_v31 = vsel %vm1679_vm4, %v1661_v8, %v1546_v42  ;;  %v620_v38 = vld [vmem:[%s6740_s18 + $0x68] sm:$0xff]  ;;  %v1061_v8 = vmax.f32 %v1029_v19, 0.0  ;;  %v819_v42 = vadd.f32 %v617_v28, %v7428_v27 }
  0xa9   : > { %1774 = vst.msk [vmem:[#allocation2 + $0xc9] sm:$0xff] %vm1712_vm0, %v1695_v56  ;;  %1279 = vrot.lane.b32.xlu1 %v924_v33, %s9133_s21  ;;  %1773 = vst.msk [vmem:[#allocation2 + $0xc1] sm:$0xff] %vm1712_vm0, %v1694_v31  ;;  %1277 = vrot.lane.b32.xlu0 %v923_v35, %s9133_s21  ;;  %v595_v33 = vld [vmem:[%s7242_s25 + $0xa0] sm:$0xff]  ;;  %v1136_v56 = vmul.f32 %v7362_v36, %v1099_v23  ;;  %v822_v55 = vadd.f32 %v620_v38, %v7438_v32  ;;  %v576_v19 = vld [vmem:[%s7242_s25 + $0x8] sm:$0xff] }
  0xaa   : > { %v619_v31 = vld [vmem:[%s6740_s18 + $0x60] sm:$0xff]  ;;  %v1174_v58 = vadd.f32 %v7375_v20, %v1137_v21  ;;  %v856_v60 = vmul.f32 %v7313_v1, %v819_v42  ;;  %v894_v28 = vadd.f32 %v7336_v14, %v857_v46  ;;  %v957_v5 = vadd.f32 %v649_v13, %v7428_v27 }
  0xab   : > { %v1552_v2 = vpop.permute.xlu1 %1551  ;;  %v1550_v57 = vpop.permute.xlu0 %1549  ;;  %v859_v23 = vmul.f32 %v7313_v1, %v822_v55  ;;  %v651_v38 = vld [vmem:[%s6769_s15 + $0x60] sm:$0xff] }
  0xac   : > { %v1697_v47 = vsel %vm1679_vm4, %v1664_v43, %v1552_v2  ;;  %v1696_v62 = vsel %vm1679_vm4, %v1663_v6, %v1550_v57  ;;  %v1204_v43 = vmax.f32 %v1172_v4, 0.0  ;;  %v1203_v2 = vmax.f32 %v1171_v53, 0.0  ;;  %v650_v6 = vld [vmem:[%s6769_s15 + $0x58] sm:$0xff]  ;;  %v575_v42 = vld [vmem:[%s7242_s25] sm:$0xff] }
  0xad   : > { %1776 = vst.msk [vmem:[#allocation2 + $0xe1] sm:$0xff] %vm1712_vm0, %v1697_v47  ;;  %1403 = vrot.lane.b32.xlu1 %v1060_v45, %s9141_s20  ;;  %1775 = vst.msk [vmem:[#allocation2 + $0xd9] sm:$0xff] %vm1712_vm0, %v1696_v62  ;;  %1401 = vrot.lane.b32.xlu0 %v1059_v39, %s9141_s20  ;;  %v726_v45 = vmul.f32 %v7273_v11, %v689_v9  ;;  %v691_v39 = vadd.f32 %v6487_v61, %v595_v33  ;;  %v6460_v62 = vld [vmem:[%s9118_s7 + $0x10] sm:$0xff]   ;;  %v1206_v9 = vmax.f32 %v1174_v58, 0.0 }
  0xae   : > { %v1173_v57 = vadd.f32 %v7375_v20, %v1136_v56  ;;  %v958_v0 = vadd.f32 %v650_v6, %v7416_v10  ;;  %v796_v33 = vmax.f32 %v7465_v50, 0.0  ;;  %v926_v17 = vmax.f32 %v894_v28, 0.0  ;;  %v6489_v6 = vld [vmem:[%s6746_s22] sm:$0xff] }
  0xaf   : > { %v7424_v25 = vpop.permute.xlu1 %1299  ;;  %v7432_v29 = vpop.permute.xlu0 %1297  ;;  %v763_v15 = vadd.f32 %v7304_v48, %v726_v45  ;;  %v728_v12 = vmul.f32 %v7273_v11, %v691_v39  ;;  %v896_v45 = vadd.f32 %v7336_v14, %v859_v23  ;;  %v994_v54 = vmul.f32 %v7327_v7, %v957_v5 }
  0xb0   : > { %v1807_v34 = vld [vmem:[#allocation2 + $0xc0] sm:$0xff]  ;;  %v1808_v35 = vld [vmem:[#allocation2 + $0xc8] sm:$0xff]  ;;  %v1205_v21 = vmax.f32 %v1173_v57, 0.0  ;;  %v1633_v39 = vsel %vm1613_vm2, %v796_v33, %v7424_v25  ;;  %v671_v57 = vadd.f32 %v6489_v6, %v575_v42 }
  0xb1   : > { %1575 = vrot.lane.b32.xlu1 %v1226_v52, %s9142_s26  ;;  %1573 = vrot.lane.b32.xlu0 %v1225_v26, %s9142_s26  ;;  %v7453_v40 = vpack.c.bf16 %v1808_v35, %v1807_v34  ;;  %v821_v52 = vadd.f32 %v619_v31, %v7461_v30  ;;  %v893_v34 = vadd.f32 %v7336_v14, %v856_v60  ;;  %v795_v4 = vmax.f32 %v763_v15, 0.0 }
  0xb2   : > { %v995_v31 = vmul.f32 %v7327_v7, %v958_v0  ;;  %v765_v50 = vadd.f32 %v7304_v48, %v728_v12  ;;  %v928_v13 = vmax.f32 %v896_v45, 0.0  ;;  %v1101_v0 = vadd.f32 %v7383_v51, %v7428_v27 }
  0xb3   : > { %v7458_v49 = vpop.permute.xlu1 %1303  ;;  %v7468_v59 = vpop.permute.xlu0 %1301  ;;  %6033 = vmatprep.mubr.msk.bf16.mxu1 %vm1712_vm0, %v7453_v40  ;;  %v858_v35 = vmul.f32 %v7313_v1, %v821_v52  ;;  %v925_v55 = vmax.f32 %v893_v34, 0.0  ;;  %v708_v5 = vmul.f32 %v7273_v11, %v671_v57  ;;  %v1103_v45 = vadd.f32 %v7383_v51, %v7461_v30 }
  0xb4   : > { %v1809_v22 = vld [vmem:[#allocation2 + $0xd8] sm:$0xff]  ;;  %v1810_v63 = vld [vmem:[#allocation2 + $0xe0] sm:$0xff]  ;;  %v797_v12 = vmax.f32 %v765_v50, 0.0  ;;  %v1138_v42 = vmul.f32 %v7362_v36, %v1101_v0  ;;  %v637_v50 = vld [vmem:[%s6740_s18 + $0xf0] sm:$0xff] }
  0xb5   : > { %1407 = vrot.lane.b32.xlu1 %v1062_v44, %s9141_s20  ;;  %1405 = vrot.lane.b32.xlu0 %v1061_v8, %s9141_s20  ;;  %v7479_v47 = vpack.c.bf16 %v1810_v63, %v1809_v22  ;;  %v652_v44 = vld [vmem:[%s6769_s15 + $0x68] sm:$0xff]  ;;  %v766_v8 = vadd.f32 %v7304_v48, %v729_v18  ;;  %v895_v22 = vadd.f32 %v7336_v14, %v858_v35 }
  0xb6   : > { %v960_v61 = vadd.f32 %v652_v44, %v7438_v32  ;;  %v959_v63 = vadd.f32 %v651_v38, %v7461_v30  ;;  %v1102_v18 = vadd.f32 %v7383_v51, %v7416_v10 }
  0xb7   : > { %v1428_v16 = vpop.permute.xlu1 %1427  ;;  %v1426_v26 = vpop.permute.xlu0 %1425  ;;  %6034 = vmatmul.mubr.msk.bf16.vlgmr.msra.gmra.mxu1 %vm1712_vm0, %v7479_v47 }
  0xb8   : > { %6050 = vmatpush3.bf16.msra.mxu1 %v7422_v24  ;;  %v6488_v24 = vld [vmem:[%s6746_s22 + $0x8] sm:$0xff]  ;;  %v996_v23 = vmul.f32 %v7327_v7, %v959_v63 }
  0xb9   : > { %1531 = vrot.lane.b32.xlu1 %v1204_v43, %s9142_s26  ;;  %1529 = vrot.lane.b32.xlu0 %v1203_v2, %s9142_s26  ;;  %v672_v37 = vadd.f32 %v6488_v24, %v576_v19  ;;  %v1632_v43 = vsel %vm1613_vm2, %v795_v4, %v7432_v29  ;;  %v1666_v2 = vsel %vm1646_vm3, %v1633_v39, %v1428_v16  ;;  %v927_v19 = vmax.f32 %v895_v22, 0.0  ;;  %v7558_v24 = vld [vmem:[%s6746_s22 + $0xf8] sm:$0xff] }
  0xba   : > { %6051 = vmatprep.subr.bf16.mxu1 %v6460_v62  ;;  %v1665_v60 = vsel %vm1646_vm3, %v1632_v43, %v1426_v26  ;;  %v1031_v29 = vadd.f32 %v7350_v3, %v994_v54  ;;  %v997_v16 = vmul.f32 %v7327_v7, %v960_v61  ;;  %v798_v26 = vmax.f32 %v766_v8, 0.0 }
  0xbb   : > { %v7510_v53 = vpop.permute.xlu1 %1431  ;;  %v7516_v56 = vpop.permute.xlu0 %1429  ;;  %v709_v46 = vmul.f32 %v7273_v11, %v672_v37  ;;  %v1139_v4 = vmul.f32 %v7362_v36, %v1102_v18  ;;  %v638_v37 = vld [vmem:[%s6740_s18 + $0xf8] sm:$0xff]  ;;  %v1033_v8 = vadd.f32 %v7350_v3, %v996_v23  ;;  %s514_s18 = sand.u32 1, %s6592_s30  }
  0xbc   : > { %6052 = vmatpush3.bf16.msra.mxu1 %v6460_v62  ;;  %v1032_v62 = vadd.f32 %v7350_v3, %v995_v31  ;;  %v1063_v35 = vmax.f32 %v1031_v29, 0.0  ;;  %v1034_v44 = vadd.f32 %v7350_v3, %v997_v16  ;;  %v1635_v38 = vsel %vm1613_vm2, %v798_v26, %v7458_v49  ;;  %v7569_v31 = vld [vmem:[%s6746_s22 + $0xf0] sm:$0xff]  ;;  %s9070_s17 = scalar_lea.sflag [#allocation5], %s514_s18 }
  0xbd   : > { %1535 = vrot.lane.b32.xlu1 %v1206_v9, %s9142_s26  ;;  %1533 = vrot.lane.b32.xlu0 %v1205_v21, %s9142_s26  ;;  %v746_v28 = vadd.f32 %v7304_v48, %v709_v46  ;;  %v1104_v21 = vadd.f32 %v7383_v51, %v7438_v32  ;;  %v1668_v54 = vsel %vm1646_vm3, %v1635_v38, %v7510_v53  ;;  %v669_v29 = vld [vmem:[%s6769_s15 + $0xf0] sm:$0xff] }
  0xbe   : > { %v1064_v34 = vmax.f32 %v1032_v62, 0.0  ;;  %v745_v49 = vadd.f32 %v7304_v48, %v708_v5  ;;  %v1066_v46 = vmax.f32 %v1034_v44, 0.0  ;;  %v839_v6 = vadd.f32 %v637_v50, %v7569_v31 }
  0xbf   : > { %v1556_v58 = vpop.permute.xlu1 %1555  ;;  %v1554_v52 = vpop.permute.xlu0 %1553  ;;  %v778_v61 = vmax.f32 %v746_v28, 0.0  ;;  %v1141_v43 = vmul.f32 %v7362_v36, %v1104_v21  ;;  %v977_v21 = vadd.f32 %v669_v29, %v7569_v31 }
  0xc0   : > { %v1699_v25 = vsel %vm1679_vm4, %v1666_v2, %v1556_v58  ;;  %v1698_v15 = vsel %vm1679_vm4, %v1665_v60, %v1554_v52  ;;  %v840_v2 = vadd.f32 %v638_v37, %v7558_v24  ;;  %v1065_v60 = vmax.f32 %v1033_v8, 0.0  ;;  %v7614_v8 = vld [vmem:[%s9118_s7 + $0x38] sm:$0xff]  }
  0xc1   : > { %1778 = vst.msk [vmem:[#allocation2 + $0xf9] sm:$0xff] %vm1712_vm0, %v1699_v25  ;;  %1283 = vrot.lane.b32.xlu1 %v926_v17, %s9133_s21  ;;  %1777 = vst.msk [vmem:[#allocation2 + $0xf1] sm:$0xff] %vm1712_vm0, %v1698_v15  ;;  %1281 = vrot.lane.b32.xlu0 %v925_v55, %s9133_s21  ;;  %v1634_v17 = vsel %vm1613_vm2, %v797_v12, %v7468_v59  ;;  %v1175_v25 = vadd.f32 %v7375_v20, %v1138_v42  ;;  %v777_v62 = vmax.f32 %v745_v49, 0.0 }
  0xc2   : > { %v1667_v55 = vsel %vm1646_vm3, %v1634_v17, %v7516_v56  ;;  %v1176_v56 = vadd.f32 %v7375_v20, %v1139_v4  ;;  %v1140_v52 = vmul.f32 %v7362_v36, %v1103_v45  ;;  %v1178_v18 = vadd.f32 %v7375_v20, %v1141_v43  ;;  %6121 = vmatprep.subr.bf16.mxu1 %v7614_v8  ;;  %v597_v43 = vld [vmem:[%s7242_s25 + $0xb0] sm:$0xff] }
  0xc3   : > { %v1264_v9 = vpop.permute.xlu1 %1263  ;;  %v1262_v33 = vpop.permute.xlu0 %1261  ;;  %v877_v26 = vmul.f32 %v7313_v1, %v840_v2  ;;  %v876_v23 = vmul.f32 %v7313_v1, %v839_v6  ;;  %v1207_v28 = vmax.f32 %v1175_v25, 0.0  ;;  %v6491_v6 = vld [vmem:[%s6746_s22 + $0xb0] sm:$0xff] }
  0xc4   : > { %v1615_v12 = vsel %vm1613_vm2, %v778_v61, %v1264_v9  ;;  %v1177_v5 = vadd.f32 %v7375_v20, %v1140_v52  ;;  %v1210_v38 = vmax.f32 %v1178_v18, 0.0 }
  0xc5   : > { %1287 = vrot.lane.b32.xlu1 %v928_v13, %s9133_s21  ;;  %1285 = vrot.lane.b32.xlu0 %v927_v19, %s9133_s21  ;;  %v670_v13 = vld [vmem:[%s6769_s15 + $0xf8] sm:$0xff]  ;;  %v1208_v19 = vmax.f32 %v1176_v56, 0.0  ;;  %v914_v9 = vadd.f32 %v7336_v14, %v877_v26  ;;  %v913_v50 = vadd.f32 %v7336_v14, %v876_v23  ;;  %v6462_v26 = vld [vmem:[%s9118_s7 + $0x20] sm:$0xff]   ;;  %s5556_s15 = sshll.u32 %s514_s18, 8 }
  0xc6   : > { %v978_v0 = vadd.f32 %v670_v13, %v7558_v24  ;;  %v1209_v49 = vmax.f32 %v1177_v5, 0.0  ;;  %v7667_v5 = vld [vmem:[%s9118_s7 + $0x48] sm:$0xff]   ;;  %s8970_s27 = scalar_lea.vmem [#allocation4], %s5556_s15 }
  0xc7   : > { %v1560_v39 = vpop.permute.xlu1 %1559  ;;  %v1558_v63 = vpop.permute.xlu0 %1557  ;;  %v946_v2 = vmax.f32 %v914_v9, 0.0  ;;  %v6493_v9 = vld [vmem:[%s6746_s22 + $0xc0] sm:$0xff]  ;;  %s5445_s28 = sshll.u32 %s8970_s27, 4  ;;  %s9064_s28 = int_to_ptr.vmem [resolvable:$true] %s5445_s28 }
  0xc8   : > { %v1701_v22 = vsel %vm1679_vm4, %v1668_v54, %v1560_v39  ;;  %v1700_v59 = vsel %vm1679_vm4, %v1667_v55, %v1558_v63  ;;  %v1811_v53 = vld [vmem:[#allocation2 + $0xf0] sm:$0xff]  ;;  %v1812_v58 = vld [vmem:[#allocation2 + $0xf8] sm:$0xff]  ;;  %v1015_v17 = vmul.f32 %v7327_v7, %v978_v0  ;;  %v1122_v54 = vadd.f32 %v7383_v51, %v7558_v24 }
  0xc9   : > { %1780 = vst.msk [vmem:[#allocation2 + $0x111] sm:$0xff] %vm1712_vm0, %v1701_v22  ;;  %1411 = vrot.lane.b32.xlu1 %v1064_v34, %s9141_s20  ;;  %1779 = vst.msk [vmem:[#allocation2 + $0x109] sm:$0xff] %vm1712_vm0, %v1700_v59  ;;  %1409 = vrot.lane.b32.xlu0 %v1063_v35, %s9141_s20  ;;  %v7589_v57 = vpack.c.bf16 %v1812_v58, %v1811_v53  ;;  %v1614_v34 = vsel %vm1613_vm2, %v777_v62, %v1262_v33  ;;  %v598_v22 = vld [vmem:[%s7242_s25 + $0xb8] sm:$0xff] }
  0xca   : > { %v1014_v39 = vmul.f32 %v7327_v7, %v977_v21  ;;  %v1121_v55 = vadd.f32 %v7383_v51, %v7569_v31  ;;  %v1052_v59 = vadd.f32 %v7350_v3, %v1015_v17  ;;  %v1159_v7 = vmul.f32 %v7362_v36, %v1122_v54  ;;  %v6490_v53 = vld [vmem:[%s6746_s22 + $0xb8] sm:$0xff] }
  0xcb   : > { %v1392_v15 = vpop.permute.xlu1 %1391  ;;  %v1390_v16 = vpop.permute.xlu0 %1389  ;;  %6037 = vmatprep.mubr.msk.bf16.mxu1 %vm1712_vm0, %v7589_v57  ;;  %v694_v58 = vadd.f32 %v6490_v53, %v598_v22  ;;  %v945_v51 = vmax.f32 %v913_v50, 0.0  ;;  %v6494_v53 = vld [vmem:[%s6746_s22 + $0x18] sm:$0xff] }
  0xcc   : > { %v1648_v35 = vsel %vm1646_vm3, %v1615_v12, %v1392_v15  ;;  %v1647_v4 = vsel %vm1646_vm3, %v1614_v34, %v1390_v16  ;;  %v1158_v56 = vmul.f32 %v7362_v36, %v1121_v55  ;;  %v1084_v15 = vmax.f32 %v1052_v59, 0.0  ;;  %v600_v34 = vld [vmem:[%s7242_s25 + $0xc8] sm:$0xff]  ;;  %v578_v55 = vld [vmem:[%s7242_s25 + $0x18] sm:$0xff] }
  0xcd   : > { %1415 = vrot.lane.b32.xlu1 %v1066_v46, %s9141_s20  ;;  %1413 = vrot.lane.b32.xlu0 %v1065_v60, %s9141_s20  ;;  %v1051_v46 = vadd.f32 %v7350_v3, %v1014_v39  ;;  %v693_v60 = vadd.f32 %v6491_v6, %v597_v43  ;;  %v1196_v29 = vadd.f32 %v7375_v20, %v1159_v7 }
  0xce   : > { %v731_v16 = vmul.f32 %v7273_v11, %v694_v58  ;;  %v1195_v36 = vadd.f32 %v7375_v20, %v1158_v56  ;;  %v674_v58 = vadd.f32 %v6494_v53, %v578_v55 }
  0xcf   : > { %v1520_v44 = vpop.permute.xlu1 %1519  ;;  %v1518_v37 = vpop.permute.xlu0 %1517  ;;  %v1083_v3 = vmax.f32 %v1051_v46, 0.0  ;;  %v1228_v12 = vmax.f32 %v1196_v29, 0.0  ;;  %v6495_v46 = vld [vmem:[%s6746_s22 + $0x10] sm:$0xff] }
  0xd0   : > { %v1681_v1 = vsel %vm1679_vm4, %v1648_v35, %v1520_v44  ;;  %v1680_v33 = vsel %vm1679_vm4, %v1647_v4, %v1518_v37  ;;  %v1813_v42 = vld [vmem:[#allocation2 + $0x108] sm:$0xff]  ;;  %v1814_v45 = vld [vmem:[#allocation2 + $0x110] sm:$0xff]  ;;  %v768_v20 = vadd.f32 %v7304_v48, %v731_v16  ;;  %v599_v44 = vld [vmem:[%s7242_s25 + $0xc0] sm:$0xff]  ;;  %v711_v29 = vmul.f32 %v7273_v11, %v674_v58 }
  0xd1   : > { %1760 = vst.msk [vmem:[#allocation2 + $0x21] sm:$0xff] %vm1712_vm0, %v1681_v1  ;;  %1539 = vrot.lane.b32.xlu1 %v1208_v19, %s9142_s26  ;;  %1759 = vst.msk [vmem:[#allocation2 + $0x19] sm:$0xff] %vm1712_vm0, %v1680_v33  ;;  %1537 = vrot.lane.b32.xlu0 %v1207_v28, %s9142_s26  ;;  %v7625_v61 = vpack.c.bf16 %v1814_v45, %v1813_v42  ;;  %v730_v19 = vmul.f32 %v7273_v11, %v693_v60  ;;  %v1227_v28 = vmax.f32 %v1195_v36, 0.0  ;;  %v6492_v1 = vld [vmem:[%s6746_s22 + $0xc8] sm:$0xff] }
  0xd2   : > { %v696_v37 = vadd.f32 %v6492_v1, %v600_v34  ;;  %v695_v33 = vadd.f32 %v6493_v9, %v599_v44  ;;  %v580_v60 = vld [vmem:[%s7242_s25 + $0x28] sm:$0xff]  ;;  %v748_v34 = vadd.f32 %v7304_v48, %v711_v29 }
  0xd3   : > { %v1308_v14 = vpop.permute.xlu1 %1307  ;;  %v1306_v63 = vpop.permute.xlu0 %1305  ;;  %6038 = vmatmul.mubr.msk.bf16.gmra.mxu1 %vm1712_vm0, %v7625_v61  ;;  %v767_v21 = vadd.f32 %v7304_v48, %v730_v19  ;;  %v6496_v16 = vld [vmem:[%s6746_s22 + $0x28] sm:$0xff]  ;;  %v6497_v19 = vld [vmem:[%s6746_s22 + $0x20] sm:$0xff] }
  0xd4   : > { %v733_v17 = vmul.f32 %v7273_v11, %v696_v37 }
  0xd5   : > { %1543 = vrot.lane.b32.xlu1 %v1210_v38, %s9142_s26  ;;  %1541 = vrot.lane.b32.xlu0 %v1209_v49, %s9142_s26  ;;  %v799_v38 = vmax.f32 %v767_v21, 0.0  ;;  %v732_v49 = vmul.f32 %v7273_v11, %v695_v33 }
  0xd7   : > { %v7643_v25 = vpop.permute.xlu1 %1311  ;;  %v7645_v52 = vpop.permute.xlu0 %1309  ;;  %v1636_v54 = vsel %vm1613_vm2, %v799_v38, %v1306_v63  ;;  %v770_v63 = vadd.f32 %v7304_v48, %v733_v17 }
  0xd8   : > { %v1793_v13 = vld [vmem:[#allocation2 + $0x18] sm:$0xff]  ;;  %v1794_v62 = vld [vmem:[#allocation2 + $0x20] sm:$0xff] }
  0xd9   : > { %1323 = vrot.lane.b32.xlu1 %v946_v2, %s9133_s21  ;;  %v7650_v18 = vpack.c.bf16 %v1794_v62, %v1793_v13  ;;  %1321 = vrot.lane.b32.xlu0 %v945_v51, %s9133_s21  ;;  %v577_v2 = vld [vmem:[%s7242_s25 + $0x10] sm:$0xff]  ;;  %v769_v51 = vadd.f32 %v7304_v48, %v732_v49  ;;  %v579_v62 = vld [vmem:[%s7242_s25 + $0x20] sm:$0xff] }
  0xda   : > { %v673_v56 = vadd.f32 %v6495_v46, %v577_v2 }
  0xdb   : > { %v1436_v23 = vpop.permute.xlu1 %1435  ;;  %v1434_v0 = vpop.permute.xlu0 %1433  ;;  %6018 = vmatmul.mubr.msk.bf16.vlgmr.msra.gmra.mxu0 %vm1712_vm0, %v7650_v18  ;;  %v801_v36 = vmax.f32 %v769_v51, 0.0 }
  0xdc   : > { %6086 = vmatpush3.bf16.msra.mxu0 %v7503_v41  ;;  %v800_v41 = vmax.f32 %v768_v20, 0.0  ;;  %v1669_v43 = vsel %vm1646_vm3, %v1636_v54, %v1434_v0 }
  0xdd   : > { %1451 = vrot.lane.b32.xlu1 %v1084_v15, %s9141_s20  ;;  %1449 = vrot.lane.b32.xlu0 %v1083_v3, %s9141_s20  ;;  %v802_v15 = vmax.f32 %v770_v63, 0.0  ;;  %v676_v3 = vadd.f32 %v6496_v16, %v580_v60  ;;  %v1638_v1 = vsel %vm1613_vm2, %v801_v36, %v7645_v52  ;;  %v780_v52 = vmax.f32 %v748_v34, 0.0  ;;  %v602_v36 = vld [vmem:[%s7242_s25 + $0xd8] sm:$0xff]  ;;  %s6540_s20 = scalar_lea.vmem %s9064_s28, 4096 }
  0xde   : > { %6087 = vmatprep.subr.bf16.mxu0 %v6462_v26  ;;  %v1637_v50 = vsel %vm1613_vm2, %v800_v41, %v1308_v14  ;;  %p6541_p11 = scmp.ne.s32.totalorder %s9064_s28, %s6540_s20 }
  0xdf   : > { %v7671_v35 = vpop.permute.xlu1 %1267  ;;  %v7674_v4 = vpop.permute.xlu0 %1265  ;;  %v1670_v39 = vsel %vm1646_vm3, %v1637_v50, %v1436_v23  ;;  %v675_v23 = vadd.f32 %v6497_v19, %v579_v62  ;;  %v1639_v21 = vsel %vm1613_vm2, %v802_v15, %v7643_v25  ;;  %v713_v44 = vmul.f32 %v7273_v11, %v676_v3  ;;  %v601_v19 = vld [vmem:[%s7242_s25 + $0xd0] sm:$0xff] }
  0xe0   : > { %6088 = vmatpush3.bf16.msra.mxu0 %v6462_v26  ;;  %v710_v26 = vmul.f32 %v7273_v11, %v673_v56  ;;  %p6542_p12 = pnand %p6541_p11, %p6722_p5 }
  0xe1   : > { %1579 = vrot.lane.b32.xlu1 %v1228_v12, %s9142_s26  ;;  %1577 = vrot.lane.b32.xlu0 %v1227_v28, %s9142_s26  ;;  %v712_v9 = vmul.f32 %v7273_v11, %v675_v23  ;;  %v750_v49 = vadd.f32 %v7304_v48, %v713_v44  ;;  %s6607_s26 = smov [#allocation4]  }
  0xe2   : > { %6157 = vmatprep.subr.bf16.mxu0 %v7667_v5  ;;  %v747_v37 = vadd.f32 %v7304_v48, %v710_v26  ;;  %p6543_p13 = pneg %p6542_p12  ;;  %s6544_s15 = sshll.u32 %s6607_s26, 4  ;;  %s6545_s15 = int_to_ptr.vmem [resolvable:$false] %s6544_s15 }
  0xe3   : > { %v1440_v42 = vpop.permute.xlu1 %1439  ;;  %v1438_v45 = vpop.permute.xlu0 %1437  ;;  %p6547_p0 = scmp.lt.s32.totalorder %s9064_s28, %s6545_s15 }
  0xe4   : > { %v1672_v38 = vsel %vm1646_vm3, %v1639_v21, %v1440_v42  ;;  %v1671_v50 = vsel %vm1646_vm3, %v1638_v1, %v1438_v45  ;;  %v779_v42 = vmax.f32 %v747_v37, 0.0  ;;  %v6499_v21 = vld [vmem:[%s6746_s22 + $0xd0] sm:$0xff] }
  0xe5   : > { %v697_v34 = vadd.f32 %v6499_v21, %v601_v19 }
  0xe6   : > { %v1616_v2 = vsel %vm1613_vm2, %v779_v42, %v7674_v4 }
  0xe7   : > { %v1564_v22 = vpop.permute.xlu1 %1563  ;;  %v1562_v7 = vpop.permute.xlu0 %1561 }
  0xe8   : > { %v1703_v59 = vsel %vm1679_vm4, %v1670_v39, %v1564_v22  ;;  %v1702_v14 = vsel %vm1679_vm4, %v1669_v43, %v1562_v7  ;;  %v749_v39 = vadd.f32 %v7304_v48, %v712_v9  ;;  %v1617_v22 = vsel %vm1613_vm2, %v780_v52, %v7671_v35 }
  0xe9   : > { %1782 = vst.msk [vmem:[#allocation2 + $0x129] sm:$0xff] %vm1712_vm0, %v1703_v59  ;;  %1781 = vst.msk [vmem:[#allocation2 + $0x121] sm:$0xff] %vm1712_vm0, %v1702_v14  ;;  %v782_v43 = vmax.f32 %v750_v49, 0.0  ;;  %v604_v49 = vld [vmem:[%s7242_s25 + $0xe8] sm:$0xff] }
  0xea   : > { %v781_v59 = vmax.f32 %v749_v39, 0.0  ;;  %v603_v39 = vld [vmem:[%s7242_s25 + $0xe0] sm:$0xff] }
  0xeb   : > { %v1272_v6 = vpop.permute.xlu1 %1271  ;;  %v1270_v13 = vpop.permute.xlu0 %1269 }
  0xec   : > { %v1619_v56 = vsel %vm1613_vm2, %v782_v43, %v1272_v6  ;;  %v1618_v60 = vsel %vm1613_vm2, %v781_v59, %v1270_v13  ;;  %v6501_v59 = vld [vmem:[%s6746_s22 + $0xe0] sm:$0xff] }
  0xef   : > { %v1396_v0 = vpop.permute.xlu1 %1395  ;;  %v1394_v12 = vpop.permute.xlu0 %1393 }
  0xf0   : > { %v1815_v20 = vld [vmem:[#allocation2 + $0x120] sm:$0xff]  ;;  %v1816_v28 = vld [vmem:[#allocation2 + $0x128] sm:$0xff]  ;;  %v1650_v7 = vsel %vm1646_vm3, %v1617_v22, %v1396_v0  ;;  %v1649_v63 = vsel %vm1646_vm3, %v1616_v2, %v1394_v12  ;;  %v6498_v12 = vld [vmem:[%s6746_s22 + $0xd8] sm:$0xff] }
  0xf1   : > { %v7707_v41 = vpack.c.bf16 %v1816_v28, %v1815_v20  ;;  %v698_v20 = vadd.f32 %v6498_v12, %v602_v36  ;;  %v6500_v22 = vld [vmem:[%s6746_s22 + $0xe8] sm:$0xff] }
  0xf2   : > { %v700_v43 = vadd.f32 %v6500_v22, %v604_v49 }
  0xf3   : > { %v1568_v33 = vpop.permute.xlu1 %1567  ;;  %v1566_v17 = vpop.permute.xlu0 %1565  ;;  %6041 = vmatprep.mubr.msk.bf16.mxu1 %vm1712_vm0, %v7707_v41  ;;  %v735_v9 = vmul.f32 %v7273_v11, %v698_v20  ;;  %v583_v20 = vld [vmem:[%s7242_s25 + $0x40] sm:$0xff] }
  0xf4   : > { %v1705_v25 = vsel %vm1679_vm4, %v1672_v38, %v1568_v33  ;;  %v1704_v54 = vsel %vm1679_vm4, %v1671_v50, %v1566_v17  ;;  %v734_v50 = vmul.f32 %v7273_v11, %v697_v34  ;;  %v7794_v34 = vld [vmem:[%s9116_s5] ss:$0 sm:$0xff] }
  0xf5   : > { %1784 = vst.msk [vmem:[#allocation2 + $0x141] sm:$0xff] %vm1712_vm0, %v1705_v25  ;;  %1783 = vst.msk [vmem:[#allocation2 + $0x139] sm:$0xff] %vm1712_vm0, %v1704_v54  ;;  %v772_v54 = vadd.f32 %v7304_v48, %v735_v9 }
  0xf6   : > { %v771_v52 = vadd.f32 %v7304_v48, %v734_v50 }
  0xf7   : > { %v1400_v55 = vpop.permute.xlu1 %1399  ;;  %v1398_v45 = vpop.permute.xlu0 %1397 }
  0xf8   : > { %v1652_v62 = vsel %vm1646_vm3, %v1619_v56, %v1400_v55  ;;  %v1651_v29 = vsel %vm1646_vm3, %v1618_v60, %v1398_v45  ;;  %v804_v45 = vmax.f32 %v772_v54, 0.0  ;;  %v803_v2 = vmax.f32 %v771_v52, 0.0  ;;  %v582_v56 = vld [vmem:[%s7242_s25 + $0x38] sm:$0xff] }
  0xfb   : > { %v1524_v14 = vpop.permute.xlu1 %1523  ;;  %v1522_v58 = vpop.permute.xlu0 %1521 }
  0xfc   : > { %v1683_v53 = vsel %vm1679_vm4, %v1650_v7, %v1524_v14  ;;  %v1682_v51 = vsel %vm1679_vm4, %v1649_v63, %v1522_v58  ;;  %v1817_v46 = vld [vmem:[#allocation2 + $0x138] sm:$0xff]  ;;  %v1818_v35 = vld [vmem:[#allocation2 + $0x140] sm:$0xff]  ;;  %v699_v7 = vadd.f32 %v6501_v59, %v603_v39  ;;  %v737_v58 = vmul.f32 %v7273_v11, %v700_v43 }
  0xfd   : > { %1762 = vst.msk [vmem:[#allocation2 + $0x39] sm:$0xff] %vm1712_vm0, %v1683_v53  ;;  %1761 = vst.msk [vmem:[#allocation2 + $0x31] sm:$0xff] %vm1712_vm0, %v1682_v51  ;;  %v7734_v4 = vpack.c.bf16 %v1818_v35, %v1817_v46 }
  0xfe   : > { %v736_v46 = vmul.f32 %v7273_v11, %v699_v7  ;;  %v6502_v11 = vld [vmem:[%s6746_s22 + $0x38] sm:$0xff] }
  0xff   : > { %v1528_v15 = vpop.permute.xlu1 %1527  ;;  %v1526_v3 = vpop.permute.xlu0 %1525  ;;  %6042 = vmatmul.mubr.msk.bf16.gmra.mxu1 %vm1712_vm0, %v7734_v4 }
 0x100   : > { %v1685_v16 = vsel %vm1679_vm4, %v1652_v62, %v1528_v15  ;;  %v1684_v6 = vsel %vm1679_vm4, %v1651_v29, %v1526_v3  ;;  %v581_v15 = vld [vmem:[%s7242_s25 + $0x30] sm:$0xff]  ;;  %v773_v36 = vadd.f32 %v7304_v48, %v736_v46 }
 0x101   : > { %1764 = vst.msk [vmem:[#allocation2 + $0x51] sm:$0xff] %vm1712_vm0, %v1685_v16  ;;  %1763 = vst.msk [vmem:[#allocation2 + $0x49] sm:$0xff] %vm1712_vm0, %v1684_v6  ;;  %v774_v6 = vadd.f32 %v7304_v48, %v737_v58 }
 0x102   : > { %v805_v50 = vmax.f32 %v773_v36, 0.0 }
 0x103   : > { %v1316_v13 = vpop.permute.xlu1 %1315  ;;  %v1314_v26 = vpop.permute.xlu0 %1313  ;;  %v806_v21 = vmax.f32 %v774_v6, 0.0  ;;  %v1845_v6 = vld [vmem:[#allocation2 + $0x1] sm:$0xff] }
 0x104   : > { %v1795_v23 = vld [vmem:[#allocation2 + $0x30] sm:$0xff]  ;;  %v1796_v0 = vld [vmem:[#allocation2 + $0x38] sm:$0xff]  ;;  %v1641_v53 = vsel %vm1613_vm2, %v804_v45, %v1316_v13  ;;  %v1640_v51 = vsel %vm1613_vm2, %v803_v2, %v1314_v26  ;;  %v678_v13 = vadd.f32 %v6502_v11, %v582_v56 }
 0x105   : > { %v7748_v28 = vpack.c.bf16 %v1796_v0, %v1795_v23  ;;  %v6503_v26 = vld [vmem:[%s6746_s22 + $0x30] sm:$0xff]  ;;  %v584_v0 = vld [vmem:[%s7242_s25 + $0x48] sm:$0xff] }
 0x106   : > { %v677_v19 = vadd.f32 %v6503_v26, %v581_v15  ;;  %v1846_v11 = vld [vmem:[#allocation2 + $0x9] sm:$0xff] }
 0x107   : > { %v7751_v44 = vpop.permute.xlu1 %1319  ;;  %v7753_v1 = vpop.permute.xlu0 %1317  ;;  %6021 = vmatprep.mubr.msk.bf16.mxu0 %vm1712_vm0, %v7748_v28 }
 0x108   : > { %v1797_v37 = vld [vmem:[#allocation2 + $0x48] sm:$0xff]  ;;  %v1798_v38 = vld [vmem:[#allocation2 + $0x50] sm:$0xff]  ;;  %v1643_v22 = vsel %vm1613_vm2, %v806_v21, %v7751_v44  ;;  %v1642_v7 = vsel %vm1613_vm2, %v805_v50, %v7753_v1 }
 0x109   : > { %v7758_v33 = vpack.c.bf16 %v1798_v38, %v1797_v37  ;;  %v715_v37 = vmul.f32 %v7794_v34, %v678_v13  ;;  %v6505_v38 = vld [vmem:[%s6746_s22 + $0x48] sm:$0xff] }
 0x10a   : > { %v680_v9 = vadd.f32 %v6505_v38, %v584_v0 }
 0x10b   : > { %v1444_v25 = vpop.permute.xlu1 %1443  ;;  %v1442_v17 = vpop.permute.xlu0 %1441  ;;  %6022 = vmatmul.mubr.msk.bf16.gmra.mxu0 %vm1712_vm0, %v7758_v33  ;;  %v752_v43 = vadd.f32 %v7304_v48, %v715_v37 }
 0x10c   : > { %v1674_v35 = vsel %vm1646_vm3, %v1641_v53, %v1444_v25  ;;  %v1673_v62 = vsel %vm1646_vm3, %v1640_v51, %v1442_v17  ;;  %v714_v25 = vmul.f32 %v7794_v34, %v677_v19  ;;  %v6506_v17 = vld [vmem:[%s6746_s22 + $0x40] sm:$0xff]  ;;  %v717_v2 = vmul.f32 %v7794_v34, %v680_v9 }
 0x10d   : > { %v679_v54 = vadd.f32 %v6506_v17, %v583_v20  ;;  %v784_v1 = vmax.f32 %v752_v43, 0.0  ;;  %v1881_v9 = vpack.c.bf16 %v1846_v11, %v1845_v6 }
 0x10e   : > { %v751_v53 = vadd.f32 %v7304_v48, %v714_v25  ;;  %v7820_v48 = vld [vmem:[%s9117_s6] ss:$0 sm:$0xff] }
 0x10f   : > { %v7766_v42 = vpop.permute.xlu1 %1275  ;;  %v7769_v55 = vpop.permute.xlu0 %1273  ;;  %v716_v51 = vmul.f32 %v7794_v34, %v679_v54 }
 0x113   : > { %v1448_v14 = vpop.permute.xlu1 %1447  ;;  %v1446_v63 = vpop.permute.xlu0 %1445 }
 0x114   : > { %v1676_v58 = vsel %vm1646_vm3, %v1643_v22, %v1448_v14  ;;  %v754_v14 = vadd.f32 %v7820_v48, %v717_v2 }
 0x117   : > { %v1572_v60 = vpop.permute.xlu1 %1571  ;;  %v1570_v16 = vpop.permute.xlu0 %1569 }
 0x118   : > { %v1707_v29 = vsel %vm1679_vm4, %v1674_v35, %v1572_v60  ;;  %v1706_v3 = vsel %vm1679_vm4, %v1673_v62, %v1570_v16  ;;  %v1675_v35 = vsel %vm1646_vm3, %v1642_v7, %v1446_v63  ;;  %v783_v63 = vmax.f32 %v751_v53, 0.0  ;;  %v588_v7 = vld [vmem:[%s7242_s25 + $0x68] sm:$0xff]  ;;  %v1847_v53 = vld [vmem:[#allocation2 + $0x19] sm:$0xff] }
 0x119   : > { %1786 = vst.msk [vmem:[#allocation2 + $0x159] sm:$0xff] %vm1712_vm0, %v1707_v29  ;;  %1785 = vst.msk [vmem:[#allocation2 + $0x151] sm:$0xff] %vm1712_vm0, %v1706_v3  ;;  %v753_v62 = vadd.f32 %v7820_v48, %v716_v51  ;;  %v1621_v16 = vsel %vm1613_vm2, %v784_v1, %v7766_v42  ;;  %v786_v3 = vmax.f32 %v754_v14, 0.0  ;;  %v684_v14 = vadd.f32 %v588_v7, %v7438_v32 }
 0x11a   : > { %v1620_v13 = vsel %vm1613_vm2, %v783_v63, %v7769_v55 }
 0x11b   : > { %v1280_v23 = vpop.permute.xlu1 %1279  ;;  %v1278_v12 = vpop.permute.xlu0 %1277  ;;  %v785_v36 = vmax.f32 %v753_v62, 0.0  ;;  %v721_v11 = vmul.f32 %v7794_v34, %v684_v14 }
 0x11c   : > { %v1623_v55 = vsel %vm1613_vm2, %v786_v3, %v1280_v23  ;;  %v585_v23 = vld [vmem:[%s7242_s25 + $0x50] sm:$0xff] }
 0x11d   : > { %v1622_v25 = vsel %vm1613_vm2, %v785_v36, %v1278_v12  ;;  %v681_v2 = vadd.f32 %v585_v23, %v7428_v27  ;;  %v7881_v36 = vld [vmem:[%s9118_s7 + $0x58] sm:$0xff]  }
 0x11f   : > { %v1404_v52 = vpop.permute.xlu1 %1403  ;;  %v1402_v49 = vpop.permute.xlu0 %1401  ;;  %v718_v27 = vmul.f32 %v7794_v34, %v681_v2 }
 0x120   : > { %v1819_v39 = vld [vmem:[#allocation2 + $0x150] sm:$0xff]  ;;  %v1820_v45 = vld [vmem:[#allocation2 + $0x158] sm:$0xff]  ;;  %v1654_v26 = vsel %vm1646_vm3, %v1621_v16, %v1404_v52  ;;  %v1653_v0 = vsel %vm1646_vm3, %v1620_v13, %v1402_v49 }
 0x121   : > { %v7804_v59 = vpack.c.bf16 %v1820_v45, %v1819_v39  ;;  %v586_v52 = vld [vmem:[%s7242_s25 + $0x58] sm:$0xff] }
 0x122   : > { %v682_v12 = vadd.f32 %v586_v52, %v7416_v10  ;;  %v6465_v10 = vld [vmem:[%s9118_s7 + $0x30] sm:$0xff]  }
 0x123   : > { %v1576_v46 = vpop.permute.xlu1 %1575  ;;  %v1574_v56 = vpop.permute.xlu0 %1573  ;;  %6045 = vmatprep.mubr.msk.bf16.mxu1 %vm1712_vm0, %v7804_v59 }
 0x124   : > { %v1709_v44 = vsel %vm1679_vm4, %v1676_v58, %v1576_v46  ;;  %v1708_v60 = vsel %vm1679_vm4, %v1675_v35, %v1574_v56  ;;  %v1848_v58 = vld [vmem:[#allocation2 + $0x21] sm:$0xff]  ;;  %v1849_v35 = vld [vmem:[#allocation2 + $0x31] sm:$0xff]  ;;  %v719_v1 = vmul.f32 %v7794_v34, %v682_v12 }
 0x125   : > { %1788 = vst.msk [vmem:[#allocation2 + $0x171] sm:$0xff] %vm1712_vm0, %v1709_v44  ;;  %1787 = vst.msk [vmem:[#allocation2 + $0x169] sm:$0xff] %vm1712_vm0, %v1708_v60  ;;  %v587_v46 = vld [vmem:[%s7242_s25 + $0x60] sm:$0xff]  ;;  %v7858_v62 = vpack.c.bf16 %v1848_v58, %v1847_v53 }
 0x126   : > { %v1850_v44 = vld [vmem:[#allocation2 + $0x39] sm:$0xff] }
 0x127   : > { %v1408_v15 = vpop.permute.xlu1 %1407  ;;  %v1406_v29 = vpop.permute.xlu0 %1405  ;;  %v7865_v16 = vpack.c.bf16 %v1850_v44, %v1849_v35 }
 0x128   : > { %v1656_v17 = vsel %vm1646_vm3, %v1623_v55, %v1408_v15  ;;  %v1655_v49 = vsel %vm1646_vm3, %v1622_v25, %v1406_v29  ;;  %v683_v29 = vadd.f32 %v587_v46, %v7461_v30  ;;  %v756_v30 = vadd.f32 %v7820_v48, %v719_v1 }
 0x129   : > { %v758_v25 = vadd.f32 %v7820_v48, %v721_v11 }
 0x12a   : > { %v788_v55 = vmax.f32 %v756_v30, 0.0 }
 0x12b   : > { %v1532_v19 = vpop.permute.xlu1 %1531  ;;  %v1530_v21 = vpop.permute.xlu0 %1529  ;;  %v790_v2 = vmax.f32 %v758_v25, 0.0 }
 0x12c   : > { %v1687_v20 = vsel %vm1679_vm4, %v1654_v26, %v1532_v19  ;;  %v1686_v42 = vsel %vm1679_vm4, %v1653_v0, %v1530_v21  ;;  %v1821_v37 = vld [vmem:[#allocation2 + $0x168] sm:$0xff]  ;;  %v1822_v38 = vld [vmem:[#allocation2 + $0x170] sm:$0xff]  ;;  %v755_v26 = vadd.f32 %v7820_v48, %v718_v27  ;;  %v720_v19 = vmul.f32 %v7794_v34, %v683_v29  ;;  %v606_v21 = vld [vmem:[%s7242_s25 + $0xf8] sm:$0xff] }
 0x12d   : > { %1766 = vst.msk [vmem:[#allocation2 + $0x69] sm:$0xff] %vm1712_vm0, %v1687_v20  ;;  %1765 = vst.msk [vmem:[#allocation2 + $0x61] sm:$0xff] %vm1712_vm0, %v1686_v42  ;;  %v7836_v50 = vpack.c.bf16 %v1822_v38, %v1821_v37  ;;  %v1851_v20 = vld [vmem:[#allocation2 + $0x49] sm:$0xff] }
 0x12e   : > { %v787_v52 = vmax.f32 %v755_v26, 0.0 }
 0x12f   : > { %v1536_v54 = vpop.permute.xlu1 %1535  ;;  %v1534_v45 = vpop.permute.xlu0 %1533  ;;  %6046 = vmatmul.mubr.msk.bf16.gmra.mxu1 %vm1712_vm0, %v7836_v50 }
 0x130   : > { %v1689_v39 = vsel %vm1679_vm4, %v1656_v17, %v1536_v54  ;;  %v1688_v22 = vsel %vm1679_vm4, %v1655_v49, %v1534_v45  ;;  %6053 = vmatprep.mubr.msk.bf16.mxu1 %vm1712_vm0, %v1881_v9  ;;  %v605_v9 = vld [vmem:[%s7242_s25 + $0xf0] sm:$0xff]  ;;  %v702_v54 = vadd.f32 %v606_v21, %v7558_v24  ;;  %v757_v49 = vadd.f32 %v7820_v48, %v720_v19  ;;  %s9060_s25 = scalar_lea.hbm %s9125_s14, %s5815_s1  ;;  %s6546_s1 = scalar_lea.vmem %s6545_s15, 8192 }
 0x131   : > { %1768 = vst.msk [vmem:[#allocation2 + $0x81] sm:$0xff] %vm1712_vm0, %v1689_v39  ;;  %1767 = vst.msk [vmem:[#allocation2 + $0x79] sm:$0xff] %vm1712_vm0, %v1688_v22  ;;  %v701_v23 = vadd.f32 %v605_v9, %v7569_v31  ;;  %v1900_v9 = vld [vmem:[#allocation2 + $0xa] sm:$0xff]  ;;  %p6548_p1 = scmp.lt.s32.totalorder %s6546_s1, %s6540_s20 }
 0x132   : > { %v739_v24 = vmul.f32 %v7794_v34, %v702_v54  ;;  %v789_v53 = vmax.f32 %v757_v49, 0.0  ;;  %v1861_v49 = vld [vmem:[#allocation2 + $0xc1] sm:$0xff] }
 0x133   : > { %v1284_v43 = vpop.permute.xlu1 %1283  ;;  %v1282_v51 = vpop.permute.xlu0 %1281  ;;  %v738_v44 = vmul.f32 %v7794_v34, %v701_v23  ;;  %p6549_p2 = por %p6548_p1, %p6547_p0 }
 0x134   : > { %v1799_v56 = vld [vmem:[#allocation2 + $0x60] sm:$0xff]  ;;  %v1800_v60 = vld [vmem:[#allocation2 + $0x68] sm:$0xff]  ;;  %v1625_v12 = vsel %vm1613_vm2, %v788_v55, %v1284_v43  ;;  %v1624_v7 = vsel %vm1613_vm2, %v787_v52, %v1282_v51 }
 0x135   : > { %v7856_v63 = vpack.c.bf16 %v1800_v60, %v1799_v56  ;;  %v1853_v37 = vld [vmem:[#allocation2 + $0x61] sm:$0xff]  ;;  %v1854_v38 = vld [vmem:[#allocation2 + $0x69] sm:$0xff]  ;;  %p6550_p3 = pnand %p6549_p2, %p6543_p13 }
 0x136   : > { %v7895_v45 = vpack.c.bf16 %v1854_v38, %v1853_v37  ;;  %v1899_v38 = vld [vmem:[#allocation2 + $0x2] sm:$0xff] }
 0x137   : > { %v1288_v15 = vpop.permute.xlu1 %1287  ;;  %v1286_v3 = vpop.permute.xlu0 %1285  ;;  %6025 = vmatprep.mubr.msk.bf16.mxu0 %vm1712_vm0, %v7856_v63  ;;  %6054 = vmatmul.mubr.msk.bf16.vlgmr.msra.gmra.mxu1 %vm1712_vm0, %v7858_v62 }
 0x138   : > { %6057 = vmatprep.mubr.msk.bf16.mxu1 %vm1712_vm0, %v7865_v16  ;;  %v1801_v32 = vld [vmem:[#allocation2 + $0x78] sm:$0xff]  ;;  %v1802_v6 = vld [vmem:[#allocation2 + $0x80] sm:$0xff]  ;;  %6122 = vmatpush3.bf16.msra.mxu1 %v7614_v8  ;;  %v1627_v14 = vsel %vm1613_vm2, %v790_v2, %v1288_v15  ;;  %v1626_v27 = vsel %vm1613_vm2, %v789_v53, %v1286_v3 }
 0x139   : > { %v7876_v13 = vpack.c.bf16 %v1802_v6, %v1801_v32  ;;  %6123 = vmatprep.subr.bf16.mxu1 %v6465_v10  ;;  %v1852_v8 = vld [vmem:[#allocation2 + $0x51] sm:$0xff]  ;;  %v1855_v35 = vld [vmem:[#allocation2 + $0x79] sm:$0xff]  ;;  %v1856_v31 = vld [vmem:[#allocation2 + $0x81] sm:$0xff]  ;;  %v775_v32 = vadd.f32 %v7820_v48, %v738_v44 }
 0x13a   : > { %v7890_v17 = vpack.c.bf16 %v1852_v8, %v1851_v20  ;;  %v7913_v51 = vpack.c.bf16 %v1856_v31, %v1855_v35 }
 0x13b   : > { %v1412_v0 = vpop.permute.xlu1 %1411  ;;  %v1410_v42 = vpop.permute.xlu0 %1409  ;;  %6026 = vmatmul.mubr.msk.bf16.gmra.mxu0 %vm1712_vm0, %v7876_v13  ;;  %v807_v19 = vmax.f32 %v775_v32, 0.0  ;;  %v1904_v32 = vld [vmem:[#allocation2 + $0x3a] sm:$0xff] }
 0x13c   : > { %6124 = vmatpush3.bf16.msra.mxu1 %v6465_v10  ;;  %v1658_v58 = vsel %vm1646_vm3, %v1625_v12, %v1412_v0  ;;  %v1657_v56 = vsel %vm1646_vm3, %v1624_v7, %v1410_v42  ;;  %v776_v10 = vadd.f32 %v7820_v48, %v739_v24  ;;  %v1935_v24 = vpack.c.bf16 %v1900_v9, %v1899_v38  ;;  %v1907_v38 = vld [vmem:[#allocation2 + $0x62] sm:$0xff] }
 0x13d   : > { %6193 = vmatprep.subr.bf16.mxu1 %v7881_v36 }
 0x13e   : > { %v808_v3 = vmax.f32 %v776_v10, 0.0  ;;  %v1902_v10 = vld [vmem:[#allocation2 + $0x22] sm:$0xff] }
 0x13f   : > { %v1416_v39 = vpop.permute.xlu1 %1415  ;;  %v1414_v22 = vpop.permute.xlu0 %1413  ;;  %6058 = vmatmul.mubr.msk.bf16.gmra.mxu1 %vm1712_vm0, %v7890_v17 }
 0x140   : > { %6061 = vmatprep.mubr.msk.bf16.mxu1 %vm1712_vm0, %v7895_v45  ;;  %v1660_v34 = vsel %vm1646_vm3, %v1627_v14, %v1416_v39  ;;  %v1659_v6 = vsel %vm1646_vm3, %v1626_v27, %v1414_v22  ;;  %v1862_v39 = vld [vmem:[#allocation2 + $0xc9] sm:$0xff]  ;;  %v1901_v14 = vld [vmem:[#allocation2 + $0x1a] sm:$0xff]  ;;  %v1865_v27 = vld [vmem:[#allocation2 + $0xf1] sm:$0xff] }
 0x141   : > { %v7942_v35 = vpack.c.bf16 %v1862_v39, %v1861_v49  ;;  %v1872_v49 = vld [vmem:[#allocation2 + $0x141] sm:$0xff] }
 0x142   : > { %v1909_v39 = vld [vmem:[#allocation2 + $0x7a] sm:$0xff] }
 0x143   : > { %v1540_v46 = vpop.permute.xlu1 %1539  ;;  %v1538_v1 = vpop.permute.xlu0 %1537 }
 0x144   : > { %v1691_v60 = vsel %vm1679_vm4, %v1658_v58, %v1540_v46  ;;  %v1690_v43 = vsel %vm1679_vm4, %v1657_v56, %v1538_v1  ;;  %v1864_v1 = vld [vmem:[#allocation2 + $0xe1] sm:$0xff] }
 0x145   : > { %1770 = vst.msk [vmem:[#allocation2 + $0x99] sm:$0xff] %vm1712_vm0, %v1691_v60  ;;  %1769 = vst.msk [vmem:[#allocation2 + $0x91] sm:$0xff] %vm1712_vm0, %v1690_v43  ;;  %v1863_v43 = vld [vmem:[#allocation2 + $0xd9] sm:$0xff] }
 0x147   : > { %v1544_v29 = vpop.permute.xlu1 %1543  ;;  %v1542_v11 = vpop.permute.xlu0 %1541  ;;  %6062 = vmatmul.mubr.msk.bf16.gmra.mxu1 %vm1712_vm0, %v7913_v51 }
 0x148   : > { %v1693_v30 = vsel %vm1679_vm4, %v1660_v34, %v1544_v29  ;;  %v1692_v15 = vsel %vm1679_vm4, %v1659_v6, %v1542_v11  ;;  %v1866_v34 = vld [vmem:[#allocation2 + $0xf9] sm:$0xff]  ;;  %v7955_v6 = vpack.c.bf16 %v1864_v1, %v1863_v43 }
 0x149   : > { %1772 = vst.msk [vmem:[#allocation2 + $0xb1] sm:$0xff] %vm1712_vm0, %v1693_v30  ;;  %1771 = vst.msk [vmem:[#allocation2 + $0xa9] sm:$0xff] %vm1712_vm0, %v1692_v15  ;;  %v1903_v29 = vld [vmem:[#allocation2 + $0x32] sm:$0xff]  ;;  %v7957_v30 = vpack.c.bf16 %v1902_v10, %v1901_v14  ;;  %v6466_v11 = vld [vmem:[%s9118_s7 + $0x40] sm:$0xff]   ;;  %v7962_v15 = vpack.c.bf16 %v1866_v34, %v1865_v27 }
 0x14a   : > { %v1915_v14 = vld [vmem:[#allocation2 + $0xc2] sm:$0xff]  ;;  %v1916_v10 = vld [vmem:[#allocation2 + $0xca] sm:$0xff] }
 0x14b   : > { %v1324_v26 = vpop.permute.xlu1 %1323  ;;  %v1322_v20 = vpop.permute.xlu0 %1321 }
 0x14c   : > { %v1858_v0 = vld [vmem:[#allocation2 + $0x99] sm:$0xff]  ;;  %v1803_v48 = vld [vmem:[#allocation2 + $0x90] sm:$0xff]  ;;  %v1645_v55 = vsel %vm1613_vm2, %v808_v3, %v1324_v26  ;;  %v1644_v25 = vsel %vm1613_vm2, %v807_v19, %v1322_v20  ;;  %v7968_v3 = vpack.c.bf16 %v1904_v32, %v1903_v29  ;;  %v8017_v29 = vpack.c.bf16 %v1916_v10, %v1915_v14 }
 0x14d   : > { %v1804_v8 = vld [vmem:[#allocation2 + $0x98] sm:$0xff]  ;;  %v1867_v26 = vld [vmem:[#allocation2 + $0x109] sm:$0xff] }
 0x14e   : > { %v1857_v21 = vld [vmem:[#allocation2 + $0x91] sm:$0xff]  ;;  %v7926_v42 = vpack.c.bf16 %v1804_v8, %v1803_v48  ;;  %v1870_v8 = vld [vmem:[#allocation2 + $0x129] sm:$0xff]  ;;  %v1917_v32 = vld [vmem:[#allocation2 + $0xda] sm:$0xff] }
 0x14f   : > { %v7928_v37 = vpack.c.bf16 %v1858_v0, %v1857_v21  ;;  %v1452_v54 = vpop.permute.xlu1 %1451  ;;  %v1450_v23 = vpop.permute.xlu0 %1449  ;;  %v1868_v19 = vld [vmem:[#allocation2 + $0x111] sm:$0xff]  ;;  %v7978_v0 = vld [vmem:[%s9118_s7 + $0x68] sm:$0xff]  }
 0x150   : > { %6029 = vmatprep.mubr.msk.bf16.mxu0 %vm1712_vm0, %v7926_v42  ;;  %v1860_v52 = vld [vmem:[#allocation2 + $0xb1] sm:$0xff]  ;;  %v1805_v22 = vld [vmem:[#allocation2 + $0xa8] sm:$0xff]  ;;  %v1678_v7 = vsel %vm1646_vm3, %v1645_v55, %v1452_v54  ;;  %v1677_v46 = vsel %vm1646_vm3, %v1644_v25, %v1450_v23  ;;  %v7980_v9 = vpack.c.bf16 %v1868_v19, %v1867_v26 }
 0x151   : > { %6065 = vmatprep.mubr.msk.bf16.mxu1 %vm1712_vm0, %v7928_v37  ;;  %v1806_v12 = vld [vmem:[#allocation2 + $0xb0] sm:$0xff]  ;;  %v1869_v21 = vld [vmem:[#allocation2 + $0x121] sm:$0xff] }
 0x152   : > { %v1859_v2 = vld [vmem:[#allocation2 + $0xa9] sm:$0xff]  ;;  %v7937_v53 = vpack.c.bf16 %v1806_v12, %v1805_v22  ;;  %v1906_v48 = vld [vmem:[#allocation2 + $0x52] sm:$0xff]  ;;  %v7985_v25 = vpack.c.bf16 %v1870_v8, %v1869_v21 }
 0x153   : > { %v7939_v58 = vpack.c.bf16 %v1860_v52, %v1859_v2  ;;  %v1580_v31 = vpop.permute.xlu1 %1579  ;;  %v1578_v56 = vpop.permute.xlu0 %1577  ;;  %v1905_v20 = vld [vmem:[#allocation2 + $0x4a] sm:$0xff]  ;;  %v1871_v52 = vld [vmem:[#allocation2 + $0x139] sm:$0xff]  ;;  %v1910_v23 = vld [vmem:[#allocation2 + $0x82] sm:$0xff] }
 0x154   : > { %6030 = vmatmul.mubr.msk.bf16.gmra.mxu0 %vm1712_vm0, %v7937_v53  ;;  %v1711_v44 = vsel %vm1679_vm4, %v1678_v7, %v1580_v31  ;;  %v1710_v60 = vsel %vm1679_vm4, %v1677_v46, %v1578_v56  ;;  %v7982_v55 = vpack.c.bf16 %v1906_v48, %v1905_v20  ;;  %v1874_v22 = vld [vmem:[#allocation2 + $0x159] sm:$0xff]  ;;  %v1873_v12 = vld [vmem:[#allocation2 + $0x151] sm:$0xff]  ;;  %v7997_v7 = vpack.c.bf16 %v1872_v49, %v1871_v52 }
 0x155   : > { %6066 = vmatmul.mubr.msk.bf16.gmra.mxu1 %vm1712_vm0, %v7939_v58  ;;  %6089 = vmatprep.mubr.msk.bf16.mxu0 %vm1712_vm0, %v1935_v24  ;;  %1790 = vst.msk [vmem:[#allocation2 + $0x189] sm:$0xff] %vm1712_vm0, %v1711_v44  ;;  %1789 = vst.msk [vmem:[#allocation2 + $0x181] sm:$0xff] %vm1712_vm0, %v1710_v60  ;;  %v1911_v2 = vld [vmem:[#allocation2 + $0x92] sm:$0xff]  ;;  %v1912_v24 = vld [vmem:[#allocation2 + $0x9a] sm:$0xff]  ;;  %v7999_v46 = vpack.c.bf16 %v1910_v23, %v1909_v39  ;;  %v8001_v31 = vpack.c.bf16 %v1874_v22, %v1873_v12 }
 0x156   : > { %6069 = vmatprep.mubr.msk.bf16.mxu1 %vm1712_vm0, %v7942_v35  ;;  %v8003_v44 = vpack.c.bf16 %v1912_v24, %v1911_v2  ;;  %v1876_v56 = vld [vmem:[#allocation2 + $0x171] sm:$0xff]  ;;  %v1875_v60 = vld [vmem:[#allocation2 + $0x169] sm:$0xff]  ;;  %v1920_v20 = vld [vmem:[#allocation2 + $0xfa] sm:$0xff] }
 0x157   : > { %v1913_v1 = vld [vmem:[#allocation2 + $0xaa] sm:$0xff]  ;;  %v1914_v43 = vld [vmem:[#allocation2 + $0xb2] sm:$0xff]  ;;  %v8013_v27 = vpack.c.bf16 %v1876_v56, %v1875_v60  ;;  %v1923_v23 = vld [vmem:[#allocation2 + $0x122] sm:$0xff] }
 0x158   : > { %v8015_v34 = vpack.c.bf16 %v1914_v43, %v1913_v1  ;;  %v1919_v19 = vld [vmem:[#allocation2 + $0xf2] sm:$0xff]  ;;  %v1921_v52 = vld [vmem:[#allocation2 + $0x10a] sm:$0xff]  ;;  %v1926_v24 = vld [vmem:[#allocation2 + $0x142] sm:$0xff] }
 0x159   : > { %v8031_v21 = vpack.c.bf16 %v1920_v20, %v1919_v19  ;;  %v1922_v49 = vld [vmem:[#allocation2 + $0x112] sm:$0xff]  ;;  %v1924_v22 = vld [vmem:[#allocation2 + $0x12a] sm:$0xff]  ;;  %v1928_v60 = vld [vmem:[#allocation2 + $0x15a] sm:$0xff] }
 0x15a   : > { %v8050_v39 = vld [vmem:[%s9118_s7 + $0x78] sm:$0xff]   ;;  %v8052_v12 = vpack.c.bf16 %v1922_v49, %v1921_v52  ;;  %v8054_v2 = vpack.c.bf16 %v1924_v22, %v1923_v23  ;;  %v1929_v14 = vld [vmem:[#allocation2 + $0x16a] sm:$0xff] }
 0x15b   : > { %v1927_v56 = vld [vmem:[#allocation2 + $0x152] sm:$0xff] }
 0x15c   : > { %6090 = vmatmul.mubr.msk.bf16.vlgmr.msra.gmra.mxu0 %vm1712_vm0, %v7957_v30  ;;  %v8067_v43 = vpack.c.bf16 %v1928_v60, %v1927_v56  ;;  %v1930_v10 = vld [vmem:[#allocation2 + $0x172] sm:$0xff]  ;;  %v1823_v52 = vld [vmem:[#allocation2 + $0x180] sm:$0xff]  ;;  %v1824_v49 = vld [vmem:[#allocation2 + $0x188] sm:$0xff] }
 0x15d   : > { %6070 = vmatmul.mubr.msk.bf16.gmra.mxu1 %vm1712_vm0, %v7955_v6  ;;  %6158 = vmatpush3.bf16.msra.mxu0 %v7667_v5  ;;  %v1908_v5 = vld [vmem:[#allocation2 + $0x6a] sm:$0xff]  ;;  %v8129_v23 = vpack.c.bf16 %v1824_v49, %v1823_v52 }
 0x15e   : > { %6073 = vmatprep.mubr.msk.bf16.mxu1 %vm1712_vm0, %v7962_v15  ;;  %6093 = vmatprep.mubr.msk.bf16.mxu0 %vm1712_vm0, %v7968_v3  ;;  %v7987_v54 = vpack.c.bf16 %v1908_v5, %v1907_v38  ;;  %v6469_v38 = vld [vmem:[%s9118_s7 + $0x50] sm:$0xff]  }
 0x15f   : > { %6159 = vmatprep.subr.bf16.mxu0 %v6466_v11  ;;  %v6473_v22 = vld [vmem:[%s9118_s7 + $0x70] sm:$0xff]  }
 0x161   : > { %6160 = vmatpush3.bf16.msra.mxu0 %v6466_v11  ;;  %v1918_v11 = vld [vmem:[#allocation2 + $0xe2] sm:$0xff] }
 0x162   : > { %6229 = vmatprep.subr.bf16.mxu0 %v7978_v0  ;;  %v8028_v8 = vpack.c.bf16 %v1918_v11, %v1917_v32  ;;  %v8077_v32 = vpack.c.bf16 %v1930_v10, %v1929_v14  ;;  %v1877_v14 = vld [vmem:[#allocation2 + $0x181] sm:$0xff]  ;;  %v1878_v10 = vld [vmem:[#allocation2 + $0x189] sm:$0xff] }
 0x164   : > { %6094 = vmatmul.mubr.msk.bf16.gmra.mxu0 %vm1712_vm0, %v7982_v55 }
 0x165   : > { %6074 = vmatmul.mubr.msk.bf16.gmra.mxu1 %vm1712_vm0, %v7980_v9  ;;  %6097 = vmatprep.mubr.msk.bf16.mxu0 %vm1712_vm0, %v7987_v54 }
 0x166   : > { %6077 = vmatprep.mubr.msk.bf16.mxu1 %vm1712_vm0, %v7985_v25 }
 0x16c   : > { %6098 = vmatmul.mubr.msk.bf16.gmra.mxu0 %vm1712_vm0, %v7999_v46 }
 0x16d   : > { %6078 = vmatmul.mubr.msk.bf16.gmra.mxu1 %vm1712_vm0, %v7997_v7  ;;  %6101 = vmatprep.mubr.msk.bf16.mxu0 %vm1712_vm0, %v8003_v44 }
 0x16e   : > { %6081 = vmatprep.mubr.msk.bf16.mxu1 %vm1712_vm0, %v8001_v31 }
 0x174   : > { %6102 = vmatmul.mubr.msk.bf16.gmra.mxu0 %vm1712_vm0, %v8015_v34 }
 0x175   : > { %6082 = vmatmul.mubr.msk.bf16.gmra.mxu1 %vm1712_vm0, %v8013_v27  ;;  %6105 = vmatprep.mubr.msk.bf16.mxu0 %vm1712_vm0, %v8017_v29 }
 0x176   : > { %6125 = vmatprep.mubr.msk.bf16.mxu1 %vm1712_vm0, %v7650_v18 }
 0x177   : > { %v6035_v26 = vpop.f32.mrf.mxu1 }
 0x178   : > { %2196 = vst.msk [vmem:[#allocation3 + $0x90] sm:$0xff] %vm1712_vm0, %v6035_v26 }
 0x179   : > { %v2115_v48 = vpop.f32.mrf.mxu1 }
 0x17a   : > { %2194 = vst.msk [vmem:[#allocation3 + $0x80] sm:$0xff] %vm1712_vm0, %v2115_v48  ;;  %v6470_v48 = vld [vmem:[%s9118_s7 + $0x60] sm:$0xff]  }
 0x17b   : > { %v6036_v5 = vpop.f32.mrf.mxu1 }
 0x17c   : > { %6106 = vmatmul.mubr.msk.bf16.gmra.mxu0 %vm1712_vm0, %v8028_v8  ;;  %2197 = vst.msk [vmem:[#allocation3 + $0x98] sm:$0xff] %vm1712_vm0, %v6036_v5  ;;  %v8107_v5 = vld [vmem:[%s9118_s7 + $0x88] sm:$0xff]  }
 0x17d   : > { %6126 = vmatmul.mubr.msk.bf16.vlgmr.msra.gmra.mxu1 %vm1712_vm0, %v7748_v28  ;;  %6109 = vmatprep.mubr.msk.bf16.mxu0 %vm1712_vm0, %v8031_v21  ;;  %v2118_v18 = vpop.f32.mrf.mxu1 }
 0x17e   : > { %6129 = vmatprep.mubr.msk.bf16.mxu1 %vm1712_vm0, %v7758_v33  ;;  %6194 = vmatpush3.bf16.msra.mxu1 %v7881_v36  ;;  %2195 = vst.msk [vmem:[#allocation3 + $0x88] sm:$0xff] %vm1712_vm0, %v2118_v18  ;;  %v1925_v36 = vld [vmem:[#allocation2 + $0x13a] sm:$0xff] }
 0x17f   : > { %6195 = vmatprep.subr.bf16.mxu1 %v6469_v38  ;;  %v8065_v1 = vpack.c.bf16 %v1926_v24, %v1925_v36 }
 0x182   : > { %6196 = vmatpush3.bf16.msra.mxu1 %v6469_v38 }
 0x183   : > { %6265 = vmatprep.subr.bf16.mxu1 %v8050_v39 }
 0x184   : > { %6110 = vmatmul.mubr.msk.bf16.gmra.mxu0 %vm1712_vm0, %v8052_v12 }
 0x185   : > { %6130 = vmatmul.mubr.msk.bf16.gmra.mxu1 %vm1712_vm0, %v7856_v63  ;;  %6113 = vmatprep.mubr.msk.bf16.mxu0 %vm1712_vm0, %v8054_v2 }
 0x186   : > { %6133 = vmatprep.mubr.msk.bf16.mxu1 %vm1712_vm0, %v7876_v13 }
 0x18c   : > { %6114 = vmatmul.mubr.msk.bf16.gmra.mxu0 %vm1712_vm0, %v8065_v1 }
 0x18d   : > { %6134 = vmatmul.mubr.msk.bf16.gmra.mxu1 %vm1712_vm0, %v7926_v42  ;;  %6117 = vmatprep.mubr.msk.bf16.mxu0 %vm1712_vm0, %v8067_v43 }
 0x18e   : > { %6137 = vmatprep.mubr.msk.bf16.mxu1 %vm1712_vm0, %v7937_v53 }
 0x193   : > { %v6039_v11 = vpop.f32.mrf.mxu1 }
 0x194   : > { %6118 = vmatmul.mubr.msk.bf16.gmra.mxu0 %vm1712_vm0, %v8077_v32  ;;  %2200 = vst.msk [vmem:[#allocation3 + $0xb0] sm:$0xff] %vm1712_vm0, %v6039_v11 }
 0x195   : > { %6138 = vmatmul.mubr.msk.bf16.gmra.mxu1 %vm1712_vm0, %v7453_v40  ;;  %6161 = vmatprep.mubr.msk.bf16.mxu0 %vm1712_vm0, %v7858_v62  ;;  %v2131_v26 = vpop.f32.mrf.mxu1 }
 0x196   : > { %6141 = vmatprep.mubr.msk.bf16.mxu1 %vm1712_vm0, %v7479_v47  ;;  %2198 = vst.msk [vmem:[#allocation3 + $0xa0] sm:$0xff] %vm1712_vm0, %v2131_v26 }
 0x197   : > { %v6040_v19 = vpop.f32.mrf.mxu1 }
 0x198   : > { %2201 = vst.msk [vmem:[#allocation3 + $0xb8] sm:$0xff] %vm1712_vm0, %v6040_v19  ;;  %v8174_v19 = vpack.c.bf16 %v1878_v10, %v1877_v14 }
 0x199   : > { %v2134_v20 = vpop.f32.mrf.mxu1 }
 0x19a   : > { %2199 = vst.msk [vmem:[#allocation3 + $0xa8] sm:$0xff] %vm1712_vm0, %v2134_v20  ;;  %v6474_v20 = vld [vmem:[%s9118_s7 + $0x80] sm:$0xff]  }
 0x19b   : > { %v6019_v38 = vpop.f32.mrf.mxu0 }
 0x19c   : > { %6162 = vmatmul.mubr.msk.bf16.vlgmr.msra.gmra.mxu0 %vm1712_vm0, %v7865_v16  ;;  %2180 = vst.msk [vmem:[#allocation3 + $0x10] sm:$0xff] %vm1712_vm0, %v6019_v38 }
 0x19d   : > { %6142 = vmatmul.mubr.msk.bf16.gmra.mxu1 %vm1712_vm0, %v7589_v57  ;;  %6230 = vmatpush3.bf16.msra.mxu0 %v7978_v0  ;;  %v2051_v62 = vpop.f32.mrf.mxu0 }
 0x19e   : > { %6145 = vmatprep.mubr.msk.bf16.mxu1 %vm1712_vm0, %v7625_v61  ;;  %6165 = vmatprep.mubr.msk.bf16.mxu0 %vm1712_vm0, %v7890_v17  ;;  %2178 = vst.msk [vmem:[#allocation3] sm:$0xff] %vm1712_vm0, %v2051_v62 }
 0x19f   : > { %6231 = vmatprep.subr.bf16.mxu0 %v6470_v48  ;;  %v6020_v18 = vpop.f32.mrf.mxu0 }
 0x1a0   : > { %2181 = vst.msk [vmem:[#allocation3 + $0x18] sm:$0xff] %vm1712_vm0, %v6020_v18 }
 0x1a1   : > { %6232 = vmatpush3.bf16.msra.mxu0 %v6470_v48  ;;  %v2054_v0 = vpop.f32.mrf.mxu0 }
 0x1a2   : > { %6301 = vmatprep.subr.bf16.mxu0 %v8107_v5  ;;  %2179 = vst.msk [vmem:[#allocation3 + $0x8] sm:$0xff] %vm1712_vm0, %v2054_v0 }
 0x1a3   : > { %v2438_v38 = vld [vmem:[#allocation3 + $0x10] sm:$0xff] }
 0x1a4   : > { %6166 = vmatmul.mubr.msk.bf16.gmra.mxu0 %vm1712_vm0, %v7895_v45 }
 0x1a5   : > { %6146 = vmatmul.mubr.msk.bf16.gmra.mxu1 %vm1712_vm0, %v7707_v41  ;;  %6169 = vmatprep.mubr.msk.bf16.mxu0 %vm1712_vm0, %v7913_v51  ;;  %v2436_v18 = vld [vmem:[#allocation3] sm:$0xff] }
 0x1a6   : > { %6149 = vmatprep.mubr.msk.bf16.mxu1 %vm1712_vm0, %v7734_v4 }
 0x1a7   : > { %v2439_v49 = vld [vmem:[#allocation3 + $0x18] sm:$0xff] }
 0x1ac   : > { %6170 = vmatmul.mubr.msk.bf16.gmra.mxu0 %vm1712_vm0, %v7928_v37 }
 0x1ad   : > { %6150 = vmatmul.mubr.msk.bf16.gmra.mxu1 %vm1712_vm0, %v7804_v59  ;;  %6173 = vmatprep.mubr.msk.bf16.mxu0 %vm1712_vm0, %v7939_v58 }
 0x1ae   : > { %6153 = vmatprep.mubr.msk.bf16.mxu1 %vm1712_vm0, %v7836_v50 }
 0x1b4   : > { %6174 = vmatmul.mubr.msk.bf16.gmra.mxu0 %vm1712_vm0, %v7942_v35 }
 0x1b5   : > { %6154 = vmatmul.mubr.msk.bf16.gmra.mxu1 %vm1712_vm0, %v8129_v23  ;;  %6177 = vmatprep.mubr.msk.bf16.mxu0 %vm1712_vm0, %v7955_v6 }
 0x1b6   : > { %6197 = vmatprep.mubr.msk.bf16.mxu1 %vm1712_vm0, %v7957_v30 }
 0x1bc   : > { %6178 = vmatmul.mubr.msk.bf16.gmra.mxu0 %vm1712_vm0, %v7962_v15 }
 0x1bd   : > { %6198 = vmatmul.mubr.msk.bf16.vlgmr.msra.gmra.mxu1 %vm1712_vm0, %v7968_v3  ;;  %6181 = vmatprep.mubr.msk.bf16.mxu0 %vm1712_vm0, %v7980_v9 }
 0x1be   : > { %6201 = vmatprep.mubr.msk.bf16.mxu1 %vm1712_vm0, %v7982_v55  ;;  %6266 = vmatpush3.bf16.msra.mxu1 %v8050_v39 }
 0x1bf   : > { %6267 = vmatprep.subr.bf16.mxu1 %v6473_v22  ;;  %v6043_v30 = vpop.f32.mrf.mxu1 }
 0x1c0   : > { %2204 = vst.msk [vmem:[#allocation3 + $0xd0] sm:$0xff] %vm1712_vm0, %v6043_v30  ;;  %v2437_v30 = vld [vmem:[#allocation3 + $0x8] sm:$0xff] }
 0x1c1   : > { %v2147_v36 = vpop.f32.mrf.mxu1 }
 0x1c2   : > { %6268 = vmatpush3.bf16.msra.mxu1 %v6473_v22  ;;  %2202 = vst.msk [vmem:[#allocation3 + $0xc0] sm:$0xff] %vm1712_vm0, %v2147_v36 }
 0x1c3   : > { %v6044_v24 = vpop.f32.mrf.mxu1 }
 0x1c4   : > { %6182 = vmatmul.mubr.msk.bf16.gmra.mxu0 %vm1712_vm0, %v7985_v25  ;;  %2205 = vst.msk [vmem:[#allocation3 + $0xd8] sm:$0xff] %vm1712_vm0, %v6044_v24 }
 0x1c5   : > { %6202 = vmatmul.mubr.msk.bf16.gmra.mxu1 %vm1712_vm0, %v7987_v54  ;;  %6185 = vmatprep.mubr.msk.bf16.mxu0 %vm1712_vm0, %v7997_v7  ;;  %v2150_v39 = vpop.f32.mrf.mxu1 }
 0x1c6   : > { %6205 = vmatprep.mubr.msk.bf16.mxu1 %vm1712_vm0, %v7999_v46  ;;  %2203 = vst.msk [vmem:[#allocation3 + $0xc8] sm:$0xff] %vm1712_vm0, %v2150_v39 }
 0x1cb   : > { %v6023_v56 = vpop.f32.mrf.mxu0 }
 0x1cc   : > { %6186 = vmatmul.mubr.msk.bf16.gmra.mxu0 %vm1712_vm0, %v8001_v31  ;;  %2184 = vst.msk [vmem:[#allocation3 + $0x30] sm:$0xff] %vm1712_vm0, %v6023_v56 }
 0x1cd   : > { %6206 = vmatmul.mubr.msk.bf16.gmra.mxu1 %vm1712_vm0, %v8003_v44  ;;  %6189 = vmatprep.mubr.msk.bf16.mxu0 %vm1712_vm0, %v8013_v27  ;;  %v2067_v60 = vpop.f32.mrf.mxu0 }
 0x1ce   : > { %6209 = vmatprep.mubr.msk.bf16.mxu1 %vm1712_vm0, %v8015_v34  ;;  %2182 = vst.msk [vmem:[#allocation3 + $0x20] sm:$0xff] %vm1712_vm0, %v2067_v60 }
 0x1cf   : > { %v6024_v11 = vpop.f32.mrf.mxu0 }
 0x1d0   : > { %2185 = vst.msk [vmem:[#allocation3 + $0x38] sm:$0xff] %vm1712_vm0, %v6024_v11 }
 0x1d1   : > { %v2070_v26 = vpop.f32.mrf.mxu0 }
 0x1d2   : > { %2183 = vst.msk [vmem:[#allocation3 + $0x28] sm:$0xff] %vm1712_vm0, %v2070_v26 }
 0x1d3   : > { %v2442_v24 = vld [vmem:[#allocation3 + $0x30] sm:$0xff] }
 0x1d4   : > { %6190 = vmatmul.mubr.msk.bf16.gmra.mxu0 %vm1712_vm0, %v8174_v19 }
 0x1d5   : > { %6210 = vmatmul.mubr.msk.bf16.gmra.mxu1 %vm1712_vm0, %v8017_v29  ;;  %6233 = vmatprep.mubr.msk.bf16.mxu0 %vm1712_vm0, %v7748_v28  ;;  %v1931_v28 = vld [vmem:[#allocation2 + $0x182] sm:$0xff]  ;;  %v2440_v60 = vld [vmem:[#allocation3 + $0x20] sm:$0xff] }
 0x1d6   : > { %6213 = vmatprep.mubr.msk.bf16.mxu1 %vm1712_vm0, %v8028_v8 }
 0x1d7   : > { %v2443_v10 = vld [vmem:[#allocation3 + $0x38] sm:$0xff] }
 0x1dc   : > { %6234 = vmatmul.mubr.msk.bf16.vlgmr.msra.gmra.mxu0 %vm1712_vm0, %v7758_v33  ;;  %v1932_v33 = vld [vmem:[#allocation2 + $0x18a] sm:$0xff] }
 0x1dd   : > { %6214 = vmatmul.mubr.msk.bf16.gmra.mxu1 %vm1712_vm0, %v8031_v21  ;;  %6302 = vmatpush3.bf16.msra.mxu0 %v8107_v5  ;;  %v8214_v48 = vpack.c.bf16 %v1932_v33, %v1931_v28 }
 0x1de   : > { %6217 = vmatprep.mubr.msk.bf16.mxu1 %vm1712_vm0, %v8052_v12  ;;  %6237 = vmatprep.mubr.msk.bf16.mxu0 %vm1712_vm0, %v7856_v63 }
 0x1df   : > { %6303 = vmatprep.subr.bf16.mxu0 %v6474_v20 }
 0x1e1   : > { %6304 = vmatpush3.bf16.msra.mxu0 %v6474_v20  ;;  %v2441_v20 = vld [vmem:[#allocation3 + $0x28] sm:$0xff] }
 0x1e4   : > { %6238 = vmatmul.mubr.msk.bf16.gmra.mxu0 %vm1712_vm0, %v7876_v13 }
 0x1e5   : > { %6218 = vmatmul.mubr.msk.bf16.gmra.mxu1 %vm1712_vm0, %v8054_v2  ;;  %6241 = vmatprep.mubr.msk.bf16.mxu0 %vm1712_vm0, %v7926_v42 }
 0x1e6   : > { %6221 = vmatprep.mubr.msk.bf16.mxu1 %vm1712_vm0, %v8065_v1 }
 0x1ec   : > { %6242 = vmatmul.mubr.msk.bf16.gmra.mxu0 %vm1712_vm0, %v7937_v53 }
 0x1ed   : > { %6222 = vmatmul.mubr.msk.bf16.gmra.mxu1 %vm1712_vm0, %v8067_v43  ;;  %6245 = vmatprep.mubr.msk.bf16.mxu0 %vm1712_vm0, %v7453_v40 }
 0x1ee   : > { %6225 = vmatprep.mubr.msk.bf16.mxu1 %vm1712_vm0, %v8077_v32 }
 0x1ef   : > { %v6047_v63 = vpop.f32.mrf.mxu1 }
 0x1f0   : > { %2208 = vst.msk [vmem:[#allocation3 + $0xf0] sm:$0xff] %vm1712_vm0, %v6047_v63 }
 0x1f1   : > { %v2163_v13 = vpop.f32.mrf.mxu1 }
 0x1f2   : > { %2206 = vst.msk [vmem:[#allocation3 + $0xe0] sm:$0xff] %vm1712_vm0, %v2163_v13 }
 0x1f3   : > { %v6048_v42 = vpop.f32.mrf.mxu1 }
 0x1f4   : > { %6246 = vmatmul.mubr.msk.bf16.gmra.mxu0 %vm1712_vm0, %v7479_v47  ;;  %2209 = vst.msk [vmem:[#allocation3 + $0xf8] sm:$0xff] %vm1712_vm0, %v6048_v42 }
 0x1f5   : > { %6226 = vmatmul.mubr.msk.bf16.gmra.mxu1 %vm1712_vm0, %v8214_v48  ;;  %6249 = vmatprep.mubr.msk.bf16.mxu0 %vm1712_vm0, %v7589_v57  ;;  %v2166_v40 = vpop.f32.mrf.mxu1 }
 0x1f6   : > { %6269 = vmatprep.mubr.msk.bf16.mxu1 %vm1712_vm0, %v7865_v16  ;;  %2207 = vst.msk [vmem:[#allocation3 + $0xe8] sm:$0xff] %vm1712_vm0, %v2166_v40 }
 0x1f7   : > { %v6055_v53 = vpop.f32.mrf.mxu1 }
 0x1f8   : > { %v2470_v62 = vadd.f32 %v6055_v53, %v2438_v38  ;;  %v1825_v53 = vld [vmem:[#allocation2 + $0x198] sm:$0xff]  ;;  %v1826_v38 = vld [vmem:[#allocation2 + $0x1a0] sm:$0xff] }
 0x1f9   : > { %v2309_v5 = vpop.f32.mrf.mxu1 }
 0x1fa   : > { %2502 = vst.msk [vmem:[#allocation3 + $0x10] sm:$0xff] %vm1712_vm0, %v2470_v62  ;;  %v2468_v0 = vadd.f32 %v2436_v18, %v2309_v5 }
 0x1fb   : > { %v6027_v47 = vpop.f32.mrf.mxu0  ;;  %v6056_v52 = vpop.f32.mrf.mxu1 }
 0x1fc   : > { %6250 = vmatmul.mubr.msk.bf16.gmra.mxu0 %vm1712_vm0, %v7625_v61  ;;  %2500 = vst.msk [vmem:[#allocation3] sm:$0xff] %vm1712_vm0, %v2468_v0  ;;  %2188 = vst.msk [vmem:[#allocation3 + $0x50] sm:$0xff] %vm1712_vm0, %v6027_v47  ;;  %v2471_v57 = vadd.f32 %v6056_v52, %v2439_v49 }
 0x1fd   : > { %6270 = vmatmul.mubr.msk.bf16.vlgmr.msra.gmra.mxu1 %vm1712_vm0, %v7890_v17  ;;  %6253 = vmatprep.mubr.msk.bf16.mxu0 %vm1712_vm0, %v7707_v41  ;;  %v2083_v16 = vpop.f32.mrf.mxu0  ;;  %v2312_v22 = vpop.f32.mrf.mxu1 }
 0x1fe   : > { %6273 = vmatprep.mubr.msk.bf16.mxu1 %vm1712_vm0, %v7895_v45  ;;  %2503 = vst.msk [vmem:[#allocation3 + $0x18] sm:$0xff] %vm1712_vm0, %v2471_v57  ;;  %2186 = vst.msk [vmem:[#allocation3 + $0x40] sm:$0xff] %vm1712_vm0, %v2083_v16  ;;  %v2469_v61 = vadd.f32 %v2437_v30, %v2312_v22  ;;  %v2454_v22 = vld [vmem:[#allocation3 + $0x90] sm:$0xff] }
 0x1ff   : > { %v6028_v17 = vpop.f32.mrf.mxu0  ;;  %v6059_v36 = vpop.f32.mrf.mxu1 }
 0x200   : > { %2501 = vst.msk [vmem:[#allocation3 + $0x8] sm:$0xff] %vm1712_vm0, %v2469_v61  ;;  %2189 = vst.msk [vmem:[#allocation3 + $0x58] sm:$0xff] %vm1712_vm0, %v6028_v17  ;;  %v2474_v39 = vadd.f32 %v6059_v36, %v2442_v24 }
 0x201   : > { %v2086_v41 = vpop.f32.mrf.mxu0  ;;  %v2325_v56 = vpop.f32.mrf.mxu1 }
 0x202   : > { %2506 = vst.msk [vmem:[#allocation3 + $0x30] sm:$0xff] %vm1712_vm0, %v2474_v39  ;;  %2187 = vst.msk [vmem:[#allocation3 + $0x48] sm:$0xff] %vm1712_vm0, %v2086_v41  ;;  %v2472_v45 = vadd.f32 %v2440_v60, %v2325_v56  ;;  %v2452_v39 = vld [vmem:[#allocation3 + $0x80] sm:$0xff] }
 0x203   : > { %v6060_v14 = vpop.f32.mrf.mxu1  ;;  %v2446_v63 = vld [vmem:[#allocation3 + $0x50] sm:$0xff]  ;;  %v2758_v56 = vld [vmem:[#allocation3] sm:$0xff] }
 0x204   : > { %6254 = vmatmul.mubr.msk.bf16.gmra.mxu0 %vm1712_vm0, %v7734_v4  ;;  %2504 = vst.msk [vmem:[#allocation3 + $0x20] sm:$0xff] %vm1712_vm0, %v2472_v45  ;;  %v2475_v11 = vadd.f32 %v6060_v14, %v2443_v10 }
 0x205   : > { %6274 = vmatmul.mubr.msk.bf16.gmra.mxu1 %vm1712_vm0, %v7913_v51  ;;  %6257 = vmatprep.mubr.msk.bf16.mxu0 %vm1712_vm0, %v7804_v59  ;;  %v2328_v26 = vpop.f32.mrf.mxu1  ;;  %v2444_v13 = vld [vmem:[#allocation3 + $0x40] sm:$0xff] }
 0x206   : > { %6277 = vmatprep.mubr.msk.bf16.mxu1 %vm1712_vm0, %v7928_v37  ;;  %2507 = vst.msk [vmem:[#allocation3 + $0x38] sm:$0xff] %vm1712_vm0, %v2475_v11  ;;  %v2473_v28 = vadd.f32 %v2441_v20, %v2328_v26  ;;  %v2761_v11 = vld [vmem:[#allocation3 + $0x18] sm:$0xff] }
 0x207   : > { %v6063_v33 = vpop.f32.mrf.mxu1  ;;  %v2447_v59 = vld [vmem:[#allocation3 + $0x58] sm:$0xff] }
 0x208   : > { %2505 = vst.msk [vmem:[#allocation3 + $0x28] sm:$0xff] %vm1712_vm0, %v2473_v28  ;;  %v2478_v4 = vadd.f32 %v6063_v33, %v2446_v63  ;;  %v2453_v63 = vld [vmem:[#allocation3 + $0x88] sm:$0xff] }
 0x209   : > { %v2341_v51 = vpop.f32.mrf.mxu1  ;;  %v2445_v5 = vld [vmem:[#allocation3 + $0x48] sm:$0xff] }
 0x20a   : > { %2510 = vst.msk [vmem:[#allocation3 + $0x50] sm:$0xff] %vm1712_vm0, %v2478_v4  ;;  %v2476_v42 = vadd.f32 %v2444_v13, %v2341_v51  ;;  %v2759_v51 = vld [vmem:[#allocation3 + $0x8] sm:$0xff] }
 0x20b   : > { %v6064_v40 = vpop.f32.mrf.mxu1 }
 0x20c   : > { %6258 = vmatmul.mubr.msk.bf16.gmra.mxu0 %vm1712_vm0, %v7836_v50  ;;  %2508 = vst.msk [vmem:[#allocation3 + $0x40] sm:$0xff] %vm1712_vm0, %v2476_v42  ;;  %v2479_v37 = vadd.f32 %v6064_v40, %v2447_v59  ;;  %v1844_v50 = vpack.c.bf16 %v1826_v38, %v1825_v53  ;;  %v2764_v38 = vld [vmem:[#allocation3 + $0x30] sm:$0xff] }
 0x20d   : > { %6278 = vmatmul.mubr.msk.bf16.gmra.mxu1 %vm1712_vm0, %v7939_v58  ;;  %6261 = vmatprep.mubr.msk.bf16.mxu0 %vm1712_vm0, %v8129_v23  ;;  %v2344_v62 = vpop.f32.mrf.mxu1 }
 0x20e   : > { %6281 = vmatprep.mubr.msk.bf16.mxu1 %vm1712_vm0, %v7942_v35  ;;  %2511 = vst.msk [vmem:[#allocation3 + $0x58] sm:$0xff] %vm1712_vm0, %v2479_v37  ;;  %v2477_v18 = vadd.f32 %v2445_v5, %v2344_v62  ;;  %v2458_v37 = vld [vmem:[#allocation3 + $0xb0] sm:$0xff] }
 0x210   : > { %2509 = vst.msk [vmem:[#allocation3 + $0x48] sm:$0xff] %vm1712_vm0, %v2477_v18 }
 0x214   : > { %v6031_v58 = vpop.f32.mrf.mxu0  ;;  %6262 = vmatmul.mubr.msk.bf16.gmra.mxu0 %vm1712_vm0, %v1844_v50  ;;  %v2456_v50 = vld [vmem:[#allocation3 + $0xa0] sm:$0xff] }
 0x215   : > { %v6067_v0 = vpop.f32.mrf.mxu1  ;;  %6282 = vmatmul.mubr.msk.bf16.gmra.mxu1 %vm1712_vm0, %v7955_v6  ;;  %2192 = vst.msk [vmem:[#allocation3 + $0x70] sm:$0xff] %vm1712_vm0, %v6031_v58  ;;  %6305 = vmatprep.mubr.msk.bf16.mxu0 %vm1712_vm0, %v7968_v3  ;;  %v2762_v58 = vld [vmem:[#allocation3 + $0x20] sm:$0xff] }
 0x216   : > { %6285 = vmatprep.mubr.msk.bf16.mxu1 %vm1712_vm0, %v7962_v15  ;;  %v2099_v35 = vpop.f32.mrf.mxu0  ;;  %v2760_v15 = vld [vmem:[#allocation3 + $0x10] sm:$0xff] }
 0x217   : > { %v2357_v23 = vpop.f32.mrf.mxu1  ;;  %2190 = vst.msk [vmem:[#allocation3 + $0x60] sm:$0xff] %vm1712_vm0, %v2099_v35 }
 0x218   : > { %v6032_v47 = vpop.f32.mrf.mxu0 }
 0x219   : > { %v6068_v52 = vpop.f32.mrf.mxu1  ;;  %2193 = vst.msk [vmem:[#allocation3 + $0x78] sm:$0xff] %vm1712_vm0, %v6032_v47 }
 0x21a   : > { %v2102_v49 = vpop.f32.mrf.mxu0 }
 0x21b   : > { %v2360_v57 = vpop.f32.mrf.mxu1  ;;  %2191 = vst.msk [vmem:[#allocation3 + $0x68] sm:$0xff] %vm1712_vm0, %v2102_v49 }
 0x21c   : > { %v2450_v6 = vld [vmem:[#allocation3 + $0x70] sm:$0xff]  ;;  %v6091_v30 = vpop.f32.mrf.mxu0  ;;  %6306 = vmatmul.mubr.msk.bf16.vlgmr.msra.gmra.mxu0 %vm1712_vm0, %v7982_v55 }
 0x21d   : > { %v6071_v16 = vpop.f32.mrf.mxu1  ;;  %6286 = vmatmul.mubr.msk.bf16.gmra.mxu1 %vm1712_vm0, %v7980_v9  ;;  %v2482_v3 = vadd.f32 %v6067_v0, %v2450_v6  ;;  %v2792_v17 = vadd.f32 %v6091_v30, %v2760_v15  ;;  %6309 = vmatprep.mubr.msk.bf16.mxu0 %vm1712_vm0, %v7987_v54 }
 0x21e   : > { %v2486_v61 = vadd.f32 %v6071_v16, %v2454_v22  ;;  %6289 = vmatprep.mubr.msk.bf16.mxu1 %vm1712_vm0, %v7985_v25  ;;  %v2448_v36 = vld [vmem:[#allocation3 + $0x60] sm:$0xff]  ;;  %v2631_v41 = vpop.f32.mrf.mxu0  ;;  %v2455_v25 = vld [vmem:[#allocation3 + $0x98] sm:$0xff]  ;;  %v2763_v16 = vld [vmem:[#allocation3 + $0x28] sm:$0xff] }
 0x21f   : > { %v2373_v24 = vpop.f32.mrf.mxu1  ;;  %2514 = vst.msk [vmem:[#allocation3 + $0x70] sm:$0xff] %vm1712_vm0, %v2482_v3  ;;  %v2480_v9 = vadd.f32 %v2448_v36, %v2357_v23  ;;  %2824 = vst.msk [vmem:[#allocation3 + $0x10] sm:$0xff] %vm1712_vm0, %v2792_v17  ;;  %v2790_v60 = vadd.f32 %v2758_v56, %v2631_v41  ;;  %v2459_v23 = vld [vmem:[#allocation3 + $0xb8] sm:$0xff]  ;;  %v2462_v3 = vld [vmem:[#allocation3 + $0xd0] sm:$0xff] }
 0x220   : > { %2518 = vst.msk [vmem:[#allocation3 + $0x90] sm:$0xff] %vm1712_vm0, %v2486_v61  ;;  %v2484_v55 = vadd.f32 %v2452_v39, %v2373_v24  ;;  %v2451_v45 = vld [vmem:[#allocation3 + $0x78] sm:$0xff]  ;;  %v6092_v10 = vpop.f32.mrf.mxu0  ;;  %v2768_v17 = vld [vmem:[#allocation3 + $0x50] sm:$0xff] }
 0x221   : > { %v6072_v14 = vpop.f32.mrf.mxu1  ;;  %2512 = vst.msk [vmem:[#allocation3 + $0x60] sm:$0xff] %vm1712_vm0, %v2480_v9  ;;  %v2483_v54 = vadd.f32 %v6068_v52, %v2451_v45  ;;  %2822 = vst.msk [vmem:[#allocation3] sm:$0xff] %vm1712_vm0, %v2790_v60  ;;  %v2793_v20 = vadd.f32 %v6092_v10, %v2761_v11  ;;  %v2765_v52 = vld [vmem:[#allocation3 + $0x38] sm:$0xff]  ;;  %v1879_v39 = vld [vmem:[#allocation2 + $0x199] sm:$0xff] }
 0x222   : > { %2516 = vst.msk [vmem:[#allocation3 + $0x80] sm:$0xff] %vm1712_vm0, %v2484_v55  ;;  %v2487_v26 = vadd.f32 %v6072_v14, %v2455_v25  ;;  %v2449_v28 = vld [vmem:[#allocation3 + $0x68] sm:$0xff]  ;;  %v2634_v4 = vpop.f32.mrf.mxu0  ;;  %v1880_v41 = vld [vmem:[#allocation2 + $0x1a1] sm:$0xff]  ;;  %v2460_v9 = vld [vmem:[#allocation3 + $0xc0] sm:$0xff] }
 0x223   : > { %v2376_v33 = vpop.f32.mrf.mxu1  ;;  %2515 = vst.msk [vmem:[#allocation3 + $0x78] sm:$0xff] %vm1712_vm0, %v2483_v54  ;;  %v2481_v13 = vadd.f32 %v2449_v28, %v2360_v57  ;;  %2825 = vst.msk [vmem:[#allocation3 + $0x18] sm:$0xff] %vm1712_vm0, %v2793_v20  ;;  %v2791_v40 = vadd.f32 %v2759_v51, %v2634_v4  ;;  %v2457_v57 = vld [vmem:[#allocation3 + $0xa8] sm:$0xff]  ;;  %v2766_v55 = vld [vmem:[#allocation3 + $0x40] sm:$0xff] }
 0x224   : > { %2519 = vst.msk [vmem:[#allocation3 + $0x98] sm:$0xff] %vm1712_vm0, %v2487_v26  ;;  %v2485_v42 = vadd.f32 %v2453_v63, %v2376_v33  ;;  %v6095_v53 = vpop.f32.mrf.mxu0  ;;  %6310 = vmatmul.mubr.msk.bf16.gmra.mxu0 %vm1712_vm0, %v7999_v46  ;;  %v2463_v14 = vld [vmem:[#allocation3 + $0xd8] sm:$0xff]  ;;  %v2461_v26 = vld [vmem:[#allocation3 + $0xc8] sm:$0xff]  ;;  %v2466_v51 = vld [vmem:[#allocation3 + $0xf0] sm:$0xff] }
 0x225   : > { %v6075_v59 = vpop.f32.mrf.mxu1  ;;  %6290 = vmatmul.mubr.msk.bf16.gmra.mxu1 %vm1712_vm0, %v7997_v7  ;;  %2513 = vst.msk [vmem:[#allocation3 + $0x68] sm:$0xff] %vm1712_vm0, %v2481_v13  ;;  %2823 = vst.msk [vmem:[#allocation3 + $0x8] sm:$0xff] %vm1712_vm0, %v2791_v40  ;;  %v2796_v5 = vadd.f32 %v6095_v53, %v2764_v38  ;;  %6313 = vmatprep.mubr.msk.bf16.mxu0 %vm1712_vm0, %v8003_v44  ;;  %v2769_v10 = vld [vmem:[#allocation3 + $0x58] sm:$0xff]  ;;  %v2767_v28 = vld [vmem:[#allocation3 + $0x48] sm:$0xff] }
 0x226   : > { %2517 = vst.msk [vmem:[#allocation3 + $0x88] sm:$0xff] %vm1712_vm0, %v2485_v42  ;;  %v2490_v62 = vadd.f32 %v6075_v59, %v2458_v37  ;;  %6293 = vmatprep.mubr.msk.bf16.mxu1 %vm1712_vm0, %v8001_v31  ;;  %v2647_v7 = vpop.f32.mrf.mxu0  ;;  %v2772_v42 = vld [vmem:[#allocation3 + $0x70] sm:$0xff]  ;;  %v2464_v53 = vld [vmem:[#allocation3 + $0xe0] sm:$0xff] }
 0x227   : > { %v2389_v18 = vpop.f32.mrf.mxu1  ;;  %2828 = vst.msk [vmem:[#allocation3 + $0x30] sm:$0xff] %vm1712_vm0, %v2796_v5  ;;  %v2794_v0 = vadd.f32 %v2762_v58, %v2647_v7  ;;  %v2467_v7 = vld [vmem:[#allocation3 + $0xf8] sm:$0xff] }
 0x228   : > { %2522 = vst.msk [vmem:[#allocation3 + $0xb0] sm:$0xff] %vm1712_vm0, %v2490_v62  ;;  %v2488_v46 = vadd.f32 %v2456_v50, %v2389_v18  ;;  %v6096_v47 = vpop.f32.mrf.mxu0  ;;  %v2770_v62 = vld [vmem:[#allocation3 + $0x60] sm:$0xff]  ;;  %v4800_v50 = vld [vmem:[%s9123_s12] sm:$0xf] }
 0x229   : > { %v6076_v35 = vpop.f32.mrf.mxu1  ;;  %2826 = vst.msk [vmem:[#allocation3 + $0x20] sm:$0xff] %vm1712_vm0, %v2794_v0  ;;  %v2797_v44 = vadd.f32 %v6096_v47, %v2765_v52  ;;  %6411 = vmatprep.subr.msk.bf16.mxu0 %vm5074_vm6, %v4800_v50  ;;  %v2465_v52 = vld [vmem:[#allocation3 + $0xe8] sm:$0xff] }
 0x22a   : > { %2520 = vst.msk [vmem:[#allocation3 + $0xa0] sm:$0xff] %vm1712_vm0, %v2488_v46  ;;  %v2491_v31 = vadd.f32 %v6076_v35, %v2459_v23  ;;  %v2650_v6 = vpop.f32.mrf.mxu0  ;;  %v2773_v46 = vld [vmem:[#allocation3 + $0x78] sm:$0xff]  ;;  %v5076_v23 = vsel %vm5074_vm6, %v4800_v50, 0 }
 0x22b   : > { %v2392_v49 = vpop.f32.mrf.mxu1  ;;  %2829 = vst.msk [vmem:[#allocation3 + $0x38] sm:$0xff] %vm1712_vm0, %v2797_v44  ;;  %v2795_v30 = vadd.f32 %v2763_v16, %v2650_v6  ;;  %6374 = vmatpush3.bf16.msra.mxu0 %v5076_v23  ;;  %v2776_v16 = vld [vmem:[#allocation3 + $0x90] sm:$0xff] }
 0x22c   : > { %2523 = vst.msk [vmem:[#allocation3 + $0xb8] sm:$0xff] %vm1712_vm0, %v2491_v31  ;;  %v2489_v22 = vadd.f32 %v2457_v57, %v2392_v49  ;;  %v6099_v61 = vpop.f32.mrf.mxu0  ;;  %6314 = vmatmul.mubr.msk.bf16.gmra.mxu0 %vm1712_vm0, %v8015_v34  ;;  %v2771_v44 = vld [vmem:[#allocation3 + $0x68] sm:$0xff]  ;;  %v1934_v23 = vld [vmem:[#allocation2 + $0x1a2] sm:$0xff] }
 0x22d   : > { %v6079_v15 = vpop.f32.mrf.mxu1  ;;  %6294 = vmatmul.mubr.msk.bf16.gmra.mxu1 %vm1712_vm0, %v8013_v27  ;;  %2827 = vst.msk [vmem:[#allocation3 + $0x28] sm:$0xff] %vm1712_vm0, %v2795_v30  ;;  %v2800_v24 = vadd.f32 %v6099_v61, %v2768_v17  ;;  %6317 = vmatprep.mubr.msk.bf16.mxu0 %vm1712_vm0, %v8017_v29  ;;  %v3037_v30 = vld [vmem:[#allocation3 + $0x10] sm:$0xff]  ;;  %v2774_v17 = vld [vmem:[#allocation3 + $0x80] sm:$0xff] }
 0x22e   : > { %2521 = vst.msk [vmem:[#allocation3 + $0xa8] sm:$0xff] %vm1712_vm0, %v2489_v22  ;;  %v2494_v36 = vadd.f32 %v6079_v15, %v2462_v3  ;;  %6297 = vmatprep.mubr.msk.bf16.mxu1 %vm1712_vm0, %v8174_v19  ;;  %v2663_v27 = vpop.f32.mrf.mxu0  ;;  %v1898_v19 = vpack.c.bf16 %v1880_v41, %v1879_v39 }
 0x22f   : > { %v2405_v56 = vpop.f32.mrf.mxu1  ;;  %2832 = vst.msk [vmem:[#allocation3 + $0x50] sm:$0xff] %vm1712_vm0, %v2800_v24  ;;  %v2798_v60 = vadd.f32 %v2766_v55, %v2663_v27  ;;  %v3035_v24 = vld [vmem:[#allocation3] sm:$0xff]  ;;  %v3038_v27 = vld [vmem:[#allocation3 + $0x18] sm:$0xff] }
 0x230   : > { %2526 = vst.msk [vmem:[#allocation3 + $0xd0] sm:$0xff] %vm1712_vm0, %v2494_v36  ;;  %v2492_v34 = vadd.f32 %v2460_v9, %v2405_v56  ;;  %v6100_v25 = vpop.f32.mrf.mxu0  ;;  %v2777_v56 = vld [vmem:[#allocation3 + $0x98] sm:$0xff] }
 0x231   : > { %v6080_v45 = vpop.f32.mrf.mxu1  ;;  %2830 = vst.msk [vmem:[#allocation3 + $0x40] sm:$0xff] %vm1712_vm0, %v2798_v60  ;;  %v2801_v11 = vadd.f32 %v6100_v25, %v2769_v10  ;;  %v2775_v60 = vld [vmem:[#allocation3 + $0x88] sm:$0xff] }
 0x232   : > { %2524 = vst.msk [vmem:[#allocation3 + $0xc0] sm:$0xff] %vm1712_vm0, %v2492_v34  ;;  %v2495_v29 = vadd.f32 %v6080_v45, %v2463_v14  ;;  %v2666_v20 = vpop.f32.mrf.mxu0  ;;  %v3036_v14 = vld [vmem:[#allocation3 + $0x8] sm:$0xff] }
 0x233   : > { %v2408_v54 = vpop.f32.mrf.mxu1  ;;  %2833 = vst.msk [vmem:[#allocation3 + $0x58] sm:$0xff] %vm1712_vm0, %v2801_v11  ;;  %v2799_v63 = vadd.f32 %v2767_v28, %v2666_v20 }
 0x234   : > { %2527 = vst.msk [vmem:[#allocation3 + $0xd8] sm:$0xff] %vm1712_vm0, %v2495_v29  ;;  %v2493_v33 = vadd.f32 %v2461_v26, %v2408_v54  ;;  %v6103_v13 = vpop.f32.mrf.mxu0  ;;  %6318 = vmatmul.mubr.msk.bf16.gmra.mxu0 %vm1712_vm0, %v8028_v8  ;;  %v6475_v8 = vld [vmem:[%s9124_s13 + $0x8] sm:$0xff]   ;;  %v2780_v29 = vld [vmem:[#allocation3 + $0xb0] sm:$0xff] }
 0x235   : > { %v6083_v4 = vpop.f32.mrf.mxu1  ;;  %6298 = vmatmul.mubr.msk.bf16.gmra.mxu1 %vm1712_vm0, %v1898_v19  ;;  %2831 = vst.msk [vmem:[#allocation3 + $0x48] sm:$0xff] %vm1712_vm0, %v2799_v63  ;;  %v2804_v59 = vadd.f32 %v6103_v13, %v2772_v42  ;;  %6321 = vmatprep.mubr.msk.bf16.mxu0 %vm1712_vm0, %v8031_v21  ;;  %v3041_v54 = vld [vmem:[#allocation3 + $0x30] sm:$0xff]  ;;  %v2781_v42 = vld [vmem:[#allocation3 + $0xb8] sm:$0xff] }
 0x236   : > { %2525 = vst.msk [vmem:[#allocation3 + $0xc8] sm:$0xff] %vm1712_vm0, %v2493_v33  ;;  %v2498_v40 = vadd.f32 %v6083_v4, %v2466_v51  ;;  %v2679_v38 = vpop.f32.mrf.mxu0  ;;  %6337 = vmatprep.subr.bf16.mxu1 %v6475_v8  ;;  %v2778_v33 = vld [vmem:[#allocation3 + $0xa0] sm:$0xff] }
 0x237   : > { %v2421_v37 = vpop.f32.mrf.mxu1  ;;  %2836 = vst.msk [vmem:[#allocation3 + $0x70] sm:$0xff] %vm1712_vm0, %v2804_v59  ;;  %v2802_v18 = vadd.f32 %v2770_v62, %v2679_v38  ;;  %6338 = vmatpush3.bf16.msra.mxu1 %v6475_v8  ;;  %v3039_v4 = vld [vmem:[#allocation3 + $0x20] sm:$0xff]  ;;  %v3042_v59 = vld [vmem:[#allocation3 + $0x38] sm:$0xff]  ;;  %v2779_v38 = vld [vmem:[#allocation3 + $0xa8] sm:$0xff] }
 0x238   : > { %2530 = vst.msk [vmem:[#allocation3 + $0xf0] sm:$0xff] %vm1712_vm0, %v2498_v40  ;;  %v2496_v5 = vadd.f32 %v2464_v53, %v2421_v37  ;;  %v6104_v58 = vpop.f32.mrf.mxu0 }
 0x239   : > { %v6084_v21 = vpop.f32.mrf.mxu1  ;;  %2834 = vst.msk [vmem:[#allocation3 + $0x60] sm:$0xff] %vm1712_vm0, %v2802_v18  ;;  %v2805_v35 = vadd.f32 %v6104_v58, %v2773_v46  ;;  %v3045_v58 = vld [vmem:[#allocation3 + $0x50] sm:$0xff] }
 0x23a   : > { %2528 = vst.msk [vmem:[#allocation3 + $0xe0] sm:$0xff] %vm1712_vm0, %v2496_v5  ;;  %v2499_v0 = vadd.f32 %v6084_v21, %v2467_v7  ;;  %v2682_v31 = vpop.f32.mrf.mxu0  ;;  %v3040_v5 = vld [vmem:[#allocation3 + $0x28] sm:$0xff]  ;;  %v2784_v21 = vld [vmem:[#allocation3 + $0xd0] sm:$0xff] }
 0x23b   : > { %v2424_v47 = vpop.f32.mrf.mxu1  ;;  %2837 = vst.msk [vmem:[#allocation3 + $0x78] sm:$0xff] %vm1712_vm0, %v2805_v35  ;;  %v2803_v57 = vadd.f32 %v2771_v44, %v2682_v31  ;;  %v1933_v35 = vld [vmem:[#allocation2 + $0x19a] sm:$0xff]  ;;  %v3043_v44 = vld [vmem:[#allocation3 + $0x40] sm:$0xff] }
 0x23c   : > { %2531 = vst.msk [vmem:[#allocation3 + $0xf8] sm:$0xff] %vm1712_vm0, %v2499_v0  ;;  %v2497_v49 = vadd.f32 %v2465_v52, %v2424_v47  ;;  %v6107_v6 = vpop.f32.mrf.mxu0  ;;  %6322 = vmatmul.mubr.msk.bf16.gmra.mxu0 %vm1712_vm0, %v8052_v12  ;;  %v2782_v52 = vld [vmem:[#allocation3 + $0xc0] sm:$0xff] }
 0x23d   : > { %v6127_v22 = vpop.f32.mrf.mxu1  ;;  %2835 = vst.msk [vmem:[#allocation3 + $0x68] sm:$0xff] %vm1712_vm0, %v2803_v57  ;;  %v2808_v15 = vadd.f32 %v6107_v6, %v2776_v16  ;;  %6325 = vmatprep.mubr.msk.bf16.mxu0 %vm1712_vm0, %v8054_v2  ;;  %v2785_v6 = vld [vmem:[#allocation3 + $0xd8] sm:$0xff] }
 0x23e   : > { %2529 = vst.msk [vmem:[#allocation3 + $0xe8] sm:$0xff] %vm1712_vm0, %v2497_v49  ;;  %v3069_v3 = vadd.f32 %v6127_v22, %v3037_v30  ;;  %v2695_v61 = vpop.f32.mrf.mxu0  ;;  %v3046_v22 = vld [vmem:[#allocation3 + $0x58] sm:$0xff]  ;;  %v1952_v30 = vpack.c.bf16 %v1934_v23, %v1933_v35 }
 0x23f   : > { %v2908_v36 = vpop.f32.mrf.mxu1  ;;  %2840 = vst.msk [vmem:[#allocation3 + $0x90] sm:$0xff] %vm1712_vm0, %v2808_v15  ;;  %v2806_v39 = vadd.f32 %v2774_v17, %v2695_v61  ;;  %v2783_v61 = vld [vmem:[#allocation3 + $0xc8] sm:$0xff] }
 0x240   : > { %3101 = vst.msk [vmem:[#allocation3 + $0x10] sm:$0xff] %vm1712_vm0, %v3069_v3  ;;  %v3067_v41 = vadd.f32 %v3035_v24, %v2908_v36  ;;  %v6108_v12 = vpop.f32.mrf.mxu0  ;;  %v3044_v36 = vld [vmem:[#allocation3 + $0x48] sm:$0xff] }
 0x241   : > { %v6128_v9 = vpop.f32.mrf.mxu1  ;;  %2838 = vst.msk [vmem:[#allocation3 + $0x80] sm:$0xff] %vm1712_vm0, %v2806_v39  ;;  %v2809_v55 = vadd.f32 %v6108_v12, %v2777_v56  ;;  %v2788_v12 = vld [vmem:[#allocation3 + $0xf0] sm:$0xff] }
 0x242   : > { %3099 = vst.msk [vmem:[#allocation3] sm:$0xff] %vm1712_vm0, %v3067_v41  ;;  %v3070_v2 = vadd.f32 %v6128_v9, %v3038_v27  ;;  %v2698_v34 = vpop.f32.mrf.mxu0  ;;  %v3049_v9 = vld [vmem:[#allocation3 + $0x70] sm:$0xff] }
 0x243   : > { %v2911_v45 = vpop.f32.mrf.mxu1  ;;  %2841 = vst.msk [vmem:[#allocation3 + $0x98] sm:$0xff] %vm1712_vm0, %v2809_v55  ;;  %v2807_v25 = vadd.f32 %v2775_v60, %v2698_v34  ;;  %v2786_v34 = vld [vmem:[#allocation3 + $0xe0] sm:$0xff] }
 0x244   : > { %3102 = vst.msk [vmem:[#allocation3 + $0x18] sm:$0xff] %vm1712_vm0, %v3070_v2  ;;  %v3068_v10 = vadd.f32 %v3036_v14, %v2911_v45  ;;  %v6111_v19 = vpop.f32.mrf.mxu0  ;;  %6326 = vmatmul.mubr.msk.bf16.gmra.mxu0 %vm1712_vm0, %v8065_v1  ;;  %v3047_v45 = vld [vmem:[#allocation3 + $0x60] sm:$0xff] }
 0x245   : > { %v6131_v11 = vpop.f32.mrf.mxu1  ;;  %2839 = vst.msk [vmem:[#allocation3 + $0x88] sm:$0xff] %vm1712_vm0, %v2807_v25  ;;  %v2812_v26 = vadd.f32 %v6111_v19, %v2780_v29  ;;  %6329 = vmatprep.mubr.msk.bf16.mxu0 %vm1712_vm0, %v8067_v43  ;;  %v2789_v29 = vld [vmem:[#allocation3 + $0xf8] sm:$0xff] }
 0x246   : > { %3100 = vst.msk [vmem:[#allocation3 + $0x8] sm:$0xff] %vm1712_vm0, %v3068_v10  ;;  %v3073_v20 = vadd.f32 %v6131_v11, %v3041_v54  ;;  %v2711_v28 = vpop.f32.mrf.mxu0  ;;  %v6476_v10 = vld [vmem:[%s9124_s13] sm:$0xff]   ;;  %v3050_v54 = vld [vmem:[#allocation3 + $0x78] sm:$0xff] }
 0x247   : > { %v2924_v63 = vpop.f32.mrf.mxu1  ;;  %2844 = vst.msk [vmem:[#allocation3 + $0xb0] sm:$0xff] %vm1712_vm0, %v2812_v26  ;;  %v2810_v51 = vadd.f32 %v2778_v33, %v2711_v28  ;;  %6339 = vmatprep.subr.bf16.mxu1 %v6476_v10  ;;  %v2787_v33 = vld [vmem:[#allocation3 + $0xe8] sm:$0xff] }
 0x248   : > { %3105 = vst.msk [vmem:[#allocation3 + $0x30] sm:$0xff] %vm1712_vm0, %v3073_v20  ;;  %v3071_v13 = vadd.f32 %v3039_v4, %v2924_v63  ;;  %v6112_v1 = vpop.f32.mrf.mxu0  ;;  %v3048_v4 = vld [vmem:[#allocation3 + $0x68] sm:$0xff]  ;;  %6340 = vmatpush3.bf16.msra.mxu1 %v6476_v10  ;;  %v8425_v10 = vld [vmem:[%s6746_s22] sm:$0xff] }
 0x249   : > { %v6132_v40 = vpop.f32.mrf.mxu1  ;;  %2842 = vst.msk [vmem:[#allocation3 + $0xa0] sm:$0xff] %vm1712_vm0, %v2810_v51  ;;  %v2813_v37 = vadd.f32 %v6112_v1, %v2781_v42  ;;  %v3053_v42 = vld [vmem:[#allocation3 + $0x90] sm:$0xff] }
 0x24a   : > { %3103 = vst.msk [vmem:[#allocation3 + $0x20] sm:$0xff] %vm1712_vm0, %v3071_v13  ;;  %v3074_v43 = vadd.f32 %v6132_v40, %v3042_v59  ;;  %v2714_v53 = vpop.f32.mrf.mxu0  ;;  %v3314_v59 = vld [vmem:[#allocation3 + $0x10] sm:$0xff] }
 0x24b   : > { %v2927_v62 = vpop.f32.mrf.mxu1  ;;  %2845 = vst.msk [vmem:[#allocation3 + $0xb8] sm:$0xff] %vm1712_vm0, %v2813_v37  ;;  %v2811_v18 = vadd.f32 %v2779_v38, %v2714_v53  ;;  %v3051_v38 = vld [vmem:[#allocation3 + $0x80] sm:$0xff] }
 0x24c   : > { %3106 = vst.msk [vmem:[#allocation3 + $0x38] sm:$0xff] %vm1712_vm0, %v3074_v43  ;;  %v3072_v8 = vadd.f32 %v3040_v5, %v2927_v62  ;;  %v6115_v50 = vpop.f32.mrf.mxu0  ;;  %6330 = vmatmul.mubr.msk.bf16.gmra.mxu0 %vm1712_vm0, %v8077_v32  ;;  %v3312_v5 = vld [vmem:[#allocation3] sm:$0xff]  ;;  %v3052_v23 = vld [vmem:[#allocation3 + $0x88] sm:$0xff] }
 0x24d   : > { %v6135_v7 = vpop.f32.mrf.mxu1  ;;  %2843 = vst.msk [vmem:[#allocation3 + $0xa8] sm:$0xff] %vm1712_vm0, %v2811_v18  ;;  %v2816_v46 = vadd.f32 %v6115_v50, %v2784_v21  ;;  %6333 = vmatprep.mubr.msk.bf16.mxu0 %vm1712_vm0, %v8214_v48  ;;  %v3054_v21 = vld [vmem:[#allocation3 + $0x98] sm:$0xff] }
 0x24e   : > { %3104 = vst.msk [vmem:[#allocation3 + $0x28] sm:$0xff] %vm1712_vm0, %v3072_v8  ;;  %v3077_v0 = vadd.f32 %v6135_v7, %v3045_v58  ;;  %v2727_v47 = vpop.f32.mrf.mxu0  ;;  %v3315_v58 = vld [vmem:[#allocation3 + $0x18] sm:$0xff] }
 0x24f   : > { %v2940_v31 = vpop.f32.mrf.mxu1  ;;  %2848 = vst.msk [vmem:[#allocation3 + $0xd0] sm:$0xff] %vm1712_vm0, %v2816_v46  ;;  %v2814_v32 = vadd.f32 %v2782_v52, %v2727_v47  ;;  %v3313_v52 = vld [vmem:[#allocation3 + $0x8] sm:$0xff] }
 0x250   : > { %3109 = vst.msk [vmem:[#allocation3 + $0x50] sm:$0xff] %vm1712_vm0, %v3077_v0  ;;  %v3075_v49 = vadd.f32 %v3043_v44, %v2940_v31  ;;  %v6116_v57 = vpop.f32.mrf.mxu0 }
 0x251   : > { %v6136_v16 = vpop.f32.mrf.mxu1  ;;  %2846 = vst.msk [vmem:[#allocation3 + $0xc0] sm:$0xff] %vm1712_vm0, %v2814_v32  ;;  %v2817_v48 = vadd.f32 %v6116_v57, %v2785_v6  ;;  %v3318_v6 = vld [vmem:[#allocation3 + $0x30] sm:$0xff] }
 0x252   : > { %3107 = vst.msk [vmem:[#allocation3 + $0x40] sm:$0xff] %vm1712_vm0, %v3075_v49  ;;  %v3078_v15 = vadd.f32 %v6136_v16, %v3046_v22  ;;  %v2730_v3 = vpop.f32.mrf.mxu0  ;;  %v3057_v49 = vld [vmem:[#allocation3 + $0xb0] sm:$0xff] }
 0x253   : > { %v2943_v17 = vpop.f32.mrf.mxu1  ;;  %2849 = vst.msk [vmem:[#allocation3 + $0xd8] sm:$0xff] %vm1712_vm0, %v2817_v48  ;;  %v2815_v24 = vadd.f32 %v2783_v61, %v2730_v3  ;;  %v3316_v61 = vld [vmem:[#allocation3 + $0x20] sm:$0xff] }
 0x254   : > { %3110 = vst.msk [vmem:[#allocation3 + $0x58] sm:$0xff] %vm1712_vm0, %v3078_v15  ;;  %v3076_v39 = vadd.f32 %v3044_v36, %v2943_v17  ;;  %v6119_v41 = vpop.f32.mrf.mxu0  ;;  %6334 = vmatmul.mubr.msk.bf16.gmra.mxu0 %vm1712_vm0, %v1952_v30  ;;  %v8408_v30 = vld [vmem:[%s9119_s8] ss:$0 sm:$0xff]  ;;  %v3055_v15 = vld [vmem:[#allocation3 + $0xa0] sm:$0xff] }
 0x255   : > { %v6139_v56 = vpop.f32.mrf.mxu1  ;;  %2847 = vst.msk [vmem:[#allocation3 + $0xc8] sm:$0xff] %vm1712_vm0, %v2815_v24  ;;  %v2820_v27 = vadd.f32 %v6119_v41, %v2788_v12  ;;  %v3319_v12 = vld [vmem:[#allocation3 + $0x38] sm:$0xff] }
 0x256   : > { %3108 = vst.msk [vmem:[#allocation3 + $0x48] sm:$0xff] %vm1712_vm0, %v3076_v39  ;;  %v3081_v55 = vadd.f32 %v6139_v56, %v3049_v9  ;;  %v2743_v2 = vpop.f32.mrf.mxu0  ;;  %v3058_v39 = vld [vmem:[#allocation3 + $0xb8] sm:$0xff]  ;;  %v8413_v56 = vld [vmem:[%s6746_s22 + $0x18] sm:$0xff] }
 0x257   : > { %v2956_v60 = vpop.f32.mrf.mxu1  ;;  %2852 = vst.msk [vmem:[#allocation3 + $0xf0] sm:$0xff] %vm1712_vm0, %v2820_v27  ;;  %v2818_v14 = vadd.f32 %v2786_v34, %v2743_v2  ;;  %v4526_v9 = vmul.f32 %v8413_v56, %v8408_v30  ;;  %v8418_v27 = vld [vmem:[%s6746_s22 + $0x10] sm:$0xff] }
 0x258   : > { %3113 = vst.msk [vmem:[#allocation3 + $0x70] sm:$0xff] %vm1712_vm0, %v3081_v55  ;;  %v3079_v25 = vadd.f32 %v3047_v45, %v2956_v60  ;;  %v6120_v19 = vpop.f32.mrf.mxu0  ;;  %v4525_v55 = vmul.f32 %v8418_v27, %v8408_v30  ;;  %v3056_v45 = vld [vmem:[#allocation3 + $0xa8] sm:$0xff] }
 0x259   : > { %v6140_v11 = vpop.f32.mrf.mxu1  ;;  %2850 = vst.msk [vmem:[#allocation3 + $0xe0] sm:$0xff] %vm1712_vm0, %v2818_v14  ;;  %v2821_v26 = vadd.f32 %v6120_v19, %v2789_v29  ;;  %v4523_v19 = vmul.f32 %v8425_v10, %v8408_v30  ;;  %v8430_v29 = vld [vmem:[%s6746_s22 + $0x8] sm:$0xff] }
 0x25a   : > { %3111 = vst.msk [vmem:[#allocation3 + $0x60] sm:$0xff] %vm1712_vm0, %v3079_v25  ;;  %v3082_v20 = vadd.f32 %v6140_v11, %v3050_v54  ;;  %v2746_v28 = vpop.f32.mrf.mxu0  ;;  %v3317_v25 = vld [vmem:[#allocation3 + $0x28] sm:$0xff]  ;;  %v4524_v11 = vmul.f32 %v8430_v29, %v8408_v30 }
 0x25b   : > { %v2959_v63 = vpop.f32.mrf.mxu1  ;;  %2853 = vst.msk [vmem:[#allocation3 + $0xf8] sm:$0xff] %vm1712_vm0, %v2821_v26  ;;  %v2819_v51 = vadd.f32 %v2787_v33, %v2746_v28  ;;  %v3061_v33 = vld [vmem:[#allocation3 + $0xd0] sm:$0xff] }
 0x25c   : > { %3114 = vst.msk [vmem:[#allocation3 + $0x78] sm:$0xff] %vm1712_vm0, %v3082_v20  ;;  %v3080_v13 = vadd.f32 %v3048_v4, %v2959_v63  ;;  %v6163_v40 = vpop.f32.mrf.mxu0  ;;  %v8439_v20 = vld [vmem:[%s9120_s9] ss:$0 sm:$0xff] }
 0x25d   : > { %v6143_v1 = vpop.f32.mrf.mxu1  ;;  %2851 = vst.msk [vmem:[#allocation3 + $0xe8] sm:$0xff] %vm1712_vm0, %v2819_v51  ;;  %v3346_v43 = vadd.f32 %v6163_v40, %v3314_v59  ;;  %v3322_v4 = vld [vmem:[#allocation3 + $0x50] sm:$0xff]  ;;  %v4562_v51 = vadd.f32 %v8439_v20, %v4523_v19  ;;  %v4564_v40 = vadd.f32 %v8439_v20, %v4525_v55  ;;  %v4565_v59 = vadd.f32 %v8439_v20, %v4526_v9 }
 0x25e   : > { %3112 = vst.msk [vmem:[#allocation3 + $0x68] sm:$0xff] %vm1712_vm0, %v3080_v13  ;;  %v3085_v37 = vadd.f32 %v6143_v1, %v3053_v42  ;;  %v3185_v62 = vpop.f32.mrf.mxu0  ;;  %v4563_v13 = vadd.f32 %v8439_v20, %v4524_v11 }
 0x25f   : > { %v2972_v53 = vpop.f32.mrf.mxu1  ;;  %3378 = vst.msk [vmem:[#allocation3 + $0x10] sm:$0xff] %vm1712_vm0, %v3346_v43  ;;  %v3344_v8 = vadd.f32 %v3312_v5, %v3185_v62  ;;  %v3059_v43 = vld [vmem:[#allocation3 + $0xc0] sm:$0xff]  ;;  %v4594_v62 = vmax.f32 %v4562_v51, 0.0 }
 0x260   : > { %3117 = vst.msk [vmem:[#allocation3 + $0x90] sm:$0xff] %vm1712_vm0, %v3085_v37  ;;  %v3083_v18 = vadd.f32 %v3051_v38, %v2972_v53  ;;  %v6164_v7 = vpop.f32.mrf.mxu0  ;;  %v3320_v38 = vld [vmem:[#allocation3 + $0x40] sm:$0xff]  ;;  %v4595_v5 = vmax.f32 %v4563_v13, 0.0 }
 0x261   : > { %v6144_v50 = vpop.f32.mrf.mxu1  ;;  %3376 = vst.msk [vmem:[#allocation3] sm:$0xff] %vm1712_vm0, %v3344_v8  ;;  %v3347_v0 = vadd.f32 %v6164_v7, %v3315_v58  ;;  %v3062_v58 = vld [vmem:[#allocation3 + $0xd8] sm:$0xff]  ;;  %v3324_v11 = vld [vmem:[#allocation3 + $0x60] sm:$0xff] }
 0x262   : > { %3115 = vst.msk [vmem:[#allocation3 + $0x80] sm:$0xff] %vm1712_vm0, %v3083_v18  ;;  %v3086_v46 = vadd.f32 %v6144_v50, %v3054_v21  ;;  %v3188_v47 = vpop.f32.mrf.mxu0  ;;  %v4596_v50 = vmax.f32 %v4564_v40, 0.0  ;;  %v4597_v21 = vmax.f32 %v4565_v59, 0.0  ;;  %v3066_v13 = vld [vmem:[#allocation3 + $0xf8] sm:$0xff] }
 0x263   : > { %v2975_v35 = vpop.f32.mrf.mxu1  ;;  %3379 = vst.msk [vmem:[#allocation3 + $0x18] sm:$0xff] %vm1712_vm0, %v3347_v0  ;;  %v3345_v44 = vadd.f32 %v3313_v52, %v3188_v47  ;;  %v3323_v0 = vld [vmem:[#allocation3 + $0x58] sm:$0xff] }
 0x264   : > { %3118 = vst.msk [vmem:[#allocation3 + $0x98] sm:$0xff] %vm1712_vm0, %v3086_v46  ;;  %v3084_v31 = vadd.f32 %v3052_v23, %v2975_v35  ;;  %v6167_v57 = vpop.f32.mrf.mxu0  ;;  %v4626_v35 = vpack.c.bf16 %v4595_v5, %v4594_v62  ;;  %v4627_v52 = vpack.c.bf16 %v4597_v21, %v4596_v50  ;;  %v8492_v50 = vld [vmem:[%s6746_s22 + $0x48] sm:$0xff] }
 0x265   : > { %v6147_v32 = vpop.f32.mrf.mxu1  ;;  %3377 = vst.msk [vmem:[#allocation3 + $0x8] sm:$0xff] %vm1712_vm0, %v3345_v44  ;;  %v3350_v22 = vadd.f32 %v6167_v57, %v3318_v6  ;;  %v3060_v44 = vld [vmem:[#allocation3 + $0xc8] sm:$0xff]  ;;  %v8453_v57 = vld [vmem:[%s6746_s22 + $0x20] sm:$0xff]  ;;  %v4532_v21 = vmul.f32 %v8492_v50, %v8408_v30 }
 0x266   : > { %3116 = vst.msk [vmem:[#allocation3 + $0x88] sm:$0xff] %vm1712_vm0, %v3084_v31  ;;  %v3089_v16 = vadd.f32 %v6147_v32, %v3057_v49  ;;  %v3201_v3 = vpop.f32.mrf.mxu0  ;;  %v3321_v49 = vld [vmem:[#allocation3 + $0x48] sm:$0xff]  ;;  %6375 = vmatprep.mubr.msk.bf16.mxu0 %vm1613_vm2, %v4626_v35  ;;  %v4527_v6 = vmul.f32 %v8453_v57, %v8408_v30 }
 0x267   : > { %v2988_v48 = vpop.f32.mrf.mxu1  ;;  %3382 = vst.msk [vmem:[#allocation3 + $0x30] sm:$0xff] %vm1712_vm0, %v3350_v22  ;;  %v3348_v36 = vadd.f32 %v3316_v61, %v3201_v3  ;;  %6376 = vmatmul.mubr.msk.bf16.vlgmr.msra.gmra.mxu0 %vm1613_vm2, %v4627_v52  ;;  %v8466_v3 = vld [vmem:[%s6746_s22 + $0x30] sm:$0xff]  ;;  %v3325_v5 = vld [vmem:[#allocation3 + $0x68] sm:$0xff]  ;;  %v3330_v52 = vld [vmem:[#allocation3 + $0x90] sm:$0xff] }
 0x268   : > { %3121 = vst.msk [vmem:[#allocation3 + $0xb0] sm:$0xff] %vm1712_vm0, %v3089_v16  ;;  %v3087_v17 = vadd.f32 %v3055_v15, %v2988_v48  ;;  %v6168_v41 = vpop.f32.mrf.mxu0  ;;  %v8458_v16 = vld [vmem:[%s6746_s22 + $0x28] sm:$0xff]  ;;  %v4529_v61 = vmul.f32 %v8466_v3, %v8408_v30  ;;  %v4566_v9 = vadd.f32 %v8439_v20, %v4527_v6  ;;  %v8505_v35 = vld [vmem:[%s6746_s22 + $0x58] sm:$0xff] }
 0x269   : > { %v6148_v24 = vpop.f32.mrf.mxu1  ;;  %3380 = vst.msk [vmem:[#allocation3 + $0x20] sm:$0xff] %vm1712_vm0, %v3348_v36  ;;  %v3351_v34 = vadd.f32 %v6168_v41, %v3319_v12  ;;  %v4528_v22 = vmul.f32 %v8458_v16, %v8408_v30  ;;  %v3326_v12 = vld [vmem:[#allocation3 + $0x70] sm:$0xff] }
 0x26a   : > { %3119 = vst.msk [vmem:[#allocation3 + $0xa0] sm:$0xff] %vm1712_vm0, %v3087_v17  ;;  %v3090_v2 = vadd.f32 %v6148_v24, %v3058_v39  ;;  %v3204_v14 = vpop.f32.mrf.mxu0  ;;  %v8471_v17 = vld [vmem:[%s6746_s22 + $0x38] sm:$0xff]  ;;  %v3065_v39 = vld [vmem:[#allocation3 + $0xf0] sm:$0xff] }
 0x26b   : > { %v2991_v60 = vpop.f32.mrf.mxu1  ;;  %3383 = vst.msk [vmem:[#allocation3 + $0x38] sm:$0xff] %vm1712_vm0, %v3351_v34  ;;  %v3349_v26 = vadd.f32 %v3317_v25, %v3204_v14  ;;  %v4530_v36 = vmul.f32 %v8471_v17, %v8408_v30  ;;  %v4567_v55 = vadd.f32 %v8439_v20, %v4528_v22  ;;  %v3063_v25 = vld [vmem:[#allocation3 + $0xe0] sm:$0xff] }
 0x26c   : > { %3122 = vst.msk [vmem:[#allocation3 + $0xb8] sm:$0xff] %vm1712_vm0, %v3090_v2  ;;  %v3088_v54 = vadd.f32 %v3056_v45, %v2991_v60  ;;  %v6171_v63 = vpop.f32.mrf.mxu0  ;;  %v4568_v60 = vadd.f32 %v8439_v20, %v4529_v61 }
 0x26d   : > { %v6151_v28 = vpop.f32.mrf.mxu1  ;;  %3381 = vst.msk [vmem:[#allocation3 + $0x28] sm:$0xff] %vm1712_vm0, %v3349_v26  ;;  %v3354_v42 = vadd.f32 %v6171_v63, %v3322_v4  ;;  %v4569_v45 = vadd.f32 %v8439_v20, %v4530_v36  ;;  %v4599_v26 = vmax.f32 %v4567_v55, 0.0  ;;  %v3328_v36 = vld [vmem:[#allocation3 + $0x80] sm:$0xff] }
 0x26e   : > { %3120 = vst.msk [vmem:[#allocation3 + $0xa8] sm:$0xff] %vm1712_vm0, %v3088_v54  ;;  %v3093_v1 = vadd.f32 %v6151_v28, %v3061_v33  ;;  %v3217_v53 = vpop.f32.mrf.mxu0  ;;  %v4598_v54 = vmax.f32 %v4566_v9, 0.0  ;;  %v4600_v63 = vmax.f32 %v4568_v60, 0.0 }
 0x26f   : > { %v3004_v37 = vpop.f32.mrf.mxu1  ;;  %3386 = vst.msk [vmem:[#allocation3 + $0x50] sm:$0xff] %vm1712_vm0, %v3354_v42  ;;  %v3352_v8 = vadd.f32 %v3320_v38, %v3217_v53  ;;  %v4601_v4 = vmax.f32 %v4569_v45, 0.0  ;;  %v3327_v42 = vld [vmem:[#allocation3 + $0x78] sm:$0xff]  ;;  %v3064_v38 = vld [vmem:[#allocation3 + $0xe8] sm:$0xff] }
 0x270   : > { %3125 = vst.msk [vmem:[#allocation3 + $0xd0] sm:$0xff] %vm1712_vm0, %v3093_v1  ;;  %v3091_v18 = vadd.f32 %v3059_v43, %v3004_v37  ;;  %v6172_v46 = vpop.f32.mrf.mxu0  ;;  %v4628_v40 = vpack.c.bf16 %v4599_v26, %v4598_v54  ;;  %v3331_v45 = vld [vmem:[#allocation3 + $0x98] sm:$0xff] }
 0x271   : > { %v6152_v7 = vpop.f32.mrf.mxu1  ;;  %3384 = vst.msk [vmem:[#allocation3 + $0x40] sm:$0xff] %vm1712_vm0, %v3352_v8  ;;  %v3355_v47 = vadd.f32 %v6172_v46, %v3323_v0  ;;  %v4629_v43 = vpack.c.bf16 %v4601_v4, %v4600_v63  ;;  %v8500_v46 = vld [vmem:[%s6746_s22 + $0x50] sm:$0xff]  ;;  %v3590_v4 = vld [vmem:[#allocation3 + $0x8] sm:$0xff] }
 0x272   : > { %3123 = vst.msk [vmem:[#allocation3 + $0xc0] sm:$0xff] %vm1712_vm0, %v3091_v18  ;;  %v3094_v23 = vadd.f32 %v6152_v7, %v3062_v58  ;;  %v3220_v32 = vpop.f32.mrf.mxu0  ;;  %6379 = vmatprep.mubr.msk.bf16.mxu0 %vm1613_vm2, %v4628_v40  ;;  %v8487_v18 = vld [vmem:[%s6746_s22 + $0x40] sm:$0xff]  ;;  %v4533_v0 = vmul.f32 %v8500_v46, %v8408_v30 }
 0x273   : > { %v3007_v31 = vpop.f32.mrf.mxu1  ;;  %3387 = vst.msk [vmem:[#allocation3 + $0x58] sm:$0xff] %vm1712_vm0, %v3355_v47  ;;  %v3353_v15 = vadd.f32 %v3321_v49, %v3220_v32  ;;  %v4531_v8 = vmul.f32 %v8487_v18, %v8408_v30  ;;  %6380 = vmatmul.mubr.msk.bf16.gmra.mxu0 %vm1613_vm2, %v4629_v43  ;;  %v4571_v49 = vadd.f32 %v8439_v20, %v4532_v21  ;;  %v3595_v21 = vld [vmem:[#allocation3 + $0x30] sm:$0xff] }
 0x274   : > { %3126 = vst.msk [vmem:[#allocation3 + $0xd8] sm:$0xff] %vm1712_vm0, %v3094_v23  ;;  %v3092_v48 = vadd.f32 %v3060_v44, %v3007_v31  ;;  %v6175_v41 = vpop.f32.mrf.mxu0  ;;  %v4534_v23 = vmul.f32 %v8505_v35, %v8408_v30  ;;  %v3591_v44 = vld [vmem:[#allocation3 + $0x10] sm:$0xff] }
 0x275   : > { %v6155_v24 = vpop.f32.mrf.mxu1  ;;  %3385 = vst.msk [vmem:[#allocation3 + $0x48] sm:$0xff] %vm1712_vm0, %v3353_v15  ;;  %v3358_v34 = vadd.f32 %v6175_v41, %v3326_v12  ;;  %v4570_v32 = vadd.f32 %v8439_v20, %v4531_v8  ;;  %v4603_v12 = vmax.f32 %v4571_v49, 0.0  ;;  %v3593_v49 = vld [vmem:[#allocation3 + $0x20] sm:$0xff] }
 0x276   : > { %3124 = vst.msk [vmem:[#allocation3 + $0xc8] sm:$0xff] %vm1712_vm0, %v3092_v48  ;;  %v3097_v2 = vadd.f32 %v6155_v24, %v3065_v39  ;;  %v3233_v19 = vpop.f32.mrf.mxu0  ;;  %v4572_v48 = vadd.f32 %v8439_v20, %v4533_v0  ;;  %v4573_v15 = vadd.f32 %v8439_v20, %v4534_v23  ;;  %v3589_v39 = vld [vmem:[#allocation3] sm:$0xff] }
 0x277   : > { %v3020_v14 = vpop.f32.mrf.mxu1  ;;  %3390 = vst.msk [vmem:[#allocation3 + $0x70] sm:$0xff] %vm1712_vm0, %v3358_v34  ;;  %v3356_v33 = vadd.f32 %v3324_v11, %v3233_v19  ;;  %v4602_v41 = vmax.f32 %v4570_v32, 0.0 }
 0x278   : > { %3129 = vst.msk [vmem:[#allocation3 + $0xf0] sm:$0xff] %vm1712_vm0, %v3097_v2  ;;  %v3095_v28 = vadd.f32 %v3063_v25, %v3020_v14  ;;  %v6176_v1 = vpop.f32.mrf.mxu0  ;;  %v4604_v2 = vmax.f32 %v4572_v48, 0.0  ;;  %v4605_v34 = vmax.f32 %v4573_v15, 0.0  ;;  %v3592_v25 = vld [vmem:[#allocation3 + $0x18] sm:$0xff] }
 0x279   : > { %v6156_v51 = vpop.f32.mrf.mxu1  ;;  %3388 = vst.msk [vmem:[#allocation3 + $0x60] sm:$0xff] %vm1712_vm0, %v3356_v33  ;;  %v3359_v37 = vadd.f32 %v6176_v1, %v3327_v42  ;;  %v4630_v19 = vpack.c.bf16 %v4603_v12, %v4602_v41  ;;  %v3329_v33 = vld [vmem:[#allocation3 + $0x88] sm:$0xff]  ;;  %v8526_v1 = vld [vmem:[%s6746_s22 + $0x68] sm:$0xff] }
 0x27a   : > { %3127 = vst.msk [vmem:[#allocation3 + $0xe0] sm:$0xff] %vm1712_vm0, %v3095_v28  ;;  %v3098_v59 = vadd.f32 %v6156_v51, %v3066_v13  ;;  %v3236_v62 = vpop.f32.mrf.mxu0  ;;  %v4631_v26 = vpack.c.bf16 %v4605_v34, %v4604_v2  ;;  %v8521_v51 = vld [vmem:[%s6746_s22 + $0x60] sm:$0xff]  ;;  %v4536_v42 = vmul.f32 %v8526_v1, %v8408_v30  ;;  %v3596_v12 = vld [vmem:[#allocation3 + $0x38] sm:$0xff] }
 0x27b   : > { %v3023_v53 = vpop.f32.mrf.mxu1  ;;  %3391 = vst.msk [vmem:[#allocation3 + $0x78] sm:$0xff] %vm1712_vm0, %v3359_v37  ;;  %v3357_v58 = vadd.f32 %v3325_v5, %v3236_v62  ;;  %6383 = vmatprep.mubr.msk.bf16.mxu0 %vm1613_vm2, %v4630_v19  ;;  %v4535_v13 = vmul.f32 %v8521_v51, %v8408_v30  ;;  %v8534_v37 = vld [vmem:[%s6746_s22 + $0x70] sm:$0xff]  ;;  %v3334_v5 = vld [vmem:[#allocation3 + $0xb0] sm:$0xff] }
 0x27c   : > { %3130 = vst.msk [vmem:[#allocation3 + $0xf8] sm:$0xff] %vm1712_vm0, %v3098_v59  ;;  %v3096_v7 = vadd.f32 %v3064_v38, %v3023_v53  ;;  %v6179_v47 = vpop.f32.mrf.mxu0  ;;  %6384 = vmatmul.mubr.msk.bf16.gmra.mxu0 %vm1613_vm2, %v4631_v26  ;;  %v4537_v43 = vmul.f32 %v8534_v37, %v8408_v30  ;;  %v8539_v53 = vld [vmem:[%s6746_s22 + $0x78] sm:$0xff]  ;;  %v8555_v19 = vld [vmem:[%s6746_s22 + $0x80] sm:$0xff] }
 0x27d   : > { %v6199_v31 = vpop.f32.mrf.mxu1  ;;  %3389 = vst.msk [vmem:[#allocation3 + $0x68] sm:$0xff] %vm1712_vm0, %v3357_v58  ;;  %v3362_v6 = vadd.f32 %v6179_v47, %v3330_v52  ;;  %v4538_v38 = vmul.f32 %v8539_v53, %v8408_v30  ;;  %v4575_v58 = vadd.f32 %v8439_v20, %v4536_v42 }
 0x27e   : > { %3128 = vst.msk [vmem:[#allocation3 + $0xe8] sm:$0xff] %vm1712_vm0, %v3096_v7  ;;  %v3623_v22 = vadd.f32 %v6199_v31, %v3591_v44  ;;  %v3249_v61 = vpop.f32.mrf.mxu0  ;;  %v4574_v7 = vadd.f32 %v8439_v20, %v4535_v13  ;;  %v4576_v47 = vadd.f32 %v8439_v20, %v4537_v43  ;;  %v3332_v44 = vld [vmem:[#allocation3 + $0xa0] sm:$0xff]  ;;  %v8573_v13 = vld [vmem:[%s6746_s22 + $0x98] sm:$0xff] }
 0x27f   : > { %v3462_v24 = vpop.f32.mrf.mxu1  ;;  %3394 = vst.msk [vmem:[#allocation3 + $0x90] sm:$0xff] %vm1712_vm0, %v3362_v6  ;;  %v3360_v9 = vadd.f32 %v3328_v36, %v3249_v61  ;;  %v4577_v52 = vadd.f32 %v8439_v20, %v4538_v38  ;;  %v4542_v42 = vmul.f32 %v8573_v13, %v8408_v30  ;;  %v3599_v38 = vld [vmem:[#allocation3 + $0x50] sm:$0xff] }
 0x280   : > { %3655 = vst.msk [vmem:[#allocation3 + $0x10] sm:$0xff] %vm1712_vm0, %v3623_v22  ;;  %v3621_v55 = vadd.f32 %v3589_v39, %v3462_v24  ;;  %v6180_v60 = vpop.f32.mrf.mxu0  ;;  %v4606_v6 = vmax.f32 %v4574_v7, 0.0  ;;  %v4607_v22 = vmax.f32 %v4575_v58, 0.0  ;;  %v4608_v61 = vmax.f32 %v4576_v47, 0.0  ;;  %v3335_v39 = vld [vmem:[#allocation3 + $0xb8] sm:$0xff] }
 0x281   : > { %v6200_v14 = vpop.f32.mrf.mxu1  ;;  %3392 = vst.msk [vmem:[#allocation3 + $0x80] sm:$0xff] %vm1712_vm0, %v3360_v9  ;;  %v3363_v11 = vadd.f32 %v6180_v60, %v3331_v45  ;;  %v4609_v36 = vmax.f32 %v4577_v52, 0.0  ;;  %v3333_v45 = vld [vmem:[#allocation3 + $0xa8] sm:$0xff]  ;;  %v4581_v58 = vadd.f32 %v8439_v20, %v4542_v42  ;;  %v3597_v52 = vld [vmem:[#allocation3 + $0x40] sm:$0xff] }
 0x282   : > { %3653 = vst.msk [vmem:[#allocation3] sm:$0xff] %vm1712_vm0, %v3621_v55  ;;  %v3624_v54 = vadd.f32 %v6200_v14, %v3592_v25  ;;  %v3252_v28 = vpop.f32.mrf.mxu0  ;;  %v4632_v9 = vpack.c.bf16 %v4607_v22, %v4606_v6  ;;  %v3594_v25 = vld [vmem:[#allocation3 + $0x28] sm:$0xff] }
 0x283   : > { %v3465_v63 = vpop.f32.mrf.mxu1  ;;  %3395 = vst.msk [vmem:[#allocation3 + $0x98] sm:$0xff] %vm1712_vm0, %v3363_v11  ;;  %v3361_v40 = vadd.f32 %v3329_v33, %v3252_v28  ;;  %v4633_v34 = vpack.c.bf16 %v4609_v36, %v4608_v61  ;;  %v4539_v11 = vmul.f32 %v8555_v19, %v8408_v30  ;;  %v4613_v22 = vmax.f32 %v4581_v58, 0.0  ;;  %v3600_v36 = vld [vmem:[#allocation3 + $0x58] sm:$0xff] }
 0x284   : > { %3656 = vst.msk [vmem:[#allocation3 + $0x18] sm:$0xff] %vm1712_vm0, %v3624_v54  ;;  %v3622_v59 = vadd.f32 %v3590_v4, %v3465_v63  ;;  %v6183_v62 = vpop.f32.mrf.mxu0  ;;  %6387 = vmatprep.mubr.msk.bf16.mxu0 %vm1613_vm2, %v4632_v9  ;;  %v8560_v54 = vld [vmem:[%s6746_s22 + $0x88] sm:$0xff]  ;;  %v8568_v63 = vld [vmem:[%s6746_s22 + $0x90] sm:$0xff] }
 0x285   : > { %v6203_v8 = vpop.f32.mrf.mxu1  ;;  %3393 = vst.msk [vmem:[#allocation3 + $0x88] sm:$0xff] %vm1712_vm0, %v3361_v40  ;;  %v3366_v0 = vadd.f32 %v6183_v62, %v3334_v5  ;;  %v4540_v26 = vmul.f32 %v8560_v54, %v8408_v30  ;;  %6388 = vmatmul.mubr.msk.bf16.gmra.mxu0 %vm1613_vm2, %v4633_v34  ;;  %v4541_v4 = vmul.f32 %v8568_v63, %v8408_v30  ;;  %v3598_v34 = vld [vmem:[#allocation3 + $0x48] sm:$0xff] }
 0x286   : > { %3654 = vst.msk [vmem:[#allocation3 + $0x8] sm:$0xff] %vm1712_vm0, %v3622_v59  ;;  %v3627_v23 = vadd.f32 %v6203_v8, %v3595_v21  ;;  %v3265_v31 = vpop.f32.mrf.mxu0  ;;  %v3338_v59 = vld [vmem:[#allocation3 + $0xd0] sm:$0xff]  ;;  %v4578_v62 = vadd.f32 %v8439_v20, %v4539_v11 }
 0x287   : > { %v3478_v32 = vpop.f32.mrf.mxu1  ;;  %3398 = vst.msk [vmem:[#allocation3 + $0xb0] sm:$0xff] %vm1712_vm0, %v3366_v0  ;;  %v3364_v48 = vadd.f32 %v3332_v44, %v3265_v31  ;;  %v4579_v5 = vadd.f32 %v8439_v20, %v4540_v26  ;;  %v4580_v7 = vadd.f32 %v8439_v20, %v4541_v4  ;;  %v8607_v4 = vld [vmem:[%s6746_s22 + $0xb8] sm:$0xff] }
 0x288   : > { %3659 = vst.msk [vmem:[#allocation3 + $0x30] sm:$0xff] %vm1712_vm0, %v3627_v23  ;;  %v3625_v15 = vadd.f32 %v3593_v49, %v3478_v32  ;;  %v6184_v24 = vpop.f32.mrf.mxu0  ;;  %v3336_v23 = vld [vmem:[#allocation3 + $0xc0] sm:$0xff]  ;;  %v4610_v31 = vmax.f32 %v4578_v62, 0.0  ;;  %v4546_v42 = vmul.f32 %v8607_v4, %v8408_v30 }
 0x289   : > { %v6204_v41 = vpop.f32.mrf.mxu1  ;;  %3396 = vst.msk [vmem:[#allocation3 + $0xa0] sm:$0xff] %vm1712_vm0, %v3364_v48  ;;  %v3367_v55 = vadd.f32 %v6184_v24, %v3335_v39  ;;  %v4611_v44 = vmax.f32 %v4579_v5, 0.0  ;;  %v4612_v6 = vmax.f32 %v4580_v7, 0.0 }
 0x28a   : > { %3657 = vst.msk [vmem:[#allocation3 + $0x20] sm:$0xff] %vm1712_vm0, %v3625_v15  ;;  %v3628_v2 = vadd.f32 %v6204_v41, %v3596_v12  ;;  %v3268_v60 = vpop.f32.mrf.mxu0  ;;  %v3339_v15 = vld [vmem:[#allocation3 + $0xd8] sm:$0xff]  ;;  %v4585_v58 = vadd.f32 %v8439_v20, %v4546_v42 }
 0x28b   : > { %v3481_v14 = vpop.f32.mrf.mxu1  ;;  %3399 = vst.msk [vmem:[#allocation3 + $0xb8] sm:$0xff] %vm1712_vm0, %v3367_v55  ;;  %v3365_v28 = vadd.f32 %v3333_v45, %v3268_v60  ;;  %v4634_v24 = vpack.c.bf16 %v4611_v44, %v4610_v31  ;;  %v4635_v12 = vpack.c.bf16 %v4613_v22, %v4612_v6  ;;  %v3337_v55 = vld [vmem:[#allocation3 + $0xc8] sm:$0xff]  ;;  %v8589_v60 = vld [vmem:[%s6746_s22 + $0xa0] sm:$0xff] }
 0x28c   : > { %3660 = vst.msk [vmem:[#allocation3 + $0x38] sm:$0xff] %vm1712_vm0, %v3628_v2  ;;  %v3626_v33 = vadd.f32 %v3594_v25, %v3481_v14  ;;  %v6187_v40 = vpop.f32.mrf.mxu0  ;;  %v4543_v45 = vmul.f32 %v8589_v60, %v8408_v30  ;;  %v8594_v14 = vld [vmem:[%s6746_s22 + $0xa8] sm:$0xff]  ;;  %v4617_v22 = vmax.f32 %v4585_v58, 0.0 }
 0x28d   : > { %v6207_v43 = vpop.f32.mrf.mxu1  ;;  %3397 = vst.msk [vmem:[#allocation3 + $0xa8] sm:$0xff] %vm1712_vm0, %v3365_v28  ;;  %v3370_v8 = vadd.f32 %v6187_v40, %v3338_v59  ;;  %6391 = vmatprep.mubr.msk.bf16.mxu0 %vm1613_vm2, %v4634_v24  ;;  %v4544_v25 = vmul.f32 %v8594_v14, %v8408_v30  ;;  %v8602_v28 = vld [vmem:[%s6746_s22 + $0xb0] sm:$0xff]  ;;  %v3342_v59 = vld [vmem:[#allocation3 + $0xf0] sm:$0xff] }
 0x28e   : > { %3658 = vst.msk [vmem:[#allocation3 + $0x28] sm:$0xff] %vm1712_vm0, %v3626_v33  ;;  %v3631_v21 = vadd.f32 %v6207_v43, %v3599_v38  ;;  %v3281_v0 = vpop.f32.mrf.mxu0  ;;  %6392 = vmatmul.mubr.msk.bf16.gmra.mxu0 %vm1613_vm2, %v4635_v12  ;;  %v4545_v33 = vmul.f32 %v8602_v28, %v8408_v30  ;;  %v3603_v38 = vld [vmem:[#allocation3 + $0x70] sm:$0xff]  ;;  %v4582_v62 = vadd.f32 %v8439_v20, %v4543_v45 }
 0x28f   : > { %v3494_v47 = vpop.f32.mrf.mxu1  ;;  %3402 = vst.msk [vmem:[#allocation3 + $0xd0] sm:$0xff] %vm1712_vm0, %v3370_v8  ;;  %v3368_v32 = vadd.f32 %v3336_v23, %v3281_v0  ;;  %v4583_v5 = vadd.f32 %v8439_v20, %v4544_v25  ;;  %v3340_v23 = vld [vmem:[#allocation3 + $0xe0] sm:$0xff]  ;;  %v8623_v45 = vld [vmem:[%s6746_s22 + $0xc0] sm:$0xff] }
 0x290   : > { %3663 = vst.msk [vmem:[#allocation3 + $0x50] sm:$0xff] %vm1712_vm0, %v3631_v21  ;;  %v3629_v49 = vadd.f32 %v3597_v52, %v3494_v47  ;;  %v6188_v48 = vpop.f32.mrf.mxu0  ;;  %v4584_v7 = vadd.f32 %v8439_v20, %v4545_v33  ;;  %v3601_v52 = vld [vmem:[#allocation3 + $0x60] sm:$0xff]  ;;  %v4614_v31 = vmax.f32 %v4582_v62, 0.0  ;;  %v4547_v25 = vmul.f32 %v8623_v45, %v8408_v30 }
 0x291   : > { %v6208_v61 = vpop.f32.mrf.mxu1  ;;  %3400 = vst.msk [vmem:[#allocation3 + $0xc0] sm:$0xff] %vm1712_vm0, %v3368_v32  ;;  %v3371_v39 = vadd.f32 %v6188_v48, %v3339_v15  ;;  %v4615_v44 = vmax.f32 %v4583_v5, 0.0  ;;  %v3343_v15 = vld [vmem:[#allocation3 + $0xf8] sm:$0xff]  ;;  %v3607_v5 = vld [vmem:[#allocation3 + $0x90] sm:$0xff] }
 0x292   : > { %3661 = vst.msk [vmem:[#allocation3 + $0x40] sm:$0xff] %vm1712_vm0, %v3629_v49  ;;  %v3632_v41 = vadd.f32 %v6208_v61, %v3600_v36  ;;  %v3284_v9 = vpop.f32.mrf.mxu0  ;;  %v4616_v6 = vmax.f32 %v4584_v7, 0.0  ;;  %v3604_v36 = vld [vmem:[#allocation3 + $0x78] sm:$0xff]  ;;  %v4586_v7 = vadd.f32 %v8439_v20, %v4547_v25 }
 0x293   : > { %v3497_v2 = vpop.f32.mrf.mxu1  ;;  %3403 = vst.msk [vmem:[#allocation3 + $0xd8] sm:$0xff] %vm1712_vm0, %v3371_v39  ;;  %v3369_v11 = vadd.f32 %v3337_v55, %v3284_v9  ;;  %v4636_v24 = vpack.c.bf16 %v4615_v44, %v4614_v31  ;;  %v3341_v55 = vld [vmem:[#allocation3 + $0xe8] sm:$0xff]  ;;  %v3605_v44 = vld [vmem:[#allocation3 + $0x80] sm:$0xff] }
 0x294   : > { %3664 = vst.msk [vmem:[#allocation3 + $0x58] sm:$0xff] %vm1712_vm0, %v3632_v41  ;;  %v3630_v26 = vadd.f32 %v3598_v34, %v3497_v2  ;;  %v6191_v40 = vpop.f32.mrf.mxu0  ;;  %v4637_v12 = vpack.c.bf16 %v4617_v22, %v4616_v6  ;;  %v3602_v34 = vld [vmem:[#allocation3 + $0x68] sm:$0xff]  ;;  %v4618_v6 = vmax.f32 %v4586_v7, 0.0  ;;  %v8670_v7 = vld [vmem:[%s6746_s22 + $0xf0] sm:$0xff] }
 0x295   : > { %v6211_v43 = vpop.f32.mrf.mxu1  ;;  %3401 = vst.msk [vmem:[#allocation3 + $0xc8] sm:$0xff] %vm1712_vm0, %v3369_v11  ;;  %v3374_v8 = vadd.f32 %v6191_v40, %v3342_v59  ;;  %6395 = vmatprep.mubr.msk.bf16.mxu0 %vm1613_vm2, %v4636_v24  ;;  %v8628_v11 = vld [vmem:[%s6746_s22 + $0xc8] sm:$0xff]  ;;  %v8636_v40 = vld [vmem:[%s6746_s22 + $0xd0] sm:$0xff] }
 0x296   : > { %3662 = vst.msk [vmem:[#allocation3 + $0x48] sm:$0xff] %vm1712_vm0, %v3630_v26  ;;  %v3635_v21 = vadd.f32 %v6211_v43, %v3603_v38  ;;  %v3297_v0 = vpop.f32.mrf.mxu0  ;;  %v4548_v26 = vmul.f32 %v8628_v11, %v8408_v30  ;;  %6396 = vmatmul.mubr.msk.bf16.gmra.mxu0 %vm1613_vm2, %v4637_v12  ;;  %v4549_v59 = vmul.f32 %v8636_v40, %v8408_v30  ;;  %v8641_v43 = vld [vmem:[%s6746_s22 + $0xd8] sm:$0xff]  ;;  %v3869_v12 = vld [vmem:[#allocation3 + $0x18] sm:$0xff] }
 0x297   : > { %v3510_v47 = vpop.f32.mrf.mxu1  ;;  %3406 = vst.msk [vmem:[#allocation3 + $0xf0] sm:$0xff] %vm1712_vm0, %v3374_v8  ;;  %v3372_v32 = vadd.f32 %v3340_v23, %v3297_v0  ;;  %v4550_v38 = vmul.f32 %v8641_v43, %v8408_v30 }
 0x298   : > { %3667 = vst.msk [vmem:[#allocation3 + $0x70] sm:$0xff] %vm1712_vm0, %v3635_v21  ;;  %v3633_v49 = vadd.f32 %v3601_v52, %v3510_v47  ;;  %v6192_v48 = vpop.f32.mrf.mxu0  ;;  %v3868_v21 = vld [vmem:[#allocation3 + $0x10] sm:$0xff]  ;;  %v4587_v58 = vadd.f32 %v8439_v20, %v4548_v26  ;;  %v4588_v47 = vadd.f32 %v8439_v20, %v4549_v59  ;;  %v3606_v26 = vld [vmem:[#allocation3 + $0x88] sm:$0xff] }
 0x299   : > { %v6212_v61 = vpop.f32.mrf.mxu1  ;;  %3404 = vst.msk [vmem:[#allocation3 + $0xe0] sm:$0xff] %vm1712_vm0, %v3372_v32  ;;  %v3375_v39 = vadd.f32 %v6192_v48, %v3343_v15  ;;  %v4589_v52 = vadd.f32 %v8439_v20, %v4550_v38  ;;  %v8657_v59 = vld [vmem:[%s6746_s22 + $0xe0] sm:$0xff] }
 0x29a   : > { %3665 = vst.msk [vmem:[#allocation3 + $0x60] sm:$0xff] %vm1712_vm0, %v3633_v49  ;;  %v3636_v41 = vadd.f32 %v6212_v61, %v3604_v36  ;;  %v3300_v9 = vpop.f32.mrf.mxu0  ;;  %v3866_v49 = vld [vmem:[#allocation3] sm:$0xff]  ;;  %v4619_v22 = vmax.f32 %v4587_v58, 0.0  ;;  %v4620_v61 = vmax.f32 %v4588_v47, 0.0  ;;  %v4551_v38 = vmul.f32 %v8657_v59, %v8408_v30 }
 0x29b   : > { %v3513_v2 = vpop.f32.mrf.mxu1  ;;  %3407 = vst.msk [vmem:[#allocation3 + $0xf8] sm:$0xff] %vm1712_vm0, %v3375_v39  ;;  %v3373_v33 = vadd.f32 %v3341_v55, %v3300_v9  ;;  %v4621_v36 = vmax.f32 %v4589_v52, 0.0  ;;  %v3608_v39 = vld [vmem:[#allocation3 + $0x98] sm:$0xff]  ;;  %v4553_v58 = vmul.f32 %v8670_v7, %v8408_v30  ;;  %v3611_v52 = vld [vmem:[#allocation3 + $0xb0] sm:$0xff] }
 0x29c   : > { %3668 = vst.msk [vmem:[#allocation3 + $0x78] sm:$0xff] %vm1712_vm0, %v3636_v41  ;;  %v3634_v42 = vadd.f32 %v3602_v34, %v3513_v2  ;;  %v6235_v8 = vpop.f32.mrf.mxu0  ;;  %v4638_v9 = vpack.c.bf16 %v4619_v22, %v4618_v6 }
 0x29d   : > { %v6215_v62 = vpop.f32.mrf.mxu1  ;;  %3405 = vst.msk [vmem:[#allocation3 + $0xe8] sm:$0xff] %vm1712_vm0, %v3373_v33  ;;  %v3900_v23 = vadd.f32 %v6235_v8, %v3868_v21  ;;  %v4639_v34 = vpack.c.bf16 %v4621_v36, %v4620_v61 }
 0x29e   : > { %3666 = vst.msk [vmem:[#allocation3 + $0x68] sm:$0xff] %vm1712_vm0, %v3634_v42  ;;  %v3639_v0 = vadd.f32 %v6215_v62, %v3607_v5  ;;  %v3739_v32 = vpop.f32.mrf.mxu0  ;;  %v3867_v42 = vld [vmem:[#allocation3 + $0x8] sm:$0xff]  ;;  %6399 = vmatprep.mubr.msk.bf16.mxu0 %vm1613_vm2, %v4638_v9  ;;  %v8662_v62 = vld [vmem:[%s6746_s22 + $0xe8] sm:$0xff] }
 0x29f   : > { %v3526_v31 = vpop.f32.mrf.mxu1  ;;  %3932 = vst.msk [vmem:[#allocation3 + $0x10] sm:$0xff] %vm1712_vm0, %v3900_v23  ;;  %v3898_v15 = vadd.f32 %v3866_v49, %v3739_v32  ;;  %v4552_v5 = vmul.f32 %v8662_v62, %v8408_v30  ;;  %6400 = vmatmul.mubr.msk.bf16.gmra.mxu0 %vm1613_vm2, %v4639_v34  ;;  %v4590_v32 = vadd.f32 %v8439_v20, %v4551_v38 }
 0x2a0   : > { %3671 = vst.msk [vmem:[#allocation3 + $0x90] sm:$0xff] %vm1712_vm0, %v3639_v0  ;;  %v3637_v48 = vadd.f32 %v3605_v44, %v3526_v31  ;;  %v6236_v41 = vpop.f32.mrf.mxu0  ;;  %v8675_v0 = vld [vmem:[%s6746_s22 + $0xf8] sm:$0xff]  ;;  %v3872_v44 = vld [vmem:[#allocation3 + $0x30] sm:$0xff]  ;;  %s6606_s22 = smov 120  }
 0x2a1   : > { %v6216_v24 = vpop.f32.mrf.mxu1  ;;  %3930 = vst.msk [vmem:[#allocation3] sm:$0xff] %vm1712_vm0, %v3898_v15  ;;  %v3901_v2 = vadd.f32 %v6236_v41, %v3869_v12  ;;  %v4554_v23 = vmul.f32 %v8675_v0, %v8408_v30  ;;  %v4591_v49 = vadd.f32 %v8439_v20, %v4552_v5  ;;  %v3609_v30 = vld [vmem:[#allocation3 + $0xa0] sm:$0xff]  ;;  %5271 = vrot.lane.b32.xlu0 %v8425_v10, %s6606_s22 }
 0x2a2   : > { %3669 = vst.msk [vmem:[#allocation3 + $0x80] sm:$0xff] %vm1712_vm0, %v3637_v48  ;;  %v3640_v55 = vadd.f32 %v6216_v24, %v3608_v39  ;;  %v3742_v33 = vpop.f32.mrf.mxu0  ;;  %v4592_v48 = vadd.f32 %v8439_v20, %v4553_v58  ;;  %v3870_v24 = vld [vmem:[#allocation3 + $0x20] sm:$0xff]  ;;  %v4622_v39 = vmax.f32 %v4590_v32, 0.0  ;;  %5273 = vrot.lane.b32.xlu1 %v8430_v29, %s6606_s22 }
 0x2a3   : > { %v3529_v25 = vpop.f32.mrf.mxu1  ;;  %3933 = vst.msk [vmem:[#allocation3 + $0x18] sm:$0xff] %vm1712_vm0, %v3901_v2  ;;  %v3899_v21 = vadd.f32 %v3867_v42, %v3742_v33  ;;  %v4593_v15 = vadd.f32 %v8439_v20, %v4554_v23  ;;  %v4623_v41 = vmax.f32 %v4591_v49, 0.0  ;;  %v3873_v33 = vld [vmem:[#allocation3 + $0x38] sm:$0xff]  ;;  %v3871_v23 = vld [vmem:[#allocation3 + $0x28] sm:$0xff]  ;;  %v3876_v49 = vld [vmem:[#allocation3 + $0x50] sm:$0xff] }
 0x2a4   : > { %3672 = vst.msk [vmem:[#allocation3 + $0x98] sm:$0xff] %vm1712_vm0, %v3640_v55  ;;  %v3638_v8 = vadd.f32 %v3606_v26, %v3529_v25  ;;  %v6239_v31 = vpop.f32.mrf.mxu0  ;;  %v4624_v55 = vmax.f32 %v4592_v48, 0.0  ;;  %v3612_v25 = vld [vmem:[#allocation3 + $0xb8] sm:$0xff] }
 0x2a5   : > { %v6219_v47 = vpop.f32.mrf.mxu1  ;;  %3931 = vst.msk [vmem:[#allocation3 + $0x8] sm:$0xff] %vm1712_vm0, %v3899_v21  ;;  %v3904_v22 = vadd.f32 %v6239_v31, %v3872_v44  ;;  %v4625_v2 = vmax.f32 %v4593_v15, 0.0  ;;  %v4640_v42 = vpack.c.bf16 %v4623_v41, %v4622_v39  ;;  %v3610_v21 = vld [vmem:[#allocation3 + $0xa8] sm:$0xff]  ;;  %v3615_v44 = vld [vmem:[#allocation3 + $0xd0] sm:$0xff]  ;;  %v3613_v15 = vld [vmem:[#allocation3 + $0xc0] sm:$0xff]  ;;  %5275 = vrot.lane.b32.xlu0 %v8418_v27, %s6606_s22 }
 0x2a6   : > { %3670 = vst.msk [vmem:[#allocation3 + $0x88] sm:$0xff] %vm1712_vm0, %v3638_v8  ;;  %v3643_v6 = vadd.f32 %v6219_v47, %v3611_v52  ;;  %v3755_v36 = vpop.f32.mrf.mxu0  ;;  %v3616_v41 = vld [vmem:[#allocation3 + $0xd8] sm:$0xff]  ;;  %5277 = vrot.lane.b32.xlu1 %v8413_v56, %s6606_s22 }
 0x2a7   : > { %v3542_v61 = vpop.f32.mrf.mxu1  ;;  %3936 = vst.msk [vmem:[#allocation3 + $0x30] sm:$0xff] %vm1712_vm0, %v3904_v22  ;;  %v3902_v9 = vadd.f32 %v3870_v24, %v3755_v36  ;;  %v4641_v5 = vpack.c.bf16 %v4625_v2, %v4624_v55  ;;  %6403 = vmatprep.mubr.msk.bf16.mxu0 %vm1613_vm2, %v4640_v42 }
 0x2a8   : > { %3675 = vst.msk [vmem:[#allocation3 + $0xb0] sm:$0xff] %vm1712_vm0, %v3643_v6  ;;  %v3641_v12 = vadd.f32 %v3609_v30, %v3542_v61  ;;  %v6240_v26 = vpop.f32.mrf.mxu0  ;;  %v3874_v30 = vld [vmem:[#allocation3 + $0x40] sm:$0xff] }
 0x2a9   : > { %v6220_v34 = vpop.f32.mrf.mxu1  ;;  %3934 = vst.msk [vmem:[#allocation3 + $0x20] sm:$0xff] %vm1712_vm0, %v3902_v9  ;;  %v3905_v38 = vadd.f32 %v6240_v26, %v3873_v33  ;;  %6404 = vmatmul.mubr.msk.bf16.gmra.mxu0 %vm1613_vm2, %v4641_v5  ;;  %v3877_v9 = vld [vmem:[#allocation3 + $0x58] sm:$0xff]  ;;  %v3875_v33 = vld [vmem:[#allocation3 + $0x48] sm:$0xff]  ;;  %v3880_v5 = vld [vmem:[#allocation3 + $0x70] sm:$0xff]  ;;  %5279 = vrot.lane.b32.xlu0 %v8453_v57, %s6606_s22 }
 0x2aa   : > { %3673 = vst.msk [vmem:[#allocation3 + $0xa0] sm:$0xff] %vm1712_vm0, %v3641_v12  ;;  %v3644_v20 = vadd.f32 %v6220_v34, %v3612_v25  ;;  %v3758_v58 = vpop.f32.mrf.mxu0  ;;  %v3614_v25 = vld [vmem:[#allocation3 + $0xc8] sm:$0xff]  ;;  %5281 = vrot.lane.b32.xlu1 %v8458_v16, %s6606_s22 }
 0x2ab   : > { %v3545_v8 = vpop.f32.mrf.mxu1  ;;  %3937 = vst.msk [vmem:[#allocation3 + $0x38] sm:$0xff] %vm1712_vm0, %v3905_v38  ;;  %v3903_v52 = vadd.f32 %v3871_v23, %v3758_v58  ;;  %v3617_v23 = vld [vmem:[#allocation3 + $0xe0] sm:$0xff] }
 0x2ac   : > { %3676 = vst.msk [vmem:[#allocation3 + $0xb8] sm:$0xff] %vm1712_vm0, %v3644_v20  ;;  %v3642_v47 = vadd.f32 %v3610_v21, %v3545_v8  ;;  %v6243_v32 = vpop.f32.mrf.mxu0  ;;  %v3619_v20 = vld [vmem:[#allocation3 + $0xf0] sm:$0xff] }
 0x2ad   : > { %v6223_v31 = vpop.f32.mrf.mxu1  ;;  %3935 = vst.msk [vmem:[#allocation3 + $0x28] sm:$0xff] %vm1712_vm0, %v3903_v52  ;;  %v3908_v22 = vadd.f32 %v6243_v32, %v3876_v49  ;;  %v3878_v52 = vld [vmem:[#allocation3 + $0x60] sm:$0xff]  ;;  %v3881_v49 = vld [vmem:[#allocation3 + $0x78] sm:$0xff]  ;;  %5283 = vrot.lane.b32.xlu0 %v8466_v3, %s6606_s22 }
 0x2ae   : > { %3674 = vst.msk [vmem:[#allocation3 + $0xa8] sm:$0xff] %vm1712_vm0, %v3642_v47  ;;  %v3647_v6 = vadd.f32 %v6223_v31, %v3615_v44  ;;  %v3771_v61 = vpop.f32.mrf.mxu0  ;;  %v3620_v44 = vld [vmem:[#allocation3 + $0xf8] sm:$0xff]  ;;  %5285 = vrot.lane.b32.xlu1 %v8471_v17, %s6606_s22 }
 0x2af   : > { %v3558_v48 = vpop.f32.mrf.mxu1  ;;  %3940 = vst.msk [vmem:[#allocation3 + $0x50] sm:$0xff] %vm1712_vm0, %v3908_v22  ;;  %v3906_v24 = vadd.f32 %v3874_v30, %v3771_v61  ;;  %v3879_v30 = vld [vmem:[#allocation3 + $0x68] sm:$0xff] }
 0x2b0   : > { %3679 = vst.msk [vmem:[#allocation3 + $0xd0] sm:$0xff] %vm1712_vm0, %v3647_v6  ;;  %v3645_v36 = vadd.f32 %v3613_v15, %v3558_v48  ;;  %v6244_v12 = vpop.f32.mrf.mxu0  ;;  %v3618_v15 = vld [vmem:[#allocation3 + $0xe8] sm:$0xff] }
 0x2b1   : > { %v6224_v39 = vpop.f32.mrf.mxu1  ;;  %3938 = vst.msk [vmem:[#allocation3 + $0x40] sm:$0xff] %vm1712_vm0, %v3906_v24  ;;  %v3909_v2 = vadd.f32 %v6244_v12, %v3877_v9  ;;  %v3884_v24 = vld [vmem:[#allocation3 + $0x90] sm:$0xff]  ;;  %5287 = vrot.lane.b32.xlu0 %v8487_v18, %s6606_s22 }
 0x2b2   : > { %3677 = vst.msk [vmem:[#allocation3 + $0xc0] sm:$0xff] %vm1712_vm0, %v3645_v36  ;;  %v3648_v55 = vadd.f32 %v6224_v39, %v3616_v41  ;;  %v3774_v26 = vpop.f32.mrf.mxu0  ;;  %v4145_v41 = vld [vmem:[#allocation3 + $0x10] sm:$0xff]  ;;  %5289 = vrot.lane.b32.xlu1 %v8492_v50, %s6606_s22 }
 0x2b3   : > { %v3561_v34 = vpop.f32.mrf.mxu1  ;;  %3941 = vst.msk [vmem:[#allocation3 + $0x58] sm:$0xff] %vm1712_vm0, %v3909_v2  ;;  %v3907_v29 = vadd.f32 %v3875_v33, %v3774_v26  ;;  %v3882_v2 = vld [vmem:[#allocation3 + $0x80] sm:$0xff]  ;;  %v3885_v33 = vld [vmem:[#allocation3 + $0x98] sm:$0xff] }
 0x2b4   : > { %3680 = vst.msk [vmem:[#allocation3 + $0xd8] sm:$0xff] %vm1712_vm0, %v3648_v55  ;;  %v3646_v10 = vadd.f32 %v3614_v25, %v3561_v34  ;;  %v6247_v38 = vpop.f32.mrf.mxu0  ;;  %v4143_v25 = vld [vmem:[#allocation3] sm:$0xff] }
 0x2b5   : > { %v6227_v42 = vpop.f32.mrf.mxu1  ;;  %3939 = vst.msk [vmem:[#allocation3 + $0x48] sm:$0xff] %vm1712_vm0, %v3907_v29  ;;  %v3912_v21 = vadd.f32 %v6247_v38, %v3880_v5  ;;  %v4146_v29 = vld [vmem:[#allocation3 + $0x18] sm:$0xff]  ;;  %v3883_v5 = vld [vmem:[#allocation3 + $0x88] sm:$0xff]  ;;  %5291 = vrot.lane.b32.xlu0 %v8500_v46, %s6606_s22 }
 0x2b6   : > { %3678 = vst.msk [vmem:[#allocation3 + $0xc8] sm:$0xff] %vm1712_vm0, %v3646_v10  ;;  %v3651_v8 = vadd.f32 %v6227_v42, %v3619_v20  ;;  %v3787_v47 = vpop.f32.mrf.mxu0  ;;  %5293 = vrot.lane.b32.xlu1 %v8505_v35, %s6606_s22 }
 0x2b7   : > { %v3574_v58 = vpop.f32.mrf.mxu1  ;;  %3944 = vst.msk [vmem:[#allocation3 + $0x70] sm:$0xff] %vm1712_vm0, %v3912_v21  ;;  %v3910_v56 = vadd.f32 %v3878_v52, %v3787_v47  ;;  %v4144_v21 = vld [vmem:[#allocation3 + $0x8] sm:$0xff]  ;;  %v4149_v52 = vld [vmem:[#allocation3 + $0x30] sm:$0xff] }
 0x2b8   : > { %3683 = vst.msk [vmem:[#allocation3 + $0xf0] sm:$0xff] %vm1712_vm0, %v3651_v8  ;;  %v3649_v27 = vadd.f32 %v3617_v23, %v3574_v58  ;;  %v6248_v32 = vpop.f32.mrf.mxu0  ;;  %v3888_v23 = vld [vmem:[#allocation3 + $0xb0] sm:$0xff] }
 0x2b9   : > { %v6228_v31 = vpop.f32.mrf.mxu1  ;;  %3942 = vst.msk [vmem:[#allocation3 + $0x60] sm:$0xff] %vm1712_vm0, %v3910_v56  ;;  %v3913_v22 = vadd.f32 %v6248_v32, %v3881_v49  ;;  %v4147_v49 = vld [vmem:[#allocation3 + $0x20] sm:$0xff]  ;;  %5295 = vrot.lane.b32.xlu0 %v8521_v51, %s6606_s22 }
 0x2ba   : > { %3681 = vst.msk [vmem:[#allocation3 + $0xe0] sm:$0xff] %vm1712_vm0, %v3649_v27  ;;  %v3652_v6 = vadd.f32 %v6228_v31, %v3620_v44  ;;  %v3790_v61 = vpop.f32.mrf.mxu0  ;;  %v3886_v44 = vld [vmem:[#allocation3 + $0xa0] sm:$0xff]  ;;  %5297 = vrot.lane.b32.xlu1 %v8526_v1, %s6606_s22 }
 0x2bb   : > { %v3577_v48 = vpop.f32.mrf.mxu1  ;;  %3945 = vst.msk [vmem:[#allocation3 + $0x78] sm:$0xff] %vm1712_vm0, %v3913_v22  ;;  %v3911_v16 = vadd.f32 %v3879_v30, %v3790_v61  ;;  %v3889_v22 = vld [vmem:[#allocation3 + $0xb8] sm:$0xff] }
 0x2bc   : > { %3684 = vst.msk [vmem:[#allocation3 + $0xf8] sm:$0xff] %vm1712_vm0, %v3652_v6  ;;  %v3650_v57 = vadd.f32 %v3618_v15, %v3577_v48  ;;  %v6251_v36 = vpop.f32.mrf.mxu0  ;;  %v4150_v15 = vld [vmem:[#allocation3 + $0x38] sm:$0xff] }
 0x2bd   : > { %v6271_v39 = vpop.f32.mrf.mxu1  ;;  %3943 = vst.msk [vmem:[#allocation3 + $0x68] sm:$0xff] %vm1712_vm0, %v3911_v16  ;;  %v3916_v12 = vadd.f32 %v6251_v36, %v3884_v24  ;;  %v3887_v16 = vld [vmem:[#allocation3 + $0xa8] sm:$0xff]  ;;  %5299 = vrot.lane.b32.xlu0 %v8534_v37, %s6606_s22 }
 0x2be   : > { %3682 = vst.msk [vmem:[#allocation3 + $0xe8] sm:$0xff] %vm1712_vm0, %v3650_v57  ;;  %v4177_v9 = vadd.f32 %v6271_v39, %v4145_v41  ;;  %v3803_v55 = vpop.f32.mrf.mxu0  ;;  %v4148_v24 = vld [vmem:[#allocation3 + $0x28] sm:$0xff]  ;;  %5301 = vrot.lane.b32.xlu1 %v8539_v53, %s6606_s22  ;;  %v3892_v41 = vld [vmem:[#allocation3 + $0xd0] sm:$0xff] }
 0x2bf   : > { %v4016_v34 = vpop.f32.mrf.mxu1  ;;  %3948 = vst.msk [vmem:[#allocation3 + $0x90] sm:$0xff] %vm1712_vm0, %v3916_v12  ;;  %v3914_v3 = vadd.f32 %v3882_v2, %v3803_v55 }
 0x2c0   : > { %4209 = vst.msk [vmem:[#allocation3 + $0x10] sm:$0xff] %vm1712_vm0, %v4177_v9  ;;  %v4175_v17 = vadd.f32 %v4143_v25, %v4016_v34  ;;  %v6252_v26 = vpop.f32.mrf.mxu0  ;;  %v4153_v9 = vld [vmem:[#allocation3 + $0x50] sm:$0xff]  ;;  %v3890_v25 = vld [vmem:[#allocation3 + $0xc0] sm:$0xff] }
 0x2c1   : > { %v6272_v10 = vpop.f32.mrf.mxu1  ;;  %3946 = vst.msk [vmem:[#allocation3 + $0x80] sm:$0xff] %vm1712_vm0, %v3914_v3  ;;  %v3917_v42 = vadd.f32 %v6252_v26, %v3885_v33  ;;  %5303 = vrot.lane.b32.xlu0 %v8555_v19, %s6606_s22  ;;  %v3893_v33 = vld [vmem:[#allocation3 + $0xd8] sm:$0xff] }
 0x2c2   : > { %4207 = vst.msk [vmem:[#allocation3] sm:$0xff] %vm1712_vm0, %v4175_v17  ;;  %v4178_v20 = vadd.f32 %v6272_v10, %v4146_v29  ;;  %v3806_v38 = vpop.f32.mrf.mxu0  ;;  %v4151_v17 = vld [vmem:[#allocation3 + $0x40] sm:$0xff]  ;;  %5305 = vrot.lane.b32.xlu1 %v8560_v54, %s6606_s22  ;;  %v4154_v29 = vld [vmem:[#allocation3 + $0x58] sm:$0xff] }
 0x2c3   : > { %v4019_v8 = vpop.f32.mrf.mxu1  ;;  %3949 = vst.msk [vmem:[#allocation3 + $0x98] sm:$0xff] %vm1712_vm0, %v3917_v42  ;;  %v3915_v18 = vadd.f32 %v3883_v5, %v3806_v38  ;;  %v3891_v5 = vld [vmem:[#allocation3 + $0xc8] sm:$0xff] }
 0x2c4   : > { %4210 = vst.msk [vmem:[#allocation3 + $0x18] sm:$0xff] %vm1712_vm0, %v4178_v20  ;;  %v4176_v50 = vadd.f32 %v4144_v21, %v4019_v8  ;;  %v6255_v58 = vpop.f32.mrf.mxu0  ;;  %v4152_v21 = vld [vmem:[#allocation3 + $0x48] sm:$0xff] }
 0x2c5   : > { %v6275_v47 = vpop.f32.mrf.mxu1  ;;  %3947 = vst.msk [vmem:[#allocation3 + $0x88] sm:$0xff] %vm1712_vm0, %v3915_v18  ;;  %v3920_v27 = vadd.f32 %v6255_v58, %v3888_v23  ;;  %5307 = vrot.lane.b32.xlu0 %v8568_v63, %s6606_s22  ;;  %v4157_v23 = vld [vmem:[#allocation3 + $0x70] sm:$0xff] }
 0x2c6   : > { %4208 = vst.msk [vmem:[#allocation3 + $0x8] sm:$0xff] %vm1712_vm0, %v4176_v50  ;;  %v4181_v56 = vadd.f32 %v6275_v47, %v4149_v52  ;;  %v3819_v31 = vpop.f32.mrf.mxu0  ;;  %5309 = vrot.lane.b32.xlu1 %v8573_v13, %s6606_s22  ;;  %v3896_v50 = vld [vmem:[#allocation3 + $0xf0] sm:$0xff] }
 0x2c7   : > { %v4032_v32 = vpop.f32.mrf.mxu1  ;;  %3952 = vst.msk [vmem:[#allocation3 + $0xb0] sm:$0xff] %vm1712_vm0, %v3920_v27  ;;  %v3918_v46 = vadd.f32 %v3886_v44, %v3819_v31  ;;  %v4155_v44 = vld [vmem:[#allocation3 + $0x60] sm:$0xff] }
 0x2c8   : > { %4213 = vst.msk [vmem:[#allocation3 + $0x30] sm:$0xff] %vm1712_vm0, %v4181_v56  ;;  %v4179_v35 = vadd.f32 %v4147_v49, %v4032_v32  ;;  %v6256_v6 = vpop.f32.mrf.mxu0  ;;  %v3894_v56 = vld [vmem:[#allocation3 + $0xe0] sm:$0xff]  ;;  %v3897_v49 = vld [vmem:[#allocation3 + $0xf8] sm:$0xff] }
 0x2c9   : > { %v6276_v48 = vpop.f32.mrf.mxu1  ;;  %3950 = vst.msk [vmem:[#allocation3 + $0xa0] sm:$0xff] %vm1712_vm0, %v3918_v46  ;;  %v3921_v61 = vadd.f32 %v6256_v6, %v3889_v22  ;;  %5311 = vrot.lane.b32.xlu0 %v8589_v60, %s6606_s22 }
 0x2ca   : > { %4211 = vst.msk [vmem:[#allocation3 + $0x20] sm:$0xff] %vm1712_vm0, %v4179_v35  ;;  %v4182_v30 = vadd.f32 %v6276_v48, %v4150_v15  ;;  %v3822_v57 = vpop.f32.mrf.mxu0  ;;  %5313 = vrot.lane.b32.xlu1 %v8594_v14, %s6606_s22  ;;  %v4158_v35 = vld [vmem:[#allocation3 + $0x78] sm:$0xff]  ;;  %v3895_v15 = vld [vmem:[#allocation3 + $0xe8] sm:$0xff] }
 0x2cb   : > { %v4035_v36 = vpop.f32.mrf.mxu1  ;;  %3953 = vst.msk [vmem:[#allocation3 + $0xb8] sm:$0xff] %vm1712_vm0, %v3921_v61  ;;  %v3919_v51 = vadd.f32 %v3887_v16, %v3822_v57  ;;  %v4161_v16 = vld [vmem:[#allocation3 + $0x90] sm:$0xff] }
 0x2cc   : > { %4214 = vst.msk [vmem:[#allocation3 + $0x38] sm:$0xff] %vm1712_vm0, %v4182_v30  ;;  %v4180_v1 = vadd.f32 %v4148_v24, %v4035_v36  ;;  %v6259_v39 = vpop.f32.mrf.mxu0  ;;  %v4156_v30 = vld [vmem:[#allocation3 + $0x68] sm:$0xff]  ;;  %v4422_v24 = vld [vmem:[#allocation3 + $0x10] sm:$0xff] }
 0x2cd   : > { %v6279_v12 = vpop.f32.mrf.mxu1  ;;  %3951 = vst.msk [vmem:[#allocation3 + $0xa8] sm:$0xff] %vm1712_vm0, %v3919_v51  ;;  %v3924_v55 = vadd.f32 %v6259_v39, %v3892_v41  ;;  %5315 = vrot.lane.b32.xlu0 %v8602_v28, %s6606_s22  ;;  %v4159_v41 = vld [vmem:[#allocation3 + $0x80] sm:$0xff] }
 0x2ce   : > { %4212 = vst.msk [vmem:[#allocation3 + $0x28] sm:$0xff] %vm1712_vm0, %v4180_v1  ;;  %v4185_v2 = vadd.f32 %v6279_v12, %v4153_v9  ;;  %v3835_v34 = vpop.f32.mrf.mxu0  ;;  %5317 = vrot.lane.b32.xlu1 %v8607_v4, %s6606_s22  ;;  %v4420_v9 = vld [vmem:[#allocation3] sm:$0xff] }
 0x2cf   : > { %v4048_v3 = vpop.f32.mrf.mxu1  ;;  %3956 = vst.msk [vmem:[#allocation3 + $0xd0] sm:$0xff] %vm1712_vm0, %v3924_v55  ;;  %v3922_v37 = vadd.f32 %v3890_v25, %v3835_v34  ;;  %v4423_v25 = vld [vmem:[#allocation3 + $0x18] sm:$0xff] }
 0x2d0   : > { %4217 = vst.msk [vmem:[#allocation3 + $0x50] sm:$0xff] %vm1712_vm0, %v4185_v2  ;;  %v4183_v53 = vadd.f32 %v4151_v17, %v4048_v3  ;;  %v6260_v26 = vpop.f32.mrf.mxu0  ;;  %v4162_v2 = vld [vmem:[#allocation3 + $0x98] sm:$0xff] }
 0x2d1   : > { %v6280_v10 = vpop.f32.mrf.mxu1  ;;  %3954 = vst.msk [vmem:[#allocation3 + $0xc0] sm:$0xff] %vm1712_vm0, %v3922_v37  ;;  %v3925_v42 = vadd.f32 %v6260_v26, %v3893_v33  ;;  %5319 = vrot.lane.b32.xlu0 %v8623_v45, %s6606_s22  ;;  %v4421_v33 = vld [vmem:[#allocation3 + $0x8] sm:$0xff] }
 0x2d2   : > { %4215 = vst.msk [vmem:[#allocation3 + $0x40] sm:$0xff] %vm1712_vm0, %v4183_v53  ;;  %v4186_v20 = vadd.f32 %v6280_v10, %v4154_v29  ;;  %v3838_v38 = vpop.f32.mrf.mxu0  ;;  %5321 = vrot.lane.b32.xlu1 %v8628_v11, %s6606_s22  ;;  %v4160_v53 = vld [vmem:[#allocation3 + $0x88] sm:$0xff]  ;;  %v4165_v29 = vld [vmem:[#allocation3 + $0xb0] sm:$0xff] }
 0x2d3   : > { %v4051_v8 = vpop.f32.mrf.mxu1  ;;  %3957 = vst.msk [vmem:[#allocation3 + $0xd8] sm:$0xff] %vm1712_vm0, %v3925_v42  ;;  %v3923_v19 = vadd.f32 %v3891_v5, %v3838_v38 }
 0x2d4   : > { %4218 = vst.msk [vmem:[#allocation3 + $0x58] sm:$0xff] %vm1712_vm0, %v4186_v20  ;;  %v4184_v54 = vadd.f32 %v4152_v21, %v4051_v8  ;;  %v6263_v18 = vpop.f32.mrf.mxu0  ;;  %v4426_v20 = vld [vmem:[#allocation3 + $0x30] sm:$0xff]  ;;  %v4163_v21 = vld [vmem:[#allocation3 + $0xa0] sm:$0xff] }
 0x2d5   : > { %v6283_v58 = vpop.f32.mrf.mxu1  ;;  %3955 = vst.msk [vmem:[#allocation3 + $0xc8] sm:$0xff] %vm1712_vm0, %v3923_v19  ;;  %v3928_v47 = vadd.f32 %v6263_v18, %v3896_v50  ;;  %5323 = vrot.lane.b32.xlu0 %v8636_v40, %s6606_s22  ;;  %v8812_v18 = vld [vmem:[%s9121_s10] ss:$0 sm:$0xff] }
 0x2d6   : > { %4216 = vst.msk [vmem:[#allocation3 + $0x48] sm:$0xff] %vm1712_vm0, %v4184_v54  ;;  %v4189_v52 = vadd.f32 %v6283_v58, %v4157_v23  ;;  %v3851_v27 = vpop.f32.mrf.mxu0  ;;  %5325 = vrot.lane.b32.xlu1 %v8641_v43, %s6606_s22  ;;  %v4424_v54 = vld [vmem:[#allocation3 + $0x20] sm:$0xff]  ;;  %v4166_v23 = vld [vmem:[#allocation3 + $0xb8] sm:$0xff] }
 0x2d7   : > { %v4064_v31 = vpop.f32.mrf.mxu1  ;;  %3960 = vst.msk [vmem:[#allocation3 + $0xf0] sm:$0xff] %vm1712_vm0, %v3928_v47  ;;  %v3926_v63 = vadd.f32 %v3894_v56, %v3851_v27 }
 0x2d8   : > { %4221 = vst.msk [vmem:[#allocation3 + $0x70] sm:$0xff] %vm1712_vm0, %v4189_v52  ;;  %v4187_v13 = vadd.f32 %v4155_v44, %v4064_v31  ;;  %v6264_v32 = vpop.f32.mrf.mxu0  ;;  %v4427_v52 = vld [vmem:[#allocation3 + $0x38] sm:$0xff] }
 0x2d9   : > { %v6284_v46 = vpop.f32.mrf.mxu1  ;;  %3958 = vst.msk [vmem:[#allocation3 + $0xe0] sm:$0xff] %vm1712_vm0, %v3926_v63  ;;  %v3929_v6 = vadd.f32 %v6264_v32, %v3897_v49  ;;  %5327 = vrot.lane.b32.xlu0 %v8657_v59, %s6606_s22  ;;  %v4425_v59 = vld [vmem:[#allocation3 + $0x28] sm:$0xff] }
 0x2da   : > { %4219 = vst.msk [vmem:[#allocation3 + $0x60] sm:$0xff] %vm1712_vm0, %v4187_v13  ;;  %v4190_v22 = vadd.f32 %v6284_v46, %v4158_v35  ;;  %v3854_v48 = vpop.f32.mrf.mxu0  ;;  %5329 = vrot.lane.b32.xlu1 %v8662_v62, %s6606_s22  ;;  %v4164_v13 = vld [vmem:[#allocation3 + $0xa8] sm:$0xff] }
 0x2db   : > { %v4067_v61 = vpop.f32.mrf.mxu1  ;;  %3961 = vst.msk [vmem:[#allocation3 + $0xf8] sm:$0xff] %vm1712_vm0, %v3929_v6  ;;  %v3927_v60 = vadd.f32 %v3895_v15, %v3854_v48  ;;  %v8827_v6 = vld [vmem:[%s9122_s11] ss:$0 sm:$0xff] }
 0x2dc   : > { %4222 = vst.msk [vmem:[#allocation3 + $0x78] sm:$0xff] %vm1712_vm0, %v4190_v22  ;;  %v4188_v14 = vadd.f32 %v4156_v30, %v4067_v61  ;;  %v6307_v36 = vpop.f32.mrf.mxu0  ;;  %v4169_v15 = vld [vmem:[#allocation3 + $0xd0] sm:$0xff] }
 0x2dd   : > { %v6287_v57 = vpop.f32.mrf.mxu1  ;;  %3959 = vst.msk [vmem:[#allocation3 + $0xe8] sm:$0xff] %vm1712_vm0, %v3927_v60  ;;  %v4454_v1 = vadd.f32 %v6307_v36, %v4422_v24  ;;  %5331 = vrot.lane.b32.xlu0 %v8670_v7, %s6606_s22  ;;  %v4430_v30 = vld [vmem:[#allocation3 + $0x50] sm:$0xff]  ;;  %v4167_v7 = vld [vmem:[#allocation3 + $0xc0] sm:$0xff] }
 0x2de   : > { %4220 = vst.msk [vmem:[#allocation3 + $0x68] sm:$0xff] %vm1712_vm0, %v4188_v14  ;;  %v4193_v51 = vadd.f32 %v6287_v57, %v4161_v16  ;;  %v4293_v12 = vpop.f32.mrf.mxu0  ;;  %5333 = vrot.lane.b32.xlu1 %v8675_v0, %s6606_s22 }
 0x2df   : > { %v4080_v39 = vpop.f32.mrf.mxu1  ;;  %4486 = vst.msk [vmem:[#allocation3 + $0x10] sm:$0xff] %vm1712_vm0, %v4454_v1  ;;  %v4452_v4 = vadd.f32 %v4420_v9, %v4293_v12  ;;  %v4428_v1 = vld [vmem:[#allocation3 + $0x40] sm:$0xff] }
 0x2e0   : > { %4225 = vst.msk [vmem:[#allocation3 + $0x90] sm:$0xff] %vm1712_vm0, %v4193_v51  ;;  %v4191_v28 = vadd.f32 %v4159_v41, %v4080_v39  ;;  %v6308_v34 = vpop.f32.mrf.mxu0 }
 0x2e1   : > { %v6288_v55 = vpop.f32.mrf.mxu1  ;;  %4484 = vst.msk [vmem:[#allocation3] sm:$0xff] %vm1712_vm0, %v4452_v4  ;;  %v4455_v17 = vadd.f32 %v6308_v34, %v4423_v25  ;;  %v4431_v34 = vld [vmem:[#allocation3 + $0x58] sm:$0xff] }
 0x2e2   : > { %4223 = vst.msk [vmem:[#allocation3 + $0x80] sm:$0xff] %vm1712_vm0, %v4191_v28  ;;  %v4194_v3 = vadd.f32 %v6288_v55, %v4162_v2  ;;  %v4296_v26 = vpop.f32.mrf.mxu0  ;;  %v4170_v55 = vld [vmem:[#allocation3 + $0xd8] sm:$0xff] }
 0x2e3   : > { %v4083_v37 = vpop.f32.mrf.mxu1  ;;  %4487 = vst.msk [vmem:[#allocation3 + $0x18] sm:$0xff] %vm1712_vm0, %v4455_v17  ;;  %v4453_v11 = vadd.f32 %v4421_v33, %v4296_v26 }
 0x2e4   : > { %4226 = vst.msk [vmem:[#allocation3 + $0x98] sm:$0xff] %vm1712_vm0, %v4194_v3  ;;  %v4192_v45 = vadd.f32 %v4160_v53, %v4083_v37  ;;  %v6311_v42 = vpop.f32.mrf.mxu0 }
 0x2e5   : > { %v6291_v10 = vpop.f32.mrf.mxu1  ;;  %4485 = vst.msk [vmem:[#allocation3 + $0x8] sm:$0xff] %vm1712_vm0, %v4453_v11  ;;  %v4458_v5 = vadd.f32 %v6311_v42, %v4426_v20  ;;  %v4168_v11 = vld [vmem:[#allocation3 + $0xc8] sm:$0xff] }
 0x2e6   : > { %4224 = vst.msk [vmem:[#allocation3 + $0x88] sm:$0xff] %vm1712_vm0, %v4192_v45  ;;  %v4197_v38 = vadd.f32 %v6291_v10, %v4165_v29  ;;  %v4309_v19 = vpop.f32.mrf.mxu0  ;;  %v4644_v50 = vld [vmem:[#allocation3 + $0x10] sm:$0xff]  ;;  %v4429_v29 = vld [vmem:[#allocation3 + $0x48] sm:$0xff] }
 0x2e7   : > { %v4096_v8 = vpop.f32.mrf.mxu1  ;;  %4490 = vst.msk [vmem:[#allocation3 + $0x30] sm:$0xff] %vm1712_vm0, %v4458_v5  ;;  %v4456_v43 = vadd.f32 %v4424_v54, %v4309_v19  ;;  %v4683_v62 = vmul.f32 %v8812_v18, %v4644_v50  ;;  %v4173_v54 = vld [vmem:[#allocation3 + $0xf0] sm:$0xff] }
 0x2e8   : > { %4229 = vst.msk [vmem:[#allocation3 + $0xb0] sm:$0xff] %vm1712_vm0, %v4197_v38  ;;  %v4195_v40 = vadd.f32 %v4163_v21, %v4096_v8  ;;  %v6312_v47 = vpop.f32.mrf.mxu0  ;;  %v4642_v27 = vld [vmem:[#allocation3] sm:$0xff] }
 0x2e9   : > { %v6292_v58 = vpop.f32.mrf.mxu1  ;;  %4488 = vst.msk [vmem:[#allocation3 + $0x20] sm:$0xff] %vm1712_vm0, %v4456_v43  ;;  %v4459_v31 = vadd.f32 %v6312_v47, %v4427_v52  ;;  %v4681_v44 = vmul.f32 %v8812_v18, %v4642_v27  ;;  %v4722_v39 = vadd.f32 %v8827_v6, %v4683_v62  ;;  %v4434_v43 = vld [vmem:[#allocation3 + $0x70] sm:$0xff] }
 0x2ea   : > { %4227 = vst.msk [vmem:[#allocation3 + $0xa0] sm:$0xff] %vm1712_vm0, %v4195_v40  ;;  %v4198_v56 = vadd.f32 %v6292_v58, %v4166_v23  ;;  %v4312_v32 = vpop.f32.mrf.mxu0  ;;  %v4645_v49 = vld [vmem:[#allocation3 + $0x18] sm:$0xff] }
 0x2eb   : > { %v4099_v63 = vpop.f32.mrf.mxu1  ;;  %4491 = vst.msk [vmem:[#allocation3 + $0x38] sm:$0xff] %vm1712_vm0, %v4459_v31  ;;  %v4457_v35 = vadd.f32 %v4425_v59, %v4312_v32  ;;  %v4684_v22 = vmul.f32 %v8812_v18, %v4645_v49  ;;  %v4720_v14 = vadd.f32 %v8827_v6, %v4681_v44  ;;  %v4754_v42 = vmax.f32 %v4722_v39, 0.0  ;;  %v4171_v44 = vld [vmem:[#allocation3 + $0xe0] sm:$0xff]  ;;  %v4433_v39 = vld [vmem:[#allocation3 + $0x68] sm:$0xff] }
 0x2ec   : > { %4230 = vst.msk [vmem:[#allocation3 + $0xb8] sm:$0xff] %vm1712_vm0, %v4198_v56  ;;  %v4196_v46 = vadd.f32 %v4164_v13, %v4099_v63  ;;  %v6315_v61 = vpop.f32.mrf.mxu0  ;;  %v4643_v60 = vld [vmem:[#allocation3 + $0x8] sm:$0xff]  ;;  %v4432_v13 = vld [vmem:[#allocation3 + $0x60] sm:$0xff] }
 0x2ed   : > { %v6295_v48 = vpop.f32.mrf.mxu1  ;;  %4489 = vst.msk [vmem:[#allocation3 + $0x28] sm:$0xff] %vm1712_vm0, %v4457_v35  ;;  %v4462_v16 = vadd.f32 %v6315_v61, %v4430_v30  ;;  %v4682_v36 = vmul.f32 %v8812_v18, %v4643_v60  ;;  %v4723_v41 = vadd.f32 %v8827_v6, %v4684_v22  ;;  %v4752_v25 = vmax.f32 %v4720_v14, 0.0  ;;  %v4435_v61 = vld [vmem:[#allocation3 + $0x78] sm:$0xff] }
 0x2ee   : > { %4228 = vst.msk [vmem:[#allocation3 + $0xa8] sm:$0xff] %vm1712_vm0, %v4196_v46  ;;  %v4201_v57 = vadd.f32 %v6295_v48, %v4169_v15  ;;  %v4325_v51 = vpop.f32.mrf.mxu0  ;;  %v4648_v28 = vld [vmem:[#allocation3 + $0x30] sm:$0xff]  ;;  %v4174_v48 = vld [vmem:[#allocation3 + $0xf8] sm:$0xff] }
 0x2ef   : > { %v4112_v24 = vpop.f32.mrf.mxu1  ;;  %4494 = vst.msk [vmem:[#allocation3 + $0x50] sm:$0xff] %vm1712_vm0, %v4462_v16  ;;  %v4460_v12 = vadd.f32 %v4428_v1, %v4325_v51  ;;  %v4721_v9 = vadd.f32 %v8827_v6, %v4682_v36  ;;  %v4755_v3 = vmax.f32 %v4723_v41, 0.0  ;;  %v4687_v38 = vmul.f32 %v8812_v18, %v4648_v28  ;;  %v4172_v51 = vld [vmem:[#allocation3 + $0xe8] sm:$0xff] }
 0x2f0   : > { %4233 = vst.msk [vmem:[#allocation3 + $0xd0] sm:$0xff] %vm1712_vm0, %v4201_v57  ;;  %v4199_v0 = vadd.f32 %v4167_v7, %v4112_v24  ;;  %v6316_v2 = vpop.f32.mrf.mxu0  ;;  %v4646_v17 = vld [vmem:[#allocation3 + $0x20] sm:$0xff] }
 0x2f1   : > { %v6296_v4 = vpop.f32.mrf.mxu1  ;;  %4492 = vst.msk [vmem:[#allocation3 + $0x40] sm:$0xff] %vm1712_vm0, %v4460_v12  ;;  %v4463_v53 = vadd.f32 %v6316_v2, %v4431_v34  ;;  %v4753_v26 = vmax.f32 %v4721_v9, 0.0  ;;  %v4685_v33 = vmul.f32 %v8812_v18, %v4646_v17  ;;  %v4785_v50 = vpack.c.bf16 %v4755_v3, %v4754_v42  ;;  %v4438_v2 = vld [vmem:[#allocation3 + $0x90] sm:$0xff] }
 0x2f2   : > { %4231 = vst.msk [vmem:[#allocation3 + $0xc0] sm:$0xff] %vm1712_vm0, %v4199_v0  ;;  %v4202_v37 = vadd.f32 %v6296_v4, %v4170_v55  ;;  %v4328_v10 = vpop.f32.mrf.mxu0  ;;  %v4649_v20 = vld [vmem:[#allocation3 + $0x38] sm:$0xff]  ;;  %v4726_v32 = vadd.f32 %v8827_v6, %v4687_v38 }
 0x2f3   : > { %v4115_v45 = vpop.f32.mrf.mxu1  ;;  %4495 = vst.msk [vmem:[#allocation3 + $0x58] sm:$0xff] %vm1712_vm0, %v4463_v53  ;;  %v4461_v8 = vadd.f32 %v4429_v29, %v4328_v10  ;;  %v4784_v21 = vpack.c.bf16 %v4753_v26, %v4752_v25  ;;  %v4724_v23 = vadd.f32 %v8827_v6, %v4685_v33  ;;  %v4688_v47 = vmul.f32 %v8812_v18, %v4649_v20  ;;  %v4436_v33 = vld [vmem:[#allocation3 + $0x80] sm:$0xff]  ;;  %v4439_v38 = vld [vmem:[#allocation3 + $0x98] sm:$0xff] }
 0x2f4   : > { %4234 = vst.msk [vmem:[#allocation3 + $0xd8] sm:$0xff] %vm1712_vm0, %v4202_v37  ;;  %v4200_v5 = vadd.f32 %v4168_v11, %v4115_v45  ;;  %v6319_v40 = vpop.f32.mrf.mxu0  ;;  %v4647_v58 = vld [vmem:[#allocation3 + $0x28] sm:$0xff]  ;;  %v4758_v41 = vmax.f32 %v4726_v32, 0.0 }
 0x2f5   : > { %v6299_v19 = vpop.f32.mrf.mxu1  ;;  %4493 = vst.msk [vmem:[#allocation3 + $0x48] sm:$0xff] %vm1712_vm0, %v4461_v8  ;;  %v4466_v27 = vadd.f32 %v6319_v40, %v4434_v43  ;;  %6341 = vmatprep.mubr.msk.bf16.mxu1 %vm1712_vm0, %v4784_v21  ;;  %v4686_v56 = vmul.f32 %v8812_v18, %v4647_v58  ;;  %v4727_v59 = vadd.f32 %v8827_v6, %v4688_v47  ;;  %v4756_v30 = vmax.f32 %v4724_v23, 0.0 }
 0x2f6   : > { %4232 = vst.msk [vmem:[#allocation3 + $0xc8] sm:$0xff] %vm1712_vm0, %v4200_v5  ;;  %v4205_v52 = vadd.f32 %v6299_v19, %v4173_v54  ;;  %v4341_v63 = vpop.f32.mrf.mxu0  ;;  %6342 = vmatmul.mubr.msk.bf16.vlgmr.msra.gmra.mxu1 %vm1712_vm0, %v4785_v50  ;;  %v4652_v35 = vld [vmem:[#allocation3 + $0x50] sm:$0xff]  ;;  %v4437_v50 = vld [vmem:[#allocation3 + $0x88] sm:$0xff] }
 0x2f7   : > { %v4128_v31 = vpop.f32.mrf.mxu1  ;;  %4498 = vst.msk [vmem:[#allocation3 + $0x70] sm:$0xff] %vm1712_vm0, %v4466_v27  ;;  %v4464_v62 = vadd.f32 %v4432_v13, %v4341_v63  ;;  %v4725_v46 = vadd.f32 %v8827_v6, %v4686_v56  ;;  %v4759_v60 = vmax.f32 %v4727_v59, 0.0  ;;  %v4691_v12 = vmul.f32 %v8812_v18, %v4652_v35  ;;  %v4440_v35 = vld [vmem:[#allocation3 + $0xa0] sm:$0xff] }
 0x2f8   : > { %4237 = vst.msk [vmem:[#allocation3 + $0xf0] sm:$0xff] %vm1712_vm0, %v4205_v52  ;;  %v4203_v49 = vadd.f32 %v4171_v44, %v4128_v31  ;;  %v6320_v15 = vpop.f32.mrf.mxu0  ;;  %v4650_v14 = vld [vmem:[#allocation3 + $0x40] sm:$0xff]  ;;  %v4442_v44 = vld [vmem:[#allocation3 + $0xb0] sm:$0xff] }
 0x2f9   : > { %v6300_v22 = vpop.f32.mrf.mxu1  ;;  %4496 = vst.msk [vmem:[#allocation3 + $0x60] sm:$0xff] %vm1712_vm0, %v4464_v62  ;;  %v4467_v16 = vadd.f32 %v6320_v15, %v4435_v61  ;;  %v4757_v36 = vmax.f32 %v4725_v46, 0.0  ;;  %v4689_v24 = vmul.f32 %v8812_v18, %v4650_v14  ;;  %v4787_v34 = vpack.c.bf16 %v4759_v60, %v4758_v41  ;;  %v4443_v60 = vld [vmem:[#allocation3 + $0xb8] sm:$0xff] }
 0x2fa   : > { %4235 = vst.msk [vmem:[#allocation3 + $0xe0] sm:$0xff] %vm1712_vm0, %v4203_v49  ;;  %v4206_v57 = vadd.f32 %v6300_v22, %v4174_v48  ;;  %v4344_v1 = vpop.f32.mrf.mxu0  ;;  %v4653_v0 = vld [vmem:[#allocation3 + $0x58] sm:$0xff]  ;;  %v4730_v45 = vadd.f32 %v8827_v6, %v4691_v12 }
 0x2fb   : > { %v4131_v7 = vpop.f32.mrf.mxu1  ;;  %4499 = vst.msk [vmem:[#allocation3 + $0x78] sm:$0xff] %vm1712_vm0, %v4467_v16  ;;  %v4465_v28 = vadd.f32 %v4433_v39, %v4344_v1  ;;  %v4786_v4 = vpack.c.bf16 %v4757_v36, %v4756_v30  ;;  %v4692_v3 = vmul.f32 %v8812_v18, %v4653_v0  ;;  %v4728_v53 = vadd.f32 %v8827_v6, %v4689_v24  ;;  %v4441_v1 = vld [vmem:[#allocation3 + $0xa8] sm:$0xff] }
 0x2fc   : > { %4238 = vst.msk [vmem:[#allocation3 + $0xf8] sm:$0xff] %vm1712_vm0, %v4206_v57  ;;  %v4204_v9 = vadd.f32 %v4172_v51, %v4131_v7  ;;  %v6323_v55 = vpop.f32.mrf.mxu0  ;;  %v4651_v25 = vld [vmem:[#allocation3 + $0x48] sm:$0xff]  ;;  %v4762_v58 = vmax.f32 %v4730_v45, 0.0 }
 0x2fd   : > { %4497 = vst.msk [vmem:[#allocation3 + $0x68] sm:$0xff] %vm1712_vm0, %v4465_v28  ;;  %v4470_v17 = vadd.f32 %v6323_v55, %v4438_v2  ;;  %6345 = vmatprep.mubr.msk.bf16.mxu1 %vm1712_vm0, %v4786_v4  ;;  %v4690_v37 = vmul.f32 %v8812_v18, %v4651_v25  ;;  %v4731_v11 = vadd.f32 %v8827_v6, %v4692_v3  ;;  %v4760_v19 = vmax.f32 %v4728_v53, 0.0  ;;  %v4446_v55 = vld [vmem:[#allocation3 + $0xd0] sm:$0xff] }
 0x2fe   : > { %4236 = vst.msk [vmem:[#allocation3 + $0xe8] sm:$0xff] %vm1712_vm0, %v4204_v9  ;;  %v4357_v26 = vpop.f32.mrf.mxu0  ;;  %6346 = vmatmul.mubr.msk.bf16.gmra.mxu1 %vm1712_vm0, %v4787_v34  ;;  %v4656_v42 = vld [vmem:[#allocation3 + $0x70] sm:$0xff] }
 0x2ff   : > { %4502 = vst.msk [vmem:[#allocation3 + $0x90] sm:$0xff] %vm1712_vm0, %v4470_v17  ;;  %v4468_v10 = vadd.f32 %v4436_v33, %v4357_v26  ;;  %v4729_v29 = vadd.f32 %v8827_v6, %v4690_v37  ;;  %v4763_v5 = vmax.f32 %v4731_v11, 0.0  ;;  %v4695_v47 = vmul.f32 %v8812_v18, %v4656_v42  ;;  %v4444_v26 = vld [vmem:[#allocation3 + $0xc0] sm:$0xff]  ;;  %v4447_v42 = vld [vmem:[#allocation3 + $0xd8] sm:$0xff] }
 0x300   : > { %v6324_v20 = vpop.f32.mrf.mxu0  ;;  %v4654_v8 = vld [vmem:[#allocation3 + $0x60] sm:$0xff] }
 0x301   : > { %4500 = vst.msk [vmem:[#allocation3 + $0x80] sm:$0xff] %vm1712_vm0, %v4468_v10  ;;  %v4471_v21 = vadd.f32 %v6324_v20, %v4439_v38  ;;  %v4761_v54 = vmax.f32 %v4729_v29, 0.0  ;;  %v4693_v40 = vmul.f32 %v8812_v18, %v4654_v8  ;;  %v4789_v63 = vpack.c.bf16 %v4763_v5, %v4762_v58 }
 0x302   : > { %v4360_v43 = vpop.f32.mrf.mxu0  ;;  %v4657_v23 = vld [vmem:[#allocation3 + $0x78] sm:$0xff]  ;;  %v4734_v22 = vadd.f32 %v8827_v6, %v4695_v47 }
 0x303   : > { %4503 = vst.msk [vmem:[#allocation3 + $0x98] sm:$0xff] %vm1712_vm0, %v4471_v21  ;;  %v4469_v52 = vadd.f32 %v4437_v50, %v4360_v43  ;;  %v4788_v27 = vpack.c.bf16 %v4761_v54, %v4760_v19  ;;  %v4696_v56 = vmul.f32 %v8812_v18, %v4657_v23  ;;  %v4732_v49 = vadd.f32 %v8827_v6, %v4693_v40  ;;  %v4445_v40 = vld [vmem:[#allocation3 + $0xc8] sm:$0xff] }
 0x304   : > { %v6327_v31 = vpop.f32.mrf.mxu0  ;;  %v4655_v13 = vld [vmem:[#allocation3 + $0x68] sm:$0xff]  ;;  %v4766_v39 = vmax.f32 %v4734_v22, 0.0 }
 0x305   : > { %4501 = vst.msk [vmem:[#allocation3 + $0x88] sm:$0xff] %vm1712_vm0, %v4469_v52  ;;  %v4474_v32 = vadd.f32 %v6327_v31, %v4442_v44  ;;  %6349 = vmatprep.mubr.msk.bf16.mxu1 %vm1712_vm0, %v4788_v27  ;;  %v4694_v59 = vmul.f32 %v8812_v18, %v4655_v13  ;;  %v4735_v62 = vadd.f32 %v8827_v6, %v4696_v56  ;;  %v4764_v36 = vmax.f32 %v4732_v49, 0.0  ;;  %v4450_v56 = vld [vmem:[#allocation3 + $0xf0] sm:$0xff] }
 0x306   : > { %v4373_v46 = vpop.f32.mrf.mxu0  ;;  %6350 = vmatmul.mubr.msk.bf16.gmra.mxu1 %vm1712_vm0, %v4789_v63  ;;  %v4660_v61 = vld [vmem:[#allocation3 + $0x90] sm:$0xff] }
 0x307   : > { %4506 = vst.msk [vmem:[#allocation3 + $0xb0] sm:$0xff] %vm1712_vm0, %v4474_v32  ;;  %v4472_v48 = vadd.f32 %v4440_v35, %v4373_v46  ;;  %v4733_v15 = vadd.f32 %v8827_v6, %v4694_v59  ;;  %v4767_v14 = vmax.f32 %v4735_v62, 0.0  ;;  %v4699_v0 = vmul.f32 %v8812_v18, %v4660_v61  ;;  %v4448_v62 = vld [vmem:[#allocation3 + $0xe0] sm:$0xff]  ;;  %v4451_v61 = vld [vmem:[#allocation3 + $0xf8] sm:$0xff] }
 0x308   : > { %v6328_v30 = vpop.f32.mrf.mxu0  ;;  %v4658_v57 = vld [vmem:[#allocation3 + $0x80] sm:$0xff] }
 0x309   : > { %4504 = vst.msk [vmem:[#allocation3 + $0xa0] sm:$0xff] %vm1712_vm0, %v4472_v48  ;;  %v4475_v16 = vadd.f32 %v6328_v30, %v4443_v60  ;;  %v4765_v24 = vmax.f32 %v4733_v15, 0.0  ;;  %v4697_v7 = vmul.f32 %v8812_v18, %v4658_v57  ;;  %v4791_v2 = vpack.c.bf16 %v4767_v14, %v4766_v39 }
 0x30a   : > { %v4376_v51 = vpop.f32.mrf.mxu0  ;;  %v4661_v41 = vld [vmem:[#allocation3 + $0x98] sm:$0xff]  ;;  %v4738_v33 = vadd.f32 %v8827_v6, %v4699_v0 }
 0x30b   : > { %4507 = vst.msk [vmem:[#allocation3 + $0xb8] sm:$0xff] %vm1712_vm0, %v4475_v16  ;;  %v4473_v12 = vadd.f32 %v4441_v1, %v4376_v51  ;;  %v4790_v9 = vpack.c.bf16 %v4765_v24, %v4764_v36  ;;  %v4700_v28 = vmul.f32 %v8812_v18, %v4661_v41  ;;  %v4736_v17 = vadd.f32 %v8827_v6, %v4697_v7  ;;  %v4449_v7 = vld [vmem:[#allocation3 + $0xe8] sm:$0xff] }
 0x30c   : > { %v6331_v4 = vpop.f32.mrf.mxu0  ;;  %v4659_v34 = vld [vmem:[#allocation3 + $0x88] sm:$0xff]  ;;  %v4770_v43 = vmax.f32 %v4738_v33, 0.0 }
 0x30d   : > { %4505 = vst.msk [vmem:[#allocation3 + $0xa8] sm:$0xff] %vm1712_vm0, %v4473_v12  ;;  %v4478_v25 = vadd.f32 %v6331_v4, %v4446_v55  ;;  %6353 = vmatprep.mubr.msk.bf16.mxu1 %vm1712_vm0, %v4790_v9  ;;  %v4698_v3 = vmul.f32 %v8812_v18, %v4659_v34  ;;  %v4739_v37 = vadd.f32 %v8827_v6, %v4700_v28  ;;  %v4768_v8 = vmax.f32 %v4736_v17, 0.0 }
 0x30e   : > { %v4389_v53 = vpop.f32.mrf.mxu0  ;;  %6354 = vmatmul.mubr.msk.bf16.gmra.mxu1 %vm1712_vm0, %v4791_v2  ;;  %v4664_v10 = vld [vmem:[#allocation3 + $0xb0] sm:$0xff] }
 0x30f   : > { %4510 = vst.msk [vmem:[#allocation3 + $0xd0] sm:$0xff] %vm1712_vm0, %v4478_v25  ;;  %v4476_v45 = vadd.f32 %v4444_v26, %v4389_v53  ;;  %v4737_v11 = vadd.f32 %v8827_v6, %v4698_v3  ;;  %v4771_v20 = vmax.f32 %v4739_v37, 0.0  ;;  %v4703_v58 = vmul.f32 %v8812_v18, %v4664_v10 }
 0x310   : > { %v6332_v29 = vpop.f32.mrf.mxu0  ;;  %v4662_v38 = vld [vmem:[#allocation3 + $0xa0] sm:$0xff] }
 0x311   : > { %4508 = vst.msk [vmem:[#allocation3 + $0xc0] sm:$0xff] %vm1712_vm0, %v4476_v45  ;;  %v4479_v5 = vadd.f32 %v6332_v29, %v4447_v42  ;;  %v4769_v21 = vmax.f32 %v4737_v11, 0.0  ;;  %v4701_v19 = vmul.f32 %v8812_v18, %v4662_v38  ;;  %v4793_v31 = vpack.c.bf16 %v4771_v20, %v4770_v43 }
 0x312   : > { %v4392_v54 = vpop.f32.mrf.mxu0  ;;  %v4665_v50 = vld [vmem:[#allocation3 + $0xb8] sm:$0xff]  ;;  %v4742_v46 = vadd.f32 %v8827_v6, %v4703_v58 }
 0x313   : > { %4511 = vst.msk [vmem:[#allocation3 + $0xd8] sm:$0xff] %vm1712_vm0, %v4479_v5  ;;  %v4477_v23 = vadd.f32 %v4445_v40, %v4392_v54  ;;  %v4792_v47 = vpack.c.bf16 %v4769_v21, %v4768_v8  ;;  %v4704_v52 = vmul.f32 %v8812_v18, %v4665_v50  ;;  %v4740_v32 = vadd.f32 %v8827_v6, %v4701_v19 }
 0x314   : > { %v6335_v27 = vpop.f32.mrf.mxu0  ;;  %v4663_v44 = vld [vmem:[#allocation3 + $0xa8] sm:$0xff]  ;;  %v4774_v51 = vmax.f32 %v4742_v46, 0.0 }
 0x315   : > { %4509 = vst.msk [vmem:[#allocation3 + $0xc8] sm:$0xff] %vm1712_vm0, %v4477_v23  ;;  %v4482_v63 = vadd.f32 %v6335_v27, %v4450_v56  ;;  %6357 = vmatprep.mubr.msk.bf16.mxu1 %vm1712_vm0, %v4792_v47  ;;  %v4702_v13 = vmul.f32 %v8812_v18, %v4663_v44  ;;  %v4743_v59 = vadd.f32 %v8827_v6, %v4704_v52  ;;  %v4772_v57 = vmax.f32 %v4740_v32, 0.0  ;;  %v5272_v32 = vpop.permute.xlu0 %5271 }
 0x316   : > { %v4405_v49 = vpop.f32.mrf.mxu0  ;;  %6358 = vmatmul.mubr.msk.bf16.gmra.mxu1 %vm1712_vm0, %v4793_v31  ;;  %v4668_v48 = vld [vmem:[#allocation3 + $0xd0] sm:$0xff] }
 0x317   : > { %4514 = vst.msk [vmem:[#allocation3 + $0xf0] sm:$0xff] %vm1712_vm0, %v4482_v63  ;;  %v4480_v35 = vadd.f32 %v4448_v62, %v4405_v49  ;;  %v4741_v22 = vadd.f32 %v8827_v6, %v4702_v13  ;;  %v4775_v30 = vmax.f32 %v4743_v59, 0.0  ;;  %v4707_v39 = vmul.f32 %v8812_v18, %v4668_v48  ;;  %v5274_v59 = vpop.permute.xlu1 %5273 }
 0x318   : > { %v6336_v15 = vpop.f32.mrf.mxu0  ;;  %v4666_v60 = vld [vmem:[#allocation3 + $0xc0] sm:$0xff] }
 0x319   : > { %4512 = vst.msk [vmem:[#allocation3 + $0xe0] sm:$0xff] %vm1712_vm0, %v4480_v35  ;;  %v4483_v14 = vadd.f32 %v6336_v15, %v4451_v61  ;;  %v4773_v16 = vmax.f32 %v4741_v22, 0.0  ;;  %v4705_v36 = vmul.f32 %v8812_v18, %v4666_v60  ;;  %v4795_v9 = vpack.c.bf16 %v4775_v30, %v4774_v51  ;;  %v5276_v49 = vpop.permute.xlu0 %5275 }
 0x31a   : > { %v4408_v24 = vpop.f32.mrf.mxu0  ;;  %v4669_v1 = vld [vmem:[#allocation3 + $0xd8] sm:$0xff]  ;;  %v4746_v34 = vadd.f32 %v8827_v6, %v4707_v39 }
 0x31b   : > { %4515 = vst.msk [vmem:[#allocation3 + $0xf8] sm:$0xff] %vm1712_vm0, %v4483_v14  ;;  %v4481_v41 = vadd.f32 %v4449_v7, %v4408_v24  ;;  %v4794_v0 = vpack.c.bf16 %v4773_v16, %v4772_v57  ;;  %v4708_v12 = vmul.f32 %v8812_v18, %v4669_v1  ;;  %v4744_v55 = vadd.f32 %v8827_v6, %v4705_v36  ;;  %v5278_v46 = vpop.permute.xlu1 %5277 }
 0x31c   : > { %v4667_v28 = vld [vmem:[#allocation3 + $0xc8] sm:$0xff]  ;;  %v4778_v45 = vmax.f32 %v4746_v34, 0.0 }
 0x31d   : > { %4513 = vst.msk [vmem:[#allocation3 + $0xe8] sm:$0xff] %vm1712_vm0, %v4481_v41  ;;  %6361 = vmatprep.mubr.msk.bf16.mxu1 %vm1712_vm0, %v4794_v0  ;;  %v4706_v4 = vmul.f32 %v8812_v18, %v4667_v28  ;;  %v4747_v2 = vadd.f32 %v8827_v6, %v4708_v12  ;;  %v4776_v53 = vmax.f32 %v4744_v55, 0.0  ;;  %v5280_v22 = vpop.permute.xlu0 %5279 }
 0x31e   : > { %6362 = vmatmul.mubr.msk.bf16.gmra.mxu1 %vm1712_vm0, %v4795_v9  ;;  %v4672_v3 = vld [vmem:[#allocation3 + $0xf0] sm:$0xff] }
 0x31f   : > { %v4745_v25 = vadd.f32 %v8827_v6, %v4706_v4  ;;  %v4779_v17 = vmax.f32 %v4747_v2, 0.0  ;;  %v4711_v10 = vmul.f32 %v8812_v18, %v4672_v3  ;;  %v5282_v15 = vpop.permute.xlu1 %5281 }
 0x320   : > { %v4670_v37 = vld [vmem:[#allocation3 + $0xe0] sm:$0xff] }
 0x321   : > { %v4777_v26 = vmax.f32 %v4745_v25, 0.0  ;;  %v4709_v33 = vmul.f32 %v8812_v18, %v4670_v37  ;;  %v4797_v20 = vpack.c.bf16 %v4779_v17, %v4778_v45  ;;  %v4750_v19 = vadd.f32 %v8827_v6, %v4711_v10  ;;  %v5284_v61 = vpop.permute.xlu0 %5283 }
 0x322   : > { %v4673_v11 = vld [vmem:[#allocation3 + $0xf8] sm:$0xff] }
 0x323   : > { %v4796_v29 = vpack.c.bf16 %v4777_v26, %v4776_v53  ;;  %v4712_v42 = vmul.f32 %v8812_v18, %v4673_v11  ;;  %v4748_v8 = vadd.f32 %v8827_v6, %v4709_v33  ;;  %v4782_v58 = vmax.f32 %v4750_v19, 0.0  ;;  %v5286_v60 = vpop.permute.xlu1 %5285 }
 0x324   : > { %v4671_v38 = vld [vmem:[#allocation3 + $0xe8] sm:$0xff] }
 0x325   : > { %6365 = vmatprep.mubr.msk.bf16.mxu1 %vm1712_vm0, %v4796_v29  ;;  %v4710_v5 = vmul.f32 %v8812_v18, %v4671_v38  ;;  %v4751_v21 = vadd.f32 %v8827_v6, %v4712_v42  ;;  %v4780_v43 = vmax.f32 %v4748_v8, 0.0  ;;  %v5288_v57 = vpop.permute.xlu0 %5287 }
 0x326   : > { %6366 = vmatmul.mubr.msk.bf16.gmra.mxu1 %vm1712_vm0, %v4797_v20 }
 0x327   : > { %v4749_v54 = vadd.f32 %v8827_v6, %v4710_v5  ;;  %v4783_v40 = vmax.f32 %v4751_v21, 0.0  ;;  %v6377_v18 = vpop.f32.mrf.mxu0  ;;  %v8959_v36 = vpop.permute.xlu1 %5289 }
 0x329   : > { %v4781_v50 = vmax.f32 %v4749_v54, 0.0  ;;  %v4799_v47 = vpack.c.bf16 %v4783_v40, %v4782_v58  ;;  %v5112_v52 = vpop.f32.mrf.mxu0  ;;  %v5292_v24 = vpop.permute.xlu0 %5291 }
 0x32b   : > { %v4798_v23 = vpack.c.bf16 %v4781_v50, %v4780_v43  ;;  %v6378_v27 = vpop.f32.mrf.mxu0  ;;  %v5294_v1 = vpop.permute.xlu1 %5293 }
 0x32d   : > { %6369 = vmatprep.mubr.msk.bf16.mxu1 %vm1712_vm0, %v4798_v23  ;;  %v5115_v56 = vpop.f32.mrf.mxu0  ;;  %v8968_v12 = vpop.permute.xlu0 %5295 }
 0x32e   : > { %6370 = vmatmul.mubr.msk.bf16.gmra.mxu1 %vm1712_vm0, %v4799_v47 }
 0x32f   : > { %v8976_v3 = vpop.permute.xlu1 %5297 }
 0x331   : > { %v5300_v26 = vpop.permute.xlu0 %5299 }
 0x333   : > { %v6381_v31 = vpop.f32.mrf.mxu0  ;;  %v5302_v38 = vpop.permute.xlu1 %5301 }
 0x335   : > { %v5128_v44 = vpop.f32.mrf.mxu0  ;;  %v5304_v54 = vpop.permute.xlu0 %5303 }
 0x337   : > { %v6382_v63 = vpop.f32.mrf.mxu0 }
 0x339   : > { %v5131_v13 = vpop.f32.mrf.mxu0 }
 0x33c   : > { %v8945_v6 = vpop.f32.mrf.mxu0 }
 0x33e   : > { %v8947_v62 = vpop.f32.mrf.mxu0 }
 0x340   : > { %v8949_v35 = vpop.f32.mrf.mxu0 }
 0x342   : > { %v8951_v48 = vpop.f32.mrf.mxu0 }
 0x345   : > { %v8953_v30 = vpop.f32.mrf.mxu0 }
 0x347   : > { %v8955_v14 = vpop.f32.mrf.mxu0 }
 0x349   : > { %v8957_v16 = vpop.f32.mrf.mxu0 }
 0x34b   : > { %v8962_v7 = vpop.f32.mrf.mxu0 }
 0x34e   : > { %v8966_v41 = vpop.f32.mrf.mxu0 }
 0x350   : > { %v8974_v34 = vpop.f32.mrf.mxu0 }
 0x352   : > { %v8982_v11 = vpop.f32.mrf.mxu0 }
 0x354   : > { %v8988_v21 = vpop.f32.mrf.mxu0 }
 0x356   : > { %v6397_v47 = vpop.f32.mrf.mxu0 }
 0x3b6   : > { %v6343_v51 = vpop.f32.mrf.mxu1 }
 0x3b7   : > { %v5121_v39 = vadd.f32 %v6377_v18, %v6343_v51 }
 0x3b8   : > { %v4899_v0 = vpop.f32.mrf.mxu1 }
 0x3b9   : > { %v5369_v9 = vadd.f32 %v5276_v49, %v5121_v39  ;;  %v5113_v28 = vadd.f32 %v5112_v52, %v4899_v0  ;;  %v5306_v52 = vpop.permute.xlu1 %5305 }
 0x3ba   : > { %v6344_v4 = vpop.f32.mrf.mxu1 }
 0x3bb   : > { %5401 = vst.msk [vmem:[%s8970_s27 + $0x10] sm:$0xff] %vm1712_vm0, %v5369_v9  ;;  %v5367_v55 = vadd.f32 %v5272_v32, %v5113_v28  ;;  %v5124_v2 = vadd.f32 %v6378_v27, %v6344_v4  ;;  %v5192_v32 = vpop.f32.mrf.mxu0 }
 0x3bc   : > { %v4902_v25 = vpop.f32.mrf.mxu1 }
 0x3bd   : > { %5399 = vst.msk [vmem:[%s8970_s27] sm:$0xff] %vm1712_vm0, %v5367_v55  ;;  %v5370_v17 = vadd.f32 %v5278_v46, %v5124_v2  ;;  %v5116_v37 = vadd.f32 %v5115_v56, %v4902_v25 }
 0x3be   : > { %v6347_v53 = vpop.f32.mrf.mxu1 }
 0x3bf   : > { %5402 = vst.msk [vmem:[%s8970_s27 + $0x18] sm:$0xff] %vm1712_vm0, %v5370_v17  ;;  %v5368_v33 = vadd.f32 %v5274_v59, %v5116_v37  ;;  %v5137_v45 = vadd.f32 %v6381_v31, %v6347_v53 }
 0x3c0   : > { %v4915_v10 = vpop.f32.mrf.mxu1 }
 0x3c1   : > { %5400 = vst.msk [vmem:[%s8970_s27 + $0x8] sm:$0xff] %vm1712_vm0, %v5368_v33  ;;  %v5373_v29 = vadd.f32 %v5284_v61, %v5137_v45  ;;  %v5129_v42 = vadd.f32 %v5128_v44, %v4915_v10  ;;  %v5308_v44 = vpop.permute.xlu0 %5307  ;;  %v6398_v61 = vpop.f32.mrf.mxu0 }
 0x3c2   : > { %v6348_v20 = vpop.f32.mrf.mxu1 }
 0x3c3   : > { %5405 = vst.msk [vmem:[%s8970_s27 + $0x30] sm:$0xff] %vm1712_vm0, %v5373_v29  ;;  %v5371_v5 = vadd.f32 %v5280_v22, %v5129_v42  ;;  %v5140_v8 = vadd.f32 %v6382_v63, %v6348_v20  ;;  %v5310_v22 = vpop.permute.xlu1 %5309 }
 0x3c4   : > { %v4918_v19 = vpop.f32.mrf.mxu1 }
 0x3c5   : > { %5403 = vst.msk [vmem:[%s8970_s27 + $0x20] sm:$0xff] %vm1712_vm0, %v5371_v5  ;;  %v5374_v40 = vadd.f32 %v5286_v60, %v5140_v8  ;;  %v5132_v43 = vadd.f32 %v5131_v13, %v4918_v19 }
 0x3c6   : > { %v6351_v50 = vpop.f32.mrf.mxu1 }
 0x3c7   : > { %5406 = vst.msk [vmem:[%s8970_s27 + $0x38] sm:$0xff] %vm1712_vm0, %v5374_v40  ;;  %v5372_v58 = vadd.f32 %v5282_v15, %v5132_v43  ;;  %v5153_v23 = vadd.f32 %v8945_v6, %v6351_v50 }
 0x3c8   : > { %v4931_v18 = vpop.f32.mrf.mxu1 }
 0x3c9   : > { %5404 = vst.msk [vmem:[%s8970_s27 + $0x28] sm:$0xff] %vm1712_vm0, %v5372_v58  ;;  %v5377_v27 = vadd.f32 %v5292_v24, %v5153_v23  ;;  %v5145_v56 = vadd.f32 %v8947_v62, %v4931_v18 }
 0x3ca   : > { %v6352_v31 = vpop.f32.mrf.mxu1 }
 0x3cb   : > { %5409 = vst.msk [vmem:[%s8970_s27 + $0x50] sm:$0xff] %vm1712_vm0, %v5377_v27  ;;  %v5375_v63 = vadd.f32 %v5288_v57, %v5145_v56  ;;  %v5156_v13 = vadd.f32 %v8949_v35, %v6352_v31  ;;  %v5312_v35 = vpop.permute.xlu0 %5311 }
 0x3cc   : > { %v4934_v59 = vpop.f32.mrf.mxu1 }
 0x3cd   : > { %5407 = vst.msk [vmem:[%s8970_s27 + $0x40] sm:$0xff] %vm1712_vm0, %v5375_v63  ;;  %v5378_v6 = vadd.f32 %v5294_v1, %v5156_v13  ;;  %v5148_v49 = vadd.f32 %v8951_v48, %v4934_v59 }
 0x3ce   : > { %v6355_v46 = vpop.f32.mrf.mxu1 }
 0x3cf   : > { %5410 = vst.msk [vmem:[%s8970_s27 + $0x58] sm:$0xff] %vm1712_vm0, %v5378_v6  ;;  %v5376_v62 = vadd.f32 %v8959_v36, %v5148_v49  ;;  %v5169_v15 = vadd.f32 %v8953_v30, %v6355_v46  ;;  %v5195_v36 = vpop.f32.mrf.mxu0  ;;  %v5314_v30 = vpop.permute.xlu1 %5313 }
 0x3d0   : > { %v4947_v60 = vpop.f32.mrf.mxu1  ;;  %v5316_v4 = vpop.permute.xlu0 %5315 }
 0x3d1   : > { %5408 = vst.msk [vmem:[%s8970_s27 + $0x48] sm:$0xff] %vm1712_vm0, %v5376_v62  ;;  %v5381_v57 = vadd.f32 %v5300_v26, %v5169_v15  ;;  %v5161_v24 = vadd.f32 %v8955_v14, %v4947_v60  ;;  %v6401_v55 = vpop.f32.mrf.mxu0 }
 0x3d2   : > { %v6356_v51 = vpop.f32.mrf.mxu1 }
 0x3d3   : > { %5413 = vst.msk [vmem:[%s8970_s27 + $0x70] sm:$0xff] %vm1712_vm0, %v5381_v57  ;;  %v5379_v48 = vadd.f32 %v8968_v12, %v5161_v24  ;;  %v5172_v1 = vadd.f32 %v8957_v16, %v6356_v51  ;;  %v5318_v37 = vpop.permute.xlu1 %5317  ;;  %v5208_v26 = vpop.f32.mrf.mxu0 }
 0x3d4   : > { %v4950_v39 = vpop.f32.mrf.mxu1  ;;  %v5320_v33 = vpop.permute.xlu0 %5319 }
 0x3d5   : > { %5411 = vst.msk [vmem:[%s8970_s27 + $0x60] sm:$0xff] %vm1712_vm0, %v5379_v48  ;;  %v5382_v0 = vadd.f32 %v5302_v38, %v5172_v1  ;;  %v5164_v9 = vadd.f32 %v8962_v7, %v4950_v39  ;;  %v6402_v42 = vpop.f32.mrf.mxu0 }
 0x3d6   : > { %v6359_v28 = vpop.f32.mrf.mxu1 }
 0x3d7   : > { %5414 = vst.msk [vmem:[%s8970_s27 + $0x78] sm:$0xff] %vm1712_vm0, %v5382_v0  ;;  %v5380_v14 = vadd.f32 %v8976_v3, %v5164_v9  ;;  %v5185_v12 = vadd.f32 %v8966_v41, %v6359_v28  ;;  %v5322_v38 = vpop.permute.xlu1 %5321  ;;  %v5211_v40 = vpop.f32.mrf.mxu0 }
 0x3d8   : > { %v4963_v16 = vpop.f32.mrf.mxu1  ;;  %v5324_v19 = vpop.permute.xlu0 %5323 }
 0x3d9   : > { %5412 = vst.msk [vmem:[%s8970_s27 + $0x68] sm:$0xff] %vm1712_vm0, %v5380_v14  ;;  %v5385_v2 = vadd.f32 %v5308_v44, %v5185_v12  ;;  %v5177_v25 = vadd.f32 %v8974_v34, %v4963_v16  ;;  %v6405_v27 = vpop.f32.mrf.mxu0 }
 0x3da   : > { %v6360_v17 = vpop.f32.mrf.mxu1 }
 0x3db   : > { %5417 = vst.msk [vmem:[%s8970_s27 + $0x90] sm:$0xff] %vm1712_vm0, %v5385_v2  ;;  %v5383_v7 = vadd.f32 %v5304_v54, %v5177_v25  ;;  %v5188_v53 = vadd.f32 %v8982_v11, %v6360_v17  ;;  %v5224_v6 = vpop.f32.mrf.mxu0 }
 0x3dc   : > { %v4966_v3 = vpop.f32.mrf.mxu1  ;;  %v5328_v31 = vpop.permute.xlu0 %5327 }
 0x3dd   : > { %5415 = vst.msk [vmem:[%s8970_s27 + $0x80] sm:$0xff] %vm1712_vm0, %v5383_v7  ;;  %v5386_v41 = vadd.f32 %v5310_v22, %v5188_v53  ;;  %v5180_v45 = vadd.f32 %v8988_v21, %v4966_v3  ;;  %v6406_v57 = vpop.f32.mrf.mxu0 }
 0x3de   : > { %v6363_v10 = vpop.f32.mrf.mxu1 }
 0x3df   : > { %5418 = vst.msk [vmem:[%s8970_s27 + $0x98] sm:$0xff] %vm1712_vm0, %v5386_v41  ;;  %v5384_v34 = vadd.f32 %v5306_v52, %v5180_v45  ;;  %v5201_v29 = vadd.f32 %v6397_v47, %v6363_v10  ;;  %v5326_v47 = vpop.permute.xlu1 %5325  ;;  %v5227_v0 = vpop.f32.mrf.mxu0 }
 0x3e0   : > { %v4979_v20 = vpop.f32.mrf.mxu1 }
 0x3e1   : > { %5416 = vst.msk [vmem:[%s8970_s27 + $0x88] sm:$0xff] %vm1712_vm0, %v5384_v34  ;;  %v5389_v11 = vadd.f32 %v5316_v4, %v5201_v29  ;;  %v5193_v5 = vadd.f32 %v5192_v32, %v4979_v20 }
 0x3e2   : > { %v6364_v8 = vpop.f32.mrf.mxu1 }
 0x3e3   : > { %5421 = vst.msk [vmem:[%s8970_s27 + $0xb0] sm:$0xff] %vm1712_vm0, %v5389_v11  ;;  %v5387_v21 = vadd.f32 %v5312_v35, %v5193_v5  ;;  %v5204_v54 = vadd.f32 %v6398_v61, %v6364_v8  ;;  %v5330_v46 = vpop.permute.xlu1 %5329  ;;  %v5332_v61 = vpop.permute.xlu0 %5331 }
 0x3e4   : > { %v4982_v43 = vpop.f32.mrf.mxu1 }
 0x3e5   : > { %5419 = vst.msk [vmem:[%s8970_s27 + $0xa0] sm:$0xff] %vm1712_vm0, %v5387_v21  ;;  %v5390_v50 = vadd.f32 %v5318_v37, %v5204_v54  ;;  %v5196_v58 = vadd.f32 %v5195_v36, %v4982_v43 }
 0x3e6   : > { %v6367_v23 = vpop.f32.mrf.mxu1 }
 0x3e7   : > { %5422 = vst.msk [vmem:[%s8970_s27 + $0xb8] sm:$0xff] %vm1712_vm0, %v5390_v50  ;;  %v5388_v18 = vadd.f32 %v5314_v30, %v5196_v58  ;;  %v5217_v52 = vadd.f32 %v6401_v55, %v6367_v23  ;;  %v5334_v36 = vpop.permute.xlu1 %5333 }
 0x3e8   : > { %v4995_v56 = vpop.f32.mrf.mxu1 }
 0x3e9   : > { %5420 = vst.msk [vmem:[%s8970_s27 + $0xa8] sm:$0xff] %vm1712_vm0, %v5388_v18  ;;  %v5393_v44 = vadd.f32 %v5324_v19, %v5217_v52  ;;  %v5209_v63 = vadd.f32 %v5208_v26, %v4995_v56 }
 0x3ea   : > { %v6368_v13 = vpop.f32.mrf.mxu1 }
 0x3eb   : > { %5425 = vst.msk [vmem:[%s8970_s27 + $0xd0] sm:$0xff] %vm1712_vm0, %v5393_v44  ;;  %v5391_v32 = vadd.f32 %v5320_v33, %v5209_v63  ;;  %v5220_v59 = vadd.f32 %v6402_v42, %v6368_v13 }
 0x3ec   : > { %v4998_v49 = vpop.f32.mrf.mxu1 }
 0x3ed   : > { %5423 = vst.msk [vmem:[%s8970_s27 + $0xc0] sm:$0xff] %vm1712_vm0, %v5391_v32  ;;  %v5394_v22 = vadd.f32 %v5326_v47, %v5220_v59  ;;  %v5212_v62 = vadd.f32 %v5211_v40, %v4998_v49 }
 0x3ee   : > { %v6371_v15 = vpop.f32.mrf.mxu1 }
 0x3ef   : > { %5426 = vst.msk [vmem:[%s8970_s27 + $0xd8] sm:$0xff] %vm1712_vm0, %v5394_v22  ;;  %v5392_v60 = vadd.f32 %v5322_v38, %v5212_v62  ;;  %v5233_v35 = vadd.f32 %v6405_v27, %v6371_v15 }
 0x3f0   : > { %v5011_v24 = vpop.f32.mrf.mxu1 }
 0x3f1   : > { %5424 = vst.msk [vmem:[%s8970_s27 + $0xc8] sm:$0xff] %vm1712_vm0, %v5392_v60  ;;  %v5397_v51 = vadd.f32 %v5332_v61, %v5233_v35  ;;  %v5225_v48 = vadd.f32 %v5224_v6, %v5011_v24 }
 0x3f2   : > { %v6372_v1 = vpop.f32.mrf.mxu1 }
 0x3f3   : > { %5429 = vst.msk [vmem:[%s8970_s27 + $0xf0] sm:$0xff] %vm1712_vm0, %v5397_v51  ;;  %v5395_v39 = vadd.f32 %v5328_v31, %v5225_v48  ;;  %v5236_v30 = vadd.f32 %v6406_v57, %v6372_v1 }
 0x3f4   : > { %v5014_v9 = vpop.f32.mrf.mxu1 }
 0x3f5   : > { %5427 = vst.msk [vmem:[%s8970_s27 + $0xe0] sm:$0xff] %vm1712_vm0, %v5395_v39  ;;  %v5398_v28 = vadd.f32 %v5334_v36, %v5236_v30  ;;  %v5228_v4 = vadd.f32 %v5227_v0, %v5014_v9 }
 0x3f7   : > { %5430 = vst.msk [vmem:[%s8970_s27 + $0xf8] sm:$0xff] %vm1712_vm0, %v5398_v28  ;;  %v5396_v14 = vadd.f32 %v5330_v46, %v5228_v4 }
 0x3f9   : > { %5428 = vst.msk [vmem:[%s8970_s27 + $0xe8] sm:$0xff] %vm1712_vm0, %v5396_v14 }
 0x3fa   : > { %6553 = shalt.err (!%p6550_p3)
}
 0x3fb   : > { %s6554_s18 = scalar_lea.hbm %s9060_s25, 4096  ;;  %s6558_s19 = scalar_lea.hbm %s9125_s14, 8192 }
 0x3fc   : > { %p6555_p4 = scmp.ne.s32.totalorder %s9060_s25, %s6554_s18  ;;  %p6559_p9 = scmp.lt.s32.totalorder %s9060_s25, %s9125_s14 }
 0x3fd   : > { %p6560_p10 = scmp.lt.s32.totalorder %s6558_s19, %s6554_s18 }
 0x3fe   : > { %p6556_p7 = pnand %p6555_p4, %p6722_p5 }
 0x3ff   : > { %p6561_p11 = por %p6560_p10, %p6559_p9 }
 0x400   : > { %p6557_p8 = pneg %p6556_p7 }
 0x402   : > { %p6562_p12 = pnand %p6561_p11, %p6557_p8 }
 0x404   : > { %6565 = shalt.err (!%p6562_p12)
}
 0x405   : > { %s6608_s20 = smov 128   ;;  %s9143_s15 = smov 8  }
 0x406   : > { %6412 = dma.vmem_to_hbm [thread:$0]  (%p6722_p5), %s9064_s28, 4096, %s9060_s25, %s9070_s17, %s6608_s20, %s6608_s20, %s9143_s15  }
 0x407 PF: > { %p6418_p13 = scmp.ge.s32.totalorder %s6600_s16, 2  ;;  %s5460_s1 = sand.u32 1, %s6588_s29  }
 0x408   : > { %s5461_s21 = scalar_lea.sflag [#allocation5], %s5460_s1 }
 0x409   : > { %p6415_p0 = pnand %p6418_p13, %p6726_p6 }
 0x40b   : > { %p6416_p1 = pneg %p6415_p0 }
 0x40d   : > { %6583 = dma.done.wait (%p6416_p1), %s5461_s21, 4096  }
 0x40e   : > { %6585 = vsyncadd (%p6416_p1), %s5461_s21, 4294963200  ;;  %s9144_s16 = sld [smem:[#allocation8_spill]]  ;;  %s9147_s29 = smov %s6592_s30 }
 0x40f   : > { %s9145_s23 = sld [smem:[#allocation7_spill]] }
 0x410   : > { %s9146_s15 = sld [smem:[#allocation9_spill]] }
 0x414   : > { %p24_p2 = scmp.ge.s32.totalorder %s9144_s16, 4  }
 0x415   : > { %s9148_s30 = smov %s9145_s23 }
 0x416   :  { %26 = sbr.rel (!%p24_p2) target bundleno = 5 (0x5), region = 133 }
 0x41b   :  { %5466 = vsyncpa [#allocation5], 1 }
 0x41c   :  { %5468 = vsyncpa [#allocation5 + $0x1], 1 }

</bundles_post_ra>
